<compile_context>
chip_gen: v6e
topology: v6e:2x2x1
jax: 0.10.0
libtpu: 0.0.40
codegen_flags: <defaults>
</compile_context>

<pallas_src>
import functools

import jax
import jax.numpy as jnp
import numpy as np
from jax.experimental import pallas as pl
from jax.experimental.pallas import tpu as pltpu

F7 = 7        # EMG feature channels
NODES = 8     # electrodes (graph nodes / NCHW H dim)
HEADS = 4     # MHA heads inside the GNN
GP = 128      # lane-padded width of every intermediate activation group
NC_PAD = 128  # lane-padded classifier width


def _vmem_spec():
    return pl.BlockSpec(memory_space=pltpu.MemorySpace.VMEM)


# ---------------------------------------------------------------------------
# Fused forward kernel
# ---------------------------------------------------------------------------
def _fused_forward_kernel(
        x0_ref, band1_ref, bn1_ref,
        g1a_ref, g1w_ref, g1b_ref,
        g2a_ref, g2w_ref, g2b_ref, spbn_ref,
        band2_ref, bn2_ref, band3_ref,
        b1_ref, b2_ref, b3_ref,
        w1_hbm, w2_hbm, w3_hbm,
        o_ref,
        w1_vmem, w2_vmem, w3_vmem, h3_scr, flat_scr, dma_sem):
    B = o_ref.shape[0]
    M = x0_ref.shape[0]          # B * NODES

    # Prefetch the three MLP weights from HBM; the DMAs overlap with the
    # temporal / GNN compute and are waited on right before each matmul.
    cp1 = pltpu.make_async_copy(w1_hbm, w1_vmem, dma_sem.at[0])
    cp2 = pltpu.make_async_copy(w2_hbm, w2_vmem, dma_sem.at[1])
    cp3 = pltpu.make_async_copy(w3_hbm, w3_vmem, dma_sem.at[2])
    cp1.start()
    cp2.start()
    cp3.start()

    def temporal(x, band, bn):
        # Banded im2col matmul: a single MXU push produces the three GLU groups,
        # each padded to a 128-lane-aligned slab.
        y = jnp.dot(x, band, preferred_element_type=jnp.float32)
        h = (y[:, GP:2 * GP] + y[:, 0:GP]) * jax.nn.sigmoid(y[:, 2 * GP:3 * GP])
        if bn is not None:                       # fused eval-mode BatchNorm2d(7)
            h = h * bn[0:1, :] + bn[1:2, :]
        return h

    def gnn(x, a_stack, w_gnn, b_gnn):
        # indicator == 2: averaged MHA attention weights -> bmm -> W_gnn -> +B_gnn.
        # Q/K projections folded into per-head bilinear forms (head slabs are
        # 128-lane aligned), scores computed with batched einsums.
        x3 = x.reshape(B, NODES, GP)
        y = jnp.dot(x, a_stack, preferred_element_type=jnp.float32)   # (M, HEADS*GP)
        y3 = y.reshape(B, NODES, HEADS * GP)
        attn = jnp.zeros((B, NODES, NODES), jnp.float32)
        for h in range(HEADS):                                        # 4 static iters
            s = jnp.einsum('bqd,bkd->bqk', y3[:, :, h * GP:(h + 1) * GP], x3,
                           preferred_element_type=jnp.float32)
            s = s - jnp.max(s, axis=-1, keepdims=True)
            p = jnp.exp(s)
            attn = attn + p * pl.reciprocal(
                jnp.sum(p, axis=-1, keepdims=True), approx=True)
        attn = attn * (1.0 / HEADS)
        agg = jnp.einsum('bqk,bkd->bqd', attn, x3,
                         preferred_element_type=jnp.float32)          # (B, NODES, GP)
        out = jnp.dot(agg.reshape(M, GP), w_gnn,
                      preferred_element_type=jnp.float32)
        return out + b_gnn[...]

    # ---- Temp1 + ARMBANDGNN.batch1 ------------------------------------------------
    h1 = temporal(x0_ref[...], band1_ref[...], bn1_ref[...])          # (M,128) 112 live

    # ---- Spat1: gnn -> relu -> gnn2 -> BN(T) -> relu -> residual --------------------
    g1 = jnp.maximum(gnn(h1, g1a_ref[...], g1w_ref[...], g1b_ref[...]), 0.0)
    g2 = gnn(g1, g2a_ref[...], g2w_ref[...], g2b_ref[...])
    sp = spbn_ref[...]
    g2 = jnp.maximum(g2 * sp[0:1, :] + sp[1:2, :], 0.0)
    hs = h1 + g2

    # ---- Temp2 + ARMBANDGNN.batch2, Temp3 -------------------------------------------
    h2 = temporal(hs, band2_ref[...], bn2_ref[...])                   # (M,128) 84 live
    h3 = temporal(h2, band3_ref[...], None)                           # (M,128) 56 live

    # ---- flatten rows (b, electrode) into lane blocks of one (B, 1024) MLP input ----
    # 16 single-sublane, full-lane-width stores (128-lane aligned offsets): negligible.
    h3_scr[...] = h3
    for b in range(B):
        for hh in range(NODES):
            flat_scr[b, hh * GP:(hh + 1) * GP] = h3_scr[b * NODES + hh, :]
    flat = flat_scr[...].astype(jnp.bfloat16)

    # ---- MLP head (bf16 weights, f32 accumulate) + log_softmax ----------------------
    cp1.wait()
    z1 = jnp.dot(flat, w1_vmem[...],
                 preferred_element_type=jnp.float32) + b1_ref[...]
    z1 = jnp.maximum(z1, 0.0)                                         # drop1: eval id
    cp2.wait()
    z2 = jnp.dot(z1.astype(jnp.bfloat16), w2_vmem[...],
                 preferred_element_type=jnp.float32) + b2_ref[...]
    z2 = jnp.maximum(z2, 0.0)                                         # drop2: eval id
    cp3.wait()
    # Lane-dense (128-wide) classifier: pad logits carry bias -1e30, so their exp()
    # is exactly 0 and the log-softmax over the real classes is unchanged.
    logits = jnp.dot(z2, w3_vmem[...],
                     preferred_element_type=jnp.float32) + b3_ref[...]
    mx = jnp.max(logits, axis=-1, keepdims=True)
    sh = logits - mx
    lse = jnp.log(jnp.sum(jnp.exp(sh), axis=-1, keepdims=True))
    o_ref[...] = (sh - lse).astype(o_ref.dtype)


# ---------------------------------------------------------------------------
# Wrapper
# ---------------------------------------------------------------------------
def armbandgnn_forward(x, P):
    B, first, H, Fdim = x.shape
    assert H == NODES and Fdim == F7
    M = B * NODES
    # torch: x = transpose(1, 3) -> NCHW.  Kernel layout: rows = (batch, electrode),
    # lanes = (time, feature).  One tiny XLA transpose feeds the fused kernel.
    x0 = jnp.transpose(x, (0, 2, 1, 3)).reshape(M, first * F7)
    nc = P['nc']
    out = pl.pallas_call(
        _fused_forward_kernel,
        out_shape=jax.ShapeDtypeStruct((B, NC_PAD), jnp.float32),
        in_specs=([_vmem_spec() for _ in range(16)]
                  + [pl.BlockSpec(memory_space=pl.ANY)] * 3),
        out_specs=_vmem_spec(),
        scratch_shapes=[
            pltpu.VMEM((NODES * GP, 512), jnp.bfloat16),   # MLP1 weight landing buffer
            pltpu.VMEM((512, 2048), jnp.bfloat16),         # MLP2 weight landing buffer
            pltpu.VMEM((2048, NC_PAD), jnp.float32),       # MLP3 weight landing buffer
            pltpu.VMEM((M, GP), jnp.float32),              # Temp3 output staging
            pltpu.VMEM((B, NODES * GP), jnp.float32),      # flattened MLP input
            pltpu.SemaphoreType.DMA((3,)),
        ],
        compiler_params=pltpu.CompilerParams(vmem_limit_bytes=32 * 1024 * 1024),
    )(x0, P['band1'], P['bn1'],
      P['g1_a'], P['g1_w'], P['g1_b'],
      P['g2_a'], P['g2_w'], P['g2_b'], P['spbn'],
      P['band2'], P['bn2'], P['band3'],
      P['b1'], P['b2'], P['b3'],
      P['w1'], P['w2'], P['w3'])
    return out[:, :nc]


# ---------------------------------------------------------------------------
# Parameter init: deterministic random weights, pre-packed into the kernel layout.
# ---------------------------------------------------------------------------
def _xavier(key, shape, fan_in, fan_out):
    bound = float(np.sqrt(6.0 / (fan_in + fan_out)))
    return jax.random.uniform(key, shape, jnp.float32, -bound, bound)


def init_params(key, channels, num_classes):
    first, second, third, fourth = channels
    assert second == 16, "Spat1 is hard-wired to Spatial_layer(16, 16)"
    assert second * F7 <= GP and third * F7 <= GP and fourth * F7 <= GP
    assert num_classes <= NC_PAD
    keys = iter(jax.random.split(key, 64))
    P = {}

    # temporal conv (WT_input + WT_glu) -> banded matmul weight (im2col folded in)
    def temporal_band(lin, lout, in_rows):
        k = lin - lout + 1
        w_in = np.asarray(_xavier(next(keys), (F7, F7, 1, k), F7 * k, F7 * k))
        w_glu = np.asarray(_xavier(next(keys), (2 * F7, F7, 1, k), F7 * k, 2 * F7 * k))
        wc = np.concatenate([w_in, w_glu], axis=0)[:, :, 0, :]          # (21, 7, k)
        band = np.zeros((in_rows, 3 * GP), np.float32)
        for kw in range(k):
            for g in range(3):
                sub = wc[g * F7:(g + 1) * F7, :, kw].T                  # (in_c, out_c)
                for lo in range(lout):
                    band[(lo + kw) * F7:(lo + kw) * F7 + F7,
                         g * GP + lo * F7:g * GP + lo * F7 + F7] = sub
        return jnp.asarray(band)

    # eval-mode BatchNorm folded to per-column scale/shift vectors (pads = 0)
    def bn_channel7(lout):                      # BatchNorm2d(7) over the feature dim
        gamma = np.asarray(jax.random.uniform(next(keys), (F7,), jnp.float32, 0.5, 1.5))
        beta = np.asarray(jax.random.uniform(next(keys), (F7,), jnp.float32, -0.1, 0.1))
        scale = gamma / np.sqrt(1.0 + 1e-5)     # running_var = 1, running_mean = 0
        vec = np.zeros((2, GP), np.float32)
        vec[0, :lout * F7] = np.tile(scale, lout)
        vec[1, :lout * F7] = np.tile(beta, lout)
        return jnp.asarray(vec)

    def bn_channelT(t):                         # BatchNorm2d(T) over the time dim
        gamma = np.asarray(jax.random.uniform(next(keys), (t,), jnp.float32, 0.5, 1.5))
        beta = np.asarray(jax.random.uniform(next(keys), (t,), jnp.float32, -0.1, 0.1))
        scale = gamma / np.sqrt(1.0 + 1e-5)
        vec = np.zeros((2, GP), np.float32)
        vec[0, :t * F7] = np.repeat(scale, F7)
        vec[1, :t * F7] = np.repeat(beta, F7)
        return jnp.asarray(vec)

    # GNN (indicator == 2): fold the MHA Q/K projections (zero bias at init) into
    # per-head bilinear forms stacked along 128-lane-aligned slabs.
    def gnn_pack(e):
        in_proj = np.asarray(_xavier(next(keys), (3 * e, e), e, 3 * e))
        wq, wk = in_proj[:e], in_proj[e:2 * e]
        hd = e // HEADS
        a_stack = np.zeros((GP, HEADS * GP), np.float32)
        for h in range(HEADS):
            a_h = wq[h * hd:(h + 1) * hd].T @ wk[h * hd:(h + 1) * hd] / np.sqrt(hd)
            a_stack[:e, h * GP:h * GP + e] = a_h
        w_gnn = np.asarray(_xavier(next(keys), (e, e), e, e))
        b_gnn = np.asarray(jax.random.normal(next(keys), (e,), jnp.float32))
        w_pad = np.zeros((GP, GP), np.float32); w_pad[:e, :e] = w_gnn
        b_pad = np.zeros((1, GP), np.float32); b_pad[0, :e] = b_gnn
        return jnp.asarray(a_stack), jnp.asarray(w_pad), jnp.asarray(b_pad)

    P['band1'] = temporal_band(first, second, first * F7)
    P['bn1'] = bn_channel7(second)               # ARMBANDGNN.batch1
    P['g1_a'], P['g1_w'], P['g1_b'] = gnn_pack(second * F7)
    P['g2_a'], P['g2_w'], P['g2_b'] = gnn_pack(second * F7)
    P['spbn'] = bn_channelT(second)              # Spatial_layer.batch2 (over T=16)
    P['band2'] = temporal_band(second, third, GP)
    P['bn2'] = bn_channel7(third)                # ARMBANDGNN.batch2
    P['band3'] = temporal_band(third, fourth, GP)

    # MLP head: lane-padded weights, rows permuted from the torch NCHW flatten order
    # (c*64 + h*8 + l) to the kernel's (h*128 + l*7 + c) flatten order.
    d_in = fourth * NODES * F7                   # torch: fourth * 56
    w1 = np.asarray(_xavier(next(keys), (500, d_in), d_in, 500))       # torch (out, in)
    b1 = np.asarray(jax.random.uniform(next(keys), (500,), jnp.float32, -0.05, 0.05))
    w1_t = w1.T.reshape(F7, NODES, fourth, 500)                        # [c, h, l, o]
    w1_t = np.transpose(w1_t, (1, 2, 0, 3)).reshape(NODES, fourth * F7, 500)
    w1_my = np.zeros((NODES, GP, 512), np.float32)
    w1_my[:, :fourth * F7, :500] = w1_t
    P['w1'] = jnp.asarray(w1_my.reshape(NODES * GP, 512), dtype=jnp.bfloat16)
    b1_my = np.zeros((1, 512), np.float32); b1_my[0, :500] = b1
    P['b1'] = jnp.asarray(b1_my)

    w2 = np.asarray(_xavier(next(keys), (2000, 500), 500, 2000))
    b2 = np.asarray(jax.random.uniform(next(keys), (2000,), jnp.float32, -0.05, 0.05))
    w2_my = np.zeros((512, 2048), np.float32); w2_my[:500, :2000] = w2.T
    P['w2'] = jnp.asarray(w2_my, dtype=jnp.bfloat16)
    b2_my = np.zeros((1, 2048), np.float32); b2_my[0, :2000] = b2
    P['b2'] = jnp.asarray(b2_my)

    # MLP3 lane-padded to 128 classes: pad weight cols = 0, pad bias = -1e30 so the
    # padded logits vanish under exp() inside the fused log-softmax.
    w3 = np.asarray(_xavier(next(keys), (num_classes, 2000), 2000, num_classes))
    b3 = np.asarray(jax.random.uniform(next(keys), (num_classes,), jnp.float32,
                                       -0.05, 0.05))
    w3_my = np.zeros((2048, NC_PAD), np.float32); w3_my[:2000, :num_classes] = w3.T
    P['w3'] = jnp.asarray(w3_my)
    b3_my = np.full((1, NC_PAD), -1e30, np.float32); b3_my[0, :num_classes] = b3
    P['b3'] = jnp.asarray(b3_my)
    P['nc'] = int(num_classes)
    return P


if __name__ == "__main__":
    channels = (20, 16, 12, 8)   # first, second(=16 required by Spat1), third, fourth
    num_classes = 7
    B = 2

    key = jax.random.PRNGKey(0)
    kx, kp = jax.random.split(key)
    x = jax.random.normal(kx, (B, channels[0], NODES, F7), jnp.float32)
    P = init_params(kp, channels, num_classes)

    fwd = jax.jit(functools.partial(armbandgnn_forward, P=P))
    out = fwd(x)
    jax.block_until_ready(out)
    assert out.shape == (B, num_classes), out.shape
    assert bool(jnp.all(jnp.isfinite(out)))
    print("KERNEL_OK")
</pallas_src>

<mosaic_0001>
module attributes {stable_mosaic.version = 11 : i64} {
  func.func @_fused_forward_kernel(%arg0: memref<16x140xf32, #tpu.memory_space<vmem>>, %arg1: memref<140x384xf32, #tpu.memory_space<vmem>>, %arg2: memref<2x128xf32, #tpu.memory_space<vmem>>, %arg3: memref<128x512xf32, #tpu.memory_space<vmem>>, %arg4: memref<128x128xf32, #tpu.memory_space<vmem>>, %arg5: memref<1x128xf32, #tpu.memory_space<vmem>>, %arg6: memref<128x512xf32, #tpu.memory_space<vmem>>, %arg7: memref<128x128xf32, #tpu.memory_space<vmem>>, %arg8: memref<1x128xf32, #tpu.memory_space<vmem>>, %arg9: memref<2x128xf32, #tpu.memory_space<vmem>>, %arg10: memref<128x384xf32, #tpu.memory_space<vmem>>, %arg11: memref<2x128xf32, #tpu.memory_space<vmem>>, %arg12: memref<128x384xf32, #tpu.memory_space<vmem>>, %arg13: memref<1x512xf32, #tpu.memory_space<vmem>>, %arg14: memref<1x2048xf32, #tpu.memory_space<vmem>>, %arg15: memref<1x128xf32, #tpu.memory_space<vmem>>, %arg16: memref<1024x512xbf16, #tpu.memory_space<any>>, %arg17: memref<512x2048xbf16, #tpu.memory_space<any>>, %arg18: memref<2048x128xf32, #tpu.memory_space<any>>, %arg19: memref<2x128xf32, #tpu.memory_space<vmem>>, %arg20: memref<1024x512xbf16, #tpu.memory_space<vmem>>, %arg21: memref<512x2048xbf16, #tpu.memory_space<vmem>>, %arg22: memref<2048x128xf32, #tpu.memory_space<vmem>>, %arg23: memref<16x128xf32, #tpu.memory_space<vmem>>, %arg24: memref<2x1024xf32, #tpu.memory_space<vmem>>, %arg25: memref<3x!tpu.dma_semaphore, #tpu.memory_space<semaphore_mem>>) attributes {dimension_semantics = [], scalar_prefetch = 0 : i64, scratch_operands = 6 : i64, tpu.core_type = #tpu.core_type<tc>} {
    %c0_i32 = arith.constant 0 : i32
    %0 = tpu.memref_slice %arg25[%c0_i32] : memref<3x!tpu.dma_semaphore, #tpu.memory_space<semaphore_mem>> -> memref<1x!tpu.dma_semaphore, #tpu.memory_space<semaphore_mem>>
    %1 = tpu.memref_squeeze %0 : memref<1x!tpu.dma_semaphore, #tpu.memory_space<semaphore_mem>> -> memref<!tpu.dma_semaphore, #tpu.memory_space<semaphore_mem>>
    tpu.enqueue_dma source(%arg16 : memref<1024x512xbf16, #tpu.memory_space<any>>) target(%arg20 : memref<1024x512xbf16, #tpu.memory_space<vmem>>) target_semaphore(%1 : memref<!tpu.dma_semaphore, #tpu.memory_space<semaphore_mem>>)
    %c1_i32 = arith.constant 1 : i32
    %2 = tpu.memref_slice %arg25[%c1_i32] : memref<3x!tpu.dma_semaphore, #tpu.memory_space<semaphore_mem>> -> memref<1x!tpu.dma_semaphore, #tpu.memory_space<semaphore_mem>>
    %3 = tpu.memref_squeeze %2 : memref<1x!tpu.dma_semaphore, #tpu.memory_space<semaphore_mem>> -> memref<!tpu.dma_semaphore, #tpu.memory_space<semaphore_mem>>
    tpu.enqueue_dma source(%arg17 : memref<512x2048xbf16, #tpu.memory_space<any>>) target(%arg21 : memref<512x2048xbf16, #tpu.memory_space<vmem>>) target_semaphore(%3 : memref<!tpu.dma_semaphore, #tpu.memory_space<semaphore_mem>>)
    %c2_i32 = arith.constant 2 : i32
    %4 = tpu.memref_slice %arg25[%c2_i32] : memref<3x!tpu.dma_semaphore, #tpu.memory_space<semaphore_mem>> -> memref<1x!tpu.dma_semaphore, #tpu.memory_space<semaphore_mem>>
    %5 = tpu.memref_squeeze %4 : memref<1x!tpu.dma_semaphore, #tpu.memory_space<semaphore_mem>> -> memref<!tpu.dma_semaphore, #tpu.memory_space<semaphore_mem>>
    tpu.enqueue_dma source(%arg18 : memref<2048x128xf32, #tpu.memory_space<any>>) target(%arg22 : memref<2048x128xf32, #tpu.memory_space<vmem>>) target_semaphore(%5 : memref<!tpu.dma_semaphore, #tpu.memory_space<semaphore_mem>>)
    %c0 = arith.constant 0 : index
    %c0_0 = arith.constant 0 : index
    %6 = vector.load %arg0[%c0, %c0_0] : memref<16x140xf32, #tpu.memory_space<vmem>>, vector<16x140xf32>
    %c0_1 = arith.constant 0 : index
    %c0_2 = arith.constant 0 : index
    %7 = vector.load %arg1[%c0_1, %c0_2] : memref<140x384xf32, #tpu.memory_space<vmem>>, vector<140x384xf32>
    %c0_3 = arith.constant 0 : index
    %c0_4 = arith.constant 0 : index
    %8 = vector.load %arg2[%c0_3, %c0_4] : memref<2x128xf32, #tpu.memory_space<vmem>>, vector<2x128xf32>
    %cst = arith.constant dense<0.000000e+00> : vector<16x384xf32>
    %9 = tpu.matmul %6, %7, %cst {dimension_numbers = #tpu.dot_dimension_numbers<[1], [0], [0], [1], [0, 0, 1, 1], [], []>} : vector<16x140xf32>, vector<140x384xf32>, vector<16x384xf32> -> vector<16x384xf32>
    %10 = vector.extract_strided_slice %9 {offsets = [0, 128], sizes = [16, 128], strides = [1, 1]} : vector<16x384xf32> to vector<16x128xf32>
    %11 = vector.extract_strided_slice %9 {offsets = [0, 0], sizes = [16, 128], strides = [1, 1]} : vector<16x384xf32> to vector<16x128xf32>
    %12 = arith.addf %10, %11 : vector<16x128xf32>
    %13 = vector.extract_strided_slice %9 {offsets = [0, 256], sizes = [16, 128], strides = [1, 1]} : vector<16x384xf32> to vector<16x128xf32>
    %14 = arith.negf %13 : vector<16x128xf32>
    %15 = math.exp %14 : vector<16x128xf32>
    %cst_5 = arith.constant 1.000000e+00 : f32
    %16 = vector.broadcast %cst_5 : f32 to vector<16x128xf32>
    %17 = arith.addf %16, %15 : vector<16x128xf32>
    %18 = arith.divf %16, %17 : vector<16x128xf32>
    %19 = arith.mulf %12, %18 : vector<16x128xf32>
    %20 = vector.extract_strided_slice %8 {offsets = [0, 0], sizes = [1, 128], strides = [1, 1]} : vector<2x128xf32> to vector<1x128xf32>
    %21 = vector.broadcast %20 : vector<1x128xf32> to vector<16x128xf32>
    %22 = arith.mulf %19, %21 : vector<16x128xf32>
    %23 = vector.extract_strided_slice %8 {offsets = [1, 0], sizes = [1, 128], strides = [1, 1]} : vector<2x128xf32> to vector<1x128xf32>
    %24 = vector.broadcast %23 : vector<1x128xf32> to vector<16x128xf32>
    %25 = arith.addf %22, %24 : vector<16x128xf32>
    %c0_6 = arith.constant 0 : index
    %c0_7 = arith.constant 0 : index
    %26 = vector.load %arg3[%c0_6, %c0_7] : memref<128x512xf32, #tpu.memory_space<vmem>>, vector<128x512xf32>
    %c0_8 = arith.constant 0 : index
    %c0_9 = arith.constant 0 : index
    %27 = vector.load %arg4[%c0_8, %c0_9] : memref<128x128xf32, #tpu.memory_space<vmem>>, vector<128x128xf32>
    %c0_10 = arith.constant 0 : index
    %c0_11 = arith.constant 0 : index
    %28 = vector.load %arg5[%c0_10, %c0_11] : memref<1x128xf32, #tpu.memory_space<vmem>>, vector<1x128xf32>
    %29 = vector.shape_cast %25 : vector<16x128xf32> to vector<2x8x128xf32>
    %cst_12 = arith.constant dense<0.000000e+00> : vector<16x512xf32>
    %30 = tpu.matmul %25, %26, %cst_12 {dimension_numbers = #tpu.dot_dimension_numbers<[1], [0], [0], [1], [0, 0, 1, 1], [], []>} : vector<16x128xf32>, vector<128x512xf32>, vector<16x512xf32> -> vector<16x512xf32>
    %31 = vector.shape_cast %30 : vector<16x512xf32> to vector<2x8x512xf32>
    %cst_13 = arith.constant 0.000000e+00 : f32
    %32 = vector.broadcast %cst_13 : f32 to vector<2x8x8xf32>
    %33 = vector.extract_strided_slice %31 {offsets = [0, 0, 0], sizes = [2, 8, 128], strides = [1, 1, 1]} : vector<2x8x512xf32> to vector<2x8x128xf32>
    "tpu.trace_start"() <{level = 10 : i32, message = "bqd,bkd->bqk"}> : () -> ()
    %cst_14 = arith.constant dense<0.000000e+00> : vector<2x8x8xf32>
    %34 = tpu.matmul %33, %29, %cst_14 {dimension_numbers = #tpu.dot_dimension_numbers<[2], [2], [1], [1], [0, 0, 0, 1, 1, 1], [0], [0]>} : vector<2x8x128xf32>, vector<2x8x128xf32>, vector<2x8x8xf32> -> vector<2x8x8xf32>
    "tpu.trace_stop"() : () -> ()
    %cst_15 = arith.constant dense<0xFF800000> : vector<2x8xf32>
    %35 = vector.multi_reduction <maximumf>, %34, %cst_15 [2] : vector<2x8x8xf32> to vector<2x8xf32>
    %36 = vector.shape_cast %35 : vector<2x8xf32> to vector<2x8x1xf32>
    %37 = vector.broadcast %36 : vector<2x8x1xf32> to vector<2x8x8xf32>
    %38 = arith.subf %34, %37 : vector<2x8x8xf32>
    %39 = math.exp %38 : vector<2x8x8xf32>
    %cst_16 = arith.constant dense<0.000000e+00> : vector<2x8xf32>
    %40 = vector.multi_reduction <add>, %39, %cst_16 [2] : vector<2x8x8xf32> to vector<2x8xf32>
    %41 = vector.shape_cast %40 : vector<2x8xf32> to vector<2x8x1xf32>
    %42 = tpu.reciprocal %41 {approx = true} : vector<2x8x1xf32> -> vector<2x8x1xf32>
    %43 = vector.broadcast %42 : vector<2x8x1xf32> to vector<2x8x8xf32>
    %44 = arith.mulf %39, %43 : vector<2x8x8xf32>
    %45 = arith.addf %32, %44 : vector<2x8x8xf32>
    %46 = vector.extract_strided_slice %31 {offsets = [0, 0, 128], sizes = [2, 8, 128], strides = [1, 1, 1]} : vector<2x8x512xf32> to vector<2x8x128xf32>
    "tpu.trace_start"() <{level = 10 : i32, message = "bqd,bkd->bqk"}> : () -> ()
    %cst_17 = arith.constant dense<0.000000e+00> : vector<2x8x8xf32>
    %47 = tpu.matmul %46, %29, %cst_17 {dimension_numbers = #tpu.dot_dimension_numbers<[2], [2], [1], [1], [0, 0, 0, 1, 1, 1], [0], [0]>} : vector<2x8x128xf32>, vector<2x8x128xf32>, vector<2x8x8xf32> -> vector<2x8x8xf32>
    "tpu.trace_stop"() : () -> ()
    %cst_18 = arith.constant dense<0xFF800000> : vector<2x8xf32>
    %48 = vector.multi_reduction <maximumf>, %47, %cst_18 [2] : vector<2x8x8xf32> to vector<2x8xf32>
    %49 = vector.shape_cast %48 : vector<2x8xf32> to vector<2x8x1xf32>
    %50 = vector.broadcast %49 : vector<2x8x1xf32> to vector<2x8x8xf32>
    %51 = arith.subf %47, %50 : vector<2x8x8xf32>
    %52 = math.exp %51 : vector<2x8x8xf32>
    %cst_19 = arith.constant dense<0.000000e+00> : vector<2x8xf32>
    %53 = vector.multi_reduction <add>, %52, %cst_19 [2] : vector<2x8x8xf32> to vector<2x8xf32>
    %54 = vector.shape_cast %53 : vector<2x8xf32> to vector<2x8x1xf32>
    %55 = tpu.reciprocal %54 {approx = true} : vector<2x8x1xf32> -> vector<2x8x1xf32>
    %56 = vector.broadcast %55 : vector<2x8x1xf32> to vector<2x8x8xf32>
    %57 = arith.mulf %52, %56 : vector<2x8x8xf32>
    %58 = arith.addf %45, %57 : vector<2x8x8xf32>
    %59 = vector.extract_strided_slice %31 {offsets = [0, 0, 256], sizes = [2, 8, 128], strides = [1, 1, 1]} : vector<2x8x512xf32> to vector<2x8x128xf32>
    "tpu.trace_start"() <{level = 10 : i32, message = "bqd,bkd->bqk"}> : () -> ()
    %cst_20 = arith.constant dense<0.000000e+00> : vector<2x8x8xf32>
    %60 = tpu.matmul %59, %29, %cst_20 {dimension_numbers = #tpu.dot_dimension_numbers<[2], [2], [1], [1], [0, 0, 0, 1, 1, 1], [0], [0]>} : vector<2x8x128xf32>, vector<2x8x128xf32>, vector<2x8x8xf32> -> vector<2x8x8xf32>
    "tpu.trace_stop"() : () -> ()
    %cst_21 = arith.constant dense<0xFF800000> : vector<2x8xf32>
    %61 = vector.multi_reduction <maximumf>, %60, %cst_21 [2] : vector<2x8x8xf32> to vector<2x8xf32>
    %62 = vector.shape_cast %61 : vector<2x8xf32> to vector<2x8x1xf32>
    %63 = vector.broadcast %62 : vector<2x8x1xf32> to vector<2x8x8xf32>
    %64 = arith.subf %60, %63 : vector<2x8x8xf32>
    %65 = math.exp %64 : vector<2x8x8xf32>
    %cst_22 = arith.constant dense<0.000000e+00> : vector<2x8xf32>
    %66 = vector.multi_reduction <add>, %65, %cst_22 [2] : vector<2x8x8xf32> to vector<2x8xf32>
    %67 = vector.shape_cast %66 : vector<2x8xf32> to vector<2x8x1xf32>
    %68 = tpu.reciprocal %67 {approx = true} : vector<2x8x1xf32> -> vector<2x8x1xf32>
    %69 = vector.broadcast %68 : vector<2x8x1xf32> to vector<2x8x8xf32>
    %70 = arith.mulf %65, %69 : vector<2x8x8xf32>
    %71 = arith.addf %58, %70 : vector<2x8x8xf32>
    %72 = vector.extract_strided_slice %31 {offsets = [0, 0, 384], sizes = [2, 8, 128], strides = [1, 1, 1]} : vector<2x8x512xf32> to vector<2x8x128xf32>
    "tpu.trace_start"() <{level = 10 : i32, message = "bqd,bkd->bqk"}> : () -> ()
    %cst_23 = arith.constant dense<0.000000e+00> : vector<2x8x8xf32>
    %73 = tpu.matmul %72, %29, %cst_23 {dimension_numbers = #tpu.dot_dimension_numbers<[2], [2], [1], [1], [0, 0, 0, 1, 1, 1], [0], [0]>} : vector<2x8x128xf32>, vector<2x8x128xf32>, vector<2x8x8xf32> -> vector<2x8x8xf32>
    "tpu.trace_stop"() : () -> ()
    %cst_24 = arith.constant dense<0xFF800000> : vector<2x8xf32>
    %74 = vector.multi_reduction <maximumf>, %73, %cst_24 [2] : vector<2x8x8xf32> to vector<2x8xf32>
    %75 = vector.shape_cast %74 : vector<2x8xf32> to vector<2x8x1xf32>
    %76 = vector.broadcast %75 : vector<2x8x1xf32> to vector<2x8x8xf32>
    %77 = arith.subf %73, %76 : vector<2x8x8xf32>
    %78 = math.exp %77 : vector<2x8x8xf32>
    %cst_25 = arith.constant dense<0.000000e+00> : vector<2x8xf32>
    %79 = vector.multi_reduction <add>, %78, %cst_25 [2] : vector<2x8x8xf32> to vector<2x8xf32>
    %80 = vector.shape_cast %79 : vector<2x8xf32> to vector<2x8x1xf32>
    %81 = tpu.reciprocal %80 {approx = true} : vector<2x8x1xf32> -> vector<2x8x1xf32>
    %82 = vector.broadcast %81 : vector<2x8x1xf32> to vector<2x8x8xf32>
    %83 = arith.mulf %78, %82 : vector<2x8x8xf32>
    %84 = arith.addf %71, %83 : vector<2x8x8xf32>
    %cst_26 = arith.constant 2.500000e-01 : f32
    %85 = vector.broadcast %cst_26 : f32 to vector<2x8x8xf32>
    %86 = arith.mulf %84, %85 : vector<2x8x8xf32>
    "tpu.trace_start"() <{level = 10 : i32, message = "bqk,bkd->bqd"}> : () -> ()
    %cst_27 = arith.constant dense<0.000000e+00> : vector<2x8x128xf32>
    %87 = tpu.matmul %86, %29, %cst_27 {dimension_numbers = #tpu.dot_dimension_numbers<[2], [1], [1], [2], [0, 0, 0, 1, 1, 2], [0], [0]>} : vector<2x8x8xf32>, vector<2x8x128xf32>, vector<2x8x128xf32> -> vector<2x8x128xf32>
    "tpu.trace_stop"() : () -> ()
    %88 = vector.shape_cast %87 : vector<2x8x128xf32> to vector<16x128xf32>
    %cst_28 = arith.constant dense<0.000000e+00> : vector<16x128xf32>
    %89 = tpu.matmul %88, %27, %cst_28 {dimension_numbers = #tpu.dot_dimension_numbers<[1], [0], [0], [1], [0, 0, 1, 1], [], []>} : vector<16x128xf32>, vector<128x128xf32>, vector<16x128xf32> -> vector<16x128xf32>
    %90 = vector.broadcast %28 : vector<1x128xf32> to vector<16x128xf32>
    %91 = arith.addf %89, %90 : vector<16x128xf32>
    %cst_29 = arith.constant 0.000000e+00 : f32
    %92 = vector.broadcast %cst_29 : f32 to vector<16x128xf32>
    %93 = arith.maximumf %91, %92 : vector<16x128xf32>
    %c0_30 = arith.constant 0 : index
    %c0_31 = arith.constant 0 : index
    %94 = vector.load %arg6[%c0_30, %c0_31] : memref<128x512xf32, #tpu.memory_space<vmem>>, vector<128x512xf32>
    %c0_32 = arith.constant 0 : index
    %c0_33 = arith.constant 0 : index
    %95 = vector.load %arg7[%c0_32, %c0_33] : memref<128x128xf32, #tpu.memory_space<vmem>>, vector<128x128xf32>
    %c0_34 = arith.constant 0 : index
    %c0_35 = arith.constant 0 : index
    %96 = vector.load %arg8[%c0_34, %c0_35] : memref<1x128xf32, #tpu.memory_space<vmem>>, vector<1x128xf32>
    %97 = vector.shape_cast %93 : vector<16x128xf32> to vector<2x8x128xf32>
    %cst_36 = arith.constant dense<0.000000e+00> : vector<16x512xf32>
    %98 = tpu.matmul %93, %94, %cst_36 {dimension_numbers = #tpu.dot_dimension_numbers<[1], [0], [0], [1], [0, 0, 1, 1], [], []>} : vector<16x128xf32>, vector<128x512xf32>, vector<16x512xf32> -> vector<16x512xf32>
    %99 = vector.shape_cast %98 : vector<16x512xf32> to vector<2x8x512xf32>
    %cst_37 = arith.constant 0.000000e+00 : f32
    %100 = vector.broadcast %cst_37 : f32 to vector<2x8x8xf32>
    %101 = vector.extract_strided_slice %99 {offsets = [0, 0, 0], sizes = [2, 8, 128], strides = [1, 1, 1]} : vector<2x8x512xf32> to vector<2x8x128xf32>
    "tpu.trace_start"() <{level = 10 : i32, message = "bqd,bkd->bqk"}> : () -> ()
    %cst_38 = arith.constant dense<0.000000e+00> : vector<2x8x8xf32>
    %102 = tpu.matmul %101, %97, %cst_38 {dimension_numbers = #tpu.dot_dimension_numbers<[2], [2], [1], [1], [0, 0, 0, 1, 1, 1], [0], [0]>} : vector<2x8x128xf32>, vector<2x8x128xf32>, vector<2x8x8xf32> -> vector<2x8x8xf32>
    "tpu.trace_stop"() : () -> ()
    %cst_39 = arith.constant dense<0xFF800000> : vector<2x8xf32>
    %103 = vector.multi_reduction <maximumf>, %102, %cst_39 [2] : vector<2x8x8xf32> to vector<2x8xf32>
    %104 = vector.shape_cast %103 : vector<2x8xf32> to vector<2x8x1xf32>
    %105 = vector.broadcast %104 : vector<2x8x1xf32> to vector<2x8x8xf32>
    %106 = arith.subf %102, %105 : vector<2x8x8xf32>
    %107 = math.exp %106 : vector<2x8x8xf32>
    %cst_40 = arith.constant dense<0.000000e+00> : vector<2x8xf32>
    %108 = vector.multi_reduction <add>, %107, %cst_40 [2] : vector<2x8x8xf32> to vector<2x8xf32>
    %109 = vector.shape_cast %108 : vector<2x8xf32> to vector<2x8x1xf32>
    %110 = tpu.reciprocal %109 {approx = true} : vector<2x8x1xf32> -> vector<2x8x1xf32>
    %111 = vector.broadcast %110 : vector<2x8x1xf32> to vector<2x8x8xf32>
    %112 = arith.mulf %107, %111 : vector<2x8x8xf32>
    %113 = arith.addf %100, %112 : vector<2x8x8xf32>
    %114 = vector.extract_strided_slice %99 {offsets = [0, 0, 128], sizes = [2, 8, 128], strides = [1, 1, 1]} : vector<2x8x512xf32> to vector<2x8x128xf32>
    "tpu.trace_start"() <{level = 10 : i32, message = "bqd,bkd->bqk"}> : () -> ()
    %cst_41 = arith.constant dense<0.000000e+00> : vector<2x8x8xf32>
    %115 = tpu.matmul %114, %97, %cst_41 {dimension_numbers = #tpu.dot_dimension_numbers<[2], [2], [1], [1], [0, 0, 0, 1, 1, 1], [0], [0]>} : vector<2x8x128xf32>, vector<2x8x128xf32>, vector<2x8x8xf32> -> vector<2x8x8xf32>
    "tpu.trace_stop"() : () -> ()
    %cst_42 = arith.constant dense<0xFF800000> : vector<2x8xf32>
    %116 = vector.multi_reduction <maximumf>, %115, %cst_42 [2] : vector<2x8x8xf32> to vector<2x8xf32>
    %117 = vector.shape_cast %116 : vector<2x8xf32> to vector<2x8x1xf32>
    %118 = vector.broadcast %117 : vector<2x8x1xf32> to vector<2x8x8xf32>
    %119 = arith.subf %115, %118 : vector<2x8x8xf32>
    %120 = math.exp %119 : vector<2x8x8xf32>
    %cst_43 = arith.constant dense<0.000000e+00> : vector<2x8xf32>
    %121 = vector.multi_reduction <add>, %120, %cst_43 [2] : vector<2x8x8xf32> to vector<2x8xf32>
    %122 = vector.shape_cast %121 : vector<2x8xf32> to vector<2x8x1xf32>
    %123 = tpu.reciprocal %122 {approx = true} : vector<2x8x1xf32> -> vector<2x8x1xf32>
    %124 = vector.broadcast %123 : vector<2x8x1xf32> to vector<2x8x8xf32>
    %125 = arith.mulf %120, %124 : vector<2x8x8xf32>
    %126 = arith.addf %113, %125 : vector<2x8x8xf32>
    %127 = vector.extract_strided_slice %99 {offsets = [0, 0, 256], sizes = [2, 8, 128], strides = [1, 1, 1]} : vector<2x8x512xf32> to vector<2x8x128xf32>
    "tpu.trace_start"() <{level = 10 : i32, message = "bqd,bkd->bqk"}> : () -> ()
    %cst_44 = arith.constant dense<0.000000e+00> : vector<2x8x8xf32>
    %128 = tpu.matmul %127, %97, %cst_44 {dimension_numbers = #tpu.dot_dimension_numbers<[2], [2], [1], [1], [0, 0, 0, 1, 1, 1], [0], [0]>} : vector<2x8x128xf32>, vector<2x8x128xf32>, vector<2x8x8xf32> -> vector<2x8x8xf32>
    "tpu.trace_stop"() : () -> ()
    %cst_45 = arith.constant dense<0xFF800000> : vector<2x8xf32>
    %129 = vector.multi_reduction <maximumf>, %128, %cst_45 [2] : vector<2x8x8xf32> to vector<2x8xf32>
    %130 = vector.shape_cast %129 : vector<2x8xf32> to vector<2x8x1xf32>
    %131 = vector.broadcast %130 : vector<2x8x1xf32> to vector<2x8x8xf32>
    %132 = arith.subf %128, %131 : vector<2x8x8xf32>
    %133 = math.exp %132 : vector<2x8x8xf32>
    %cst_46 = arith.constant dense<0.000000e+00> : vector<2x8xf32>
    %134 = vector.multi_reduction <add>, %133, %cst_46 [2] : vector<2x8x8xf32> to vector<2x8xf32>
    %135 = vector.shape_cast %134 : vector<2x8xf32> to vector<2x8x1xf32>
    %136 = tpu.reciprocal %135 {approx = true} : vector<2x8x1xf32> -> vector<2x8x1xf32>
    %137 = vector.broadcast %136 : vector<2x8x1xf32> to vector<2x8x8xf32>
    %138 = arith.mulf %133, %137 : vector<2x8x8xf32>
    %139 = arith.addf %126, %138 : vector<2x8x8xf32>
    %140 = vector.extract_strided_slice %99 {offsets = [0, 0, 384], sizes = [2, 8, 128], strides = [1, 1, 1]} : vector<2x8x512xf32> to vector<2x8x128xf32>
    "tpu.trace_start"() <{level = 10 : i32, message = "bqd,bkd->bqk"}> : () -> ()
    %cst_47 = arith.constant dense<0.000000e+00> : vector<2x8x8xf32>
    %141 = tpu.matmul %140, %97, %cst_47 {dimension_numbers = #tpu.dot_dimension_numbers<[2], [2], [1], [1], [0, 0, 0, 1, 1, 1], [0], [0]>} : vector<2x8x128xf32>, vector<2x8x128xf32>, vector<2x8x8xf32> -> vector<2x8x8xf32>
    "tpu.trace_stop"() : () -> ()
    %cst_48 = arith.constant dense<0xFF800000> : vector<2x8xf32>
    %142 = vector.multi_reduction <maximumf>, %141, %cst_48 [2] : vector<2x8x8xf32> to vector<2x8xf32>
    %143 = vector.shape_cast %142 : vector<2x8xf32> to vector<2x8x1xf32>
    %144 = vector.broadcast %143 : vector<2x8x1xf32> to vector<2x8x8xf32>
    %145 = arith.subf %141, %144 : vector<2x8x8xf32>
    %146 = math.exp %145 : vector<2x8x8xf32>
    %cst_49 = arith.constant dense<0.000000e+00> : vector<2x8xf32>
    %147 = vector.multi_reduction <add>, %146, %cst_49 [2] : vector<2x8x8xf32> to vector<2x8xf32>
    %148 = vector.shape_cast %147 : vector<2x8xf32> to vector<2x8x1xf32>
    %149 = tpu.reciprocal %148 {approx = true} : vector<2x8x1xf32> -> vector<2x8x1xf32>
    %150 = vector.broadcast %149 : vector<2x8x1xf32> to vector<2x8x8xf32>
    %151 = arith.mulf %146, %150 : vector<2x8x8xf32>
    %152 = arith.addf %139, %151 : vector<2x8x8xf32>
    %cst_50 = arith.constant 2.500000e-01 : f32
    %153 = vector.broadcast %cst_50 : f32 to vector<2x8x8xf32>
    %154 = arith.mulf %152, %153 : vector<2x8x8xf32>
    "tpu.trace_start"() <{level = 10 : i32, message = "bqk,bkd->bqd"}> : () -> ()
    %cst_51 = arith.constant dense<0.000000e+00> : vector<2x8x128xf32>
    %155 = tpu.matmul %154, %97, %cst_51 {dimension_numbers = #tpu.dot_dimension_numbers<[2], [1], [1], [2], [0, 0, 0, 1, 1, 2], [0], [0]>} : vector<2x8x8xf32>, vector<2x8x128xf32>, vector<2x8x128xf32> -> vector<2x8x128xf32>
    "tpu.trace_stop"() : () -> ()
    %156 = vector.shape_cast %155 : vector<2x8x128xf32> to vector<16x128xf32>
    %cst_52 = arith.constant dense<0.000000e+00> : vector<16x128xf32>
    %157 = tpu.matmul %156, %95, %cst_52 {dimension_numbers = #tpu.dot_dimension_numbers<[1], [0], [0], [1], [0, 0, 1, 1], [], []>} : vector<16x128xf32>, vector<128x128xf32>, vector<16x128xf32> -> vector<16x128xf32>
    %158 = vector.broadcast %96 : vector<1x128xf32> to vector<16x128xf32>
    %159 = arith.addf %157, %158 : vector<16x128xf32>
    %c0_53 = arith.constant 0 : index
    %c0_54 = arith.constant 0 : index
    %160 = vector.load %arg9[%c0_53, %c0_54] : memref<2x128xf32, #tpu.memory_space<vmem>>, vector<2x128xf32>
    %161 = vector.extract_strided_slice %160 {offsets = [0, 0], sizes = [1, 128], strides = [1, 1]} : vector<2x128xf32> to vector<1x128xf32>
    %162 = vector.broadcast %161 : vector<1x128xf32> to vector<16x128xf32>
    %163 = arith.mulf %159, %162 : vector<16x128xf32>
    %164 = vector.extract_strided_slice %160 {offsets = [1, 0], sizes = [1, 128], strides = [1, 1]} : vector<2x128xf32> to vector<1x128xf32>
    %165 = vector.broadcast %164 : vector<1x128xf32> to vector<16x128xf32>
    %166 = arith.addf %163, %165 : vector<16x128xf32>
    %cst_55 = arith.constant 0.000000e+00 : f32
    %167 = vector.broadcast %cst_55 : f32 to vector<16x128xf32>
    %168 = arith.maximumf %166, %167 : vector<16x128xf32>
    %169 = arith.addf %25, %168 : vector<16x128xf32>
    %c0_56 = arith.constant 0 : index
    %c0_57 = arith.constant 0 : index
    %170 = vector.load %arg10[%c0_56, %c0_57] : memref<128x384xf32, #tpu.memory_space<vmem>>, vector<128x384xf32>
    %c0_58 = arith.constant 0 : index
    %c0_59 = arith.constant 0 : index
    %171 = vector.load %arg11[%c0_58, %c0_59] : memref<2x128xf32, #tpu.memory_space<vmem>>, vector<2x128xf32>
    %cst_60 = arith.constant dense<0.000000e+00> : vector<16x384xf32>
    %172 = tpu.matmul %169, %170, %cst_60 {dimension_numbers = #tpu.dot_dimension_numbers<[1], [0], [0], [1], [0, 0, 1, 1], [], []>} : vector<16x128xf32>, vector<128x384xf32>, vector<16x384xf32> -> vector<16x384xf32>
    %173 = vector.extract_strided_slice %172 {offsets = [0, 128], sizes = [16, 128], strides = [1, 1]} : vector<16x384xf32> to vector<16x128xf32>
    %174 = vector.extract_strided_slice %172 {offsets = [0, 0], sizes = [16, 128], strides = [1, 1]} : vector<16x384xf32> to vector<16x128xf32>
    %175 = arith.addf %173, %174 : vector<16x128xf32>
    %176 = vector.extract_strided_slice %172 {offsets = [0, 256], sizes = [16, 128], strides = [1, 1]} : vector<16x384xf32> to vector<16x128xf32>
    %177 = arith.negf %176 : vector<16x128xf32>
    %178 = math.exp %177 : vector<16x128xf32>
    %cst_61 = arith.constant 1.000000e+00 : f32
    %179 = vector.broadcast %cst_61 : f32 to vector<16x128xf32>
    %180 = arith.addf %179, %178 : vector<16x128xf32>
    %181 = arith.divf %179, %180 : vector<16x128xf32>
    %182 = arith.mulf %175, %181 : vector<16x128xf32>
    %183 = vector.extract_strided_slice %171 {offsets = [0, 0], sizes = [1, 128], strides = [1, 1]} : vector<2x128xf32> to vector<1x128xf32>
    %184 = vector.broadcast %183 : vector<1x128xf32> to vector<16x128xf32>
    %185 = arith.mulf %182, %184 : vector<16x128xf32>
    %186 = vector.extract_strided_slice %171 {offsets = [1, 0], sizes = [1, 128], strides = [1, 1]} : vector<2x128xf32> to vector<1x128xf32>
    %187 = vector.broadcast %186 : vector<1x128xf32> to vector<16x128xf32>
    %188 = arith.addf %185, %187 : vector<16x128xf32>
    %c0_62 = arith.constant 0 : index
    %c0_63 = arith.constant 0 : index
    %189 = vector.load %arg12[%c0_62, %c0_63] : memref<128x384xf32, #tpu.memory_space<vmem>>, vector<128x384xf32>
    %cst_64 = arith.constant dense<0.000000e+00> : vector<16x384xf32>
    %190 = tpu.matmul %188, %189, %cst_64 {dimension_numbers = #tpu.dot_dimension_numbers<[1], [0], [0], [1], [0, 0, 1, 1], [], []>} : vector<16x128xf32>, vector<128x384xf32>, vector<16x384xf32> -> vector<16x384xf32>
    %191 = vector.extract_strided_slice %190 {offsets = [0, 128], sizes = [16, 128], strides = [1, 1]} : vector<16x384xf32> to vector<16x128xf32>
    %192 = vector.extract_strided_slice %190 {offsets = [0, 0], sizes = [16, 128], strides = [1, 1]} : vector<16x384xf32> to vector<16x128xf32>
    %193 = arith.addf %191, %192 : vector<16x128xf32>
    %194 = vector.extract_strided_slice %190 {offsets = [0, 256], sizes = [16, 128], strides = [1, 1]} : vector<16x384xf32> to vector<16x128xf32>
    %195 = arith.negf %194 : vector<16x128xf32>
    %196 = math.exp %195 : vector<16x128xf32>
    %cst_65 = arith.constant 1.000000e+00 : f32
    %197 = vector.broadcast %cst_65 : f32 to vector<16x128xf32>
    %198 = arith.addf %197, %196 : vector<16x128xf32>
    %199 = arith.divf %197, %198 : vector<16x128xf32>
    %200 = arith.mulf %193, %199 : vector<16x128xf32>
    %c0_66 = arith.constant 0 : index
    %c0_67 = arith.constant 0 : index
    %201 = vector.load %arg23[%c0_66, %c0_67] : memref<16x128xf32, #tpu.memory_space<vmem>>, vector<16x128xf32>
    tpu.vector_store %arg23[%c0_66, %c0_67], %200 {strides = array<i32>} : memref<16x128xf32, #tpu.memory_space<vmem>>, vector<16x128xf32>,
    %c0_68 = arith.constant 0 : index
    %c0_69 = arith.constant 0 : index
    %202 = vector.load %arg23[%c0_68, %c0_69] : memref<16x128xf32, #tpu.memory_space<vmem>>, vector<1x128xf32>
    %203 = vector.shape_cast %202 : vector<1x128xf32> to vector<128xf32>
    %c0_70 = arith.constant 0 : index
    %c0_71 = arith.constant 0 : index
    %204 = vector.load %arg24[%c0_70, %c0_71] : memref<2x1024xf32, #tpu.memory_space<vmem>>, vector<1x128xf32>
    %205 = vector.shape_cast %204 : vector<1x128xf32> to vector<128xf32>
    %206 = vector.shape_cast %203 : vector<128xf32> to vector<1x128xf32>
    tpu.vector_store %arg24[%c0_70, %c0_71], %206 {strides = array<i32>} : memref<2x1024xf32, #tpu.memory_space<vmem>>, vector<1x128xf32>,
    %c1 = arith.constant 1 : index
    %c0_72 = arith.constant 0 : index
    %207 = vector.load %arg23[%c1, %c0_72] : memref<16x128xf32, #tpu.memory_space<vmem>>, vector<1x128xf32>
    %208 = vector.shape_cast %207 : vector<1x128xf32> to vector<128xf32>
    %c0_73 = arith.constant 0 : index
    %c128 = arith.constant 128 : index
    %209 = vector.load %arg24[%c0_73, %c128] : memref<2x1024xf32, #tpu.memory_space<vmem>>, vector<1x128xf32>
    %210 = vector.shape_cast %209 : vector<1x128xf32> to vector<128xf32>
    %211 = vector.shape_cast %208 : vector<128xf32> to vector<1x128xf32>
    tpu.vector_store %arg24[%c0_73, %c128], %211 {strides = array<i32>} : memref<2x1024xf32, #tpu.memory_space<vmem>>, vector<1x128xf32>,
    %c2 = arith.constant 2 : index
    %c0_74 = arith.constant 0 : index
    %212 = vector.load %arg23[%c2, %c0_74] : memref<16x128xf32, #tpu.memory_space<vmem>>, vector<1x128xf32>
    %213 = vector.shape_cast %212 : vector<1x128xf32> to vector<128xf32>
    %c0_75 = arith.constant 0 : index
    %c256 = arith.constant 256 : index
    %214 = vector.load %arg24[%c0_75, %c256] : memref<2x1024xf32, #tpu.memory_space<vmem>>, vector<1x128xf32>
    %215 = vector.shape_cast %214 : vector<1x128xf32> to vector<128xf32>
    %216 = vector.shape_cast %213 : vector<128xf32> to vector<1x128xf32>
    tpu.vector_store %arg24[%c0_75, %c256], %216 {strides = array<i32>} : memref<2x1024xf32, #tpu.memory_space<vmem>>, vector<1x128xf32>,
    %c3 = arith.constant 3 : index
    %c0_76 = arith.constant 0 : index
    %217 = vector.load %arg23[%c3, %c0_76] : memref<16x128xf32, #tpu.memory_space<vmem>>, vector<1x128xf32>
    %218 = vector.shape_cast %217 : vector<1x128xf32> to vector<128xf32>
    %c0_77 = arith.constant 0 : index
    %c384 = arith.constant 384 : index
    %219 = vector.load %arg24[%c0_77, %c384] : memref<2x1024xf32, #tpu.memory_space<vmem>>, vector<1x128xf32>
    %220 = vector.shape_cast %219 : vector<1x128xf32> to vector<128xf32>
    %221 = vector.shape_cast %218 : vector<128xf32> to vector<1x128xf32>
    tpu.vector_store %arg24[%c0_77, %c384], %221 {strides = array<i32>} : memref<2x1024xf32, #tpu.memory_space<vmem>>, vector<1x128xf32>,
    %c4 = arith.constant 4 : index
    %c0_78 = arith.constant 0 : index
    %222 = vector.load %arg23[%c4, %c0_78] : memref<16x128xf32, #tpu.memory_space<vmem>>, vector<1x128xf32>
    %223 = vector.shape_cast %222 : vector<1x128xf32> to vector<128xf32>
    %c0_79 = arith.constant 0 : index
    %c512 = arith.constant 512 : index
    %224 = vector.load %arg24[%c0_79, %c512] : memref<2x1024xf32, #tpu.memory_space<vmem>>, vector<1x128xf32>
    %225 = vector.shape_cast %224 : vector<1x128xf32> to vector<128xf32>
    %226 = vector.shape_cast %223 : vector<128xf32> to vector<1x128xf32>
    tpu.vector_store %arg24[%c0_79, %c512], %226 {strides = array<i32>} : memref<2x1024xf32, #tpu.memory_space<vmem>>, vector<1x128xf32>,
    %c5 = arith.constant 5 : index
    %c0_80 = arith.constant 0 : index
    %227 = vector.load %arg23[%c5, %c0_80] : memref<16x128xf32, #tpu.memory_space<vmem>>, vector<1x128xf32>
    %228 = vector.shape_cast %227 : vector<1x128xf32> to vector<128xf32>
    %c0_81 = arith.constant 0 : index
    %c640 = arith.constant 640 : index
    %229 = vector.load %arg24[%c0_81, %c640] : memref<2x1024xf32, #tpu.memory_space<vmem>>, vector<1x128xf32>
    %230 = vector.shape_cast %229 : vector<1x128xf32> to vector<128xf32>
    %231 = vector.shape_cast %228 : vector<128xf32> to vector<1x128xf32>
    tpu.vector_store %arg24[%c0_81, %c640], %231 {strides = array<i32>} : memref<2x1024xf32, #tpu.memory_space<vmem>>, vector<1x128xf32>,
    %c6 = arith.constant 6 : index
    %c0_82 = arith.constant 0 : index
    %232 = vector.load %arg23[%c6, %c0_82] : memref<16x128xf32, #tpu.memory_space<vmem>>, vector<1x128xf32>
    %233 = vector.shape_cast %232 : vector<1x128xf32> to vector<128xf32>
    %c0_83 = arith.constant 0 : index
    %c768 = arith.constant 768 : index
    %234 = vector.load %arg24[%c0_83, %c768] : memref<2x1024xf32, #tpu.memory_space<vmem>>, vector<1x128xf32>
    %235 = vector.shape_cast %234 : vector<1x128xf32> to vector<128xf32>
    %236 = vector.shape_cast %233 : vector<128xf32> to vector<1x128xf32>
    tpu.vector_store %arg24[%c0_83, %c768], %236 {strides = array<i32>} : memref<2x1024xf32, #tpu.memory_space<vmem>>, vector<1x128xf32>,
    %c7 = arith.constant 7 : index
    %c0_84 = arith.constant 0 : index
    %237 = vector.load %arg23[%c7, %c0_84] : memref<16x128xf32, #tpu.memory_space<vmem>>, vector<1x128xf32>
    %238 = vector.shape_cast %237 : vector<1x128xf32> to vector<128xf32>
    %c0_85 = arith.constant 0 : index
    %c896 = arith.constant 896 : index
    %239 = vector.load %arg24[%c0_85, %c896] : memref<2x1024xf32, #tpu.memory_space<vmem>>, vector<1x128xf32>
    %240 = vector.shape_cast %239 : vector<1x128xf32> to vector<128xf32>
    %241 = vector.shape_cast %238 : vector<128xf32> to vector<1x128xf32>
    tpu.vector_store %arg24[%c0_85, %c896], %241 {strides = array<i32>} : memref<2x1024xf32, #tpu.memory_space<vmem>>, vector<1x128xf32>,
    %c8 = arith.constant 8 : index
    %c0_86 = arith.constant 0 : index
    %242 = vector.load %arg23[%c8, %c0_86] : memref<16x128xf32, #tpu.memory_space<vmem>>, vector<1x128xf32>
    %243 = vector.shape_cast %242 : vector<1x128xf32> to vector<128xf32>
    %c1_87 = arith.constant 1 : index
    %c0_88 = arith.constant 0 : index
    %244 = vector.load %arg24[%c1_87, %c0_88] : memref<2x1024xf32, #tpu.memory_space<vmem>>, vector<1x128xf32>
    %245 = vector.shape_cast %244 : vector<1x128xf32> to vector<128xf32>
    %246 = vector.shape_cast %243 : vector<128xf32> to vector<1x128xf32>
    tpu.vector_store %arg24[%c1_87, %c0_88], %246 {strides = array<i32>} : memref<2x1024xf32, #tpu.memory_space<vmem>>, vector<1x128xf32>,
    %c9 = arith.constant 9 : index
    %c0_89 = arith.constant 0 : index
    %247 = vector.load %arg23[%c9, %c0_89] : memref<16x128xf32, #tpu.memory_space<vmem>>, vector<1x128xf32>
    %248 = vector.shape_cast %247 : vector<1x128xf32> to vector<128xf32>
    %c1_90 = arith.constant 1 : index
    %c128_91 = arith.constant 128 : index
    %249 = vector.load %arg24[%c1_90, %c128_91] : memref<2x1024xf32, #tpu.memory_space<vmem>>, vector<1x128xf32>
    %250 = vector.shape_cast %249 : vector<1x128xf32> to vector<128xf32>
    %251 = vector.shape_cast %248 : vector<128xf32> to vector<1x128xf32>
    tpu.vector_store %arg24[%c1_90, %c128_91], %251 {strides = array<i32>} : memref<2x1024xf32, #tpu.memory_space<vmem>>, vector<1x128xf32>,
    %c10 = arith.constant 10 : index
    %c0_92 = arith.constant 0 : index
    %252 = vector.load %arg23[%c10, %c0_92] : memref<16x128xf32, #tpu.memory_space<vmem>>, vector<1x128xf32>
    %253 = vector.shape_cast %252 : vector<1x128xf32> to vector<128xf32>
    %c1_93 = arith.constant 1 : index
    %c256_94 = arith.constant 256 : index
    %254 = vector.load %arg24[%c1_93, %c256_94] : memref<2x1024xf32, #tpu.memory_space<vmem>>, vector<1x128xf32>
    %255 = vector.shape_cast %254 : vector<1x128xf32> to vector<128xf32>
    %256 = vector.shape_cast %253 : vector<128xf32> to vector<1x128xf32>
    tpu.vector_store %arg24[%c1_93, %c256_94], %256 {strides = array<i32>} : memref<2x1024xf32, #tpu.memory_space<vmem>>, vector<1x128xf32>,
    %c11 = arith.constant 11 : index
    %c0_95 = arith.constant 0 : index
    %257 = vector.load %arg23[%c11, %c0_95] : memref<16x128xf32, #tpu.memory_space<vmem>>, vector<1x128xf32>
    %258 = vector.shape_cast %257 : vector<1x128xf32> to vector<128xf32>
    %c1_96 = arith.constant 1 : index
    %c384_97 = arith.constant 384 : index
    %259 = vector.load %arg24[%c1_96, %c384_97] : memref<2x1024xf32, #tpu.memory_space<vmem>>, vector<1x128xf32>
    %260 = vector.shape_cast %259 : vector<1x128xf32> to vector<128xf32>
    %261 = vector.shape_cast %258 : vector<128xf32> to vector<1x128xf32>
    tpu.vector_store %arg24[%c1_96, %c384_97], %261 {strides = array<i32>} : memref<2x1024xf32, #tpu.memory_space<vmem>>, vector<1x128xf32>,
    %c12 = arith.constant 12 : index
    %c0_98 = arith.constant 0 : index
    %262 = vector.load %arg23[%c12, %c0_98] : memref<16x128xf32, #tpu.memory_space<vmem>>, vector<1x128xf32>
    %263 = vector.shape_cast %262 : vector<1x128xf32> to vector<128xf32>
    %c1_99 = arith.constant 1 : index
    %c512_100 = arith.constant 512 : index
    %264 = vector.load %arg24[%c1_99, %c512_100] : memref<2x1024xf32, #tpu.memory_space<vmem>>, vector<1x128xf32>
    %265 = vector.shape_cast %264 : vector<1x128xf32> to vector<128xf32>
    %266 = vector.shape_cast %263 : vector<128xf32> to vector<1x128xf32>
    tpu.vector_store %arg24[%c1_99, %c512_100], %266 {strides = array<i32>} : memref<2x1024xf32, #tpu.memory_space<vmem>>, vector<1x128xf32>,
    %c13 = arith.constant 13 : index
    %c0_101 = arith.constant 0 : index
    %267 = vector.load %arg23[%c13, %c0_101] : memref<16x128xf32, #tpu.memory_space<vmem>>, vector<1x128xf32>
    %268 = vector.shape_cast %267 : vector<1x128xf32> to vector<128xf32>
    %c1_102 = arith.constant 1 : index
    %c640_103 = arith.constant 640 : index
    %269 = vector.load %arg24[%c1_102, %c640_103] : memref<2x1024xf32, #tpu.memory_space<vmem>>, vector<1x128xf32>
    %270 = vector.shape_cast %269 : vector<1x128xf32> to vector<128xf32>
    %271 = vector.shape_cast %268 : vector<128xf32> to vector<1x128xf32>
    tpu.vector_store %arg24[%c1_102, %c640_103], %271 {strides = array<i32>} : memref<2x1024xf32, #tpu.memory_space<vmem>>, vector<1x128xf32>,
    %c14 = arith.constant 14 : index
    %c0_104 = arith.constant 0 : index
    %272 = vector.load %arg23[%c14, %c0_104] : memref<16x128xf32, #tpu.memory_space<vmem>>, vector<1x128xf32>
    %273 = vector.shape_cast %272 : vector<1x128xf32> to vector<128xf32>
    %c1_105 = arith.constant 1 : index
    %c768_106 = arith.constant 768 : index
    %274 = vector.load %arg24[%c1_105, %c768_106] : memref<2x1024xf32, #tpu.memory_space<vmem>>, vector<1x128xf32>
    %275 = vector.shape_cast %274 : vector<1x128xf32> to vector<128xf32>
    %276 = vector.shape_cast %273 : vector<128xf32> to vector<1x128xf32>
    tpu.vector_store %arg24[%c1_105, %c768_106], %276 {strides = array<i32>} : memref<2x1024xf32, #tpu.memory_space<vmem>>, vector<1x128xf32>,
    %c15 = arith.constant 15 : index
    %c0_107 = arith.constant 0 : index
    %277 = vector.load %arg23[%c15, %c0_107] : memref<16x128xf32, #tpu.memory_space<vmem>>, vector<1x128xf32>
    %278 = vector.shape_cast %277 : vector<1x128xf32> to vector<128xf32>
    %c1_108 = arith.constant 1 : index
    %c896_109 = arith.constant 896 : index
    %279 = vector.load %arg24[%c1_108, %c896_109] : memref<2x1024xf32, #tpu.memory_space<vmem>>, vector<1x128xf32>
    %280 = vector.shape_cast %279 : vector<1x128xf32> to vector<128xf32>
    %281 = vector.shape_cast %278 : vector<128xf32> to vector<1x128xf32>
    tpu.vector_store %arg24[%c1_108, %c896_109], %281 {strides = array<i32>} : memref<2x1024xf32, #tpu.memory_space<vmem>>, vector<1x128xf32>,
    %c0_110 = arith.constant 0 : index
    %c0_111 = arith.constant 0 : index
    %282 = vector.load %arg24[%c0_110, %c0_111] : memref<2x1024xf32, #tpu.memory_space<vmem>>, vector<2x1024xf32>
    %283 = arith.truncf %282 : vector<2x1024xf32> to vector<2x1024xbf16>
    %c0_i32_112 = arith.constant 0 : i32
    %284 = tpu.memref_slice %arg25[%c0_i32_112] : memref<3x!tpu.dma_semaphore, #tpu.memory_space<semaphore_mem>> -> memref<1x!tpu.dma_semaphore, #tpu.memory_space<semaphore_mem>>
    %285 = tpu.memref_squeeze %284 : memref<1x!tpu.dma_semaphore, #tpu.memory_space<semaphore_mem>> -> memref<!tpu.dma_semaphore, #tpu.memory_space<semaphore_mem>>
    tpu.wait_dma2 semaphore(%285 : memref<!tpu.dma_semaphore, #tpu.memory_space<semaphore_mem>>) src(%arg16 : memref<1024x512xbf16, #tpu.memory_space<any>>) dst(%arg20 : memref<1024x512xbf16, #tpu.memory_space<vmem>>)
    %c0_113 = arith.constant 0 : index
    %c0_114 = arith.constant 0 : index
    %286 = vector.load %arg20[%c0_113, %c0_114] : memref<1024x512xbf16, #tpu.memory_space<vmem>>, vector<1024x512xbf16>
    %cst_115 = arith.constant dense<0.000000e+00> : vector<2x512xf32>
    %287 = tpu.matmul %283, %286, %cst_115 {dimension_numbers = #tpu.dot_dimension_numbers<[1], [0], [0], [1], [0, 0, 1, 1], [], []>} : vector<2x1024xbf16>, vector<1024x512xbf16>, vector<2x512xf32> -> vector<2x512xf32>
    %c0_116 = arith.constant 0 : index
    %c0_117 = arith.constant 0 : index
    %288 = vector.load %arg13[%c0_116, %c0_117] : memref<1x512xf32, #tpu.memory_space<vmem>>, vector<1x512xf32>
    %289 = vector.broadcast %288 : vector<1x512xf32> to vector<2x512xf32>
    %290 = arith.addf %287, %289 : vector<2x512xf32>
    %cst_118 = arith.constant 0.000000e+00 : f32
    %291 = vector.broadcast %cst_118 : f32 to vector<2x512xf32>
    %292 = arith.maximumf %290, %291 : vector<2x512xf32>
    %c1_i32_119 = arith.constant 1 : i32
    %293 = tpu.memref_slice %arg25[%c1_i32_119] : memref<3x!tpu.dma_semaphore, #tpu.memory_space<semaphore_mem>> -> memref<1x!tpu.dma_semaphore, #tpu.memory_space<semaphore_mem>>
    %294 = tpu.memref_squeeze %293 : memref<1x!tpu.dma_semaphore, #tpu.memory_space<semaphore_mem>> -> memref<!tpu.dma_semaphore, #tpu.memory_space<semaphore_mem>>
    tpu.wait_dma2 semaphore(%294 : memref<!tpu.dma_semaphore, #tpu.memory_space<semaphore_mem>>) src(%arg17 : memref<512x2048xbf16, #tpu.memory_space<any>>) dst(%arg21 : memref<512x2048xbf16, #tpu.memory_space<vmem>>)
    %295 = arith.truncf %292 : vector<2x512xf32> to vector<2x512xbf16>
    %c0_120 = arith.constant 0 : index
    %c0_121 = arith.constant 0 : index
    %296 = vector.load %arg21[%c0_120, %c0_121] : memref<512x2048xbf16, #tpu.memory_space<vmem>>, vector<512x2048xbf16>
    %cst_122 = arith.constant dense<0.000000e+00> : vector<2x2048xf32>
    %297 = tpu.matmul %295, %296, %cst_122 {dimension_numbers = #tpu.dot_dimension_numbers<[1], [0], [0], [1], [0, 0, 1, 1], [], []>} : vector<2x512xbf16>, vector<512x2048xbf16>, vector<2x2048xf32> -> vector<2x2048xf32>
    %c0_123 = arith.constant 0 : index
    %c0_124 = arith.constant 0 : index
    %298 = vector.load %arg14[%c0_123, %c0_124] : memref<1x2048xf32, #tpu.memory_space<vmem>>, vector<1x2048xf32>
    %299 = vector.broadcast %298 : vector<1x2048xf32> to vector<2x2048xf32>
    %300 = arith.addf %297, %299 : vector<2x2048xf32>
    %cst_125 = arith.constant 0.000000e+00 : f32
    %301 = vector.broadcast %cst_125 : f32 to vector<2x2048xf32>
    %302 = arith.maximumf %300, %301 : vector<2x2048xf32>
    %c2_i32_126 = arith.constant 2 : i32
    %303 = tpu.memref_slice %arg25[%c2_i32_126] : memref<3x!tpu.dma_semaphore, #tpu.memory_space<semaphore_mem>> -> memref<1x!tpu.dma_semaphore, #tpu.memory_space<semaphore_mem>>
    %304 = tpu.memref_squeeze %303 : memref<1x!tpu.dma_semaphore, #tpu.memory_space<semaphore_mem>> -> memref<!tpu.dma_semaphore, #tpu.memory_space<semaphore_mem>>
    tpu.wait_dma2 semaphore(%304 : memref<!tpu.dma_semaphore, #tpu.memory_space<semaphore_mem>>) src(%arg18 : memref<2048x128xf32, #tpu.memory_space<any>>) dst(%arg22 : memref<2048x128xf32, #tpu.memory_space<vmem>>)
    %c0_127 = arith.constant 0 : index
    %c0_128 = arith.constant 0 : index
    %305 = vector.load %arg22[%c0_127, %c0_128] : memref<2048x128xf32, #tpu.memory_space<vmem>>, vector<2048x128xf32>
    %cst_129 = arith.constant dense<0.000000e+00> : vector<2x128xf32>
    %306 = tpu.matmul %302, %305, %cst_129 {dimension_numbers = #tpu.dot_dimension_numbers<[1], [0], [0], [1], [0, 0, 1, 1], [], []>} : vector<2x2048xf32>, vector<2048x128xf32>, vector<2x128xf32> -> vector<2x128xf32>
    %c0_130 = arith.constant 0 : index
    %c0_131 = arith.constant 0 : index
    %307 = vector.load %arg15[%c0_130, %c0_131] : memref<1x128xf32, #tpu.memory_space<vmem>>, vector<1x128xf32>
    %308 = vector.broadcast %307 : vector<1x128xf32> to vector<2x128xf32>
    %309 = arith.addf %306, %308 : vector<2x128xf32>
    %cst_132 = arith.constant dense<0xFF800000> : vector<2xf32>
    %310 = vector.multi_reduction <maximumf>, %309, %cst_132 [1] : vector<2x128xf32> to vector<2xf32>
    %311 = vector.shape_cast %310 : vector<2xf32> to vector<2x1xf32>
    %312 = vector.broadcast %311 : vector<2x1xf32> to vector<2x128xf32>
    %313 = arith.subf %309, %312 : vector<2x128xf32>
    %314 = math.exp %313 : vector<2x128xf32>
    %cst_133 = arith.constant dense<0.000000e+00> : vector<2xf32>
    %315 = vector.multi_reduction <add>, %314, %cst_133 [1] : vector<2x128xf32> to vector<2xf32>
    %316 = vector.shape_cast %315 : vector<2xf32> to vector<2x1xf32>
    %317 = math.log %316 : vector<2x1xf32>
    %318 = vector.broadcast %317 : vector<2x1xf32> to vector<2x128xf32>
    %319 = arith.subf %313, %318 : vector<2x128xf32>
    %c0_134 = arith.constant 0 : index
    %c0_135 = arith.constant 0 : index
    %320 = vector.load %arg19[%c0_134, %c0_135] : memref<2x128xf32, #tpu.memory_space<vmem>>, vector<2x128xf32>
    tpu.vector_store %arg19[%c0_134, %c0_135], %319 {strides = array<i32>} : memref<2x128xf32, #tpu.memory_space<vmem>>, vector<2x128xf32>,
    return
  }
}

</mosaic_0001>

<bundles_post_ra>
// kernel: armbandgnn_forward.1
= control target key start
LH: loop header
LB: loop body
LE: loop exit
PB: predicated region body
PF: predicated region fallthrough
CT: control target
= control target key end

     0   :  { %s12915_s0 = inlined_call_operand.vmem [shape: f32[16,140], index: 0, kind: input, shape index: {}]   ;;  %s12916_s1 = inlined_call_operand.hbm [shape: f32[140,384], index: 1, kind: input, shape index: {}]   ;;  %s12917_s2 = inlined_call_operand.hbm [shape: f32[2,128], index: 2, kind: input, shape index: {}]   ;;  %s12918_s3 = inlined_call_operand.hbm [shape: f32[128,512], index: 3, kind: input, shape index: {}]   ;;  %s12919_s4 = inlined_call_operand.hbm [shape: f32[128,128], index: 4, kind: input, shape index: {}]   ;;  %s12920_s5 = inlined_call_operand.hbm [shape: f32[1,128], index: 5, kind: input, shape index: {}]   ;;  %s12921_s6 = inlined_call_operand.hbm [shape: f32[128,512], index: 6, kind: input, shape index: {}]   ;;  %s12922_s7 = inlined_call_operand.hbm [shape: f32[128,128], index: 7, kind: input, shape index: {}]   ;;  %s12923_s8 = inlined_call_operand.hbm [shape: f32[1,128], index: 8, kind: input, shape index: {}]   ;;  %s12924_s9 = inlined_call_operand.hbm [shape: f32[2,128], index: 9, kind: input, shape index: {}]   ;;  %s12925_s10 = inlined_call_operand.hbm [shape: f32[128,384], index: 10, kind: input, shape index: {}]   ;;  %s12926_s11 = inlined_call_operand.hbm [shape: f32[2,128], index: 11, kind: input, shape index: {}]   ;;  %s12927_s12 = inlined_call_operand.hbm [shape: f32[128,384], index: 12, kind: input, shape index: {}]   ;;  %s12928_s13 = inlined_call_operand.hbm [shape: f32[1,512], index: 13, kind: input, shape index: {}]   ;;  %s12929_s14 = inlined_call_operand.hbm [shape: f32[1,2048], index: 14, kind: input, shape index: {}]   ;;  %s12930_s15 = inlined_call_operand.hbm [shape: f32[1,128], index: 15, kind: input, shape index: {}]   ;;  %s12931_s16 = inlined_call_operand.hbm [shape: bf16[1024,512], index: 16, kind: input, shape index: {}]   ;;  %s12932_s17 = inlined_call_operand.hbm [shape: bf16[512,2048], index: 17, kind: input, shape index: {}]   ;;  %s12933_s18 = inlined_call_operand.hbm [shape: f32[2048,128], index: 18, kind: input, shape index: {}]   ;;  %s12934_s19 = inlined_call_operand.hbm [shape: f32[2,128], index: 19, kind: output, shape index: {}]  }
   0x1   :  { %12936 = sst [smem:[#allocation53_spill]] %s12915_s0 }
   0x2   :  { %12937 = sst [smem:[#allocation54_spill]] %s12916_s1 }
   0x3   :  { %12938 = sst [smem:[#allocation55_spill]] %s12917_s2 }
   0x4   :  { %12939 = sst [smem:[#allocation56_spill]] %s12918_s3 }
   0x5   :  { %24 = vsyncpa [#allocation9], 0 }
   0x6   :  { %25 = vsyncpa [#allocation12], 0 }
   0x7   :  { %26 = vsyncpa [#allocation15], 0 }
   0x8   :  { %27 = vsyncpa [#allocation18], 0 }
   0x9   :  { %28 = vsyncpa [#allocation21], 0 }
   0xa   :  { %29 = vsyncpa [#allocation24], 0 }
   0xb   :  { %30 = vsyncpa [#allocation27], 0 }
   0xc   :  { %31 = vsyncpa [#allocation30], 0 }
   0xd   :  { %32 = vsyncpa [#allocation10], 0  ;;  %s12274_s0 = smov [#allocation11]   ;;  %s12275_s20 = smov [#allocation14]  }
   0xe   :  { %s53_s30 = sshll.u32 %s12274_s0, 4  ;;  %s74_s21 = sshll.u32 %s12275_s20, 4  ;;  %s54_s30 = int_to_ptr.vmem [resolvable:$true] %s53_s30  ;;  %s75_s21 = int_to_ptr.vmem [resolvable:$true] %s74_s21 }
   0xf   :  { %s11878_s1 = scalar_lea.vmem %s54_s30, 32  ;;  %p11883_p1 = scmp.lt.s32.totalorder %s54_s30, %s54_s30 }
  0x10   :  { %p11879_p0 = scmp.ne.s32.totalorder %s54_s30, %s11878_s1  ;;  %p11884_p2 = scmp.lt.s32.totalorder %s11878_s1, %s11878_s1 }
  0x12   :  { %p11885_p3 = por %p11884_p2, %p11883_p1 }
  0x14   :  { %p11886_p4 = pnand %p11885_p3, %p11879_p0 }
  0x16   :  { %11889 = shalt.err (!%p11886_p4)
}
  0x17   :  { %s12940_s23 = sld [smem:[#allocation55_spill]]  ;;  %s11898_s24 = scalar_lea.vmem %s75_s21, 2048 }
  0x18   :  { %p11899_p5 = scmp.ne.s32.totalorder %s75_s21, %s11898_s24  ;;  %p11903_p6 = scmp.lt.s32.totalorder %s75_s21, %s75_s21 }
  0x19   :  { %p11904_p7 = scmp.lt.s32.totalorder %s11898_s24, %s11898_s24 }
  0x1b   :  { %p11905_p8 = por %p11904_p7, %p11903_p6 }
  0x1d   :  { %56 = dma.hbm_to_vmem [thread:$0]  %s12940_s23, 32, %s54_s30, [#allocation12]  }
  0x1e   :  { %p11906_p9 = pnand %p11905_p8, %p11899_p5 }
  0x20   :  { %11909 = shalt.err (!%p11906_p9)
}
  0x21   :  { %s12276_s25 = smov 128   ;;  %s12277_s3 = smov 8  }
  0x22   :  { %80 = dma.hbm_to_vmem [thread:$0]  %s12919_s4, 2048, %s75_s21, [#allocation15], %s12276_s25, %s12276_s25, %s12277_s3  }
  0x23   :  { %s12278_s28 = smov [#allocation17]   ;;  %s12279_s0 = smov [#allocation20]  }
  0x24   :  { %s96_s29 = sshll.u32 %s12278_s28, 4  ;;  %s121_s30 = sshll.u32 %s12279_s0, 4  ;;  %s97_s29 = int_to_ptr.vmem [resolvable:$true] %s96_s29  ;;  %s122_s30 = int_to_ptr.vmem [resolvable:$true] %s121_s30 }
  0x25   :  { %s11918_s20 = scalar_lea.vmem %s97_s29, 8192  ;;  %p11923_p11 = scmp.lt.s32.totalorder %s97_s29, %s97_s29 }
  0x26   :  { %p11919_p10 = scmp.ne.s32.totalorder %s97_s29, %s11918_s20  ;;  %p11924_p12 = scmp.lt.s32.totalorder %s11918_s20, %s11918_s20 }
  0x28   :  { %p11925_p13 = por %p11924_p12, %p11923_p11 }
  0x2a   :  { %p11926_p0 = pnand %p11925_p13, %p11919_p10 }
  0x2c   :  { %11929 = shalt.err (!%p11926_p0)
}
  0x2d   :  { %s12280_s1 = smov 512   ;;  %s12281_s22 = smov 32  }
  0x2e   :  { %102 = dma.hbm_to_vmem [thread:$0]  %s12921_s6, 8192, %s97_s29, [#allocation18], %s12280_s1, %s12280_s1, %s12281_s22  }
  0x2f   :  { %s11938_s21 = scalar_lea.vmem %s122_s30, 16  ;;  %s11942_s23 = scalar_lea.vmem %s122_s30, 32 }
  0x30   :  { %p11939_p1 = scmp.ne.s32.totalorder %s122_s30, %s11938_s21  ;;  %p11943_p2 = scmp.lt.s32.totalorder %s122_s30, %s122_s30 }
  0x31   :  { %p11944_p3 = scmp.lt.s32.totalorder %s11942_s23, %s11938_s21 }
  0x33   :  { %p11945_p4 = por %p11944_p3, %p11943_p2 }
  0x35   :  { %p11946_p5 = pnand %p11945_p4, %p11939_p1 }
  0x37   :  { %11949 = shalt.err (!%p11946_p5)
}
  0x38   :  { %124 = dma.hbm_to_vmem [thread:$0]  %s12923_s8, 16, %s122_s30, [#allocation21]  }
  0x39   :  { %s12282_s27 = smov [#allocation23]   ;;  %s12283_s0 = smov [#allocation26]  }
  0x3a   :  { %s140_s28 = sshll.u32 %s12282_s27, 4  ;;  %s162_s20 = sshll.u32 %s12283_s0, 4  ;;  %s141_s28 = int_to_ptr.vmem [resolvable:$true] %s140_s28  ;;  %s163_s20 = int_to_ptr.vmem [resolvable:$true] %s162_s20 }
  0x3b   :  { %s11958_s2 = scalar_lea.vmem %s141_s28, 6144  ;;  %p11963_p7 = scmp.lt.s32.totalorder %s141_s28, %s141_s28 }
  0x3c   :  { %p11959_p6 = scmp.ne.s32.totalorder %s141_s28, %s11958_s2  ;;  %p11964_p8 = scmp.lt.s32.totalorder %s11958_s2, %s11958_s2 }
  0x3e   :  { %p11965_p9 = por %p11964_p8, %p11963_p7 }
  0x40   :  { %p11966_p10 = pnand %p11965_p9, %p11959_p6 }
  0x42   :  { %11969 = shalt.err (!%p11966_p10)
}
  0x43   :  { %s12284_s6 = smov 384   ;;  %s12285_s29 = smov 24  }
  0x44   :  { %146 = dma.hbm_to_vmem [thread:$0]  %s12925_s10, 6144, %s141_s28, [#allocation24], %s12284_s6, %s12284_s6, %s12285_s29  }
  0x45   :  { %s11978_s30 = scalar_lea.vmem %s163_s20, 6144  ;;  %p11983_p12 = scmp.lt.s32.totalorder %s163_s20, %s163_s20 }
  0x46   :  { %p11979_p11 = scmp.ne.s32.totalorder %s163_s20, %s11978_s30  ;;  %p11984_p13 = scmp.lt.s32.totalorder %s11978_s30, %s11978_s30 }
  0x48   :  { %p11985_p0 = por %p11984_p13, %p11983_p12 }
  0x4a   :  { %p11986_p1 = pnand %p11985_p0, %p11979_p11 }
  0x4c   :  { %11989 = shalt.err (!%p11986_p1)
}
  0x4d   :  { %168 = dma.hbm_to_vmem [thread:$0]  %s12927_s12, 6144, %s163_s20, [#allocation27], %s12284_s6, %s12284_s6, %s12285_s29  }
  0x4e   :  { %s12286_s24 = smov [#allocation29]   ;;  %s12287_s27 = smov [#allocation8]  }
  0x4f   :  { %s185_s26 = sshll.u32 %s12286_s24, 4  ;;  %s40_s0 = sshll.u32 %s12287_s27, 4  ;;  %s186_s26 = int_to_ptr.vmem [resolvable:$true] %s185_s26  ;;  %s41_s0 = int_to_ptr.vmem [resolvable:$true] %s40_s0 }
  0x50   :  { %s11998_s10 = scalar_lea.vmem %s186_s26, 256  ;;  %p12003_p3 = scmp.lt.s32.totalorder %s186_s26, %s186_s26 }
  0x51   :  { %p11999_p2 = scmp.ne.s32.totalorder %s186_s26, %s11998_s10  ;;  %p12004_p4 = scmp.lt.s32.totalorder %s11998_s10, %s11998_s10 }
  0x53   :  { %p12005_p5 = por %p12004_p4, %p12003_p3 }
  0x55   :  { %p12006_p6 = pnand %p12005_p5, %p11999_p2 }
  0x57   :  { %12009 = shalt.err (!%p12006_p6)
}
  0x58   :  { %188 = dma.hbm_to_vmem [thread:$0]  %s12929_s14, 256, %s186_s26, [#allocation30]  }
  0x59   :  { %s12018_s4 = scalar_lea.vmem %s41_s0, 6912  ;;  %p12023_p8 = scmp.lt.s32.totalorder %s41_s0, %s41_s0 }
  0x5a   :  { %p12019_p7 = scmp.ne.s32.totalorder %s41_s0, %s12018_s4  ;;  %p12024_p9 = scmp.lt.s32.totalorder %s12018_s4, %s12018_s4 }
  0x5c   :  { %p12025_p10 = por %p12024_p9, %p12023_p8 }
  0x5e   :  { %p12026_p11 = pnand %p12025_p10, %p12019_p7 }
  0x60   :  { %12029 = shalt.err (!%p12026_p11)
}
  0x61   :  { %s12941_s8 = sld [smem:[#allocation54_spill]]  ;;  %s12288_s30 = smov [#allocation13]  }
  0x62   :  { %s62_s21 = sshll.u32 %s12288_s30, 4  ;;  %s12289_s23 = smov [#allocation16]   ;;  %s63_s21 = int_to_ptr.vmem [resolvable:$true] %s62_s21 }
  0x63   :  { %s87_s24 = sshll.u32 %s12289_s23, 4  ;;  %s12038_s14 = scalar_lea.vmem %s63_s21, 8192  ;;  %s88_s24 = int_to_ptr.vmem [resolvable:$true] %s87_s24 }
  0x64   :  { %p12039_p12 = scmp.ne.s32.totalorder %s63_s21, %s12038_s14  ;;  %p12043_p13 = scmp.lt.s32.totalorder %s63_s21, %s63_s21 }
  0x65   :  { %p12044_p0 = scmp.lt.s32.totalorder %s12038_s14, %s12038_s14 }
  0x67   :  { %46 = dma.hbm_to_vmem [thread:$0]  %s12941_s8, 6912, %s41_s0, [#allocation9], %s12284_s6, %s12284_s6, %s12285_s29  }
  0x68   :  { %p12045_p1 = por %p12044_p0, %p12043_p13 }
  0x6a   :  { %p12046_p2 = pnand %p12045_p1, %p12039_p12 }
  0x6c   :  { %12049 = shalt.err (!%p12046_p2)
}
  0x6d   :  { %s12942_s10 = sld [smem:[#allocation56_spill]]  ;;  %s12058_s6 = scalar_lea.vmem %s88_s24, 16 }
  0x6e   :  { %p12059_p3 = scmp.ne.s32.totalorder %s88_s24, %s12058_s6  ;;  %s12062_s29 = scalar_lea.vmem %s88_s24, 32 }
  0x6f   :  { %p12063_p4 = scmp.lt.s32.totalorder %s88_s24, %s88_s24  ;;  %p12064_p5 = scmp.lt.s32.totalorder %s12062_s29, %s12058_s6 }
  0x71   :  { %p12065_p6 = por %p12064_p5, %p12063_p4 }
  0x73   :  { %68 = dma.hbm_to_vmem [thread:$0]  %s12942_s10, 8192, %s63_s21, [#allocation12], %s12280_s1, %s12280_s1, %s12281_s22  }
  0x74   :  { %p12066_p7 = pnand %p12065_p6, %p12059_p3 }
  0x76   :  { %12069 = shalt.err (!%p12066_p7)
}
  0x77   :  { %90 = dma.hbm_to_vmem [thread:$0]  %s12920_s5, 16, %s88_s24, [#allocation15]  }
  0x78   :  { %s12290_s2 = smov [#allocation19]   ;;  %s12291_s12 = smov [#allocation22]  }
  0x79   :  { %s108_s4 = sshll.u32 %s12290_s2, 4  ;;  %s131_s20 = sshll.u32 %s12291_s12, 4  ;;  %s109_s4 = int_to_ptr.vmem [resolvable:$true] %s108_s4  ;;  %s132_s20 = int_to_ptr.vmem [resolvable:$true] %s131_s20 }
  0x7a   :  { %s12078_s8 = scalar_lea.vmem %s109_s4, 2048  ;;  %p12083_p9 = scmp.lt.s32.totalorder %s109_s4, %s109_s4 }
  0x7b   :  { %p12079_p8 = scmp.ne.s32.totalorder %s109_s4, %s12078_s8  ;;  %p12084_p10 = scmp.lt.s32.totalorder %s12078_s8, %s12078_s8 }
  0x7d   :  { %p12085_p11 = por %p12084_p10, %p12083_p9 }
  0x7f   :  { %p12086_p12 = pnand %p12085_p11, %p12079_p8 }
  0x81   :  { %12089 = shalt.err (!%p12086_p12)
}
  0x82   :  { %114 = dma.hbm_to_vmem [thread:$0]  %s12922_s7, 2048, %s109_s4, [#allocation18], %s12276_s25, %s12276_s25, %s12277_s3  }
  0x83   :  { %s12098_s5 = scalar_lea.vmem %s132_s20, 32  ;;  %p12103_p0 = scmp.lt.s32.totalorder %s132_s20, %s132_s20 }
  0x84   :  { %p12099_p13 = scmp.ne.s32.totalorder %s132_s20, %s12098_s5  ;;  %p12104_p1 = scmp.lt.s32.totalorder %s12098_s5, %s12098_s5 }
  0x86   :  { %p12105_p2 = por %p12104_p1, %p12103_p0 }
  0x88   :  { %p12106_p3 = pnand %p12105_p2, %p12099_p13 }
  0x8a   :  { %12109 = shalt.err (!%p12106_p3)
}
  0x8b   :  { %134 = dma.hbm_to_vmem [thread:$0]  %s12924_s9, 32, %s132_s20, [#allocation21]  }
  0x8c   :  { %s12292_s23 = smov [#allocation25]   ;;  %s12293_s14 = smov [#allocation28]  }
  0x8d   :  { %s153_s24 = sshll.u32 %s12292_s23, 4  ;;  %s175_s26 = sshll.u32 %s12293_s14, 4  ;;  %s154_s24 = int_to_ptr.vmem [resolvable:$true] %s153_s24  ;;  %s176_s26 = int_to_ptr.vmem [resolvable:$true] %s175_s26 }
  0x8e   :  { %s12118_s27 = scalar_lea.vmem %s154_s24, 32  ;;  %p12123_p5 = scmp.lt.s32.totalorder %s154_s24, %s154_s24 }
  0x8f   :  { %p12119_p4 = scmp.ne.s32.totalorder %s154_s24, %s12118_s27  ;;  %p12124_p6 = scmp.lt.s32.totalorder %s12118_s27, %s12118_s27 }
  0x91   :  { %p12125_p7 = por %p12124_p6, %p12123_p5 }
  0x93   :  { %p12126_p8 = pnand %p12125_p7, %p12119_p4 }
  0x95   :  { %12129 = shalt.err (!%p12126_p8)
}
  0x96   :  { %156 = dma.hbm_to_vmem [thread:$0]  %s12926_s11, 32, %s154_s24, [#allocation24]  }
  0x97   :  { %s12138_s3 = scalar_lea.vmem %s176_s26, 64  ;;  %p12143_p10 = scmp.lt.s32.totalorder %s176_s26, %s176_s26 }
  0x98   :  { %p12139_p9 = scmp.ne.s32.totalorder %s176_s26, %s12138_s3  ;;  %p12144_p11 = scmp.lt.s32.totalorder %s12138_s3, %s12138_s3 }
  0x9a   :  { %p12145_p12 = por %p12144_p11, %p12143_p10 }
  0x9c   :  { %p12146_p13 = pnand %p12145_p12, %p12139_p9 }
  0x9e   :  { %12149 = shalt.err (!%p12146_p13)
}
  0x9f   :  { %178 = dma.hbm_to_vmem [thread:$0]  %s12928_s13, 64, %s176_s26, [#allocation27]  }
  0xa0   :  { %s12294_s6 = smov [#allocation31]  }
  0xa1   :  { %s195_s29 = sshll.u32 %s12294_s6, 4  ;;  %s196_s29 = int_to_ptr.vmem [resolvable:$true] %s195_s29 }
  0xa2   :  { %s12158_s0 = scalar_lea.vmem %s196_s29, 16  ;;  %s12162_s28 = scalar_lea.vmem %s196_s29, 32 }
  0xa3   :  { %p12159_p0 = scmp.ne.s32.totalorder %s196_s29, %s12158_s0  ;;  %p12163_p1 = scmp.lt.s32.totalorder %s196_s29, %s196_s29 }
  0xa4   :  { %p12164_p2 = scmp.lt.s32.totalorder %s12162_s28, %s12158_s0 }
  0xa6   :  { %p12165_p3 = por %p12164_p2, %p12163_p1 }
  0xa8   :  { %p12166_p4 = pnand %p12165_p3, %p12159_p0 }
  0xaa   :  { %12169 = shalt.err (!%p12166_p4)
}
  0xab   :  { %198 = dma.hbm_to_vmem [thread:$0]  %s12930_s15, 16, %s196_s29, [#allocation30]  }
  0xac   :  { %12250 = dma.done.wait [#allocation9], 6912  }
  0xad   :  { %12251 = vsyncadd [#allocation9], 4294960384 }
  0xae   :  { %12252 = dma.done.wait [#allocation12], 8224  }
  0xaf   :  { %12253 = vsyncadd [#allocation12], 4294959072 }
  0xb0   :  { %12254 = dma.done.wait [#allocation15], 2064  }
  0xb1   :  { %12255 = vsyncadd [#allocation15], 4294965232 }
  0xb2   :  { %12256 = dma.done.wait [#allocation18], 10240  }
  0xb3   :  { %12257 = vsyncadd [#allocation18], 4294957056 }
  0xb4   :  { %12258 = dma.done.wait [#allocation21], 48  }
  0xb5   :  { %12259 = vsyncadd [#allocation21], 4294967248 }
  0xb6   :  { %12260 = dma.done.wait [#allocation24], 6176  }
  0xb7   :  { %12261 = vsyncadd [#allocation24], 4294961120 }
  0xb8   :  { %12262 = dma.done.wait [#allocation27], 6208  }
  0xb9   :  { %12263 = vsyncadd [#allocation27], 4294961088 }
  0xba   :  { %12264 = dma.done.wait [#allocation30], 272  }
  0xbb   :  { %12265 = vsyncadd [#allocation30], 4294967024  ;;  %v12295_v0 = vmov 0.0   ;;  %v330_v1 = vld [vmem:[#allocation8 + $0x178] sm:$0xff]  ;;  %v327_v2 = vld [vmem:[#allocation8 + $0x160] sm:$0xff]  ;;  %s12943_s4 = sld [smem:[#allocation53_spill]] }
  0xbc   :  { %432 = vmatprep.subr.mxu1 %v12295_v0  ;;  %v324_v3 = vld [vmem:[#allocation8 + $0x148] sm:$0xff]  ;;  %v321_v4 = vld [vmem:[#allocation8 + $0x130] sm:$0xff]  ;;  %v326_v7 = vld [vmem:[#allocation8 + $0x158] sm:$0xff]  ;;  %vm338_vm0 = vcmask 97280   ;;  %vm345_vm1 = vcmask 1043456   ;;  %vm12296_vm2 = vmmov 0  }
  0xbd   :  { %433 = vmatpush1.msra.mxu1 %v330_v1  ;;  %v329_v5 = vld [vmem:[#allocation8 + $0x170] sm:$0xff]  ;;  %v328_v6 = vld [vmem:[#allocation8 + $0x168] sm:$0xff]  ;;  %v318_v9 = vld [vmem:[#allocation8 + $0x118] sm:$0xff]  ;;  %vm910_vm3 = vcmask 64512   ;;  %s12297_s30 = smov [#allocation2]   ;;  %s12298_s23 = smov [#allocation3]  }
  0xbe   :  { %434 = vmatprep.subr.mxu1 %v12295_v0  ;;  %355 = vmatprep.subr.mxu0 %v329_v5  ;;  %v325_v8 = vld [vmem:[#allocation8 + $0x150] sm:$0xff]  ;;  %v323_v10 = vld [vmem:[#allocation8 + $0x140] sm:$0xff]  ;;  %v322_v11 = vld [vmem:[#allocation8 + $0x138] sm:$0xff]  ;;  %s251_s21 = sshll.u32 %s12297_s30, 4  ;;  %s263_s24 = sshll.u32 %s12298_s23, 4  ;;  %s252_s21 = int_to_ptr.vmem [resolvable:$true] %s251_s21  ;;  %s264_s24 = int_to_ptr.vmem [resolvable:$true] %s263_s24 }
  0xbf   :  { %435 = vmatpush1.msra.mxu1 %v327_v2  ;;  %356 = vmatpush1.msra.mxu0 %v328_v6  ;;  %v315_v12 = vld [vmem:[#allocation8 + $0x100] sm:$0xff]  ;;  %v320_v13 = vld [vmem:[#allocation8 + $0x128] sm:$0xff]  ;;  %v317_v16 = vld [vmem:[#allocation8 + $0x110] sm:$0xff]  ;;  %s12178_s14 = scalar_lea.vmem %s252_s21, 32768  ;;  %p12183_p6 = scmp.lt.s32.totalorder %s252_s21, %s252_s21 }
  0xc0   :  { %436 = vmatprep.subr.mxu1 %v12295_v0  ;;  %357 = vmatprep.subr.mxu0 %v326_v7  ;;  %v319_v14 = vld [vmem:[#allocation8 + $0x120] sm:$0xff]  ;;  %v312_v15 = vld [vmem:[#allocation8 + $0xe8] sm:$0xff]  ;;  %v309_v18 = vld [vmem:[#allocation8 + $0xd0] sm:$0xff]  ;;  %p12179_p5 = scmp.ne.s32.totalorder %s252_s21, %s12178_s14  ;;  %p12184_p7 = scmp.lt.s32.totalorder %s12178_s14, %s12178_s14 }
  0xc1   :  { %437 = vmatpush1.msra.mxu1 %v324_v3  ;;  %358 = vmatpush1.msra.mxu0 %v325_v8  ;;  %v316_v17 = vld [vmem:[#allocation8 + $0x108] sm:$0xff]  ;;  %v314_v20 = vld [vmem:[#allocation8 + $0xf8] sm:$0xff]  ;;  %v313_v22 = vld [vmem:[#allocation8 + $0xf0] sm:$0xff] }
  0xc2   :  { %438 = vmatprep.subr.mxu1 %v12295_v0  ;;  %359 = vmatprep.subr.mxu0 %v323_v10  ;;  %v12478_v19 = vld [vmem:[%s12943_s4 + $0x8] sm:$0xff]  ;;  %v306_v21 = vld [vmem:[#allocation8 + $0xb8] sm:$0xff]  ;;  %v311_v23 = vld [vmem:[#allocation8 + $0xe0] sm:$0xff]  ;;  %p12185_p8 = por %p12184_p7, %p12183_p6 }
  0xc3   :  { %439 = vmatpush1.msra.mxu1 %v321_v4  ;;  %360 = vmatpush1.msra.mxu0 %v322_v11  ;;  %v303_v24 = vld [vmem:[#allocation8 + $0xa0] sm:$0xff]  ;;  %v310_v25 = vld [vmem:[#allocation8 + $0xd8] sm:$0xff]  ;;  %v308_v26 = vld [vmem:[#allocation8 + $0xc8] sm:$0xff] }
  0xc4   :  { %440 = vmatprep.subr.mxu1 %v12295_v0  ;;  %361 = vmatprep.subr.mxu0 %v320_v13  ;;  %v300_v27 = vld [vmem:[#allocation8 + $0x88] sm:$0xff]  ;;  %v307_v28 = vld [vmem:[#allocation8 + $0xc0] sm:$0xff]  ;;  %v305_v29 = vld [vmem:[#allocation8 + $0xb0] sm:$0xff]  ;;  %p12186_p9 = pnand %p12185_p8, %p12179_p5 }
  0xc5   :  { %441 = vmatpush1.msra.mxu1 %v318_v9  ;;  %362 = vmatpush1.msra.mxu0 %v319_v14  ;;  %v297_v30 = vld [vmem:[#allocation8 + $0x70] sm:$0xff]  ;;  %v304_v31 = vld [vmem:[#allocation8 + $0xa8] sm:$0xff]  ;;  %v302_v32 = vld [vmem:[#allocation8 + $0x98] sm:$0xff] }
  0xc6   :  { %442 = vmatprep.subr.mxu1 %v12295_v0  ;;  %363 = vmatprep.subr.mxu0 %v317_v16  ;;  %v294_v33 = vld [vmem:[#allocation8 + $0x58] sm:$0xff]  ;;  %v301_v34 = vld [vmem:[#allocation8 + $0x90] sm:$0xff]  ;;  %v299_v35 = vld [vmem:[#allocation8 + $0x80] sm:$0xff] }
  0xc7   :  { %443 = vmatpush1.msra.mxu1 %v315_v12  ;;  %364 = vmatpush1.msra.mxu0 %v316_v17  ;;  %v291_v36 = vld [vmem:[#allocation8 + $0x40] sm:$0xff]  ;;  %v298_v37 = vld [vmem:[#allocation8 + $0x78] sm:$0xff]  ;;  %v296_v38 = vld [vmem:[#allocation8 + $0x68] sm:$0xff] }
  0xc8   :  { %444 = vmatprep.subr.mxu1 %v12295_v0  ;;  %9945 = vmatprep.mubr.msk.f32.mxu1 %vm338_vm0, %v12478_v19  ;;  %v288_v39 = vld [vmem:[#allocation8 + $0x28] sm:$0xff]  ;;  %v295_v40 = vld [vmem:[#allocation8 + $0x60] sm:$0xff]  ;;  %v293_v41 = vld [vmem:[#allocation8 + $0x50] sm:$0xff] }
  0xc9   :  { %445 = vmatpush1.msra.mxu1 %v312_v15  ;;  %365 = vmatprep.subr.mxu0 %v314_v20  ;;  %v285_v42 = vld [vmem:[#allocation8 + $0x10] sm:$0xff]  ;;  %v292_v43 = vld [vmem:[#allocation8 + $0x48] sm:$0xff]  ;;  %v290_v44 = vld [vmem:[#allocation8 + $0x38] sm:$0xff] }
  0xca   :  { %446 = vmatprep.subr.mxu1 %v12295_v0  ;;  %366 = vmatpush1.msra.mxu0 %v313_v22  ;;  %v336_v45 = vld [vmem:[#allocation8 + $0x1a8] sm:$0xf]  ;;  %v289_v46 = vld [vmem:[#allocation8 + $0x30] sm:$0xff]  ;;  %v287_v47 = vld [vmem:[#allocation8 + $0x20] sm:$0xff] }
  0xcb   :  { %447 = vmatpush1.msra.mxu1 %v309_v18  ;;  %367 = vmatprep.subr.mxu0 %v311_v23  ;;  %v333_v48 = vld [vmem:[#allocation8 + $0x190] sm:$0xff]  ;;  %v286_v49 = vld [vmem:[#allocation8 + $0x18] sm:$0xff]  ;;  %v279_v50 = vld [vmem:[%s12943_s4] sm:$0xff] }
  0xcc   :  { %448 = vmatprep.subr.mxu1 %v12295_v0  ;;  %368 = vmatpush1.msra.mxu0 %v310_v25  ;;  %v284_v51 = vld [vmem:[#allocation8 + $0x8] sm:$0xff]  ;;  %v282_v52 = vld [vmem:[%s12943_s4 + $0x18] sm:$0xff]  ;;  %v283_v53 = vld [vmem:[#allocation8] sm:$0xff] }
  0xcd   :  { %449 = vmatpush1.msra.mxu1 %v306_v21  ;;  %369 = vmatprep.subr.mxu0 %v308_v26  ;;  %v335_v54 = vld [vmem:[#allocation8 + $0x1a0] sm:$0xf]  ;;  %v334_v55 = vld [vmem:[#allocation8 + $0x198] sm:$0xf]  ;;  %v281_v56 = vld [vmem:[%s12943_s4 + $0x10] sm:$0xff] }
  0xce   :  { %450 = vmatprep.subr.mxu1 %v12295_v0  ;;  %370 = vmatpush1.msra.mxu0 %v307_v28  ;;  %v332_v57 = vld [vmem:[#allocation8 + $0x188] sm:$0xff]  ;;  %v331_v58 = vld [vmem:[#allocation8 + $0x180] sm:$0xff]  ;;  %v595_v61 = vld [vmem:[#allocation13 + $0x1e0] sm:$0xff] }
  0xcf   :  { %451 = vmatpush1.msra.mxu1 %v303_v24  ;;  %371 = vmatprep.subr.mxu0 %v305_v29  ;;  %v596_v59 = vld [vmem:[#allocation13 + $0x1e8] sm:$0xff]  ;;  %v598_v60 = vld [vmem:[#allocation13 + $0x1f8] sm:$0xff]  ;;  %v597_v62 = vld [vmem:[#allocation13 + $0x1f0] sm:$0xff] }
  0xd0   :  { %452 = vmatprep.subr.mxu1 %v12295_v0  ;;  %372 = vmatpush1.msra.mxu0 %v304_v31  ;;  %v592_v63 = vld [vmem:[#allocation13 + $0x1c8] sm:$0xff]  ;;  %v594_v1 = vld [vmem:[#allocation13 + $0x1d8] sm:$0xff]  ;;  %v591_v2 = vld [vmem:[#allocation13 + $0x1c0] sm:$0xff] }
  0xd1   :  { %453 = vmatpush1.msra.mxu1 %v300_v27  ;;  %373 = vmatprep.subr.mxu0 %v302_v32  ;;  %v593_v3 = vld [vmem:[#allocation13 + $0x1d0] sm:$0xff]  ;;  %v588_v4 = vld [vmem:[#allocation13 + $0x1a8] sm:$0xff]  ;;  %v590_v5 = vld [vmem:[#allocation13 + $0x1b8] sm:$0xff] }
  0xd2   :  { %454 = vmatprep.subr.mxu1 %v12295_v0  ;;  %374 = vmatpush1.msra.mxu0 %v301_v34  ;;  %v587_v6 = vld [vmem:[#allocation13 + $0x1a0] sm:$0xff]  ;;  %v589_v7 = vld [vmem:[#allocation13 + $0x1b0] sm:$0xff]  ;;  %v584_v8 = vld [vmem:[#allocation13 + $0x188] sm:$0xff] }
  0xd3   :  { %455 = vmatpush1.msra.mxu1 %v297_v30  ;;  %375 = vmatprep.subr.mxu0 %v299_v35  ;;  %v586_v9 = vld [vmem:[#allocation13 + $0x198] sm:$0xff]  ;;  %v583_v10 = vld [vmem:[#allocation13 + $0x180] sm:$0xff]  ;;  %v585_v11 = vld [vmem:[#allocation13 + $0x190] sm:$0xff] }
  0xd4   :  { %456 = vmatprep.subr.mxu1 %v12295_v0  ;;  %376 = vmatpush1.msra.mxu0 %v298_v37  ;;  %v580_v12 = vld [vmem:[#allocation13 + $0x168] sm:$0xff]  ;;  %v582_v13 = vld [vmem:[#allocation13 + $0x178] sm:$0xff]  ;;  %v579_v14 = vld [vmem:[#allocation13 + $0x160] sm:$0xff] }
  0xd5   :  { %457 = vmatpush1.msra.mxu1 %v294_v33  ;;  %377 = vmatprep.subr.mxu0 %v296_v38  ;;  %v581_v15 = vld [vmem:[#allocation13 + $0x170] sm:$0xff]  ;;  %v576_v16 = vld [vmem:[#allocation13 + $0x148] sm:$0xff]  ;;  %v578_v17 = vld [vmem:[#allocation13 + $0x158] sm:$0xff] }
  0xd6   :  { %458 = vmatprep.subr.mxu1 %v12295_v0  ;;  %378 = vmatpush1.msra.mxu0 %v295_v40  ;;  %v575_v18 = vld [vmem:[#allocation13 + $0x140] sm:$0xff]  ;;  %v572_v20 = vld [vmem:[#allocation13 + $0x128] sm:$0xff]  ;;  %v574_v21 = vld [vmem:[#allocation13 + $0x138] sm:$0xff] }
  0xd7   :  { %459 = vmatpush1.msra.mxu1 %v291_v36  ;;  %379 = vmatprep.subr.mxu0 %v293_v41  ;;  %v571_v22 = vld [vmem:[#allocation13 + $0x120] sm:$0xff]  ;;  %v573_v23 = vld [vmem:[#allocation13 + $0x130] sm:$0xff]  ;;  %v568_v24 = vld [vmem:[#allocation13 + $0x108] sm:$0xff] }
  0xd8   :  { %460 = vmatprep.subr.mxu1 %v12295_v0  ;;  %380 = vmatpush1.msra.mxu0 %v292_v43  ;;  %v570_v25 = vld [vmem:[#allocation13 + $0x118] sm:$0xff]  ;;  %v567_v26 = vld [vmem:[#allocation13 + $0x100] sm:$0xff]  ;;  %v569_v27 = vld [vmem:[#allocation13 + $0x110] sm:$0xff] }
  0xd9   :  { %461 = vmatpush1.msra.mxu1 %v288_v39  ;;  %381 = vmatprep.subr.mxu0 %v290_v44  ;;  %v564_v28 = vld [vmem:[#allocation13 + $0xe8] sm:$0xff]  ;;  %v566_v29 = vld [vmem:[#allocation13 + $0xf8] sm:$0xff]  ;;  %v563_v30 = vld [vmem:[#allocation13 + $0xe0] sm:$0xff] }
  0xda   :  { %462 = vmatprep.subr.mxu1 %v12295_v0  ;;  %382 = vmatpush1.msra.mxu0 %v289_v46  ;;  %v565_v31 = vld [vmem:[#allocation13 + $0xf0] sm:$0xff]  ;;  %v560_v32 = vld [vmem:[#allocation13 + $0xc8] sm:$0xff]  ;;  %v562_v33 = vld [vmem:[#allocation13 + $0xd8] sm:$0xff] }
  0xdb   :  { %463 = vmatpush1.msra.mxu1 %v285_v42  ;;  %383 = vmatprep.subr.mxu0 %v287_v47  ;;  %v559_v34 = vld [vmem:[#allocation13 + $0xc0] sm:$0xff]  ;;  %v561_v35 = vld [vmem:[#allocation13 + $0xd0] sm:$0xff]  ;;  %v556_v36 = vld [vmem:[#allocation13 + $0xa8] sm:$0xff] }
  0xdc   :  { %492 = vmatprep.subr.mxu1 %v12295_v0  ;;  %384 = vmatpush1.msra.mxu0 %v286_v49  ;;  %v558_v37 = vld [vmem:[#allocation13 + $0xb8] sm:$0xff]  ;;  %v555_v38 = vld [vmem:[#allocation13 + $0xa0] sm:$0xff]  ;;  %v557_v39 = vld [vmem:[#allocation13 + $0xb0] sm:$0xff] }
  0xdd   :  { %9944 = vmatpush2.msk.msra.mxu1 %vm345_vm1, %v336_v45  ;;  %385 = vmatprep.subr.mxu0 %v284_v51  ;;  %v552_v40 = vld [vmem:[#allocation13 + $0x88] sm:$0xff]  ;;  %v554_v41 = vld [vmem:[#allocation13 + $0x98] sm:$0xff]  ;;  %v551_v42 = vld [vmem:[#allocation13 + $0x80] sm:$0xff] }
  0xde   :  { %494 = vmatprep.subr.mxu1 %v12295_v0  ;;  %386 = vmatpush1.msra.mxu0 %v283_v53  ;;  %v553_v43 = vld [vmem:[#allocation13 + $0x90] sm:$0xff]  ;;  %v548_v44 = vld [vmem:[#allocation13 + $0x68] sm:$0xff]  ;;  %v550_v45 = vld [vmem:[#allocation13 + $0x78] sm:$0xff] }
  0xdf   :  { %495 = vmatpush2.msra.mxu1 %v333_v48  ;;  %9940 = vmatprep.subr.msk.mxu0 %vm345_vm1, %v335_v54  ;;  %v547_v46 = vld [vmem:[#allocation13 + $0x60] sm:$0xff]  ;;  %v549_v47 = vld [vmem:[#allocation13 + $0x70] sm:$0xff]  ;;  %v544_v48 = vld [vmem:[#allocation13 + $0x48] sm:$0xff] }
  0xe0   :  { %497 = vmatmul.mubr.f32.vlgmr.msra.gmra.mxu1 %v279_v50  ;;  %9942 = vmatprep.mubr.msk.f32.mxu0 %vm338_vm0, %v12478_v19  ;;  %v577_v19 = vld [vmem:[#allocation13 + $0x150] sm:$0xff]  ;;  %v546_v49 = vld [vmem:[#allocation13 + $0x58] sm:$0xff]  ;;  %v539_v54 = vld [vmem:[#allocation13 + $0x20] sm:$0xff] }
  0xe1   :  { %9946 = vmatprep.mubr.msk.f32.mxu1 %vm338_vm0, %v282_v52  ;;  %9941 = vmatpush2.msk.msra.mxu0 %vm345_vm1, %v334_v55  ;;  %v545_v51 = vld [vmem:[#allocation13 + $0x50] sm:$0xff]  ;;  %v542_v53 = vld [vmem:[#allocation13 + $0x38] sm:$0xff] }
  0xe2   :  { %417 = vmatprep.subr.mxu0 %v332_v57  ;;  %693 = vmatprep.subr.mxu1 %v598_v60  ;;  %v541_v55 = vld [vmem:[#allocation13 + $0x30] sm:$0xff]  ;;  %v538_v57 = vld [vmem:[#allocation13 + $0x18] sm:$0xff] }
  0xe3   :  { %418 = vmatpush2.msra.mxu0 %v331_v58  ;;  %694 = vmatpush1.msra.mxu1 %v597_v62  ;;  %v535_v58 = vld [vmem:[#allocation13] sm:$0xff] }
  0xe4   :  { %502 = vmatmul.mubr.f32.gmra.mxu1 %v281_v56  ;;  %420 = vmatmul.mubr.f32.vlgmr.msra.gmra.mxu0 %v279_v50  ;;  %v543_v50 = vld [vmem:[#allocation13 + $0x40] sm:$0xff] }
  0xe5   :  { %757 = vmatprep.mubr.f32.mxu1 %v12295_v0  ;;  %9943 = vmatprep.mubr.msk.f32.mxu0 %vm338_vm0, %v282_v52  ;;  %v540_v52 = vld [vmem:[#allocation13 + $0x28] sm:$0xff] }
  0xe6   :  { %616 = vmatprep.subr.mxu0 %v596_v59  ;;  %695 = vmatprep.subr.mxu1 %v594_v1  ;;  %v537_v59 = vld [vmem:[#allocation13 + $0x10] sm:$0xff] }
  0xe7   :  { %617 = vmatpush1.msra.mxu0 %v595_v61  ;;  %696 = vmatpush1.msra.mxu1 %v593_v3 }
  0xe8   :  { %426 = vmatmul.mubr.f32.gmra.mxu0 %v281_v56  ;;  %618 = vmatprep.subr.mxu0 %v592_v63  ;;  %v536_v56 = vld [vmem:[#allocation13 + $0x8] sm:$0xff] }
  0xe9   :  { %680 = vmatprep.mubr.f32.mxu0 %v12295_v0  ;;  %619 = vmatpush1.msra.mxu0 %v591_v2 }
  0xea   :  { %620 = vmatprep.subr.mxu0 %v588_v4  ;;  %697 = vmatprep.subr.mxu1 %v590_v5  ;;  %v523_v5 = vlaneseq }
  0xeb   :  { %621 = vmatpush1.msra.mxu0 %v587_v6  ;;  %698 = vmatpush1.msra.mxu1 %v589_v7 }
  0xec   :  { %622 = vmatprep.subr.mxu0 %v584_v8  ;;  %699 = vmatprep.subr.mxu1 %v586_v9  ;;  %v12513_v9 = vshrl.u32 %v523_v5, 7 }
  0xed   :  { %623 = vmatpush1.msra.mxu0 %v583_v10  ;;  %700 = vmatpush1.msra.mxu1 %v585_v11 }
  0xee   :  { %624 = vmatprep.subr.mxu0 %v580_v12  ;;  %701 = vmatprep.subr.mxu1 %v582_v13  ;;  %v12516_v11 = vsub.s32 0, %v12513_v9  ;;  %v337_v12 = vld [vmem:[#allocation11] sm:$0x3] }
  0xef   :  { %625 = vmatpush1.msra.mxu0 %v579_v14  ;;  %702 = vmatpush1.msra.mxu1 %v581_v15  ;;  %v12519_v14 = vsub.s32 1, %v12513_v9 }
  0xf0   :  { %626 = vmatprep.subr.mxu0 %v576_v16  ;;  %703 = vmatprep.subr.mxu1 %v578_v17  ;;  %v526_v16 = vrot.slane %v337_v12, %v12516_v11 }
  0xf1   :  { %627 = vmatpush1.msra.mxu0 %v575_v18  ;;  %704 = vmatpush1.msra.mxu1 %v577_v19 }
  0xf2   :  { %628 = vmatprep.subr.mxu0 %v572_v20  ;;  %705 = vmatprep.subr.mxu1 %v574_v21  ;;  %v532_v20 = vrot.slane %v337_v12, %v12519_v14 }
  0xf3   :  { %629 = vmatpush1.msra.mxu0 %v571_v22  ;;  %706 = vmatpush1.msra.mxu1 %v573_v23 }
  0xf4   :  { %630 = vmatprep.subr.mxu0 %v568_v24  ;;  %707 = vmatprep.subr.mxu1 %v570_v25 }
  0xf5   :  { %631 = vmatpush1.msra.mxu0 %v567_v26  ;;  %708 = vmatpush1.msra.mxu1 %v569_v27 }
  0xf6   :  { %632 = vmatprep.subr.mxu0 %v564_v28  ;;  %709 = vmatprep.subr.mxu1 %v566_v29 }
  0xf7   :  { %633 = vmatpush1.msra.mxu0 %v563_v30  ;;  %710 = vmatpush1.msra.mxu1 %v565_v31 }
  0xf8   :  { %634 = vmatprep.subr.mxu0 %v560_v32  ;;  %711 = vmatprep.subr.mxu1 %v562_v33 }
  0xf9   :  { %635 = vmatpush1.msra.mxu0 %v559_v34  ;;  %712 = vmatpush1.msra.mxu1 %v561_v35 }
  0xfa   :  { %636 = vmatprep.subr.mxu0 %v556_v36  ;;  %713 = vmatprep.subr.mxu1 %v558_v37 }
  0xfb   :  { %637 = vmatpush1.msra.mxu0 %v555_v38  ;;  %714 = vmatpush1.msra.mxu1 %v557_v39 }
  0xfc   :  { %638 = vmatprep.subr.mxu0 %v552_v40  ;;  %715 = vmatprep.subr.mxu1 %v554_v41 }
  0xfd   :  { %639 = vmatpush1.msra.mxu0 %v551_v42  ;;  %716 = vmatpush1.msra.mxu1 %v553_v43 }
  0xfe   :  { %640 = vmatprep.subr.mxu0 %v548_v44  ;;  %717 = vmatprep.subr.mxu1 %v550_v45 }
  0xff   :  { %641 = vmatpush1.msra.mxu0 %v547_v46  ;;  %718 = vmatpush1.msra.mxu1 %v549_v47 }
 0x100   :  { %642 = vmatprep.subr.mxu0 %v544_v48  ;;  %719 = vmatprep.subr.mxu1 %v546_v49 }
 0x101   :  { %643 = vmatpush1.msra.mxu0 %v543_v50  ;;  %720 = vmatpush1.msra.mxu1 %v545_v51 }
 0x102   :  { %644 = vmatprep.subr.mxu0 %v540_v52  ;;  %721 = vmatprep.subr.mxu1 %v542_v53 }
 0x103   :  { %645 = vmatpush1.msra.mxu0 %v539_v54  ;;  %722 = vmatpush1.msra.mxu1 %v541_v55 }
 0x104   :  { %646 = vmatprep.subr.mxu0 %v536_v56  ;;  %723 = vmatprep.subr.mxu1 %v538_v57 }
 0x105   :  { %647 = vmatpush1.msra.mxu0 %v535_v58  ;;  %724 = vmatpush1.msra.mxu1 %v537_v59 }
 0x106   :  { %11123 = vmatprep.subr.mxu1 %v12295_v0  ;;  %11143 = vmatprep.subr.mxu0 %v12295_v0 }
 0x1a0   :  { %v498_v60 = vpop.f32.mrf.mxu1 }
 0x1a1   :  { %v9947_v61 = vmul.f32 -1.442695, %v498_v60 }
 0x1a2   :  { %v500_v62 = vpop.f32.mrf.mxu1 }
 0x1a3   :  { %11393 = vpow2.f32 %v9947_v61 }
 0x1a4   :  { %v503_v63 = vpop.f32.mrf.mxu1  ;;  %v421_v7 = vpop.f32.mrf.mxu0 }
 0x1a5   :  { %v9948_v1 = vmul.f32 -1.442695, %v503_v63 }
 0x1a6   :  { %v505_v2 = vpop.f32.mrf.mxu1  ;;  %v423_v10 = vpop.f32.mrf.mxu0 }
 0x1a7   :  { %11395 = vpow2.f32 %v9948_v1  ;;  %v507_v15 = vadd.f32 %v423_v10, %v421_v7 }
 0x1a8   :  { %v427_v13 = vpop.f32.mrf.mxu0 }
 0x1aa   :  { %v429_v18 = vpop.f32.mrf.mxu0 }
 0x1ab   :  { %v508_v22 = vadd.f32 %v429_v18, %v427_v13 }
 0x1b0   :  { %v11394_v3 = vpop.eup %11393 }
 0x1b1   :  { %v515_v4 = vadd.f32 1.0, %v11394_v3 }
 0x1b3   :  { %11397 = vrcp.f32 %v515_v4 }
 0x1b4   :  { %v11396_v6 = vpop.eup %11395 }
 0x1b5   :  { %v516_v8 = vadd.f32 1.0, %v11396_v6 }
 0x1b7   :  { %11399 = vrcp.f32 %v516_v8 }
 0x1c0   :  { %v11398_v17 = vpop.eup %11397 }
 0x1c1   :  { %v521_v19 = vmul.f32 %v11398_v17, %v507_v15 }
 0x1c3   :  { %v527_v21 = vmul.f32 %v526_v16, %v521_v19 }
 0x1c4   :  { %v11400_v23 = vpop.eup %11399 }
 0x1c5   :  { %v12523_v24 = vadd.f32 %v532_v20, %v527_v21  ;;  %v522_v25 = vmul.f32 %v11400_v23, %v508_v22 }
 0x1c7   :  { %v528_v26 = vmul.f32 %v526_v16, %v522_v25  ;;  %681 = vmatmul.mubr.f32.vlgmr.msra.gmra.mxu0 %v12523_v24  ;;  %758 = vmatmul.mubr.f32.vlgmr.msra.gmra.mxu1 %v12523_v24 }
 0x1c8   :  { %11124 = vmatpush3.xpose.msra.mxu1 %v12523_v24  ;;  %11144 = vmatpush3.xpose.msra.mxu0 %v12523_v24 }
 0x1c9   :  { %v12529_v27 = vadd.f32 %v532_v20, %v528_v26  ;;  %686 = vmatprep.mubr.f32.mxu0 %v12295_v0  ;;  %763 = vmatprep.mubr.f32.mxu1 %v12295_v0 }
 0x1ca   :  { %11128 = vmatprep.subr.mxu1 %v12295_v0  ;;  %11153 = vmatprep.subr.mxu0 %v12295_v0 }
 0x1cb   :  { %687 = vmatmul.mubr.f32.gmra.mxu0 %v12529_v27  ;;  %764 = vmatmul.mubr.f32.gmra.mxu1 %v12529_v27 }
 0x1cc   :  { %11125 = vmatprep.mubr.msk.f32.mxu1 %vm12296_vm2, %v12295_v0  ;;  %11145 = vmatprep.mubr.msk.f32.mxu0 %vm12296_vm2, %v12295_v0 }
 0x287   :  { %v682_v28 = vpop.f32.mrf.mxu0  ;;  %v759_v29 = vpop.f32.mrf.mxu1 }
 0x288   :  { %11126 = vmatmul.mubr.f32.vlgmr.msra.gmra.mxu1 %v682_v28  ;;  %11146 = vmatmul.mubr.f32.vlgmr.msra.gmra.mxu0 %v759_v29 }
 0x289   :  { %11129 = vmatpush3.xpose.msra.mxu1 %v12529_v27  ;;  %11154 = vmatpush3.xpose.msra.mxu0 %v12523_v24  ;;  %v684_v30 = vpop.f32.mrf.mxu0  ;;  %v761_v31 = vpop.f32.mrf.mxu1 }
 0x28a   :  { %11130 = vmatprep.mubr.msk.f32.mxu1 %vm12296_vm2, %v12295_v0  ;;  %11133 = vmatprep.subr.mxu1 %v12295_v0 }
 0x28b   :  { %v688_v32 = vpop.f32.mrf.mxu0  ;;  %11155 = vmatprep.mubr.msk.f32.mxu0 %vm12296_vm2, %v12295_v0  ;;  %11163 = vmatprep.subr.mxu0 %v12295_v0  ;;  %v765_v34 = vpop.f32.mrf.mxu1 }
 0x28c   :  { %11131 = vmatmul.mubr.f32.vlgmr.msra.gmra.mxu1 %v688_v32  ;;  %11156 = vmatmul.mubr.f32.vlgmr.msra.gmra.mxu0 %v761_v31 }
 0x28d   :  { %11134 = vmatpush3.xpose.msra.mxu1 %v12523_v24  ;;  %11164 = vmatpush3.msra.mxu0 %v12523_v24  ;;  %v690_v33 = vpop.f32.mrf.mxu0  ;;  %v767_v35 = vpop.f32.mrf.mxu1 }
 0x28e   :  { %11135 = vmatprep.mubr.msk.f32.mxu1 %vm12296_vm2, %v12295_v0  ;;  %11138 = vmatprep.subr.mxu1 %v12295_v0 }
 0x28f   :  { %11165 = vmatprep.mubr.msk.f32.mxu0 %vm12296_vm2, %v12295_v0 }
 0x290   :  { %11136 = vmatmul.mubr.f32.vlgmr.msra.gmra.mxu1 %v684_v30 }
 0x291   :  { %11139 = vmatpush3.xpose.msra.mxu1 %v12529_v27  ;;  %11140 = vmatprep.mubr.msk.f32.mxu1 %vm12296_vm2, %v12295_v0 }
 0x292   :  { %11148 = vmatprep.subr.mxu1 %v12295_v0 }
 0x294   :  { %11141 = vmatmul.mubr.f32.vlgmr.msra.gmra.mxu1 %v690_v33 }
 0x295   :  { %11149 = vmatpush3.xpose.msra.mxu1 %v12529_v27  ;;  %11150 = vmatprep.mubr.msk.f32.mxu1 %vm12296_vm2, %v12295_v0 }
 0x296   :  { %11158 = vmatprep.subr.mxu1 %v12295_v0 }
 0x298   :  { %11151 = vmatmul.mubr.f32.vlgmr.msra.gmra.mxu1 %v765_v34 }
 0x299   :  { %11159 = vmatpush3.xpose.msra.mxu1 %v12529_v27  ;;  %11160 = vmatprep.mubr.msk.f32.mxu1 %vm12296_vm2, %v12295_v0 }
 0x29a   :  { %11168 = vmatprep.subr.mxu1 %v12295_v0 }
 0x29c   :  { %11161 = vmatmul.mubr.f32.vlgmr.msra.gmra.mxu1 %v767_v35 }
 0x29d   :  { %11169 = vmatpush3.msra.mxu1 %v12529_v27  ;;  %11170 = vmatprep.mubr.msk.f32.mxu1 %vm12296_vm2, %v12295_v0 }
 0x348   :  { %v836_v36 = vpop.f32.mrf.mxu1  ;;  %v1165_v37 = vpop.f32.mrf.mxu0 }
 0x349   :  { %v911_v38 = vsel %vm910_vm3, %v836_v36, -inf  ;;  %v1239_v44 = vsel %vm910_vm3, %v1165_v37, -inf }
 0x34a   :  { %912 = vmax.xlane.f32.xlu0 %v911_v38  ;;  %v11127_v39 = vpop.f32.mrf.mxu1  ;;  %v11147_v40 = vpop.f32.mrf.mxu0 }
 0x34c   :  { %v906_v41 = vpop.f32.mrf.mxu1  ;;  %v1329_v42 = vpop.f32.mrf.mxu0 }
 0x34d   :  { %v914_v43 = vsel %vm910_vm3, %v906_v41, -inf  ;;  %v1403_v51 = vsel %vm910_vm3, %v1329_v42, -inf }
 0x34e   :  { %915 = vmax.xlane.f32.xlu1 %v914_v43  ;;  %v11132_v45 = vpop.f32.mrf.mxu1  ;;  %1240 = vmax.xlane.f32.xlu0 %v1239_v44  ;;  %v11157_v46 = vpop.f32.mrf.mxu0 }
 0x350   :  { %v1001_v47 = vpop.f32.mrf.mxu1 }
 0x351   :  { %v1075_v48 = vsel %vm910_vm3, %v1001_v47, -inf }
 0x352   :  { %v11137_v49 = vpop.f32.mrf.mxu1  ;;  %1076 = vmax.xlane.f32.xlu0 %v1075_v48 }
 0x354   :  { %v1071_v50 = vpop.f32.mrf.mxu1 }
 0x355   :  { %v1078_v52 = vsel %vm910_vm3, %v1071_v50, -inf }
 0x356   :  { %1404 = vmax.xlane.f32.xlu0 %v1403_v51  ;;  %1079 = vmax.xlane.f32.xlu1 %v1078_v52  ;;  %v11142_v53 = vpop.f32.mrf.mxu1 }
 0x358   :  { %v1235_v54 = vpop.f32.mrf.mxu1 }
 0x359   :  { %v1242_v55 = vsel %vm910_vm3, %v1235_v54, -inf }
 0x35a   :  { %1243 = vmax.xlane.f32.xlu1 %v1242_v55  ;;  %v11152_v56 = vpop.f32.mrf.mxu1 }
 0x35c   :  { %v1399_v57 = vpop.f32.mrf.mxu1 }
 0x35d   :  { %v1406_v58 = vsel %vm910_vm3, %v1399_v57, -inf }
 0x35e   :  { %1407 = vmax.xlane.f32.xlu1 %v1406_v58  ;;  %v11162_v59 = vpop.f32.mrf.mxu1 }
 0x3d3   :  { %v913_v60 = vpop.xlane.xlu0 %912 }
 0x3d4   :  { %v917_v61 = vsub.f32 %v836_v36, %v913_v60 }
 0x3d6   :  { %v919_v62 = vmul.f32 1.442695, %v917_v61 }
 0x3d7   :  { %v916_v63 = vpop.xlane.xlu1 %915  ;;  %v1241_v1 = vpop.xlane.xlu0 %1240 }
 0x3d8   :  { %11401 = vpow2.f32 %v919_v62  ;;  %v918_v2 = vsub.f32 %v906_v41, %v916_v63  ;;  %v1245_v3 = vsub.f32 %v1165_v37, %v1241_v1 }
 0x3da   :  { %v1247_v4 = vmul.f32 1.442695, %v1245_v3  ;;  %v921_v5 = vmul.f32 1.442695, %v918_v2 }
 0x3db   :  { %v1077_v6 = vpop.xlane.xlu0 %1076 }
 0x3dc   :  { %v1081_v7 = vsub.f32 %v1001_v47, %v1077_v6  ;;  %11403 = vpow2.f32 %v1247_v4  ;;  %v613_v6 = vld [vmem:[#allocation14 + $0x70] sm:$0xff] }
 0x3dd   :  { %11405 = vpow2.f32 %v921_v5 }
 0x3de   :  { %v1083_v8 = vmul.f32 1.442695, %v1081_v7 }
 0x3df   :  { %v1405_v10 = vpop.xlane.xlu0 %1404  ;;  %v1080_v12 = vpop.xlane.xlu1 %1079 }
 0x3e0   :  { %11407 = vpow2.f32 %v1083_v8  ;;  %v1409_v13 = vsub.f32 %v1329_v42, %v1405_v10  ;;  %v1082_v15 = vsub.f32 %v1071_v50, %v1080_v12  ;;  %v614_v42 = vld [vmem:[#allocation14 + $0x78] sm:$0xff]  ;;  %v612_v10 = vld [vmem:[#allocation14 + $0x68] sm:$0xff] }
 0x3e1   :  { %11173 = vmatprep.subr.mxu0 %v614_v42 }
 0x3e2   :  { %v1411_v16 = vmul.f32 1.442695, %v1409_v13  ;;  %v1085_v17 = vmul.f32 1.442695, %v1082_v15  ;;  %v611_v15 = vld [vmem:[#allocation14 + $0x60] sm:$0xff] }
 0x3e3   :  { %v1244_v18 = vpop.xlane.xlu1 %1243 }
 0x3e4   :  { %11409 = vpow2.f32 %v1411_v16  ;;  %v1246_v19 = vsub.f32 %v1235_v54, %v1244_v18 }
 0x3e5   :  { %v11402_v20 = vpop.eup %11401  ;;  %11411 = vpow2.f32 %v1085_v17  ;;  %v610_v17 = vld [vmem:[#allocation14 + $0x58] sm:$0xff] }
 0x3e6   :  { %v1249_v21 = vmul.f32 1.442695, %v1246_v19  ;;  %v923_v22 = vsel %vm910_vm3, %v11402_v20, 0.0  ;;  %v609_v19 = vld [vmem:[#allocation14 + $0x50] sm:$0xff] }
 0x3e7   :  { %924 = vadd.xlane.f32.xlu0 %v923_v22  ;;  %v1408_v23 = vpop.xlane.xlu1 %1407  ;;  %v606_v22 = vld [vmem:[#allocation14 + $0x38] sm:$0xff] }
 0x3e8   :  { %11413 = vpow2.f32 %v1249_v21  ;;  %v1410_v25 = vsub.f32 %v1399_v57, %v1408_v23  ;;  %v607_v21 = vld [vmem:[#allocation14 + $0x40] sm:$0xff]  ;;  %v605_v23 = vld [vmem:[#allocation14 + $0x30] sm:$0xff] }
 0x3e9   :  { %v11404_v26 = vpop.eup %11403 }
 0x3ea   :  { %v1413_v28 = vmul.f32 1.442695, %v1410_v25  ;;  %v1251_v29 = vsel %vm910_vm3, %v11404_v26, 0.0  ;;  %v11406_v30 = vpop.eup %11405  ;;  %v604_v25 = vld [vmem:[#allocation14 + $0x28] sm:$0xff] }
 0x3eb   :  { %1252 = vadd.xlane.f32.xlu0 %v1251_v29  ;;  %v926_v33 = vsel %vm910_vm3, %v11406_v30, 0.0  ;;  %v601_v29 = vld [vmem:[#allocation14 + $0x10] sm:$0xff] }
 0x3ec   :  { %11415 = vpow2.f32 %v1413_v28  ;;  %v602_v28 = vld [vmem:[#allocation14 + $0x18] sm:$0xff] }
 0x3ed   :  { %v11408_v31 = vpop.eup %11407 }
 0x3ee   :  { %v1087_v32 = vsel %vm910_vm3, %v11408_v31, 0.0 }
 0x3ef   :  { %1088 = vadd.xlane.f32.xlu1 %v1087_v32  ;;  %927 = vadd.xlane.f32.xlu0 %v926_v33  ;;  %v1719_v32 = vld [vmem:[#allocation17 + $0x1e8] sm:$0xff]  ;;  %v1718_v33 = vld [vmem:[#allocation17 + $0x1e0] sm:$0xff] }
 0x3f0   :  { %1739 = vmatprep.subr.mxu1 %v1719_v32  ;;  %v1669_v32 = vld [vmem:[#allocation17 + $0x58] sm:$0xff] }
 0x3f1   :  { %v11410_v34 = vpop.eup %11409 }
 0x3f2   :  { %v11412_v35 = vpop.eup %11411  ;;  %v1415_v36 = vsel %vm910_vm3, %v11410_v34, 0.0 }
 0x3f3   :  { %v1090_v37 = vsel %vm910_vm3, %v11412_v35, 0.0  ;;  %1416 = vadd.xlane.f32.xlu0 %v1415_v36  ;;  %v1714_v36 = vld [vmem:[#allocation17 + $0x1c0] sm:$0xff] }
 0x3f4   :  { %1091 = vadd.xlane.f32.xlu1 %v1090_v37  ;;  %v1711_v37 = vld [vmem:[#allocation17 + $0x1a8] sm:$0xff] }
 0x3f5   :  { %v11414_v38 = vpop.eup %11413 }
 0x3f6   :  { %v1254_v39 = vsel %vm910_vm3, %v11414_v38, 0.0 }
 0x3f8   :  { %1255 = vadd.xlane.f32.xlu1 %v1254_v39  ;;  %v1707_v39 = vld [vmem:[#allocation17 + $0x188] sm:$0xff] }
 0x3f9   :  { %v11416_v40 = vpop.eup %11415 }
 0x3fa   :  { %v1418_v41 = vsel %vm910_vm3, %v11416_v40, 0.0 }
 0x3fc   :  { %1419 = vadd.xlane.f32.xlu1 %v1418_v41  ;;  %v1703_v41 = vld [vmem:[#allocation17 + $0x168] sm:$0xff] }
 0x470   :  { %v925_v43 = vpop.xlane.xlu0 %924 }
 0x471   :  { %11417 = vrcp.f32 %v925_v43  ;;  %v1699_v43 = vld [vmem:[#allocation17 + $0x148] sm:$0xff] }
 0x474   :  { %v1253_v44 = vpop.xlane.xlu0 %1252 }
 0x475   :  { %11419 = vrcp.f32 %v1253_v44  ;;  %v1698_v44 = vld [vmem:[#allocation17 + $0x140] sm:$0xff] }
 0x478   :  { %v1089_v45 = vpop.xlane.xlu1 %1088  ;;  %v928_v46 = vpop.xlane.xlu0 %927 }
 0x479   :  { %11421 = vrcp.f32 %v1089_v45  ;;  %v1695_v45 = vld [vmem:[#allocation17 + $0x128] sm:$0xff] }
 0x47c   :  { %v1417_v47 = vpop.xlane.xlu0 %1416 }
 0x47d   :  { %v1092_v48 = vpop.xlane.xlu1 %1091  ;;  %11423 = vrcp.f32 %v1417_v47  ;;  %v1691_v47 = vld [vmem:[#allocation17 + $0x108] sm:$0xff] }
 0x47e   :  { %11425 = vrcp.f32 %v1092_v48  ;;  %v11418_v50 = vpop.eup %11417  ;;  %v1690_v48 = vld [vmem:[#allocation17 + $0x100] sm:$0xff] }
 0x47f   :  { %11427 = vrcp.f32 %v928_v46  ;;  %v931_v54 = vmul.f32 %v11418_v50, %v11402_v20  ;;  %v608_v20 = vld [vmem:[#allocation14 + $0x48] sm:$0xff] }
 0x480   :  { %v1694_v46 = vld [vmem:[#allocation17 + $0x120] sm:$0xff] }
 0x481   :  { %v1256_v49 = vpop.xlane.xlu1 %1255  ;;  %v1686_v50 = vld [vmem:[#allocation17 + $0xe0] sm:$0xff] }
 0x482   :  { %11429 = vrcp.f32 %v1256_v49  ;;  %v11420_v51 = vpop.eup %11419  ;;  %v1687_v49 = vld [vmem:[#allocation17 + $0xe8] sm:$0xff] }
 0x483   :  { %v1259_v56 = vmul.f32 %v11420_v51, %v11404_v26  ;;  %v603_v26 = vld [vmem:[#allocation14 + $0x20] sm:$0xff]  ;;  %v1683_v51 = vld [vmem:[#allocation17 + $0xc8] sm:$0xff] }
 0x485   :  { %v1420_v52 = vpop.xlane.xlu1 %1419 }
 0x486   :  { %v11422_v53 = vpop.eup %11421  ;;  %11431 = vrcp.f32 %v1420_v52  ;;  %v1682_v52 = vld [vmem:[#allocation17 + $0xc0] sm:$0xff] }
 0x487   :  { %v1095_v55 = vmul.f32 %v11422_v53, %v11408_v31  ;;  %v599_v31 = vld [vmem:[#allocation14] sm:$0xff]  ;;  %v1679_v53 = vld [vmem:[#allocation17 + $0xa8] sm:$0xff] }
 0x489   :  { %v1097_v57 = vadd.f32 %v1095_v55, %v931_v54  ;;  %v1678_v54 = vld [vmem:[#allocation17 + $0xa0] sm:$0xff]  ;;  %v1675_v55 = vld [vmem:[#allocation17 + $0x88] sm:$0xff] }
 0x48a   :  { %v11424_v58 = vpop.eup %11423 }
 0x48b   :  { %v1261_v59 = vadd.f32 %v1259_v56, %v1097_v57  ;;  %v11426_v60 = vpop.eup %11425  ;;  %v1423_v61 = vmul.f32 %v11424_v58, %v11410_v34  ;;  %v1721_v34 = vld [vmem:[#allocation17 + $0x1f8] sm:$0xff]  ;;  %v1674_v56 = vld [vmem:[#allocation17 + $0x80] sm:$0xff]  ;;  %v1671_v57 = vld [vmem:[#allocation17 + $0x68] sm:$0xff] }
 0x48c   :  { %v11428_v62 = vpop.eup %11427  ;;  %v1096_v63 = vmul.f32 %v11426_v60, %v11412_v35  ;;  %v1715_v35 = vld [vmem:[#allocation17 + $0x1c8] sm:$0xff]  ;;  %v1670_v58 = vld [vmem:[#allocation17 + $0x60] sm:$0xff] }
 0x48d   :  { %v1425_v1 = vadd.f32 %v1423_v61, %v1261_v59  ;;  %v932_v3 = vmul.f32 %v11428_v62, %v11406_v30  ;;  %v600_v30 = vld [vmem:[#allocation14 + $0x8] sm:$0xff]  ;;  %v1720_v61 = vld [vmem:[#allocation17 + $0x1f0] sm:$0xff] }
 0x48f   :  { %v11430_v2 = vpop.eup %11429  ;;  %v1427_v5 = vmul.f32 0.25, %v1425_v1  ;;  %v1098_v7 = vadd.f32 %v1096_v63, %v932_v3  ;;  %v1717_v63 = vld [vmem:[#allocation17 + $0x1d8] sm:$0xff]  ;;  %v1716_v1 = vld [vmem:[#allocation17 + $0x1d0] sm:$0xff] }
 0x490   :  { %v1260_v4 = vmul.f32 %v11430_v2, %v11414_v38  ;;  %v1710_v38 = vld [vmem:[#allocation17 + $0x1a0] sm:$0xff]  ;;  %v1713_v3 = vld [vmem:[#allocation17 + $0x1b8] sm:$0xff] }
 0x491   :  { %11166 = vmatmul.mubr.msk.f32.vlgmr.msra.gmra.mxu0 %vm910_vm3, %v1427_v5  ;;  %v1709_v5 = vld [vmem:[#allocation17 + $0x198] sm:$0xff] }
 0x492   :  { %11174 = vmatpush3.msra.mxu0 %v614_v42  ;;  %v1262_v12 = vadd.f32 %v1260_v4, %v1098_v7  ;;  %v1702_v42 = vld [vmem:[#allocation17 + $0x160] sm:$0xff]  ;;  %v1712_v4 = vld [vmem:[#allocation17 + $0x1b0] sm:$0xff]  ;;  %v1705_v7 = vld [vmem:[#allocation17 + $0x178] sm:$0xff] }
 0x493   :  { %v11432_v8 = vpop.eup %11431  ;;  %11175 = vmatprep.subr.mxu0 %v613_v6 }
 0x494   :  { %v1424_v13 = vmul.f32 %v11432_v8, %v11416_v40  ;;  %11176 = vmatpush3.msra.mxu0 %v613_v6  ;;  %v1706_v40 = vld [vmem:[#allocation17 + $0x180] sm:$0xff]  ;;  %v1708_v6 = vld [vmem:[#allocation17 + $0x190] sm:$0xff] }
 0x495   :  { %11177 = vmatprep.subr.mxu0 %v612_v10  ;;  %v1704_v8 = vld [vmem:[#allocation17 + $0x170] sm:$0xff] }
 0x496   :  { %v1426_v16 = vadd.f32 %v1424_v13, %v1262_v12  ;;  %11178 = vmatpush3.msra.mxu0 %v612_v10  ;;  %v1701_v10 = vld [vmem:[#allocation17 + $0x158] sm:$0xff]  ;;  %v1700_v12 = vld [vmem:[#allocation17 + $0x150] sm:$0xff] }
 0x497   :  { %11179 = vmatprep.subr.mxu0 %v611_v15  ;;  %v1697_v13 = vld [vmem:[#allocation17 + $0x138] sm:$0xff] }
 0x498   :  { %v1428_v18 = vmul.f32 0.25, %v1426_v16  ;;  %11180 = vmatpush3.msra.mxu0 %v611_v15  ;;  %v1696_v15 = vld [vmem:[#allocation17 + $0x130] sm:$0xff]  ;;  %v1693_v16 = vld [vmem:[#allocation17 + $0x118] sm:$0xff] }
 0x499   :  { %11181 = vmatprep.subr.mxu0 %v610_v17 }
 0x49a   :  { %11171 = vmatmul.mubr.msk.f32.vlgmr.msra.gmra.mxu1 %vm910_vm3, %v1428_v18  ;;  %11182 = vmatpush3.msra.mxu0 %v610_v17  ;;  %v1692_v17 = vld [vmem:[#allocation17 + $0x110] sm:$0xff]  ;;  %v1689_v18 = vld [vmem:[#allocation17 + $0xf8] sm:$0xff] }
 0x49b   :  { %1803 = vmatprep.mubr.f32.mxu1 %v12295_v0  ;;  %11183 = vmatprep.subr.mxu0 %v609_v19 }
 0x49c   :  { %11184 = vmatpush3.msra.mxu0 %v609_v19  ;;  %1740 = vmatpush1.msra.mxu1 %v1718_v33  ;;  %v1688_v19 = vld [vmem:[#allocation17 + $0xf0] sm:$0xff]  ;;  %v1663_v33 = vld [vmem:[#allocation17 + $0x28] sm:$0xff] }
 0x49d   :  { %11185 = vmatprep.subr.mxu0 %v608_v20  ;;  %1741 = vmatprep.subr.mxu1 %v1715_v35  ;;  %v1662_v35 = vld [vmem:[#allocation17 + $0x20] sm:$0xff] }
 0x49e   :  { %11186 = vmatpush3.msra.mxu0 %v608_v20  ;;  %1742 = vmatpush1.msra.mxu1 %v1714_v36  ;;  %v1685_v20 = vld [vmem:[#allocation17 + $0xd8] sm:$0xff] }
 0x49f   :  { %11187 = vmatprep.subr.mxu0 %v607_v21  ;;  %1743 = vmatprep.subr.mxu1 %v1711_v37  ;;  %v1665_v36 = vld [vmem:[#allocation17 + $0x38] sm:$0xff]  ;;  %v1659_v37 = vld [vmem:[#allocation17 + $0x8] sm:$0xff] }
 0x4a0   :  { %11188 = vmatpush3.msra.mxu0 %v607_v21  ;;  %1744 = vmatpush1.msra.mxu1 %v1710_v38  ;;  %v1684_v21 = vld [vmem:[#allocation17 + $0xd0] sm:$0xff] }
 0x4a1   :  { %11189 = vmatprep.subr.mxu0 %v606_v22  ;;  %1745 = vmatprep.subr.mxu1 %v1707_v39  ;;  %v1664_v38 = vld [vmem:[#allocation17 + $0x30] sm:$0xff]  ;;  %v1658_v39 = vld [vmem:[#allocation17] sm:$0xff] }
 0x4a2   :  { %11190 = vmatpush3.msra.mxu0 %v606_v22  ;;  %1746 = vmatpush1.msra.mxu1 %v1706_v40  ;;  %v1681_v22 = vld [vmem:[#allocation17 + $0xb8] sm:$0xff] }
 0x4a3   :  { %11191 = vmatprep.subr.mxu0 %v605_v23  ;;  %1747 = vmatprep.subr.mxu1 %v1703_v41  ;;  %v1661_v40 = vld [vmem:[#allocation17 + $0x18] sm:$0xff]  ;;  %v1660_v41 = vld [vmem:[#allocation17 + $0x10] sm:$0xff] }
 0x4a4   :  { %11192 = vmatpush3.msra.mxu0 %v605_v23  ;;  %1748 = vmatpush1.msra.mxu1 %v1702_v42  ;;  %v1680_v23 = vld [vmem:[#allocation17 + $0xb0] sm:$0xff] }
 0x4a5   :  { %11193 = vmatprep.subr.mxu0 %v604_v25  ;;  %1749 = vmatprep.subr.mxu1 %v1699_v43  ;;  %v9951_v43 = vld [vmem:[#allocation16] ss:$0 sm:$0xff] }
 0x4a6   :  { %11194 = vmatpush3.msra.mxu0 %v604_v25  ;;  %1750 = vmatpush1.msra.mxu1 %v1698_v44  ;;  %v1677_v25 = vld [vmem:[#allocation17 + $0x98] sm:$0xff] }
 0x4a7   :  { %11195 = vmatprep.subr.mxu0 %v603_v26  ;;  %1751 = vmatprep.subr.mxu1 %v1695_v45 }
 0x4a8   :  { %11196 = vmatpush3.msra.mxu0 %v603_v26  ;;  %1752 = vmatpush1.msra.mxu1 %v1694_v46  ;;  %v1676_v26 = vld [vmem:[#allocation17 + $0x90] sm:$0xff] }
 0x4a9   :  { %11197 = vmatprep.subr.mxu0 %v602_v28  ;;  %1753 = vmatprep.subr.mxu1 %v1691_v47 }
 0x4aa   :  { %11198 = vmatpush3.msra.mxu0 %v602_v28  ;;  %1754 = vmatpush1.msra.mxu1 %v1690_v48  ;;  %v1673_v28 = vld [vmem:[#allocation17 + $0x78] sm:$0xff] }
 0x4ab   :  { %11199 = vmatprep.subr.mxu0 %v601_v29  ;;  %1755 = vmatprep.subr.mxu1 %v1687_v49 }
 0x4ac   :  { %11200 = vmatpush3.msra.mxu0 %v601_v29  ;;  %1756 = vmatpush1.msra.mxu1 %v1686_v50  ;;  %v1667_v29 = vld [vmem:[#allocation17 + $0x48] sm:$0xff] }
 0x4ad   :  { %11201 = vmatprep.subr.mxu0 %v600_v30  ;;  %1757 = vmatprep.subr.mxu1 %v1683_v51 }
 0x4ae   :  { %11202 = vmatpush3.msra.mxu0 %v600_v30  ;;  %1758 = vmatpush1.msra.mxu1 %v1682_v52  ;;  %v1672_v30 = vld [vmem:[#allocation17 + $0x70] sm:$0xff] }
 0x4af   :  { %11203 = vmatprep.subr.mxu0 %v599_v31  ;;  %1759 = vmatprep.subr.mxu1 %v1679_v53 }
 0x4b0   :  { %11204 = vmatpush3.msra.mxu0 %v599_v31  ;;  %1760 = vmatpush1.msra.mxu1 %v1678_v54  ;;  %v1666_v31 = vld [vmem:[#allocation17 + $0x40] sm:$0xff] }
 0x4b1   :  { %1816 = vmatprep.subr.mxu0 %v1721_v34  ;;  %1761 = vmatprep.subr.mxu1 %v1675_v55  ;;  %v1668_v34 = vld [vmem:[#allocation17 + $0x50] sm:$0xff] }
 0x4b2   :  { %1762 = vmatpush1.msra.mxu1 %v1674_v56 }
 0x4b3   :  { %1763 = vmatprep.subr.mxu1 %v1671_v57 }
 0x4b4   :  { %1764 = vmatpush1.msra.mxu1 %v1670_v58 }
 0x4b5   :  { %1765 = vmatprep.subr.mxu1 %v1667_v29 }
 0x4b6   :  { %1766 = vmatpush1.msra.mxu1 %v1666_v31 }
 0x4b7   :  { %1767 = vmatprep.subr.mxu1 %v1663_v33 }
 0x4b8   :  { %1768 = vmatpush1.msra.mxu1 %v1662_v35 }
 0x4b9   :  { %1769 = vmatprep.subr.mxu1 %v1659_v37 }
 0x4ba   :  { %1770 = vmatpush1.msra.mxu1 %v1658_v39 }
 0x4bb   :  { %11208 = vmatprep.subr.mxu1 %v12295_v0 }
 0x551   :  { %v1498_v59 = vpop.f32.mrf.mxu0 }
 0x552   :  { %11205 = vmatprep.mubr.f32.mxu0 %v1498_v59 }
 0x553   :  { %v11167_v60 = vpop.f32.mrf.mxu0 }
 0x55a   :  { %v1571_v62 = vpop.f32.mrf.mxu1 }
 0x55b   :  { %11206 = vmatmul.mubr.f32.vlgmr.msra.gmra.mxu0 %v1571_v62 }
 0x55c   :  { %v11172_v2 = vpop.f32.mrf.mxu1  ;;  %1817 = vmatpush1.msra.mxu0 %v1720_v61  ;;  %1880 = vmatprep.mubr.f32.mxu0 %v12295_v0 }
 0x55d   :  { %1818 = vmatprep.subr.mxu0 %v1717_v63 }
 0x55e   :  { %1819 = vmatpush1.msra.mxu0 %v1716_v1 }
 0x55f   :  { %1820 = vmatprep.subr.mxu0 %v1713_v3 }
 0x560   :  { %1821 = vmatpush1.msra.mxu0 %v1712_v4 }
 0x561   :  { %1822 = vmatprep.subr.mxu0 %v1709_v5 }
 0x562   :  { %1823 = vmatpush1.msra.mxu0 %v1708_v6 }
 0x563   :  { %1824 = vmatprep.subr.mxu0 %v1705_v7 }
 0x564   :  { %1825 = vmatpush1.msra.mxu0 %v1704_v8 }
 0x565   :  { %1826 = vmatprep.subr.mxu0 %v1701_v10 }
 0x566   :  { %1827 = vmatpush1.msra.mxu0 %v1700_v12 }
 0x567   :  { %1828 = vmatprep.subr.mxu0 %v1697_v13 }
 0x568   :  { %1829 = vmatpush1.msra.mxu0 %v1696_v15 }
 0x569   :  { %1830 = vmatprep.subr.mxu0 %v1693_v16 }
 0x56a   :  { %1831 = vmatpush1.msra.mxu0 %v1692_v17 }
 0x56b   :  { %1832 = vmatprep.subr.mxu0 %v1689_v18 }
 0x56c   :  { %1833 = vmatpush1.msra.mxu0 %v1688_v19 }
 0x56d   :  { %1834 = vmatprep.subr.mxu0 %v1685_v20 }
 0x56e   :  { %1835 = vmatpush1.msra.mxu0 %v1684_v21 }
 0x56f   :  { %1836 = vmatprep.subr.mxu0 %v1681_v22 }
 0x570   :  { %1837 = vmatpush1.msra.mxu0 %v1680_v23 }
 0x571   :  { %1838 = vmatprep.subr.mxu0 %v1677_v25 }
 0x572   :  { %1839 = vmatpush1.msra.mxu0 %v1676_v26 }
 0x573   :  { %1840 = vmatprep.subr.mxu0 %v1673_v28 }
 0x574   :  { %1841 = vmatpush1.msra.mxu0 %v1672_v30 }
 0x575   :  { %1842 = vmatprep.subr.mxu0 %v1669_v32 }
 0x576   :  { %1843 = vmatpush1.msra.mxu0 %v1668_v34 }
 0x577   :  { %1844 = vmatprep.subr.mxu0 %v1665_v36 }
 0x578   :  { %1845 = vmatpush1.msra.mxu0 %v1664_v38 }
 0x579   :  { %1846 = vmatprep.subr.mxu0 %v1661_v40 }
 0x57a   :  { %1847 = vmatpush1.msra.mxu0 %v1660_v41 }
 0x61b   :  { %v11207_v42 = vpop.f32.mrf.mxu0 }
 0x61c   :  { %v1653_v46 = vadd.f32 %v11207_v42, %v9951_v43 }
 0x61d   :  { %v1647_v44 = vpop.f32.mrf.mxu0 }
 0x61e   :  { %v1648_v45 = vadd.f32 %v9951_v43, %v1647_v44  ;;  %v12593_v48 = vmax.f32 %v1653_v46, 0.0 }
 0x620   :  { %v1656_v47 = vmax.f32 %v1648_v45, 0.0 }
 0x622   :  { %1804 = vmatmul.mubr.f32.vlgmr.msra.gmra.mxu1 %v1656_v47  ;;  %1881 = vmatmul.mubr.f32.vlgmr.msra.gmra.mxu0 %v1656_v47 }
 0x623   :  { %11209 = vmatpush3.xpose.msra.mxu1 %v1656_v47  ;;  %1809 = vmatprep.mubr.f32.mxu1 %v12295_v0 }
 0x624   :  { %1886 = vmatprep.mubr.f32.mxu0 %v12295_v0  ;;  %11213 = vmatprep.subr.mxu1 %v12295_v0 }
 0x626   :  { %1810 = vmatmul.mubr.f32.gmra.mxu1 %v12593_v48  ;;  %1887 = vmatmul.mubr.f32.gmra.mxu0 %v12593_v48 }
 0x627   :  { %11210 = vmatprep.mubr.msk.f32.mxu1 %vm12296_vm2, %v12295_v0 }
 0x6e2   :  { %v1805_v49 = vpop.f32.mrf.mxu1  ;;  %v1882_v52 = vpop.f32.mrf.mxu0 }
 0x6e3   :  { %11211 = vmatmul.mubr.f32.vlgmr.msra.gmra.mxu1 %v1805_v49 }
 0x6e4   :  { %11214 = vmatpush3.xpose.msra.mxu1 %v12593_v48  ;;  %v1807_v50 = vpop.f32.mrf.mxu1  ;;  %11215 = vmatprep.mubr.msk.f32.mxu1 %vm12296_vm2, %v12295_v0  ;;  %v1884_v54 = vpop.f32.mrf.mxu0 }
 0x6e5   :  { %11218 = vmatprep.subr.mxu1 %v12295_v0 }
 0x6e6   :  { %v1811_v51 = vpop.f32.mrf.mxu1  ;;  %v1888_v55 = vpop.f32.mrf.mxu0 }
 0x6e7   :  { %11216 = vmatmul.mubr.f32.vlgmr.msra.gmra.mxu1 %v1811_v51 }
 0x6e8   :  { %11219 = vmatpush3.xpose.msra.mxu1 %v1656_v47  ;;  %11220 = vmatprep.mubr.msk.f32.mxu1 %vm12296_vm2, %v12295_v0  ;;  %v1813_v53 = vpop.f32.mrf.mxu1  ;;  %v1890_v56 = vpop.f32.mrf.mxu0 }
 0x6e9   :  { %11223 = vmatprep.subr.mxu1 %v12295_v0 }
 0x6eb   :  { %11221 = vmatmul.mubr.f32.vlgmr.msra.gmra.mxu1 %v1807_v50 }
 0x6ec   :  { %11224 = vmatpush3.xpose.msra.mxu1 %v12593_v48  ;;  %11225 = vmatprep.mubr.msk.f32.mxu1 %vm12296_vm2, %v12295_v0 }
 0x6ed   :  { %11228 = vmatprep.subr.mxu1 %v12295_v0 }
 0x6ef   :  { %11226 = vmatmul.mubr.f32.vlgmr.msra.gmra.mxu1 %v1813_v53 }
 0x6f0   :  { %11229 = vmatpush3.xpose.msra.mxu1 %v1656_v47  ;;  %11230 = vmatprep.mubr.msk.f32.mxu1 %vm12296_vm2, %v12295_v0 }
 0x6f1   :  { %11233 = vmatprep.subr.mxu1 %v12295_v0 }
 0x6f3   :  { %11231 = vmatmul.mubr.f32.vlgmr.msra.gmra.mxu1 %v1882_v52 }
 0x6f4   :  { %11234 = vmatpush3.xpose.msra.mxu1 %v12593_v48  ;;  %11235 = vmatprep.mubr.msk.f32.mxu1 %vm12296_vm2, %v12295_v0 }
 0x6f5   :  { %11238 = vmatprep.subr.mxu1 %v12295_v0 }
 0x6f7   :  { %11236 = vmatmul.mubr.f32.vlgmr.msra.gmra.mxu1 %v1888_v55 }
 0x6f8   :  { %11239 = vmatpush3.xpose.msra.mxu1 %v1656_v47  ;;  %11240 = vmatprep.mubr.msk.f32.mxu1 %vm12296_vm2, %v12295_v0 }
 0x6f9   :  { %11243 = vmatprep.subr.mxu1 %v12295_v0 }
 0x6fb   :  { %11241 = vmatmul.mubr.f32.vlgmr.msra.gmra.mxu1 %v1884_v54 }
 0x6fc   :  { %11244 = vmatpush3.xpose.msra.mxu1 %v12593_v48  ;;  %11245 = vmatprep.mubr.msk.f32.mxu1 %vm12296_vm2, %v12295_v0 }
 0x6fd   :  { %11248 = vmatprep.subr.mxu1 %v12295_v0 }
 0x6ff   :  { %11246 = vmatmul.mubr.f32.vlgmr.msra.gmra.mxu1 %v1890_v56 }
 0x700   :  { %11249 = vmatpush3.msra.mxu1 %v1656_v47  ;;  %11250 = vmatprep.mubr.msk.f32.mxu1 %vm12296_vm2, %v12295_v0 }
 0x701   :  { %11253 = vmatprep.subr.mxu1 %v12295_v0 }
 0x7a3   :  { %v1959_v57 = vpop.f32.mrf.mxu1 }
 0x7a4   :  { %v2033_v58 = vsel %vm910_vm3, %v1959_v57, -inf }
 0x7a5   :  { %2034 = vmax.xlane.f32.xlu0 %v2033_v58  ;;  %v11212_v59 = vpop.f32.mrf.mxu1 }
 0x7a7   :  { %v2029_v60 = vpop.f32.mrf.mxu1 }
 0x7a8   :  { %v2036_v61 = vsel %vm910_vm3, %v2029_v60, -inf }
 0x7a9   :  { %2037 = vmax.xlane.f32.xlu1 %v2036_v61  ;;  %v11217_v62 = vpop.f32.mrf.mxu1 }
 0x7ab   :  { %v2123_v63 = vpop.f32.mrf.mxu1 }
 0x7ac   :  { %v2197_v1 = vsel %vm910_vm3, %v2123_v63, -inf }
 0x7ad   :  { %2198 = vmax.xlane.f32.xlu1 %v2197_v1  ;;  %v11222_v2 = vpop.f32.mrf.mxu1  ;;  %v1737_v1 = vld [vmem:[#allocation19 + $0x78] sm:$0xff] }
 0x7ae   :  { %v1736_v2 = vld [vmem:[#allocation19 + $0x70] sm:$0xff]  ;;  %11258 = vmatprep.subr.mxu0 %v1737_v1 }
 0x7af   :  { %v2193_v3 = vpop.f32.mrf.mxu1  ;;  %11259 = vmatpush3.msra.mxu0 %v1737_v1  ;;  %v2828_v1 = vld [vmem:[#allocation23 + $0x108] sm:$0xff] }
 0x7b0   :  { %v2200_v4 = vsel %vm910_vm3, %v2193_v3, -inf  ;;  %11260 = vmatprep.subr.mxu0 %v1736_v2 }
 0x7b1   :  { %2201 = vmax.xlane.f32.xlu0 %v2200_v4  ;;  %v11227_v5 = vpop.f32.mrf.mxu1  ;;  %11261 = vmatpush3.msra.mxu0 %v1736_v2  ;;  %v1734_v4 = vld [vmem:[#allocation19 + $0x60] sm:$0xff] }
 0x7b2   :  { %v1733_v5 = vld [vmem:[#allocation19 + $0x58] sm:$0xff] }
 0x7b3   :  { %v2287_v6 = vpop.f32.mrf.mxu1  ;;  %v2826_v2 = vld [vmem:[#allocation23 + $0xf8] sm:$0xff] }
 0x7b4   :  { %v2361_v7 = vsel %vm910_vm3, %v2287_v6, -inf }
 0x7b5   :  { %2362 = vmax.xlane.f32.xlu0 %v2361_v7  ;;  %v11232_v8 = vpop.f32.mrf.mxu1  ;;  %v1731_v7 = vld [vmem:[#allocation19 + $0x48] sm:$0xff] }
 0x7b6   :  { %v1730_v8 = vld [vmem:[#allocation19 + $0x40] sm:$0xff] }
 0x7b7   :  { %v2357_v10 = vpop.f32.mrf.mxu1 }
 0x7b8   :  { %v2364_v12 = vsel %vm910_vm3, %v2357_v10, -inf }
 0x7b9   :  { %2365 = vmax.xlane.f32.xlu0 %v2364_v12  ;;  %v11237_v13 = vpop.f32.mrf.mxu1  ;;  %v1728_v12 = vld [vmem:[#allocation19 + $0x30] sm:$0xff] }
 0x7ba   :  { %v1727_v13 = vld [vmem:[#allocation19 + $0x28] sm:$0xff] }
 0x7bb   :  { %v2451_v15 = vpop.f32.mrf.mxu1 }
 0x7bc   :  { %v2525_v16 = vsel %vm910_vm3, %v2451_v15, -inf }
 0x7bd   :  { %2526 = vmax.xlane.f32.xlu1 %v2525_v16  ;;  %v11242_v17 = vpop.f32.mrf.mxu1  ;;  %v1725_v16 = vld [vmem:[#allocation19 + $0x18] sm:$0xff] }
 0x7be   :  { %v1724_v17 = vld [vmem:[#allocation19 + $0x10] sm:$0xff] }
 0x7bf   :  { %v2521_v18 = vpop.f32.mrf.mxu1 }
 0x7c0   :  { %v2528_v19 = vsel %vm910_vm3, %v2521_v18, -inf }
 0x7c1   :  { %2529 = vmax.xlane.f32.xlu1 %v2528_v19  ;;  %v11247_v20 = vpop.f32.mrf.mxu1 }
 0x82e   :  { %v2035_v21 = vpop.xlane.xlu0 %2034 }
 0x82f   :  { %v2039_v22 = vsub.f32 %v1959_v57, %v2035_v21 }
 0x831   :  { %v2041_v23 = vmul.f32 1.442695, %v2039_v22 }
 0x832   :  { %v2038_v25 = vpop.xlane.xlu1 %2037 }
 0x833   :  { %11433 = vpow2.f32 %v2041_v23  ;;  %v2040_v26 = vsub.f32 %v2029_v60, %v2038_v25 }
 0x835   :  { %v2043_v28 = vmul.f32 1.442695, %v2040_v26 }
 0x836   :  { %v2199_v29 = vpop.xlane.xlu1 %2198 }
 0x837   :  { %11435 = vpow2.f32 %v2043_v28  ;;  %v2203_v30 = vsub.f32 %v2123_v63, %v2199_v29 }
 0x839   :  { %v2205_v31 = vmul.f32 1.442695, %v2203_v30 }
 0x83a   :  { %v2202_v32 = vpop.xlane.xlu0 %2201 }
 0x83b   :  { %11437 = vpow2.f32 %v2205_v31  ;;  %v2204_v33 = vsub.f32 %v2193_v3, %v2202_v32  ;;  %v1735_v3 = vld [vmem:[#allocation19 + $0x68] sm:$0xff] }
 0x83c   :  { %11262 = vmatprep.subr.mxu0 %v1735_v3 }
 0x83d   :  { %v2207_v34 = vmul.f32 1.442695, %v2204_v33  ;;  %11263 = vmatpush3.msra.mxu0 %v1735_v3  ;;  %v2825_v3 = vld [vmem:[#allocation23 + $0xf0] sm:$0xff] }
 0x83e   :  { %v2363_v35 = vpop.xlane.xlu0 %2362  ;;  %11264 = vmatprep.subr.mxu0 %v1734_v4 }
 0x83f   :  { %11439 = vpow2.f32 %v2207_v34  ;;  %v2367_v36 = vsub.f32 %v2287_v6, %v2363_v35  ;;  %11265 = vmatpush3.msra.mxu0 %v1734_v4  ;;  %v1732_v6 = vld [vmem:[#allocation19 + $0x50] sm:$0xff]  ;;  %v2823_v4 = vld [vmem:[#allocation23 + $0xe0] sm:$0xff] }
 0x840   :  { %v12637_v37 = vpop.eup %11433  ;;  %11266 = vmatprep.subr.mxu0 %v1733_v5 }
 0x841   :  { %v2369_v38 = vmul.f32 1.442695, %v2367_v36  ;;  %v2045_v39 = vsel %vm910_vm3, %v12637_v37, 0.0  ;;  %11267 = vmatpush3.msra.mxu0 %v1733_v5  ;;  %v2822_v5 = vld [vmem:[#allocation23 + $0xd8] sm:$0xff] }
 0x842   :  { %2046 = vadd.xlane.f32.xlu0 %v2045_v39  ;;  %v2366_v40 = vpop.xlane.xlu0 %2365  ;;  %11268 = vmatprep.subr.mxu0 %v1732_v6 }
 0x843   :  { %11441 = vpow2.f32 %v2369_v38  ;;  %v2368_v41 = vsub.f32 %v2357_v10, %v2366_v40  ;;  %11269 = vmatpush3.msra.mxu0 %v1732_v6  ;;  %v1729_v10 = vld [vmem:[#allocation19 + $0x38] sm:$0xff]  ;;  %v2820_v6 = vld [vmem:[#allocation23 + $0xc8] sm:$0xff] }
 0x844   :  { %v12641_v42 = vpop.eup %11435  ;;  %11270 = vmatprep.subr.mxu0 %v1731_v7 }
 0x845   :  { %v2371_v43 = vmul.f32 1.442695, %v2368_v41  ;;  %v2048_v44 = vsel %vm910_vm3, %v12641_v42, 0.0  ;;  %11271 = vmatpush3.msra.mxu0 %v1731_v7  ;;  %v2819_v7 = vld [vmem:[#allocation23 + $0xc0] sm:$0xff] }
 0x846   :  { %v2527_v45 = vpop.xlane.xlu1 %2526  ;;  %2049 = vadd.xlane.f32.xlu1 %v2048_v44  ;;  %11272 = vmatprep.subr.mxu0 %v1730_v8 }
 0x847   :  { %11443 = vpow2.f32 %v2371_v43  ;;  %v2531_v46 = vsub.f32 %v2451_v15, %v2527_v45  ;;  %11273 = vmatpush3.msra.mxu0 %v1730_v8  ;;  %v1726_v15 = vld [vmem:[#allocation19 + $0x20] sm:$0xff]  ;;  %v2817_v8 = vld [vmem:[#allocation23 + $0xb0] sm:$0xff] }
 0x848   :  { %v12645_v47 = vpop.eup %11437  ;;  %11274 = vmatprep.subr.mxu0 %v1729_v10 }
 0x849   :  { %v2533_v49 = vmul.f32 1.442695, %v2531_v46  ;;  %v2209_v50 = vsel %vm910_vm3, %v12645_v47, 0.0  ;;  %11275 = vmatpush3.msra.mxu0 %v1729_v10  ;;  %v2816_v10 = vld [vmem:[#allocation23 + $0xa8] sm:$0xff] }
 0x84a   :  { %2210 = vadd.xlane.f32.xlu1 %v2209_v50  ;;  %v2530_v51 = vpop.xlane.xlu1 %2529  ;;  %11276 = vmatprep.subr.mxu0 %v1728_v12 }
 0x84b   :  { %11445 = vpow2.f32 %v2533_v49  ;;  %v2532_v52 = vsub.f32 %v2521_v18, %v2530_v51  ;;  %11277 = vmatpush3.msra.mxu0 %v1728_v12  ;;  %v2814_v12 = vld [vmem:[#allocation23 + $0x98] sm:$0xff] }
 0x84c   :  { %v12649_v53 = vpop.eup %11439  ;;  %11278 = vmatprep.subr.mxu0 %v1727_v13 }
 0x84d   :  { %v2535_v54 = vmul.f32 1.442695, %v2532_v52  ;;  %v2212_v55 = vsel %vm910_vm3, %v12649_v53, 0.0  ;;  %11279 = vmatpush3.msra.mxu0 %v1727_v13 }
 0x84e   :  { %2213 = vadd.xlane.f32.xlu0 %v2212_v55  ;;  %11280 = vmatprep.subr.mxu0 %v1726_v15  ;;  %v2841_v55 = vld [vmem:[#allocation23 + $0x170] sm:$0xff] }
 0x84f   :  { %11447 = vpow2.f32 %v2535_v54  ;;  %11281 = vmatpush3.msra.mxu0 %v1726_v15  ;;  %v1722_v54 = vld [vmem:[#allocation19] sm:$0xff] }
 0x850   :  { %v12653_v56 = vpop.eup %11441  ;;  %11282 = vmatprep.subr.mxu0 %v1725_v16 }
 0x851   :  { %v2373_v57 = vsel %vm910_vm3, %v12653_v56, 0.0  ;;  %11283 = vmatpush3.msra.mxu0 %v1725_v16 }
 0x852   :  { %2374 = vadd.xlane.f32.xlu0 %v2373_v57  ;;  %11284 = vmatprep.subr.mxu0 %v1724_v17  ;;  %v2842_v57 = vld [vmem:[#allocation23 + $0x178] sm:$0xff] }
 0x853   :  { %11285 = vmatpush3.msra.mxu0 %v1724_v17  ;;  %v2839_v17 = vld [vmem:[#allocation23 + $0x160] sm:$0xff] }
 0x854   :  { %v12657_v58 = vpop.eup %11443 }
 0x855   :  { %v2376_v59 = vsel %vm910_vm3, %v12657_v58, 0.0 }
 0x856   :  { %2377 = vadd.xlane.f32.xlu0 %v2376_v59  ;;  %v2835_v59 = vld [vmem:[#allocation23 + $0x140] sm:$0xff] }
 0x858   :  { %v12661_v60 = vpop.eup %11445 }
 0x859   :  { %v2537_v61 = vsel %vm910_vm3, %v12661_v60, 0.0 }
 0x85a   :  { %2538 = vadd.xlane.f32.xlu1 %v2537_v61  ;;  %v2832_v61 = vld [vmem:[#allocation23 + $0x128] sm:$0xff] }
 0x85c   :  { %v12665_v62 = vpop.eup %11447 }
 0x85d   :  { %v2540_v63 = vsel %vm910_vm3, %v12665_v62, 0.0 }
 0x85e   :  { %2541 = vadd.xlane.f32.xlu1 %v2540_v63  ;;  %v2829_v63 = vld [vmem:[#allocation23 + $0x110] sm:$0xff] }
 0x8cb   :  { %v2047_v18 = vpop.xlane.xlu0 %2046 }
 0x8cf   :  { %v2050_v19 = vpop.xlane.xlu1 %2049 }
 0x8d3   :  { %v2211_v21 = vpop.xlane.xlu1 %2210 }
 0x8d4   :  { %11449 = vrcp.f32 %v2211_v21  ;;  %v2830_v21 = vld [vmem:[#allocation23 + $0x118] sm:$0xff] }
 0x8d5   :  { %11451 = vrcp.f32 %v2047_v18 }
 0x8d7   :  { %v2214_v20 = vpop.xlane.xlu0 %2213 }
 0x8db   :  { %v2375_v22 = vpop.xlane.xlu0 %2374 }
 0x8dc   :  { %11453 = vrcp.f32 %v2375_v22  ;;  %v2827_v22 = vld [vmem:[#allocation23 + $0x100] sm:$0xff] }
 0x8dd   :  { %11455 = vrcp.f32 %v2214_v20  ;;  %v2833_v20 = vld [vmem:[#allocation23 + $0x130] sm:$0xff] }
 0x8de   :  { %11457 = vrcp.f32 %v2050_v19  ;;  %v2836_v19 = vld [vmem:[#allocation23 + $0x148] sm:$0xff] }
 0x8df   :  { %v2378_v23 = vpop.xlane.xlu0 %2377 }
 0x8e0   :  { %11459 = vrcp.f32 %v2378_v23  ;;  %v2824_v23 = vld [vmem:[#allocation23 + $0xe8] sm:$0xff] }
 0x8e1   :  { %v11450_v28 = vpop.eup %11449 }
 0x8e2   :  { %v11452_v29 = vpop.eup %11451  ;;  %v2217_v31 = vmul.f32 %v11450_v28, %v12645_v47  ;;  %v2813_v28 = vld [vmem:[#allocation23 + $0x90] sm:$0xff] }
 0x8e3   :  { %v2539_v25 = vpop.xlane.xlu1 %2538  ;;  %v2053_v34 = vmul.f32 %v11452_v29, %v12637_v37  ;;  %v2815_v29 = vld [vmem:[#allocation23 + $0xa0] sm:$0xff] }
 0x8e4   :  { %11461 = vrcp.f32 %v2539_v25  ;;  %v2821_v25 = vld [vmem:[#allocation23 + $0xd0] sm:$0xff] }
 0x8e5   :  { %v2219_v39 = vadd.f32 %v2217_v31, %v2053_v34  ;;  %v2810_v31 = vld [vmem:[#allocation23 + $0x78] sm:$0xff]  ;;  %v2807_v34 = vld [vmem:[#allocation23 + $0x60] sm:$0xff] }
 0x8e7   :  { %v2542_v26 = vpop.xlane.xlu1 %2541 }
 0x8e8   :  { %11463 = vrcp.f32 %v2542_v26  ;;  %v2818_v26 = vld [vmem:[#allocation23 + $0xb8] sm:$0xff] }
 0x8e9   :  { %v11454_v30 = vpop.eup %11453 }
 0x8ea   :  { %v11456_v32 = vpop.eup %11455  ;;  %v2381_v35 = vmul.f32 %v11454_v30, %v12653_v56  ;;  %v2840_v56 = vld [vmem:[#allocation23 + $0x168] sm:$0xff]  ;;  %v2811_v30 = vld [vmem:[#allocation23 + $0x80] sm:$0xff] }
 0x8eb   :  { %v11458_v33 = vpop.eup %11457  ;;  %v2218_v38 = vmul.f32 %v11456_v32, %v12649_v53  ;;  %v1723_v53 = vld [vmem:[#allocation19 + $0x8] sm:$0xff] }
 0x8ec   :  { %v2054_v41 = vmul.f32 %v11458_v33, %v12641_v42  ;;  %v2383_v44 = vadd.f32 %v2381_v35, %v2219_v39  ;;  %11286 = vmatprep.subr.mxu0 %v1723_v53  ;;  %v2812_v32 = vld [vmem:[#allocation23 + $0x88] sm:$0xff]  ;;  %v2809_v35 = vld [vmem:[#allocation23 + $0x70] sm:$0xff]  ;;  %v2806_v39 = vld [vmem:[#allocation23 + $0x58] sm:$0xff] }
 0x8ed   :  { %v11460_v36 = vpop.eup %11459  ;;  %11287 = vmatpush3.msra.mxu0 %v1723_v53  ;;  %v2808_v33 = vld [vmem:[#allocation23 + $0x68] sm:$0xff] }
 0x8ee   :  { %v2382_v43 = vmul.f32 %v11460_v36, %v12657_v58  ;;  %v2220_v47 = vadd.f32 %v2218_v38, %v2054_v41  ;;  %11288 = vmatprep.subr.mxu0 %v1722_v54  ;;  %v2837_v58 = vld [vmem:[#allocation23 + $0x150] sm:$0xff]  ;;  %v2804_v38 = vld [vmem:[#allocation23 + $0x48] sm:$0xff] }
 0x8ef   :  { %11289 = vmatpush3.msra.mxu0 %v1722_v54  ;;  %v2805_v36 = vld [vmem:[#allocation23 + $0x50] sm:$0xff] }
 0x8f0   :  { %v2384_v51 = vadd.f32 %v2382_v43, %v2220_v47  ;;  %11293 = vmatprep.subr.mxu0 %v2842_v57  ;;  %v2801_v41 = vld [vmem:[#allocation23 + $0x30] sm:$0xff]  ;;  %v2803_v43 = vld [vmem:[#allocation23 + $0x40] sm:$0xff]  ;;  %v2796_v47 = vld [vmem:[#allocation23 + $0x8] sm:$0xff] }
 0x8f1   :  { %v11462_v40 = vpop.eup %11461 }
 0x8f2   :  { %v2545_v45 = vmul.f32 %v11462_v40, %v12661_v60  ;;  %v2834_v60 = vld [vmem:[#allocation23 + $0x138] sm:$0xff] }
 0x8f3   :  { %v2802_v40 = vld [vmem:[#allocation23 + $0x38] sm:$0xff] }
 0x8f4   :  { %v2547_v46 = vadd.f32 %v2545_v45, %v2383_v44  ;;  %v2799_v44 = vld [vmem:[#allocation23 + $0x20] sm:$0xff]  ;;  %v2798_v45 = vld [vmem:[#allocation23 + $0x18] sm:$0xff] }
 0x8f5   :  { %v11464_v49 = vpop.eup %11463 }
 0x8f6   :  { %v2546_v50 = vmul.f32 %v11464_v49, %v12665_v62  ;;  %v2549_v37 = vmul.f32 0.25, %v2547_v46  ;;  %v2831_v62 = vld [vmem:[#allocation23 + $0x120] sm:$0xff]  ;;  %v2800_v46 = vld [vmem:[#allocation23 + $0x28] sm:$0xff] }
 0x8f7   :  { %v2795_v49 = vld [vmem:[#allocation23] sm:$0xff] }
 0x8f8   :  { %11251 = vmatmul.mubr.msk.f32.vlgmr.msra.gmra.mxu1 %vm910_vm3, %v2549_v37  ;;  %v2548_v52 = vadd.f32 %v2546_v50, %v2384_v51  ;;  %v2797_v50 = vld [vmem:[#allocation23 + $0x10] sm:$0xff]  ;;  %v2778_v37 = vld [vmem:[#allocation22] sm:$0x3]  ;;  %v9954_v51 = vld [vmem:[#allocation20] ss:$0 sm:$0xff] }
 0x8f9   :  { %11254 = vmatpush3.msra.mxu1 %v12593_v48  ;;  %11255 = vmatprep.mubr.msk.f32.mxu1 %vm12296_vm2, %v12295_v0  ;;  %v2838_v48 = vld [vmem:[#allocation23 + $0x158] sm:$0xff]  ;;  %v2788_v54 = vrot.slane %v2778_v37, %v12519_v14 }
 0x8fa   :  { %v2550_v42 = vmul.f32 0.25, %v2548_v52  ;;  %2844 = vmatprep.subr.mxu1 %v2841_v55  ;;  %v2782_v52 = vrot.slane %v2778_v37, %v12516_v11  ;;  %v3029_v37 = vld [vmem:[#allocation26 + $0x28] sm:$0xff] }
 0x8fc   :  { %11256 = vmatmul.mubr.msk.f32.vlgmr.msra.gmra.mxu1 %vm910_vm3, %v2550_v42 }
 0x8fd   :  { %2908 = vmatprep.mubr.f32.mxu1 %v12295_v0  ;;  %2845 = vmatpush1.msra.mxu1 %v2840_v56 }
 0x8fe   :  { %2846 = vmatprep.subr.mxu1 %v2838_v48 }
 0x8ff   :  { %2847 = vmatpush1.msra.mxu1 %v2837_v58 }
 0x900   :  { %2848 = vmatprep.subr.mxu1 %v2835_v59 }
 0x901   :  { %2849 = vmatpush1.msra.mxu1 %v2834_v60 }
 0x902   :  { %2850 = vmatprep.subr.mxu1 %v2832_v61 }
 0x903   :  { %2851 = vmatpush1.msra.mxu1 %v2831_v62 }
 0x904   :  { %2852 = vmatprep.subr.mxu1 %v2829_v63 }
 0x905   :  { %2853 = vmatpush1.msra.mxu1 %v2828_v1  ;;  %v3070_v1 = vld [vmem:[#allocation26 + $0x170] sm:$0xff] }
 0x906   :  { %2854 = vmatprep.subr.mxu1 %v2826_v2  ;;  %v3069_v2 = vld [vmem:[#allocation26 + $0x168] sm:$0xff] }
 0x907   :  { %2855 = vmatpush1.msra.mxu1 %v2825_v3  ;;  %v3071_v3 = vld [vmem:[#allocation26 + $0x178] sm:$0xff] }
 0x908   :  { %2856 = vmatprep.subr.mxu1 %v2823_v4  ;;  %v3067_v4 = vld [vmem:[#allocation26 + $0x158] sm:$0xff] }
 0x909   :  { %2857 = vmatpush1.msra.mxu1 %v2822_v5  ;;  %v3068_v5 = vld [vmem:[#allocation26 + $0x160] sm:$0xff] }
 0x90a   :  { %2858 = vmatprep.subr.mxu1 %v2820_v6  ;;  %v3063_v6 = vld [vmem:[#allocation26 + $0x138] sm:$0xff] }
 0x90b   :  { %2859 = vmatpush1.msra.mxu1 %v2819_v7  ;;  %v3065_v7 = vld [vmem:[#allocation26 + $0x148] sm:$0xff] }
 0x90c   :  { %2860 = vmatprep.subr.mxu1 %v2817_v8  ;;  %v3061_v8 = vld [vmem:[#allocation26 + $0x128] sm:$0xff] }
 0x90d   :  { %2861 = vmatpush1.msra.mxu1 %v2816_v10  ;;  %v3060_v10 = vld [vmem:[#allocation26 + $0x120] sm:$0xff] }
 0x90e   :  { %2862 = vmatprep.subr.mxu1 %v2814_v12  ;;  %v3062_v12 = vld [vmem:[#allocation26 + $0x130] sm:$0xff] }
 0x90f   :  { %2863 = vmatpush1.msra.mxu1 %v2813_v28  ;;  %v3046_v28 = vld [vmem:[#allocation26 + $0xb0] sm:$0xff] }
 0x910   :  { %2864 = vmatprep.subr.mxu1 %v2811_v30  ;;  %v3047_v30 = vld [vmem:[#allocation26 + $0xb8] sm:$0xff] }
 0x911   :  { %2865 = vmatpush1.msra.mxu1 %v2810_v31  ;;  %v3043_v31 = vld [vmem:[#allocation26 + $0x98] sm:$0xff] }
 0x912   :  { %2866 = vmatprep.subr.mxu1 %v2808_v33  ;;  %v3044_v33 = vld [vmem:[#allocation26 + $0xa0] sm:$0xff] }
 0x913   :  { %2867 = vmatpush1.msra.mxu1 %v2807_v34  ;;  %v3040_v34 = vld [vmem:[#allocation26 + $0x80] sm:$0xff] }
 0x914   :  { %2868 = vmatprep.subr.mxu1 %v2805_v36  ;;  %v3041_v36 = vld [vmem:[#allocation26 + $0x88] sm:$0xff] }
 0x915   :  { %2869 = vmatpush1.msra.mxu1 %v2804_v38  ;;  %v3037_v38 = vld [vmem:[#allocation26 + $0x68] sm:$0xff] }
 0x916   :  { %2870 = vmatprep.subr.mxu1 %v2802_v40  ;;  %v3038_v40 = vld [vmem:[#allocation26 + $0x70] sm:$0xff] }
 0x917   :  { %2871 = vmatpush1.msra.mxu1 %v2801_v41  ;;  %v3034_v41 = vld [vmem:[#allocation26 + $0x50] sm:$0xff] }
 0x918   :  { %2872 = vmatprep.subr.mxu1 %v2799_v44  ;;  %v3035_v44 = vld [vmem:[#allocation26 + $0x58] sm:$0xff] }
 0x919   :  { %2873 = vmatpush1.msra.mxu1 %v2798_v45  ;;  %v3031_v45 = vld [vmem:[#allocation26 + $0x38] sm:$0xff] }
 0x91a   :  { %2874 = vmatprep.subr.mxu1 %v2796_v47  ;;  %v3032_v47 = vld [vmem:[#allocation26 + $0x40] sm:$0xff] }
 0x91b   :  { %2875 = vmatpush1.msra.mxu1 %v2795_v49  ;;  %v3028_v49 = vld [vmem:[#allocation26 + $0x20] sm:$0xff] }
 0x91c   :  { %3072 = vmatprep.subr.mxu1 %v3070_v1  ;;  %v2843_v1 = vld [vmem:[#allocation25] sm:$0x3] }
 0x9b8   :  { %v2620_v13 = vpop.f32.mrf.mxu1 }
 0x9b9   :  { %11290 = vmatprep.mubr.f32.mxu0 %v2620_v13  ;;  %v3058_v13 = vld [vmem:[#allocation26 + $0x110] sm:$0xff] }
 0x9ba   :  { %v11252_v15 = vpop.f32.mrf.mxu1 }
 0x9bb   :  { %v3057_v15 = vld [vmem:[#allocation26 + $0x108] sm:$0xff] }
 0x9bc   :  { %v2693_v16 = vpop.f32.mrf.mxu1 }
 0x9bd   :  { %11291 = vmatmul.mubr.f32.vlgmr.msra.gmra.mxu0 %v2693_v16  ;;  %v3059_v16 = vld [vmem:[#allocation26 + $0x118] sm:$0xff] }
 0x9be   :  { %v11257_v18 = vpop.f32.mrf.mxu1  ;;  %11294 = vmatpush3.msra.mxu0 %v2842_v57 }
 0x9bf   :  { %11295 = vmatprep.subr.mxu0 %v2839_v17  ;;  %v3054_v18 = vld [vmem:[#allocation26 + $0xf0] sm:$0xff] }
 0x9c0   :  { %11296 = vmatpush3.msra.mxu0 %v2839_v17  ;;  %v3055_v17 = vld [vmem:[#allocation26 + $0xf8] sm:$0xff] }
 0x9c1   :  { %11297 = vmatprep.subr.mxu0 %v2836_v19 }
 0x9c2   :  { %11298 = vmatpush3.msra.mxu0 %v2836_v19  ;;  %v3056_v19 = vld [vmem:[#allocation26 + $0x100] sm:$0xff] }
 0x9c3   :  { %11299 = vmatprep.subr.mxu0 %v2833_v20 }
 0x9c4   :  { %11300 = vmatpush3.msra.mxu0 %v2833_v20  ;;  %v3052_v20 = vld [vmem:[#allocation26 + $0xe0] sm:$0xff] }
 0x9c5   :  { %11301 = vmatprep.subr.mxu0 %v2830_v21 }
 0x9c6   :  { %11302 = vmatpush3.msra.mxu0 %v2830_v21  ;;  %v3051_v21 = vld [vmem:[#allocation26 + $0xd8] sm:$0xff] }
 0x9c7   :  { %11303 = vmatprep.subr.mxu0 %v2827_v22 }
 0x9c8   :  { %11304 = vmatpush3.msra.mxu0 %v2827_v22  ;;  %v3053_v22 = vld [vmem:[#allocation26 + $0xe8] sm:$0xff] }
 0x9c9   :  { %11305 = vmatprep.subr.mxu0 %v2824_v23 }
 0x9ca   :  { %11306 = vmatpush3.msra.mxu0 %v2824_v23  ;;  %v3049_v23 = vld [vmem:[#allocation26 + $0xc8] sm:$0xff] }
 0x9cb   :  { %11307 = vmatprep.subr.mxu0 %v2821_v25 }
 0x9cc   :  { %11308 = vmatpush3.msra.mxu0 %v2821_v25  ;;  %v3048_v25 = vld [vmem:[#allocation26 + $0xc0] sm:$0xff] }
 0x9cd   :  { %11309 = vmatprep.subr.mxu0 %v2818_v26 }
 0x9ce   :  { %11310 = vmatpush3.msra.mxu0 %v2818_v26  ;;  %v3050_v26 = vld [vmem:[#allocation26 + $0xd0] sm:$0xff] }
 0x9cf   :  { %11311 = vmatprep.subr.mxu0 %v2815_v29 }
 0x9d0   :  { %11312 = vmatpush3.msra.mxu0 %v2815_v29  ;;  %v3045_v29 = vld [vmem:[#allocation26 + $0xa8] sm:$0xff] }
 0x9d1   :  { %11313 = vmatprep.subr.mxu0 %v2812_v32 }
 0x9d2   :  { %11314 = vmatpush3.msra.mxu0 %v2812_v32  ;;  %v3042_v32 = vld [vmem:[#allocation26 + $0x90] sm:$0xff] }
 0x9d3   :  { %11315 = vmatprep.subr.mxu0 %v2809_v35 }
 0x9d4   :  { %11316 = vmatpush3.msra.mxu0 %v2809_v35  ;;  %v3039_v35 = vld [vmem:[#allocation26 + $0x78] sm:$0xff] }
 0x9d5   :  { %11317 = vmatprep.subr.mxu0 %v2806_v39 }
 0x9d6   :  { %11318 = vmatpush3.msra.mxu0 %v2806_v39  ;;  %v3036_v39 = vld [vmem:[#allocation26 + $0x60] sm:$0xff] }
 0x9d7   :  { %11319 = vmatprep.subr.mxu0 %v2803_v43 }
 0x9d8   :  { %11320 = vmatpush3.msra.mxu0 %v2803_v43  ;;  %v3033_v43 = vld [vmem:[#allocation26 + $0x48] sm:$0xff] }
 0x9d9   :  { %11321 = vmatprep.subr.mxu0 %v2800_v46 }
 0x9da   :  { %11322 = vmatpush3.msra.mxu0 %v2800_v46  ;;  %v3030_v46 = vld [vmem:[#allocation26 + $0x30] sm:$0xff] }
 0x9db   :  { %11323 = vmatprep.subr.mxu0 %v2797_v50 }
 0x9dc   :  { %11324 = vmatpush3.msra.mxu0 %v2797_v50  ;;  %v3027_v50 = vld [vmem:[#allocation26 + $0x18] sm:$0xff] }
 0x9dd   :  { %11328 = vmatprep.subr.mxu0 %v3071_v3 }
 0xa7d   :  { %v11292_v42 = vpop.f32.mrf.mxu0 }
 0xa7e   :  { %v2775_v53 = vadd.f32 %v11292_v42, %v9954_v51  ;;  %v3026_v42 = vld [vmem:[#allocation26 + $0x10] sm:$0xff] }
 0xa7f   :  { %v2769_v55 = vpop.f32.mrf.mxu0 }
 0xa80   :  { %v2784_v56 = vmul.f32 %v2782_v52, %v2775_v53  ;;  %v2770_v57 = vadd.f32 %v9954_v51, %v2769_v55  ;;  %v3025_v51 = vld [vmem:[#allocation26 + $0x8] sm:$0xff] }
 0xa82   :  { %v2790_v48 = vadd.f32 %v2788_v54, %v2784_v56  ;;  %v2783_v58 = vmul.f32 %v2782_v52, %v2770_v57  ;;  %v3024_v52 = vld [vmem:[#allocation26] sm:$0xff] }
 0xa84   :  { %v2789_v59 = vadd.f32 %v2788_v54, %v2783_v58  ;;  %v2792_v60 = vmax.f32 %v2790_v48, 0.0 }
 0xa86   :  { %v2791_v61 = vmax.f32 %v2789_v59, 0.0  ;;  %v2794_v63 = vadd.f32 %v2792_v60, %v12529_v27  ;;  %v3064_v27 = vld [vmem:[#allocation26 + $0x140] sm:$0xff] }
 0xa88   :  { %v2793_v62 = vadd.f32 %v2791_v61, %v12523_v24  ;;  %v3066_v24 = vld [vmem:[#allocation26 + $0x150] sm:$0xff] }
 0xa8a   :  { %2909 = vmatmul.mubr.f32.vlgmr.msra.gmra.mxu1 %v2793_v62  ;;  %11325 = vmatprep.mubr.f32.mxu0 %v2793_v62 }
 0xa8b   :  { %11326 = vmatmul.mubr.f32.vlgmr.msra.gmra.mxu0 %v2794_v63  ;;  %2914 = vmatprep.mubr.f32.mxu1 %v12295_v0 }
 0xa8c   :  { %3073 = vmatpush1.msra.mxu1 %v3069_v2  ;;  %11329 = vmatpush3.msra.mxu0 %v3071_v3 }
 0xa8d   :  { %3074 = vmatprep.subr.mxu1 %v3067_v4  ;;  %11330 = vmatprep.subr.mxu0 %v3068_v5  ;;  %v3015_v4 = vrot.slane %v2843_v1, %v12516_v11 }
 0xa8e   :  { %2915 = vmatmul.mubr.f32.gmra.mxu1 %v2794_v63  ;;  %11331 = vmatpush3.msra.mxu0 %v3068_v5 }
 0xa8f   :  { %3136 = vmatprep.mubr.f32.mxu1 %v12295_v0  ;;  %3075 = vmatpush1.msra.mxu1 %v3066_v24 }
 0xa90   :  { %3076 = vmatprep.subr.mxu1 %v3064_v27  ;;  %11332 = vmatprep.subr.mxu0 %v3065_v7 }
 0xa91   :  { %3077 = vmatpush1.msra.mxu1 %v3063_v6  ;;  %11333 = vmatpush3.msra.mxu0 %v3065_v7 }
 0xa92   :  { %3078 = vmatprep.subr.mxu1 %v3061_v8  ;;  %11334 = vmatprep.subr.mxu0 %v3062_v12  ;;  %v3021_v8 = vrot.slane %v2843_v1, %v12519_v14 }
 0xa93   :  { %3079 = vmatpush1.msra.mxu1 %v3060_v10  ;;  %11335 = vmatpush3.msra.mxu0 %v3062_v12 }
 0xa94   :  { %3080 = vmatprep.subr.mxu1 %v3058_v13  ;;  %11336 = vmatprep.subr.mxu0 %v3059_v16 }
 0xa95   :  { %3081 = vmatpush1.msra.mxu1 %v3057_v15  ;;  %11337 = vmatpush3.msra.mxu0 %v3059_v16 }
 0xa96   :  { %3082 = vmatprep.subr.mxu1 %v3055_v17  ;;  %11338 = vmatprep.subr.mxu0 %v3056_v19 }
 0xa97   :  { %3083 = vmatpush1.msra.mxu1 %v3054_v18  ;;  %11339 = vmatpush3.msra.mxu0 %v3056_v19 }
 0xa98   :  { %3084 = vmatprep.subr.mxu1 %v3052_v20  ;;  %11340 = vmatprep.subr.mxu0 %v3053_v22 }
 0xa99   :  { %3085 = vmatpush1.msra.mxu1 %v3051_v21  ;;  %11341 = vmatpush3.msra.mxu0 %v3053_v22 }
 0xa9a   :  { %3086 = vmatprep.subr.mxu1 %v3049_v23  ;;  %11342 = vmatprep.subr.mxu0 %v3050_v26 }
 0xa9b   :  { %3087 = vmatpush1.msra.mxu1 %v3048_v25  ;;  %11343 = vmatpush3.msra.mxu0 %v3050_v26 }
 0xa9c   :  { %3088 = vmatprep.subr.mxu1 %v3046_v28  ;;  %11344 = vmatprep.subr.mxu0 %v3047_v30 }
 0xa9d   :  { %3089 = vmatpush1.msra.mxu1 %v3045_v29  ;;  %11345 = vmatpush3.msra.mxu0 %v3047_v30 }
 0xa9e   :  { %3090 = vmatprep.subr.mxu1 %v3043_v31  ;;  %11346 = vmatprep.subr.mxu0 %v3044_v33 }
 0xa9f   :  { %3091 = vmatpush1.msra.mxu1 %v3042_v32  ;;  %11347 = vmatpush3.msra.mxu0 %v3044_v33 }
 0xaa0   :  { %3092 = vmatprep.subr.mxu1 %v3040_v34  ;;  %11348 = vmatprep.subr.mxu0 %v3041_v36 }
 0xaa1   :  { %3093 = vmatpush1.msra.mxu1 %v3039_v35  ;;  %11349 = vmatpush3.msra.mxu0 %v3041_v36 }
 0xaa2   :  { %3094 = vmatprep.subr.mxu1 %v3037_v38  ;;  %11350 = vmatprep.subr.mxu0 %v3038_v40 }
 0xaa3   :  { %3095 = vmatpush1.msra.mxu1 %v3036_v39  ;;  %11351 = vmatpush3.msra.mxu0 %v3038_v40 }
 0xaa4   :  { %3096 = vmatprep.subr.mxu1 %v3034_v41  ;;  %11352 = vmatprep.subr.mxu0 %v3035_v44 }
 0xaa5   :  { %3097 = vmatpush1.msra.mxu1 %v3033_v43  ;;  %11353 = vmatpush3.msra.mxu0 %v3035_v44 }
 0xaa6   :  { %3098 = vmatprep.subr.mxu1 %v3031_v45  ;;  %11354 = vmatprep.subr.mxu0 %v3032_v47 }
 0xaa7   :  { %3099 = vmatpush1.msra.mxu1 %v3030_v46  ;;  %11355 = vmatpush3.msra.mxu0 %v3032_v47 }
 0xaa8   :  { %3100 = vmatprep.subr.mxu1 %v3028_v49  ;;  %11356 = vmatprep.subr.mxu0 %v3029_v37 }
 0xaa9   :  { %3101 = vmatpush1.msra.mxu1 %v3027_v50  ;;  %11357 = vmatpush3.msra.mxu0 %v3029_v37 }
 0xaaa   :  { %3102 = vmatprep.subr.mxu1 %v3025_v51  ;;  %11358 = vmatprep.subr.mxu0 %v3026_v42 }
 0xaab   :  { %3103 = vmatpush1.msra.mxu1 %v3024_v52  ;;  %11359 = vmatpush3.msra.mxu0 %v3026_v42 }
 0xb4a   :  { %v2910_v48 = vpop.f32.mrf.mxu1 }
 0xb4b   :  { %v11327_v53 = vpop.f32.mrf.mxu0 }
 0xb4c   :  { %v9956_v54 = vmul.f32 -1.442695, %v11327_v53  ;;  %v2912_v61 = vpop.f32.mrf.mxu1 }
 0xb4d   :  { %v2987_v55 = vpop.f32.mrf.mxu0  ;;  %v2996_v24 = vadd.f32 %v2912_v61, %v2910_v48 }
 0xb4e   :  { %11465 = vpow2.f32 %v9956_v54  ;;  %v9955_v56 = vmul.f32 -1.442695, %v2987_v55  ;;  %v2916_v62 = vpop.f32.mrf.mxu1 }
 0xb50   :  { %11467 = vpow2.f32 %v9955_v56  ;;  %v2918_v63 = vpop.f32.mrf.mxu1 }
 0xb51   :  { %v2997_v2 = vadd.f32 %v2918_v63, %v2916_v62 }
 0xb5b   :  { %v11466_v57 = vpop.eup %11465 }
 0xb5c   :  { %v3005_v58 = vadd.f32 1.0, %v11466_v57 }
 0xb5d   :  { %v11468_v59 = vpop.eup %11467 }
 0xb5e   :  { %11469 = vrcp.f32 %v3005_v58  ;;  %v3004_v60 = vadd.f32 1.0, %v11468_v59 }
 0xb60   :  { %11471 = vrcp.f32 %v3004_v60 }
 0xb6b   :  { %v11470_v3 = vpop.eup %11469 }
 0xb6c   :  { %v3011_v5 = vmul.f32 %v11470_v3, %v2997_v2 }
 0xb6d   :  { %v11472_v27 = vpop.eup %11471 }
 0xb6e   :  { %v3010_v6 = vmul.f32 %v11472_v27, %v2996_v24  ;;  %v3017_v7 = vmul.f32 %v3015_v4, %v3011_v5 }
 0xb70   :  { %v3016_v10 = vmul.f32 %v3015_v4, %v3010_v6  ;;  %v3023_v13 = vadd.f32 %v3021_v8, %v3017_v7 }
 0xb72   :  { %v3022_v12 = vadd.f32 %v3021_v8, %v3016_v10 }
 0xb74   :  { %3137 = vmatmul.mubr.f32.vlgmr.msra.gmra.mxu1 %v3022_v12  ;;  %11360 = vmatprep.mubr.f32.mxu0 %v3022_v12 }
 0xb75   :  { %11361 = vmatmul.mubr.f32.vlgmr.msra.gmra.mxu0 %v3023_v13  ;;  %3142 = vmatprep.mubr.f32.mxu1 %v12295_v0 }
 0xb78   :  { %3143 = vmatmul.mubr.f32.gmra.mxu1 %v3023_v13 }
 0xb79   :  { %12189 = shalt.err (!%p12186_p9)  }
 0xb7a   :  { %254 = dma.hbm_to_vmem [thread:$0]  %s12931_s16, 32768, %s252_s21, [#allocation7] }
 0xb7b   :  { %s12198_s7 = scalar_lea.vmem %s264_s24, 65536  ;;  %p12203_p11 = scmp.lt.s32.totalorder %s264_s24, %s264_s24 }
 0xb7c   :  { %p12199_p10 = scmp.ne.s32.totalorder %s264_s24, %s12198_s7  ;;  %p12204_p12 = scmp.lt.s32.totalorder %s12198_s7, %s12198_s7 }
 0xb7e   :  { %p12205_p13 = por %p12204_p12, %p12203_p11 }
 0xb80   :  { %p12206_p0 = pnand %p12205_p13, %p12199_p10 }
 0xb82   :  { %12209 = shalt.err (!%p12206_p0)  }
 0xb83   :  { %266 = dma.hbm_to_vmem [thread:$0]  %s12932_s17, 65536, %s264_s24, [#allocation7 + $0x1] }
 0xb84   :  { %s12299_s9 = smov [#allocation4]  }
 0xb85   :  { %s275_s10 = sshll.u32 %s12299_s9, 4  ;;  %s276_s10 = int_to_ptr.vmem [resolvable:$true] %s275_s10 }
 0xb86   :  { %s12218_s6 = scalar_lea.vmem %s276_s10, 32768  ;;  %p12223_p2 = scmp.lt.s32.totalorder %s276_s10, %s276_s10 }
 0xb87   :  { %p12219_p1 = scmp.ne.s32.totalorder %s276_s10, %s12218_s6  ;;  %p12224_p3 = scmp.lt.s32.totalorder %s12218_s6, %s12218_s6 }
 0xb89   :  { %p12225_p4 = por %p12224_p3, %p12223_p2 }
 0xb8b   :  { %p12226_p5 = pnand %p12225_p4, %p12219_p1 }
 0xb8d   :  { %12229 = shalt.err (!%p12226_p5)  }
 0xb8e   :  { %278 = dma.hbm_to_vmem [thread:$0]  %s12933_s18, 32768, %s276_s10, [#allocation7 + $0x2]  ;;  %v12300_v34 = vmov 1983009808  }
 0xb8f   :  { %v3280_v35 = vunpack.c.l.s4 %v12300_v34 }
 0xb91   :  { %v3281_v37 = vunpack.c.0.s8 %v3280_v35 }
 0xb93   :  { %v3284_v54 = vsub.s32 %v3281_v37, %v12513_v9 }
 0xc34   :  { %v3138_v19 = vpop.f32.mrf.mxu1 }
 0xc35   :  { %v11362_v0 = vpop.f32.mrf.mxu0 }
 0xc36   :  { %v9958_v15 = vmul.f32 -1.442695, %v11362_v0  ;;  %v3140_v23 = vpop.f32.mrf.mxu1 }
 0xc37   :  { %v3215_v16 = vpop.f32.mrf.mxu0  ;;  %v3224_v30 = vadd.f32 %v3140_v23, %v3138_v19 }
 0xc38   :  { %11473 = vpow2.f32 %v9958_v15  ;;  %v9957_v17 = vmul.f32 -1.442695, %v3215_v16  ;;  %v3144_v25 = vpop.f32.mrf.mxu1 }
 0xc3a   :  { %11475 = vpow2.f32 %v9957_v17  ;;  %v3146_v26 = vpop.f32.mrf.mxu1 }
 0xc3b   :  { %v3225_v28 = vadd.f32 %v3146_v26, %v3144_v25 }
 0xc45   :  { %v11474_v18 = vpop.eup %11473 }
 0xc46   :  { %v3233_v20 = vadd.f32 1.0, %v11474_v18 }
 0xc47   :  { %v11476_v21 = vpop.eup %11475 }
 0xc48   :  { %11477 = vrcp.f32 %v3233_v20  ;;  %v3232_v22 = vadd.f32 1.0, %v11476_v21 }
 0xc4a   :  { %11479 = vrcp.f32 %v3232_v22 }
 0xc55   :  { %v11478_v29 = vpop.eup %11477 }
 0xc56   :  { %v3239_v31 = vmul.f32 %v11478_v29, %v3225_v28 }
 0xc57   :  { %v11480_v32 = vpop.eup %11479 }
 0xc58   :  { %v3238_v33 = vmul.f32 %v11480_v32, %v3224_v30  ;;  %3241 = vst [vmem:[#allocation5 + $0x8] sm:$0xff] %v3239_v31 }
 0xc5a   :  { %3240 = vst [vmem:[#allocation5] sm:$0xff] %v3238_v33 }
 0xc5f   :  { %v3258_v36 = vld [vmem:[#allocation5 + $0x8] sm:$0x1]  ;;  %v3260_v38 = vld [vmem:[#allocation5 + $0x9] sm:$0x1]  ;;  %v3262_v39 = vld [vmem:[#allocation5 + $0xa] sm:$0x1] }
 0xc60   :  { %3259 = vst [vmem:[#allocation6 + $0x1] sm:$0x1] %v3258_v36  ;;  %3261 = vst [vmem:[#allocation6 + $0x3] sm:$0x1] %v3260_v38  ;;  %v3264_v40 = vld [vmem:[#allocation5 + $0xb] sm:$0x1] }
 0xc61   :  { %3263 = vst [vmem:[#allocation6 + $0x5] sm:$0x1] %v3262_v39  ;;  %v3266_v41 = vld [vmem:[#allocation5 + $0xc] sm:$0x1]  ;;  %v3268_v43 = vld [vmem:[#allocation5 + $0xd] sm:$0x1] }
 0xc62   :  { %v3242_v44 = vld [vmem:[#allocation5] sm:$0x1]  ;;  %v3244_v45 = vld [vmem:[#allocation5 + $0x1] sm:$0x1]  ;;  %v3246_v46 = vld [vmem:[#allocation5 + $0x2] sm:$0x1] }
 0xc63   :  { %3265 = vst [vmem:[#allocation6 + $0x7] sm:$0x1] %v3264_v40  ;;  %3267 = vst [vmem:[#allocation6 + $0x9] sm:$0x1] %v3266_v41  ;;  %v3248_v47 = vld [vmem:[#allocation5 + $0x3] sm:$0x1] }
 0xc64   :  { %3269 = vst [vmem:[#allocation6 + $0xb] sm:$0x1] %v3268_v43  ;;  %3243 = vst [vmem:[#allocation6] sm:$0x1] %v3242_v44  ;;  %v3250_v49 = vld [vmem:[#allocation5 + $0x4] sm:$0x1] }
 0xc65   :  { %3245 = vst [vmem:[#allocation6 + $0x2] sm:$0x1] %v3244_v45  ;;  %3247 = vst [vmem:[#allocation6 + $0x4] sm:$0x1] %v3246_v46  ;;  %v3252_v50 = vld [vmem:[#allocation5 + $0x5] sm:$0x1] }
 0xc66   :  { %3249 = vst [vmem:[#allocation6 + $0x6] sm:$0x1] %v3248_v47  ;;  %3251 = vst [vmem:[#allocation6 + $0x8] sm:$0x1] %v3250_v49  ;;  %v3254_v51 = vld [vmem:[#allocation5 + $0x6] sm:$0x1] }
 0xc67   :  { %3253 = vst [vmem:[#allocation6 + $0xa] sm:$0x1] %v3252_v50  ;;  %v3256_v52 = vld [vmem:[#allocation5 + $0x7] sm:$0x1]  ;;  %v3270_v42 = vld [vmem:[#allocation5 + $0xe] sm:$0x1] }
 0xc68   :  { %3255 = vst [vmem:[#allocation6 + $0xc] sm:$0x1] %v3254_v51  ;;  %3257 = vst [vmem:[#allocation6 + $0xe] sm:$0x1] %v3256_v52  ;;  %v3272_v53 = vld [vmem:[#allocation5 + $0xf] sm:$0x1] }
 0xc69   :  { %3271 = vst [vmem:[#allocation6 + $0xd] sm:$0x1] %v3270_v42  ;;  %3273 = vst [vmem:[#allocation6 + $0xf] sm:$0x1] %v3272_v53 }
 0xc6d   :  { %v3274_v55 = vld [vmem:[#allocation6] sm:$0xff] }
 0xc6e   :  { %v3278_v56 = vcombine.high %v3274_v55, %v3274_v55  ;;  %v3285_v57 = vrot.slane %v3274_v55, %v3284_v54 }
 0xc70   :  { %v3275_v48 = vld [vmem:[#allocation6 + $0x8] sm:$0xff]  ;;  %v3292_v58 = vrot.slane %v3278_v56, %v3284_v54  ;;  %v3293_v59 = vcombine.high %v3285_v57, %v3285_v57  ;;  %v12702_v62 = vpack.c.bf16 %v3285_v57, %v3285_v57 }
 0xc71   :  { %v3295_v60 = vcombine.high %v3275_v48, %v3275_v48  ;;  %v3302_v61 = vrot.slane %v3275_v48, %v3284_v54 }
 0xc72   :  { %v3294_v63 = vcombine.high %v3292_v58, %v3292_v58  ;;  %v12704_v3 = vpack.c.bf16 %v3293_v59, %v3293_v59  ;;  %v12706_v4 = vpack.c.bf16 %v3292_v58, %v3292_v58 }
 0xc73   :  { %v3309_v1 = vrot.slane %v3295_v60, %v3284_v54  ;;  %v3310_v2 = vcombine.high %v3302_v61, %v3302_v61  ;;  %v12708_v24 = vpack.c.bf16 %v3302_v61, %v3302_v61 }
 0xc74   :  { %v12710_v27 = vpack.c.bf16 %v3294_v63, %v3294_v63 }
 0xc75   :  { %v3311_v5 = vcombine.high %v3309_v1, %v3309_v1  ;;  %v12712_v6 = vpack.c.bf16 %v3310_v2, %v3310_v2  ;;  %v12714_v7 = vpack.c.bf16 %v3309_v1, %v3309_v1 }
 0xc77   :  { %v12716_v8 = vpack.c.bf16 %v3311_v5, %v3311_v5 }
 0xc78   :  { %12266 = dma.done.wait [#allocation7], 32768 }
 0xc79   :  { %12267 = vsyncadd [#allocation7], 4294934528  ;;  %4922 = vmatprep.mubr.bf16.mxu1 %v12704_v3  ;;  %4963 = vmatprep.mubr.bf16.mxu0 %v12710_v27  ;;  %v11481_v10 = vld [vmem:[#allocation2 + $0xe4] ss:$16 sps:$4 sm:$0xff]   ;;  %v11485_v13 = vld [vmem:[#allocation2 + $0xe0] ss:$16 sps:$4 sm:$0xff]  }
 0xc7a   :  { %v11483_v12 = vld [vmem:[#allocation2 + $0x2e4] ss:$16 sps:$4 sm:$0xff]   ;;  %4890 = vmatprep.subr.bf16.mxu1 %v11481_v10  ;;  %v11486_v0 = vld [vmem:[#allocation2 + $0x2e0] ss:$16 sps:$4 sm:$0xff]  }
 0xc7b   :  { %4931 = vmatprep.subr.bf16.mxu0 %v11483_v12  ;;  %v11487_v15 = vld [vmem:[#allocation2 + $0xc4] ss:$16 sps:$4 sm:$0xff]   ;;  %4891 = vmatpush1.bf16.msra.mxu1 %v11485_v13  ;;  %v11491_v17 = vld [vmem:[#allocation2 + $0xc0] ss:$16 sps:$4 sm:$0xff]  }
 0xc7c   :  { %4932 = vmatpush1.bf16.msra.mxu0 %v11486_v0  ;;  %v11489_v16 = vld [vmem:[#allocation2 + $0x2c4] ss:$16 sps:$4 sm:$0xff]   ;;  %4892 = vmatprep.subr.bf16.mxu1 %v11487_v15  ;;  %v11492_v18 = vld [vmem:[#allocation2 + $0x2c0] ss:$16 sps:$4 sm:$0xff]  }
 0xc7d   :  { %4933 = vmatprep.subr.bf16.mxu0 %v11489_v16  ;;  %v11493_v19 = vld [vmem:[#allocation2 + $0xa4] ss:$16 sps:$4 sm:$0xff]   ;;  %v11497_v21 = vld [vmem:[#allocation2 + $0xa0] ss:$16 sps:$4 sm:$0xff]  }
 0xc7e   :  { %v11495_v20 = vld [vmem:[#allocation2 + $0x2a4] ss:$16 sps:$4 sm:$0xff]   ;;  %v11498_v22 = vld [vmem:[#allocation2 + $0x2a0] ss:$16 sps:$4 sm:$0xff]  }
 0xc7f   :  { %4893 = vmatpush1.bf16.msra.mxu1 %v11491_v17  ;;  %v11499_v23 = vld [vmem:[#allocation2 + $0x84] ss:$16 sps:$4 sm:$0xff]   ;;  %v11503_v26 = vld [vmem:[#allocation2 + $0x80] ss:$16 sps:$4 sm:$0xff]  }
 0xc80   :  { %4934 = vmatpush1.bf16.msra.mxu0 %v11492_v18  ;;  %4894 = vmatprep.subr.bf16.mxu1 %v11493_v19  ;;  %v11501_v25 = vld [vmem:[#allocation2 + $0x284] ss:$16 sps:$4 sm:$0xff]   ;;  %v11504_v28 = vld [vmem:[#allocation2 + $0x280] ss:$16 sps:$4 sm:$0xff]  }
 0xc81   :  { %4935 = vmatprep.subr.bf16.mxu0 %v11495_v20  ;;  %v11505_v29 = vld [vmem:[#allocation2 + $0x64] ss:$16 sps:$4 sm:$0xff]   ;;  %v11509_v31 = vld [vmem:[#allocation2 + $0x60] ss:$16 sps:$4 sm:$0xff]  }
 0xc82   :  { %v11507_v30 = vld [vmem:[#allocation2 + $0x264] ss:$16 sps:$4 sm:$0xff]   ;;  %v11510_v32 = vld [vmem:[#allocation2 + $0x260] ss:$16 sps:$4 sm:$0xff]  }
 0xc83   :  { %4895 = vmatpush1.bf16.msra.mxu1 %v11497_v21  ;;  %v11511_v33 = vld [vmem:[#allocation2 + $0x44] ss:$16 sps:$4 sm:$0xff]   ;;  %v11515_v35 = vld [vmem:[#allocation2 + $0x40] ss:$16 sps:$4 sm:$0xff]  }
 0xc84   :  { %4936 = vmatpush1.bf16.msra.mxu0 %v11498_v22  ;;  %4896 = vmatprep.subr.bf16.mxu1 %v11499_v23  ;;  %v11513_v34 = vld [vmem:[#allocation2 + $0x244] ss:$16 sps:$4 sm:$0xff]   ;;  %v11516_v36 = vld [vmem:[#allocation2 + $0x240] ss:$16 sps:$4 sm:$0xff]  }
 0xc85   :  { %4937 = vmatprep.subr.bf16.mxu0 %v11501_v25  ;;  %v11517_v38 = vld [vmem:[#allocation2 + $0x24] ss:$16 sps:$4 sm:$0xff]   ;;  %v11521_v40 = vld [vmem:[#allocation2 + $0x20] ss:$16 sps:$4 sm:$0xff]  }
 0xc86   :  { %v11519_v39 = vld [vmem:[#allocation2 + $0x224] ss:$16 sps:$4 sm:$0xff]   ;;  %v11522_v41 = vld [vmem:[#allocation2 + $0x220] ss:$16 sps:$4 sm:$0xff]  }
 0xc87   :  { %4897 = vmatpush1.bf16.msra.mxu1 %v11503_v26  ;;  %v11523_v43 = vld [vmem:[#allocation2 + $0x4] ss:$16 sps:$4 sm:$0xff]   ;;  %v11527_v45 = vld [vmem:[#allocation2] ss:$16 sps:$4 sm:$0xff]  }
 0xc88   :  { %4938 = vmatpush1.bf16.msra.mxu0 %v11504_v28  ;;  %4898 = vmatprep.subr.bf16.mxu1 %v11505_v29  ;;  %v11525_v44 = vld [vmem:[#allocation2 + $0x204] ss:$16 sps:$4 sm:$0xff]   ;;  %v11528_v46 = vld [vmem:[#allocation2 + $0x200] ss:$16 sps:$4 sm:$0xff]  }
 0xc89   :  { %4939 = vmatprep.subr.bf16.mxu0 %v11507_v30  ;;  %v11529_v47 = vld [vmem:[#allocation2 + $0x1e4] ss:$16 sps:$4 sm:$0xff]   ;;  %v11533_v50 = vld [vmem:[#allocation2 + $0x1e0] ss:$16 sps:$4 sm:$0xff]  }
 0xc8a   :  { %v11531_v49 = vld [vmem:[#allocation2 + $0x3e4] ss:$16 sps:$4 sm:$0xff]   ;;  %v11534_v37 = vld [vmem:[#allocation2 + $0x3e0] ss:$16 sps:$4 sm:$0xff]  }
 0xc8b   :  { %4899 = vmatpush1.bf16.msra.mxu1 %v11509_v31  ;;  %v11535_v51 = vld [vmem:[#allocation2 + $0x1c4] ss:$16 sps:$4 sm:$0xff]   ;;  %v11539_v42 = vld [vmem:[#allocation2 + $0x1c0] ss:$16 sps:$4 sm:$0xff]  }
 0xc8c   :  { %4940 = vmatpush1.bf16.msra.mxu0 %v11510_v32  ;;  %4900 = vmatprep.subr.bf16.mxu1 %v11511_v33  ;;  %v11537_v52 = vld [vmem:[#allocation2 + $0x3c4] ss:$16 sps:$4 sm:$0xff]   ;;  %v11540_v53 = vld [vmem:[#allocation2 + $0x3c0] ss:$16 sps:$4 sm:$0xff]  }
 0xc8d   :  { %4941 = vmatprep.subr.bf16.mxu0 %v11513_v34  ;;  %v11541_v54 = vld [vmem:[#allocation2 + $0x1a4] ss:$16 sps:$4 sm:$0xff]   ;;  %v11545_v56 = vld [vmem:[#allocation2 + $0x1a0] ss:$16 sps:$4 sm:$0xff]  }
 0xc8e   :  { %v11543_v55 = vld [vmem:[#allocation2 + $0x3a4] ss:$16 sps:$4 sm:$0xff]   ;;  %v11546_v57 = vld [vmem:[#allocation2 + $0x3a0] ss:$16 sps:$4 sm:$0xff]  }
 0xc8f   :  { %4901 = vmatpush1.bf16.msra.mxu1 %v11515_v35  ;;  %v11547_v48 = vld [vmem:[#allocation2 + $0x184] ss:$16 sps:$4 sm:$0xff]   ;;  %v11551_v59 = vld [vmem:[#allocation2 + $0x180] ss:$16 sps:$4 sm:$0xff]  }
 0xc90   :  { %4942 = vmatpush1.bf16.msra.mxu0 %v11516_v36  ;;  %4902 = vmatprep.subr.bf16.mxu1 %v11517_v38  ;;  %v11549_v58 = vld [vmem:[#allocation2 + $0x384] ss:$16 sps:$4 sm:$0xff]   ;;  %v11552_v60 = vld [vmem:[#allocation2 + $0x380] ss:$16 sps:$4 sm:$0xff]  }
 0xc91   :  { %4943 = vmatprep.subr.bf16.mxu0 %v11519_v39  ;;  %v11553_v61 = vld [vmem:[#allocation2 + $0x164] ss:$16 sps:$4 sm:$0xff]   ;;  %v11557_v1 = vld [vmem:[#allocation2 + $0x160] ss:$16 sps:$4 sm:$0xff]  }
 0xc92   :  { %v11555_v63 = vld [vmem:[#allocation2 + $0x364] ss:$16 sps:$4 sm:$0xff]   ;;  %v11558_v2 = vld [vmem:[#allocation2 + $0x360] ss:$16 sps:$4 sm:$0xff]  }
 0xc93   :  { %4903 = vmatpush1.bf16.msra.mxu1 %v11521_v40  ;;  %v11559_v5 = vld [vmem:[#allocation2 + $0x144] ss:$16 sps:$4 sm:$0xff]   ;;  %v11563_v12 = vld [vmem:[#allocation2 + $0x140] ss:$16 sps:$4 sm:$0xff]  }
 0xc94   :  { %4944 = vmatpush1.bf16.msra.mxu0 %v11522_v41  ;;  %4904 = vmatprep.subr.bf16.mxu1 %v11523_v43  ;;  %v11561_v10 = vld [vmem:[#allocation2 + $0x344] ss:$16 sps:$4 sm:$0xff]   ;;  %v11564_v13 = vld [vmem:[#allocation2 + $0x340] ss:$16 sps:$4 sm:$0xff]  }
 0xc95   :  { %4945 = vmatprep.subr.bf16.mxu0 %v11525_v44  ;;  %v11565_v0 = vld [vmem:[#allocation2 + $0x124] ss:$16 sps:$4 sm:$0xff]   ;;  %v11569_v16 = vld [vmem:[#allocation2 + $0x120] ss:$16 sps:$4 sm:$0xff]  }
 0xc96   :  { %v11567_v15 = vld [vmem:[#allocation2 + $0x324] ss:$16 sps:$4 sm:$0xff]   ;;  %v11570_v17 = vld [vmem:[#allocation2 + $0x320] ss:$16 sps:$4 sm:$0xff]  }
 0xc97   :  { %4905 = vmatpush1.bf16.msra.mxu1 %v11527_v45  ;;  %v11571_v18 = vld [vmem:[#allocation2 + $0x104] ss:$16 sps:$4 sm:$0xff]   ;;  %v11575_v20 = vld [vmem:[#allocation2 + $0x100] ss:$16 sps:$4 sm:$0xff]  }
 0xc98   :  { %4946 = vmatpush1.bf16.msra.mxu0 %v11528_v46  ;;  %4906 = vmatprep.subr.bf16.mxu1 %v11529_v47  ;;  %v11573_v19 = vld [vmem:[#allocation2 + $0x304] ss:$16 sps:$4 sm:$0xff]   ;;  %v11576_v21 = vld [vmem:[#allocation2 + $0x300] ss:$16 sps:$4 sm:$0xff]  }
 0xc99   :  { %4947 = vmatprep.subr.bf16.mxu0 %v11531_v49  ;;  %v11579_v22 = vld [vmem:[#allocation2 + $0x4e4] ss:$16 sps:$4 sm:$0xff]   ;;  %v11577_v25 = vld [vmem:[#allocation2 + $0x4e0] ss:$16 sps:$4 sm:$0xff]  }
 0xc9a   :  { %v11582_v23 = vld [vmem:[#allocation2 + $0x6e4] ss:$16 sps:$4 sm:$0xff]   ;;  %v11580_v26 = vld [vmem:[#allocation2 + $0x6e0] ss:$16 sps:$4 sm:$0xff]  }
 0xc9b   :  { %4907 = vmatpush2.bf16.msra.mxu1 %v11533_v50  ;;  %v11585_v28 = vld [vmem:[#allocation2 + $0x4c4] ss:$16 sps:$4 sm:$0xff]   ;;  %v11583_v30 = vld [vmem:[#allocation2 + $0x4c0] ss:$16 sps:$4 sm:$0xff]  }
 0xc9c   :  { %4948 = vmatpush2.bf16.msra.mxu0 %v11534_v37  ;;  %4908 = vmatprep.subr.bf16.mxu1 %v11535_v51  ;;  %v11588_v29 = vld [vmem:[#allocation2 + $0x6c4] ss:$16 sps:$4 sm:$0xff]   ;;  %v11586_v31 = vld [vmem:[#allocation2 + $0x6c0] ss:$16 sps:$4 sm:$0xff]  }
 0xc9d   :  { %4949 = vmatprep.subr.bf16.mxu0 %v11537_v52  ;;  %v11591_v32 = vld [vmem:[#allocation2 + $0x4a4] ss:$16 sps:$4 sm:$0xff]   ;;  %v11589_v34 = vld [vmem:[#allocation2 + $0x4a0] ss:$16 sps:$4 sm:$0xff]  }
 0xc9e   :  { %v11594_v33 = vld [vmem:[#allocation2 + $0x6a4] ss:$16 sps:$4 sm:$0xff]   ;;  %v11592_v35 = vld [vmem:[#allocation2 + $0x6a0] ss:$16 sps:$4 sm:$0xff]  }
 0xc9f   :  { %4909 = vmatpush2.bf16.msra.mxu1 %v11539_v42  ;;  %v11597_v36 = vld [vmem:[#allocation2 + $0x484] ss:$16 sps:$4 sm:$0xff]   ;;  %v11595_v39 = vld [vmem:[#allocation2 + $0x480] ss:$16 sps:$4 sm:$0xff]  }
 0xca0   :  { %4950 = vmatpush2.bf16.msra.mxu0 %v11540_v53  ;;  %4910 = vmatprep.subr.bf16.mxu1 %v11541_v54  ;;  %v11600_v38 = vld [vmem:[#allocation2 + $0x684] ss:$16 sps:$4 sm:$0xff]   ;;  %v11598_v40 = vld [vmem:[#allocation2 + $0x680] ss:$16 sps:$4 sm:$0xff]  }
 0xca1   :  { %4951 = vmatprep.subr.bf16.mxu0 %v11543_v55  ;;  %v11603_v41 = vld [vmem:[#allocation2 + $0x464] ss:$16 sps:$4 sm:$0xff]   ;;  %v11601_v44 = vld [vmem:[#allocation2 + $0x460] ss:$16 sps:$4 sm:$0xff]  }
 0xca2   :  { %v11606_v43 = vld [vmem:[#allocation2 + $0x664] ss:$16 sps:$4 sm:$0xff]   ;;  %v11604_v45 = vld [vmem:[#allocation2 + $0x660] ss:$16 sps:$4 sm:$0xff]  }
 0xca3   :  { %4911 = vmatpush2.bf16.msra.mxu1 %v11545_v56  ;;  %v11609_v46 = vld [vmem:[#allocation2 + $0x444] ss:$16 sps:$4 sm:$0xff]   ;;  %v11607_v49 = vld [vmem:[#allocation2 + $0x440] ss:$16 sps:$4 sm:$0xff]  }
 0xca4   :  { %4952 = vmatpush2.bf16.msra.mxu0 %v11546_v57  ;;  %4912 = vmatprep.subr.bf16.mxu1 %v11547_v48  ;;  %v11612_v47 = vld [vmem:[#allocation2 + $0x644] ss:$16 sps:$4 sm:$0xff]   ;;  %v11610_v50 = vld [vmem:[#allocation2 + $0x640] ss:$16 sps:$4 sm:$0xff]  }
 0xca5   :  { %4953 = vmatprep.subr.bf16.mxu0 %v11549_v58  ;;  %v11615_v37 = vld [vmem:[#allocation2 + $0x424] ss:$16 sps:$4 sm:$0xff]   ;;  %v11613_v52 = vld [vmem:[#allocation2 + $0x420] ss:$16 sps:$4 sm:$0xff]  }
 0xca6   :  { %v11618_v51 = vld [vmem:[#allocation2 + $0x624] ss:$16 sps:$4 sm:$0xff]   ;;  %v11616_v42 = vld [vmem:[#allocation2 + $0x620] ss:$16 sps:$4 sm:$0xff]  }
 0xca7   :  { %4913 = vmatpush2.bf16.msra.mxu1 %v11551_v59  ;;  %v11621_v53 = vld [vmem:[#allocation2 + $0x404] ss:$16 sps:$4 sm:$0xff]   ;;  %v11619_v55 = vld [vmem:[#allocation2 + $0x400] ss:$16 sps:$4 sm:$0xff]  }
 0xca8   :  { %4954 = vmatpush2.bf16.msra.mxu0 %v11552_v60  ;;  %4914 = vmatprep.subr.bf16.mxu1 %v11553_v61  ;;  %v11624_v54 = vld [vmem:[#allocation2 + $0x604] ss:$16 sps:$4 sm:$0xff]   ;;  %v11622_v56 = vld [vmem:[#allocation2 + $0x600] ss:$16 sps:$4 sm:$0xff]  }
 0xca9   :  { %4955 = vmatprep.subr.bf16.mxu0 %v11555_v63  ;;  %v11627_v57 = vld [vmem:[#allocation2 + $0x5e4] ss:$16 sps:$4 sm:$0xff]   ;;  %v11625_v58 = vld [vmem:[#allocation2 + $0x5e0] ss:$16 sps:$4 sm:$0xff]  }
 0xcaa   :  { %v11630_v48 = vld [vmem:[#allocation2 + $0x7e4] ss:$16 sps:$4 sm:$0xff]   ;;  %v11628_v59 = vld [vmem:[#allocation2 + $0x7e0] ss:$16 sps:$4 sm:$0xff]  }
 0xcab   :  { %4915 = vmatpush2.bf16.msra.mxu1 %v11557_v1  ;;  %v11633_v60 = vld [vmem:[#allocation2 + $0x5c4] ss:$16 sps:$4 sm:$0xff]   ;;  %v11631_v63 = vld [vmem:[#allocation2 + $0x5c0] ss:$16 sps:$4 sm:$0xff]  }
 0xcac   :  { %4956 = vmatpush2.bf16.msra.mxu0 %v11558_v2  ;;  %4916 = vmatprep.subr.bf16.mxu1 %v11559_v5  ;;  %v11636_v61 = vld [vmem:[#allocation2 + $0x7c4] ss:$16 sps:$4 sm:$0xff]   ;;  %v11634_v1 = vld [vmem:[#allocation2 + $0x7c0] ss:$16 sps:$4 sm:$0xff]  }
 0xcad   :  { %4957 = vmatprep.subr.bf16.mxu0 %v11561_v10  ;;  %v11639_v2 = vld [vmem:[#allocation2 + $0x5a4] ss:$16 sps:$4 sm:$0xff]   ;;  %v11637_v10 = vld [vmem:[#allocation2 + $0x5a0] ss:$16 sps:$4 sm:$0xff]  }
 0xcae   :  { %v11642_v5 = vld [vmem:[#allocation2 + $0x7a4] ss:$16 sps:$4 sm:$0xff]  }
 0xcaf   :  { %4917 = vmatpush2.bf16.msra.mxu1 %v11563_v12  ;;  %v11640_v12 = vld [vmem:[#allocation2 + $0x7a0] ss:$16 sps:$4 sm:$0xff]  }
 0xcb0   :  { %4958 = vmatpush2.bf16.msra.mxu0 %v11564_v13  ;;  %4918 = vmatprep.subr.bf16.mxu1 %v11565_v0  ;;  %v11645_v13 = vld [vmem:[#allocation2 + $0x584] ss:$16 sps:$4 sm:$0xff]  }
 0xcb1   :  { %4959 = vmatprep.subr.bf16.mxu0 %v11567_v15  ;;  %v11648_v0 = vld [vmem:[#allocation2 + $0x784] ss:$16 sps:$4 sm:$0xff]   ;;  %v11643_v15 = vld [vmem:[#allocation2 + $0x580] ss:$16 sps:$4 sm:$0xff]  }
 0xcb3   :  { %4919 = vmatpush2.bf16.msra.mxu1 %v11569_v16  ;;  %v11646_v16 = vld [vmem:[#allocation2 + $0x780] ss:$16 sps:$4 sm:$0xff]  }
 0xcb4   :  { %4960 = vmatpush2.bf16.msra.mxu0 %v11570_v17  ;;  %4920 = vmatprep.subr.bf16.mxu1 %v11571_v18  ;;  %v11651_v17 = vld [vmem:[#allocation2 + $0x564] ss:$16 sps:$4 sm:$0xff]  }
 0xcb5   :  { %4961 = vmatprep.subr.bf16.mxu0 %v11573_v19  ;;  %v11654_v18 = vld [vmem:[#allocation2 + $0x764] ss:$16 sps:$4 sm:$0xff]   ;;  %v11649_v19 = vld [vmem:[#allocation2 + $0x560] ss:$16 sps:$4 sm:$0xff]  }
 0xcb7   :  { %4921 = vmatpush2.bf16.msra.mxu1 %v11575_v20  ;;  %v11652_v20 = vld [vmem:[#allocation2 + $0x760] ss:$16 sps:$4 sm:$0xff]  }
 0xcb8   :  { %4962 = vmatpush2.bf16.msra.mxu0 %v11576_v21  ;;  %4972 = vmatprep.subr.bf16.mxu1 %v11579_v22  ;;  %v11657_v21 = vld [vmem:[#allocation2 + $0x544] ss:$16 sps:$4 sm:$0xff]  }
 0xcb9   :  { %5013 = vmatprep.subr.bf16.mxu0 %v11582_v23  ;;  %v11660_v22 = vld [vmem:[#allocation2 + $0x744] ss:$16 sps:$4 sm:$0xff]   ;;  %v11655_v23 = vld [vmem:[#allocation2 + $0x540] ss:$16 sps:$4 sm:$0xff]  }
 0xcba   :  { %4923 = vmatmul.mubr.bf16.vlgmr.msra.gmra.mxu1 %v12702_v62 }
 0xcbb   :  { %4964 = vmatmul.mubr.bf16.vlgmr.msra.gmra.mxu0 %v12706_v4  ;;  %4973 = vmatpush1.bf16.msra.mxu1 %v11577_v25  ;;  %v11658_v25 = vld [vmem:[#allocation2 + $0x740] ss:$16 sps:$4 sm:$0xff]  }
 0xcbc   :  { %5014 = vmatpush1.bf16.msra.mxu0 %v11580_v26  ;;  %4974 = vmatprep.subr.bf16.mxu1 %v11585_v28  ;;  %v11663_v26 = vld [vmem:[#allocation2 + $0x524] ss:$16 sps:$4 sm:$0xff]  }
 0xcbd   :  { %5015 = vmatprep.subr.bf16.mxu0 %v11588_v29  ;;  %5004 = vmatprep.mubr.bf16.mxu1 %v12712_v6  ;;  %v11666_v28 = vld [vmem:[#allocation2 + $0x724] ss:$16 sps:$4 sm:$0xff]   ;;  %v11661_v29 = vld [vmem:[#allocation2 + $0x520] ss:$16 sps:$4 sm:$0xff]  }
 0xcbe   :  { %5045 = vmatprep.mubr.bf16.mxu0 %v12716_v8 }
 0xcbf   :  { %4975 = vmatpush1.bf16.msra.mxu1 %v11583_v30  ;;  %v11664_v30 = vld [vmem:[#allocation2 + $0x720] ss:$16 sps:$4 sm:$0xff]  }
 0xcc0   :  { %5016 = vmatpush1.bf16.msra.mxu0 %v11586_v31  ;;  %4976 = vmatprep.subr.bf16.mxu1 %v11591_v32  ;;  %v11669_v31 = vld [vmem:[#allocation2 + $0x504] ss:$16 sps:$4 sm:$0xff]  }
 0xcc1   :  { %5017 = vmatprep.subr.bf16.mxu0 %v11594_v33  ;;  %v11672_v32 = vld [vmem:[#allocation2 + $0x704] ss:$16 sps:$4 sm:$0xff]   ;;  %v11667_v33 = vld [vmem:[#allocation2 + $0x500] ss:$16 sps:$4 sm:$0xff]  }
 0xcc3   :  { %4977 = vmatpush1.bf16.msra.mxu1 %v11589_v34  ;;  %v11670_v34 = vld [vmem:[#allocation2 + $0x700] ss:$16 sps:$4 sm:$0xff]  }
 0xcc4   :  { %5018 = vmatpush1.bf16.msra.mxu0 %v11592_v35  ;;  %4978 = vmatprep.subr.bf16.mxu1 %v11597_v36  ;;  %v11675_v35 = vld [vmem:[#allocation2 + $0xec] ss:$16 sps:$4 sm:$0xff]  }
 0xcc5   :  { %5019 = vmatprep.subr.bf16.mxu0 %v11600_v38  ;;  %v11678_v36 = vld [vmem:[#allocation2 + $0x2ec] ss:$16 sps:$4 sm:$0xff]   ;;  %v11673_v38 = vld [vmem:[#allocation2 + $0xe8] ss:$16 sps:$4 sm:$0xff]  }
 0xcc7   :  { %4979 = vmatpush1.bf16.msra.mxu1 %v11595_v39  ;;  %v11676_v39 = vld [vmem:[#allocation2 + $0x2e8] ss:$16 sps:$4 sm:$0xff]  }
 0xcc8   :  { %5020 = vmatpush1.bf16.msra.mxu0 %v11598_v40  ;;  %4980 = vmatprep.subr.bf16.mxu1 %v11603_v41  ;;  %v11681_v40 = vld [vmem:[#allocation2 + $0xcc] ss:$16 sps:$4 sm:$0xff]  }
 0xcc9   :  { %5021 = vmatprep.subr.bf16.mxu0 %v11606_v43  ;;  %v11684_v41 = vld [vmem:[#allocation2 + $0x2cc] ss:$16 sps:$4 sm:$0xff]   ;;  %v11679_v43 = vld [vmem:[#allocation2 + $0xc8] ss:$16 sps:$4 sm:$0xff]  }
 0xccb   :  { %4981 = vmatpush1.bf16.msra.mxu1 %v11601_v44  ;;  %v11682_v44 = vld [vmem:[#allocation2 + $0x2c8] ss:$16 sps:$4 sm:$0xff]  }
 0xccc   :  { %5022 = vmatpush1.bf16.msra.mxu0 %v11604_v45  ;;  %4982 = vmatprep.subr.bf16.mxu1 %v11609_v46  ;;  %v11687_v45 = vld [vmem:[#allocation2 + $0xac] ss:$16 sps:$4 sm:$0xff]  }
 0xccd   :  { %5023 = vmatprep.subr.bf16.mxu0 %v11612_v47  ;;  %v11690_v46 = vld [vmem:[#allocation2 + $0x2ac] ss:$16 sps:$4 sm:$0xff]   ;;  %v11685_v47 = vld [vmem:[#allocation2 + $0xa8] ss:$16 sps:$4 sm:$0xff]  }
 0xccf   :  { %4983 = vmatpush1.bf16.msra.mxu1 %v11607_v49  ;;  %v11688_v49 = vld [vmem:[#allocation2 + $0x2a8] ss:$16 sps:$4 sm:$0xff]  }
 0xcd0   :  { %5024 = vmatpush1.bf16.msra.mxu0 %v11610_v50  ;;  %4984 = vmatprep.subr.bf16.mxu1 %v11615_v37  ;;  %v11693_v50 = vld [vmem:[#allocation2 + $0x8c] ss:$16 sps:$4 sm:$0xff]  }
 0xcd1   :  { %5025 = vmatprep.subr.bf16.mxu0 %v11618_v51  ;;  %v11696_v37 = vld [vmem:[#allocation2 + $0x28c] ss:$16 sps:$4 sm:$0xff]   ;;  %v11691_v51 = vld [vmem:[#allocation2 + $0x88] ss:$16 sps:$4 sm:$0xff]  }
 0xcd3   :  { %4985 = vmatpush1.bf16.msra.mxu1 %v11613_v52  ;;  %v11694_v52 = vld [vmem:[#allocation2 + $0x288] ss:$16 sps:$4 sm:$0xff]  }
 0xcd4   :  { %5026 = vmatpush1.bf16.msra.mxu0 %v11616_v42  ;;  %4986 = vmatprep.subr.bf16.mxu1 %v11621_v53  ;;  %v11699_v42 = vld [vmem:[#allocation2 + $0x6c] ss:$16 sps:$4 sm:$0xff]  }
 0xcd5   :  { %5027 = vmatprep.subr.bf16.mxu0 %v11624_v54  ;;  %v11702_v53 = vld [vmem:[#allocation2 + $0x26c] ss:$16 sps:$4 sm:$0xff]   ;;  %v11697_v54 = vld [vmem:[#allocation2 + $0x68] ss:$16 sps:$4 sm:$0xff]  }
 0xcd7   :  { %4987 = vmatpush1.bf16.msra.mxu1 %v11619_v55  ;;  %v11708_v55 = vld [vmem:[#allocation2 + $0x24c] ss:$16 sps:$4 sm:$0xff]  }
 0xcd8   :  { %5028 = vmatpush1.bf16.msra.mxu0 %v11622_v56  ;;  %4988 = vmatprep.subr.bf16.mxu1 %v11627_v57  ;;  %v11703_v56 = vld [vmem:[#allocation2 + $0x48] ss:$16 sps:$4 sm:$0xff]  }
 0xcd9   :  { %5029 = vmatprep.subr.bf16.mxu0 %v11630_v48  ;;  %v11706_v57 = vld [vmem:[#allocation2 + $0x248] ss:$16 sps:$4 sm:$0xff]   ;;  %v11711_v48 = vld [vmem:[#allocation2 + $0x2c] ss:$16 sps:$4 sm:$0xff]  }
 0xcdb   :  { %4989 = vmatpush2.bf16.msra.mxu1 %v11625_v58  ;;  %v11714_v58 = vld [vmem:[#allocation2 + $0x22c] ss:$16 sps:$4 sm:$0xff]  }
 0xcdc   :  { %5030 = vmatpush2.bf16.msra.mxu0 %v11628_v59  ;;  %4990 = vmatprep.subr.bf16.mxu1 %v11633_v60  ;;  %v11709_v59 = vld [vmem:[#allocation2 + $0x28] ss:$16 sps:$4 sm:$0xff]  }
 0xcdd   :  { %5031 = vmatprep.subr.bf16.mxu0 %v11636_v61  ;;  %v11712_v60 = vld [vmem:[#allocation2 + $0x228] ss:$16 sps:$4 sm:$0xff]   ;;  %v11717_v61 = vld [vmem:[#allocation2 + $0xc] ss:$16 sps:$4 sm:$0xff]  }
 0xcdf   :  { %4991 = vmatpush2.bf16.msra.mxu1 %v11631_v63  ;;  %v11720_v63 = vld [vmem:[#allocation2 + $0x20c] ss:$16 sps:$4 sm:$0xff]  }
 0xce0   :  { %5032 = vmatpush2.bf16.msra.mxu0 %v11634_v1  ;;  %4992 = vmatprep.subr.bf16.mxu1 %v11639_v2  ;;  %v11715_v1 = vld [vmem:[#allocation2 + $0x8] ss:$16 sps:$4 sm:$0xff]  }
 0xce1   :  { %5033 = vmatprep.subr.bf16.mxu0 %v11642_v5  ;;  %v11718_v2 = vld [vmem:[#allocation2 + $0x208] ss:$16 sps:$4 sm:$0xff]   ;;  %v11723_v5 = vld [vmem:[#allocation2 + $0x1ec] ss:$16 sps:$4 sm:$0xff]  }
 0xce3   :  { %4993 = vmatpush2.bf16.msra.mxu1 %v11637_v10  ;;  %v11726_v10 = vld [vmem:[#allocation2 + $0x3ec] ss:$16 sps:$4 sm:$0xff]  }
 0xce4   :  { %5034 = vmatpush2.bf16.msra.mxu0 %v11640_v12  ;;  %4994 = vmatprep.subr.bf16.mxu1 %v11645_v13  ;;  %v11721_v12 = vld [vmem:[#allocation2 + $0x1e8] ss:$16 sps:$4 sm:$0xff]  }
 0xce5   :  { %5035 = vmatprep.subr.bf16.mxu0 %v11648_v0  ;;  %v11724_v13 = vld [vmem:[#allocation2 + $0x3e8] ss:$16 sps:$4 sm:$0xff]   ;;  %v11729_v0 = vld [vmem:[#allocation2 + $0x1cc] ss:$16 sps:$4 sm:$0xff]  }
 0xce7   :  { %4995 = vmatpush2.bf16.msra.mxu1 %v11643_v15  ;;  %v11732_v15 = vld [vmem:[#allocation2 + $0x3cc] ss:$16 sps:$4 sm:$0xff]  }
 0xce8   :  { %5036 = vmatpush2.bf16.msra.mxu0 %v11646_v16  ;;  %4996 = vmatprep.subr.bf16.mxu1 %v11651_v17  ;;  %v11727_v16 = vld [vmem:[#allocation2 + $0x1c8] ss:$16 sps:$4 sm:$0xff]  }
 0xce9   :  { %5037 = vmatprep.subr.bf16.mxu0 %v11654_v18  ;;  %v11730_v17 = vld [vmem:[#allocation2 + $0x3c8] ss:$16 sps:$4 sm:$0xff]   ;;  %v11735_v18 = vld [vmem:[#allocation2 + $0x1ac] ss:$16 sps:$4 sm:$0xff]  }
 0xceb   :  { %4997 = vmatpush2.bf16.msra.mxu1 %v11649_v19  ;;  %v11738_v19 = vld [vmem:[#allocation2 + $0x3ac] ss:$16 sps:$4 sm:$0xff]  }
 0xcec   :  { %5038 = vmatpush2.bf16.msra.mxu0 %v11652_v20  ;;  %4998 = vmatprep.subr.bf16.mxu1 %v11657_v21  ;;  %v11733_v20 = vld [vmem:[#allocation2 + $0x1a8] ss:$16 sps:$4 sm:$0xff]  }
 0xced   :  { %5039 = vmatprep.subr.bf16.mxu0 %v11660_v22  ;;  %v11736_v21 = vld [vmem:[#allocation2 + $0x3a8] ss:$16 sps:$4 sm:$0xff]   ;;  %v11741_v22 = vld [vmem:[#allocation2 + $0x18c] ss:$16 sps:$4 sm:$0xff]  }
 0xcef   :  { %4999 = vmatpush2.bf16.msra.mxu1 %v11655_v23  ;;  %v11744_v23 = vld [vmem:[#allocation2 + $0x38c] ss:$16 sps:$4 sm:$0xff]  }
 0xcf0   :  { %5040 = vmatpush2.bf16.msra.mxu0 %v11658_v25  ;;  %5000 = vmatprep.subr.bf16.mxu1 %v11663_v26  ;;  %v11739_v25 = vld [vmem:[#allocation2 + $0x188] ss:$16 sps:$4 sm:$0xff]  }
 0xcf1   :  { %5041 = vmatprep.subr.bf16.mxu0 %v11666_v28  ;;  %v11742_v26 = vld [vmem:[#allocation2 + $0x388] ss:$16 sps:$4 sm:$0xff]   ;;  %v11747_v28 = vld [vmem:[#allocation2 + $0x16c] ss:$16 sps:$4 sm:$0xff]  }
 0xcf3   :  { %5001 = vmatpush2.bf16.msra.mxu1 %v11661_v29  ;;  %v11750_v29 = vld [vmem:[#allocation2 + $0x36c] ss:$16 sps:$4 sm:$0xff]  }
 0xcf4   :  { %5042 = vmatpush2.bf16.msra.mxu0 %v11664_v30  ;;  %5002 = vmatprep.subr.bf16.mxu1 %v11669_v31  ;;  %v11745_v30 = vld [vmem:[#allocation2 + $0x168] ss:$16 sps:$4 sm:$0xff]  }
 0xcf5   :  { %5043 = vmatprep.subr.bf16.mxu0 %v11672_v32  ;;  %v11748_v31 = vld [vmem:[#allocation2 + $0x368] ss:$16 sps:$4 sm:$0xff]   ;;  %v11753_v32 = vld [vmem:[#allocation2 + $0x14c] ss:$16 sps:$4 sm:$0xff]  }
 0xcf7   :  { %5003 = vmatpush2.bf16.msra.mxu1 %v11667_v33  ;;  %v11756_v33 = vld [vmem:[#allocation2 + $0x34c] ss:$16 sps:$4 sm:$0xff]  }
 0xcf8   :  { %5044 = vmatpush2.bf16.msra.mxu0 %v11670_v34  ;;  %5054 = vmatprep.subr.bf16.mxu1 %v11675_v35  ;;  %v11751_v34 = vld [vmem:[#allocation2 + $0x148] ss:$16 sps:$4 sm:$0xff]  }
 0xcf9   :  { %5095 = vmatprep.subr.bf16.mxu0 %v11678_v36  ;;  %v11754_v35 = vld [vmem:[#allocation2 + $0x348] ss:$16 sps:$4 sm:$0xff]   ;;  %v11759_v36 = vld [vmem:[#allocation2 + $0x12c] ss:$16 sps:$4 sm:$0xff]  }
 0xcfa   :  { %5005 = vmatmul.mubr.bf16.vlgmr.msra.gmra.mxu1 %v12708_v24 }
 0xcfb   :  { %5046 = vmatmul.mubr.bf16.vlgmr.msra.gmra.mxu0 %v12714_v7  ;;  %5055 = vmatpush1.bf16.msra.mxu1 %v11673_v38  ;;  %v11762_v38 = vld [vmem:[#allocation2 + $0x32c] ss:$16 sps:$4 sm:$0xff]  }
 0xcfc   :  { %5096 = vmatpush1.bf16.msra.mxu0 %v11676_v39  ;;  %5056 = vmatprep.subr.bf16.mxu1 %v11681_v40  ;;  %v11757_v39 = vld [vmem:[#allocation2 + $0x128] ss:$16 sps:$4 sm:$0xff]  }
 0xcfd   :  { %5097 = vmatprep.subr.bf16.mxu0 %v11684_v41  ;;  %5086 = vmatprep.mubr.bf16.mxu1 %v12704_v3  ;;  %v11700_v3 = vld [vmem:[#allocation2 + $0x268] ss:$16 sps:$4 sm:$0xff]   ;;  %v11765_v41 = vld [vmem:[#allocation2 + $0x10c] ss:$16 sps:$4 sm:$0xff]  }
 0xcfe   :  { %5127 = vmatprep.mubr.bf16.mxu0 %v12710_v27  ;;  %v11705_v27 = vld [vmem:[#allocation2 + $0x4c] ss:$16 sps:$4 sm:$0xff]   ;;  %v11760_v40 = vld [vmem:[#allocation2 + $0x328] ss:$16 sps:$4 sm:$0xff]  }
 0xcff   :  { %5057 = vmatpush1.bf16.msra.mxu1 %v11679_v43  ;;  %v11768_v43 = vld [vmem:[#allocation2 + $0x30c] ss:$16 sps:$4 sm:$0xff]  }
 0xd00   :  { %5098 = vmatpush1.bf16.msra.mxu0 %v11682_v44  ;;  %5058 = vmatprep.subr.bf16.mxu1 %v11687_v45  ;;  %v11763_v44 = vld [vmem:[#allocation2 + $0x108] ss:$16 sps:$4 sm:$0xff]  }
 0xd01   :  { %5099 = vmatprep.subr.bf16.mxu0 %v11690_v46  ;;  %v11766_v45 = vld [vmem:[#allocation2 + $0x308] ss:$16 sps:$4 sm:$0xff]   ;;  %v11771_v46 = vld [vmem:[#allocation2 + $0x4ec] ss:$16 sps:$4 sm:$0xff]  }
 0xd03   :  { %5059 = vmatpush1.bf16.msra.mxu1 %v11685_v47  ;;  %v11774_v47 = vld [vmem:[#allocation2 + $0x6ec] ss:$16 sps:$4 sm:$0xff]  }
 0xd04   :  { %5100 = vmatpush1.bf16.msra.mxu0 %v11688_v49  ;;  %5060 = vmatprep.subr.bf16.mxu1 %v11693_v50  ;;  %v11769_v49 = vld [vmem:[#allocation2 + $0x4e8] ss:$16 sps:$4 sm:$0xff]  }
 0xd05   :  { %5101 = vmatprep.subr.bf16.mxu0 %v11696_v37  ;;  %v11772_v50 = vld [vmem:[#allocation2 + $0x6e8] ss:$16 sps:$4 sm:$0xff]   ;;  %v11777_v37 = vld [vmem:[#allocation2 + $0x4cc] ss:$16 sps:$4 sm:$0xff]  }
 0xd07   :  { %5061 = vmatpush1.bf16.msra.mxu1 %v11691_v51  ;;  %v11780_v51 = vld [vmem:[#allocation2 + $0x6cc] ss:$16 sps:$4 sm:$0xff]  }
 0xd08   :  { %5102 = vmatpush1.bf16.msra.mxu0 %v11694_v52  ;;  %5062 = vmatprep.subr.bf16.mxu1 %v11699_v42  ;;  %v11775_v52 = vld [vmem:[#allocation2 + $0x4c8] ss:$16 sps:$4 sm:$0xff]  }
 0xd09   :  { %5103 = vmatprep.subr.bf16.mxu0 %v11702_v53  ;;  %v11778_v42 = vld [vmem:[#allocation2 + $0x6c8] ss:$16 sps:$4 sm:$0xff]   ;;  %v11783_v53 = vld [vmem:[#allocation2 + $0x4ac] ss:$16 sps:$4 sm:$0xff]  }
 0xd0b   :  { %5063 = vmatpush1.bf16.msra.mxu1 %v11697_v54  ;;  %v11786_v54 = vld [vmem:[#allocation2 + $0x6ac] ss:$16 sps:$4 sm:$0xff]  }
 0xd0c   :  { %5104 = vmatpush1.bf16.msra.mxu0 %v11700_v3  ;;  %5064 = vmatprep.subr.bf16.mxu1 %v11705_v27  ;;  %v11781_v3 = vld [vmem:[#allocation2 + $0x4a8] ss:$16 sps:$4 sm:$0xff]  }
 0xd0d   :  { %5105 = vmatprep.subr.bf16.mxu0 %v11708_v55  ;;  %v11784_v27 = vld [vmem:[#allocation2 + $0x6a8] ss:$16 sps:$4 sm:$0xff]  }
 0xd0e   :  { %v11787_v55 = vld [vmem:[#allocation2 + $0x488] ss:$16 sps:$4 sm:$0xff]  }
 0xd0f   :  { %5065 = vmatpush1.bf16.msra.mxu1 %v11703_v56  ;;  %v11790_v56 = vld [vmem:[#allocation2 + $0x688] ss:$16 sps:$4 sm:$0xff]  }
 0xd10   :  { %5106 = vmatpush1.bf16.msra.mxu0 %v11706_v57  ;;  %5066 = vmatprep.subr.bf16.mxu1 %v11711_v48  ;;  %v11795_v57 = vld [vmem:[#allocation2 + $0x46c] ss:$16 sps:$4 sm:$0xff]  }
 0xd11   :  { %5107 = vmatprep.subr.bf16.mxu0 %v11714_v58  ;;  %v11798_v48 = vld [vmem:[#allocation2 + $0x66c] ss:$16 sps:$4 sm:$0xff]  }
 0xd12   :  { %v11801_v58 = vld [vmem:[#allocation2 + $0x44c] ss:$16 sps:$4 sm:$0xff]  }
 0xd13   :  { %5067 = vmatpush1.bf16.msra.mxu1 %v11709_v59  ;;  %v11804_v59 = vld [vmem:[#allocation2 + $0x64c] ss:$16 sps:$4 sm:$0xff]  }
 0xd14   :  { %5108 = vmatpush1.bf16.msra.mxu0 %v11712_v60  ;;  %5068 = vmatprep.subr.bf16.mxu1 %v11717_v61  ;;  %v11799_v60 = vld [vmem:[#allocation2 + $0x448] ss:$16 sps:$4 sm:$0xff]  }
 0xd15   :  { %5109 = vmatprep.subr.bf16.mxu0 %v11720_v63  ;;  %v11802_v61 = vld [vmem:[#allocation2 + $0x648] ss:$16 sps:$4 sm:$0xff]   ;;  %v11807_v63 = vld [vmem:[#allocation2 + $0x42c] ss:$16 sps:$4 sm:$0xff]  }
 0xd17   :  { %5069 = vmatpush1.bf16.msra.mxu1 %v11715_v1  ;;  %v11810_v1 = vld [vmem:[#allocation2 + $0x62c] ss:$16 sps:$4 sm:$0xff]  }
 0xd18   :  { %5110 = vmatpush1.bf16.msra.mxu0 %v11718_v2  ;;  %5070 = vmatprep.subr.bf16.mxu1 %v11723_v5  ;;  %v11805_v2 = vld [vmem:[#allocation2 + $0x428] ss:$16 sps:$4 sm:$0xff]  }
 0xd19   :  { %5111 = vmatprep.subr.bf16.mxu0 %v11726_v10  ;;  %v11808_v5 = vld [vmem:[#allocation2 + $0x628] ss:$16 sps:$4 sm:$0xff]   ;;  %v11813_v10 = vld [vmem:[#allocation2 + $0x40c] ss:$16 sps:$4 sm:$0xff]  }
 0xd1b   :  { %5071 = vmatpush2.bf16.msra.mxu1 %v11721_v12  ;;  %v11816_v12 = vld [vmem:[#allocation2 + $0x60c] ss:$16 sps:$4 sm:$0xff]  }
 0xd1c   :  { %5112 = vmatpush2.bf16.msra.mxu0 %v11724_v13  ;;  %5072 = vmatprep.subr.bf16.mxu1 %v11729_v0  ;;  %v11811_v13 = vld [vmem:[#allocation2 + $0x408] ss:$16 sps:$4 sm:$0xff]  }
 0xd1d   :  { %5113 = vmatprep.subr.bf16.mxu0 %v11732_v15  ;;  %v11814_v0 = vld [vmem:[#allocation2 + $0x608] ss:$16 sps:$4 sm:$0xff]   ;;  %v11819_v15 = vld [vmem:[#allocation2 + $0x5ec] ss:$16 sps:$4 sm:$0xff]  }
 0xd1f   :  { %5073 = vmatpush2.bf16.msra.mxu1 %v11727_v16  ;;  %v11822_v16 = vld [vmem:[#allocation2 + $0x7ec] ss:$16 sps:$4 sm:$0xff]  }
 0xd20   :  { %5114 = vmatpush2.bf16.msra.mxu0 %v11730_v17  ;;  %5074 = vmatprep.subr.bf16.mxu1 %v11735_v18  ;;  %v11817_v17 = vld [vmem:[#allocation2 + $0x5e8] ss:$16 sps:$4 sm:$0xff]  }
 0xd21   :  { %5115 = vmatprep.subr.bf16.mxu0 %v11738_v19  ;;  %v11820_v18 = vld [vmem:[#allocation2 + $0x7e8] ss:$16 sps:$4 sm:$0xff]   ;;  %v11825_v19 = vld [vmem:[#allocation2 + $0x5cc] ss:$16 sps:$4 sm:$0xff]  }
 0xd23   :  { %5075 = vmatpush2.bf16.msra.mxu1 %v11733_v20  ;;  %v11828_v20 = vld [vmem:[#allocation2 + $0x7cc] ss:$16 sps:$4 sm:$0xff]  }
 0xd24   :  { %5116 = vmatpush2.bf16.msra.mxu0 %v11736_v21  ;;  %5076 = vmatprep.subr.bf16.mxu1 %v11741_v22  ;;  %v11823_v21 = vld [vmem:[#allocation2 + $0x5c8] ss:$16 sps:$4 sm:$0xff]  }
 0xd25   :  { %5117 = vmatprep.subr.bf16.mxu0 %v11744_v23  ;;  %v11826_v22 = vld [vmem:[#allocation2 + $0x7c8] ss:$16 sps:$4 sm:$0xff]   ;;  %v11831_v23 = vld [vmem:[#allocation2 + $0x5ac] ss:$16 sps:$4 sm:$0xff]  }
 0xd27   :  { %5077 = vmatpush2.bf16.msra.mxu1 %v11739_v25  ;;  %v11834_v25 = vld [vmem:[#allocation2 + $0x7ac] ss:$16 sps:$4 sm:$0xff]  }
 0xd28   :  { %5118 = vmatpush2.bf16.msra.mxu0 %v11742_v26  ;;  %5078 = vmatprep.subr.bf16.mxu1 %v11747_v28  ;;  %v11829_v26 = vld [vmem:[#allocation2 + $0x5a8] ss:$16 sps:$4 sm:$0xff]  }
 0xd29   :  { %5119 = vmatprep.subr.bf16.mxu0 %v11750_v29  ;;  %v11832_v28 = vld [vmem:[#allocation2 + $0x7a8] ss:$16 sps:$4 sm:$0xff]   ;;  %v11837_v29 = vld [vmem:[#allocation2 + $0x58c] ss:$16 sps:$4 sm:$0xff]  }
 0xd2b   :  { %5079 = vmatpush2.bf16.msra.mxu1 %v11745_v30  ;;  %v11840_v30 = vld [vmem:[#allocation2 + $0x78c] ss:$16 sps:$4 sm:$0xff]  }
 0xd2c   :  { %5120 = vmatpush2.bf16.msra.mxu0 %v11748_v31  ;;  %5080 = vmatprep.subr.bf16.mxu1 %v11753_v32  ;;  %v11835_v31 = vld [vmem:[#allocation2 + $0x588] ss:$16 sps:$4 sm:$0xff]  }
 0xd2d   :  { %5121 = vmatprep.subr.bf16.mxu0 %v11756_v33  ;;  %v11838_v32 = vld [vmem:[#allocation2 + $0x788] ss:$16 sps:$4 sm:$0xff]   ;;  %v11843_v33 = vld [vmem:[#allocation2 + $0x56c] ss:$16 sps:$4 sm:$0xff]  }
 0xd2f   :  { %5081 = vmatpush2.bf16.msra.mxu1 %v11751_v34  ;;  %v11846_v34 = vld [vmem:[#allocation2 + $0x76c] ss:$16 sps:$4 sm:$0xff]  }
 0xd30   :  { %5122 = vmatpush2.bf16.msra.mxu0 %v11754_v35  ;;  %5082 = vmatprep.subr.bf16.mxu1 %v11759_v36  ;;  %v11841_v35 = vld [vmem:[#allocation2 + $0x568] ss:$16 sps:$4 sm:$0xff]  }
 0xd31   :  { %5123 = vmatprep.subr.bf16.mxu0 %v11762_v38  ;;  %v11844_v36 = vld [vmem:[#allocation2 + $0x768] ss:$16 sps:$4 sm:$0xff]   ;;  %v11849_v38 = vld [vmem:[#allocation2 + $0x54c] ss:$16 sps:$4 sm:$0xff]  }
 0xd33   :  { %5083 = vmatpush2.bf16.msra.mxu1 %v11757_v39  ;;  %v11852_v39 = vld [vmem:[#allocation2 + $0x74c] ss:$16 sps:$4 sm:$0xff]  }
 0xd34   :  { %5124 = vmatpush2.bf16.msra.mxu0 %v11760_v40  ;;  %5084 = vmatprep.subr.bf16.mxu1 %v11765_v41  ;;  %v11847_v40 = vld [vmem:[#allocation2 + $0x548] ss:$16 sps:$4 sm:$0xff]  }
 0xd35   :  { %5125 = vmatprep.subr.bf16.mxu0 %v11768_v43  ;;  %v11850_v41 = vld [vmem:[#allocation2 + $0x748] ss:$16 sps:$4 sm:$0xff]   ;;  %v11855_v43 = vld [vmem:[#allocation2 + $0x52c] ss:$16 sps:$4 sm:$0xff]  }
 0xd37   :  { %5085 = vmatpush2.bf16.msra.mxu1 %v11763_v44  ;;  %v11858_v44 = vld [vmem:[#allocation2 + $0x72c] ss:$16 sps:$4 sm:$0xff]  }
 0xd38   :  { %5126 = vmatpush2.bf16.msra.mxu0 %v11766_v45  ;;  %5136 = vmatprep.subr.bf16.mxu1 %v11771_v46  ;;  %v11853_v45 = vld [vmem:[#allocation2 + $0x528] ss:$16 sps:$4 sm:$0xff]  }
 0xd39   :  { %5177 = vmatprep.subr.bf16.mxu0 %v11774_v47  ;;  %v11856_v46 = vld [vmem:[#allocation2 + $0x728] ss:$16 sps:$4 sm:$0xff]   ;;  %v11861_v47 = vld [vmem:[#allocation2 + $0x50c] ss:$16 sps:$4 sm:$0xff]  }
 0xd3a   :  { %5087 = vmatmul.mubr.bf16.vlgmr.msra.gmra.mxu1 %v12702_v62  ;;  %v11789_v62 = vld [vmem:[#allocation2 + $0x48c] ss:$16 sps:$4 sm:$0xff]  }
 0xd3b   :  { %5128 = vmatmul.mubr.bf16.vlgmr.msra.gmra.mxu0 %v12706_v4  ;;  %5137 = vmatpush1.bf16.msra.mxu1 %v11769_v49  ;;  %v11792_v4 = vld [vmem:[#allocation2 + $0x68c] ss:$16 sps:$4 sm:$0xff]  }
 0xd3c   :  { %5178 = vmatpush1.bf16.msra.mxu0 %v11772_v50  ;;  %5138 = vmatprep.subr.bf16.mxu1 %v11777_v37  ;;  %v11864_v49 = vld [vmem:[#allocation2 + $0x70c] ss:$16 sps:$4 sm:$0xff]   ;;  %v11859_v50 = vld [vmem:[#allocation2 + $0x508] ss:$16 sps:$4 sm:$0xff]  }
 0xd3d   :  { %5179 = vmatprep.subr.bf16.mxu0 %v11780_v51  ;;  %5168 = vmatprep.mubr.bf16.mxu1 %v12712_v6  ;;  %v11793_v6 = vld [vmem:[#allocation2 + $0x468] ss:$16 sps:$4 sm:$0xff]  }
 0xd3e   :  { %5209 = vmatprep.mubr.bf16.mxu0 %v12716_v8  ;;  %v11796_v8 = vld [vmem:[#allocation2 + $0x668] ss:$16 sps:$4 sm:$0xff]  }
 0xd3f   :  { %5139 = vmatpush1.bf16.msra.mxu1 %v11775_v52  ;;  %v11862_v37 = vld [vmem:[#allocation2 + $0x708] ss:$16 sps:$4 sm:$0xff]  }
 0xd40   :  { %5180 = vmatpush1.bf16.msra.mxu0 %v11778_v42  ;;  %5140 = vmatprep.subr.bf16.mxu1 %v11783_v53  ;;  %v3588_v51 = vld [vmem:[#allocation28] sm:$0xf] }
 0xd41   :  { %5181 = vmatprep.subr.bf16.mxu0 %v11786_v54  ;;  %v3593_v52 = vrot.slane %v3588_v51, %v12516_v11  ;;  %v3597_v42 = vrot.slane %v3588_v51, %v12519_v14 }
 0xd43   :  { %5141 = vmatpush1.bf16.msra.mxu1 %v11781_v3 }
 0xd44   :  { %5182 = vmatpush1.bf16.msra.mxu0 %v11784_v27  ;;  %5142 = vmatprep.subr.bf16.mxu1 %v11789_v62 }
 0xd45   :  { %5183 = vmatprep.subr.bf16.mxu0 %v11792_v4 }
 0xd47   :  { %5143 = vmatpush1.bf16.msra.mxu1 %v11787_v55 }
 0xd48   :  { %5184 = vmatpush1.bf16.msra.mxu0 %v11790_v56  ;;  %5144 = vmatprep.subr.bf16.mxu1 %v11795_v57 }
 0xd49   :  { %5185 = vmatprep.subr.bf16.mxu0 %v11798_v48 }
 0xd4b   :  { %5145 = vmatpush1.bf16.msra.mxu1 %v11793_v6 }
 0xd4c   :  { %5186 = vmatpush1.bf16.msra.mxu0 %v11796_v8  ;;  %5146 = vmatprep.subr.bf16.mxu1 %v11801_v58 }
 0xd4d   :  { %5187 = vmatprep.subr.bf16.mxu0 %v11804_v59 }
 0xd4f   :  { %5147 = vmatpush1.bf16.msra.mxu1 %v11799_v60 }
 0xd50   :  { %5188 = vmatpush1.bf16.msra.mxu0 %v11802_v61  ;;  %5148 = vmatprep.subr.bf16.mxu1 %v11807_v63 }
 0xd51   :  { %5189 = vmatprep.subr.bf16.mxu0 %v11810_v1 }
 0xd53   :  { %5149 = vmatpush1.bf16.msra.mxu1 %v11805_v2 }
 0xd54   :  { %5190 = vmatpush1.bf16.msra.mxu0 %v11808_v5  ;;  %5150 = vmatprep.subr.bf16.mxu1 %v11813_v10 }
 0xd55   :  { %5191 = vmatprep.subr.bf16.mxu0 %v11816_v12 }
 0xd57   :  { %5151 = vmatpush1.bf16.msra.mxu1 %v11811_v13 }
 0xd58   :  { %5192 = vmatpush1.bf16.msra.mxu0 %v11814_v0  ;;  %5152 = vmatprep.subr.bf16.mxu1 %v11819_v15 }
 0xd59   :  { %5193 = vmatprep.subr.bf16.mxu0 %v11822_v16 }
 0xd5b   :  { %5153 = vmatpush2.bf16.msra.mxu1 %v11817_v17 }
 0xd5c   :  { %5194 = vmatpush2.bf16.msra.mxu0 %v11820_v18  ;;  %5154 = vmatprep.subr.bf16.mxu1 %v11825_v19 }
 0xd5d   :  { %5195 = vmatprep.subr.bf16.mxu0 %v11828_v20 }
 0xd5f   :  { %5155 = vmatpush2.bf16.msra.mxu1 %v11823_v21 }
 0xd60   :  { %5196 = vmatpush2.bf16.msra.mxu0 %v11826_v22  ;;  %5156 = vmatprep.subr.bf16.mxu1 %v11831_v23  ;;  %v12740_v23 = vsub.s32 2, %v12513_v9 }
 0xd61   :  { %5197 = vmatprep.subr.bf16.mxu0 %v11834_v25  ;;  %v12743_v25 = vsub.s32 3, %v12513_v9 }
 0xd63   :  { %5157 = vmatpush2.bf16.msra.mxu1 %v11829_v26  ;;  %v3601_v26 = vrot.slane %v3588_v51, %v12740_v23 }
 0xd64   :  { %5198 = vmatpush2.bf16.msra.mxu0 %v11832_v28  ;;  %5158 = vmatprep.subr.bf16.mxu1 %v11837_v29  ;;  %v3605_v28 = vrot.slane %v3588_v51, %v12743_v25 }
 0xd65   :  { %5199 = vmatprep.subr.bf16.mxu0 %v11840_v30 }
 0xd67   :  { %5159 = vmatpush2.bf16.msra.mxu1 %v11835_v31 }
 0xd68   :  { %5200 = vmatpush2.bf16.msra.mxu0 %v11838_v32  ;;  %5160 = vmatprep.subr.bf16.mxu1 %v11843_v33 }
 0xd69   :  { %5201 = vmatprep.subr.bf16.mxu0 %v11846_v34 }
 0xd6b   :  { %5161 = vmatpush2.bf16.msra.mxu1 %v11841_v35 }
 0xd6c   :  { %5202 = vmatpush2.bf16.msra.mxu0 %v11844_v36  ;;  %5162 = vmatprep.subr.bf16.mxu1 %v11849_v38 }
 0xd6d   :  { %5203 = vmatprep.subr.bf16.mxu0 %v11852_v39 }
 0xd6f   :  { %5163 = vmatpush2.bf16.msra.mxu1 %v11847_v40 }
 0xd70   :  { %5204 = vmatpush2.bf16.msra.mxu0 %v11850_v41  ;;  %5164 = vmatprep.subr.bf16.mxu1 %v11855_v43 }
 0xd71   :  { %5205 = vmatprep.subr.bf16.mxu0 %v11858_v44 }
 0xd73   :  { %5165 = vmatpush2.bf16.msra.mxu1 %v11853_v45 }
 0xd74   :  { %5206 = vmatpush2.bf16.msra.mxu0 %v11856_v46  ;;  %5166 = vmatprep.subr.bf16.mxu1 %v11861_v47 }
 0xd75   :  { %5207 = vmatprep.subr.bf16.mxu0 %v11864_v49 }
 0xd77   :  { %5167 = vmatpush2.bf16.msra.mxu1 %v11859_v50 }
 0xd78   :  { %5208 = vmatpush2.bf16.msra.mxu0 %v11862_v37 }
 0xd7a   :  { %v4924_v53 = vpop.f32.mrf.mxu1  ;;  %5169 = vmatmul.mubr.bf16.vlgmr.msra.gmra.mxu1 %v12708_v24 }
 0xd7b   :  { %v4965_v54 = vpop.f32.mrf.mxu0  ;;  %5210 = vmatmul.mubr.bf16.vlgmr.msra.gmra.mxu0 %v12714_v7  ;;  %v4925_v3 = vadd.f32 %v4924_v53, %v3593_v52 }
 0xd7c   :  { %v4926_v27 = vpop.f32.mrf.mxu1 }
 0xd7d   :  { %v4967_v62 = vpop.f32.mrf.mxu0  ;;  %v4966_v4 = vadd.f32 %v4965_v54, %v4925_v3  ;;  %v4927_v55 = vadd.f32 %v4926_v27, %v3597_v42 }
 0xd7e   :  { %v4928_v56 = vpop.f32.mrf.mxu1 }
 0xd7f   :  { %v4969_v57 = vpop.f32.mrf.mxu0  ;;  %v4968_v48 = vadd.f32 %v4967_v62, %v4927_v55 }
 0xd80   :  { %v4929_v6 = vpop.f32.mrf.mxu1 }
 0xd81   :  { %v4970_v8 = vpop.f32.mrf.mxu0 }
 0xdba   :  { %v5006_v58 = vpop.f32.mrf.mxu1 }
 0xdbb   :  { %v5047_v59 = vpop.f32.mrf.mxu0  ;;  %v5007_v60 = vadd.f32 %v5006_v58, %v4966_v4 }
 0xdbc   :  { %v5008_v61 = vpop.f32.mrf.mxu1 }
 0xdbd   :  { %v5049_v63 = vpop.f32.mrf.mxu0  ;;  %v12736_v1 = vadd.f32 %v5047_v59, %v5007_v60  ;;  %v5009_v24 = vadd.f32 %v5008_v61, %v4968_v48 }
 0xdbe   :  { %v5010_v2 = vpop.f32.mrf.mxu1 }
 0xdbf   :  { %v5051_v7 = vpop.f32.mrf.mxu0  ;;  %v5218_v5 = vmax.f32 %v12736_v1, 0.0  ;;  %v5050_v10 = vadd.f32 %v5049_v63, %v5009_v24 }
 0xdc0   :  { %v5011_v12 = vpop.f32.mrf.mxu1 }
 0xdc1   :  { %v5052_v13 = vpop.f32.mrf.mxu0  ;;  %v5219_v0 = vmax.f32 %v5050_v10, 0.0 }
 0xdfa   :  { %v5088_v15 = vpop.f32.mrf.mxu1 }
 0xdfb   :  { %v5129_v16 = vpop.f32.mrf.mxu0  ;;  %v5089_v29 = vadd.f32 %v5088_v15, %v3601_v26 }
 0xdfc   :  { %v5090_v17 = vpop.f32.mrf.mxu1 }
 0xdfd   :  { %v5131_v18 = vpop.f32.mrf.mxu0  ;;  %v5091_v30 = vadd.f32 %v5090_v17, %v3605_v28  ;;  %v5130_v31 = vadd.f32 %v5129_v16, %v5089_v29 }
 0xdfe   :  { %v5092_v19 = vpop.f32.mrf.mxu1 }
 0xdff   :  { %v5133_v20 = vpop.f32.mrf.mxu0  ;;  %v5132_v34 = vadd.f32 %v5131_v18, %v5091_v30 }
 0xe00   :  { %v5093_v21 = vpop.f32.mrf.mxu1 }
 0xe01   :  { %v5134_v22 = vpop.f32.mrf.mxu0 }
 0xe3a   :  { %v5170_v32 = vpop.f32.mrf.mxu1 }
 0xe3b   :  { %v5211_v33 = vpop.f32.mrf.mxu0  ;;  %v5171_v35 = vadd.f32 %v5170_v32, %v5130_v31 }
 0xe3c   :  { %v5172_v36 = vpop.f32.mrf.mxu1 }
 0xe3d   :  { %v5213_v38 = vpop.f32.mrf.mxu0  ;;  %v12747_v39 = vadd.f32 %v5211_v33, %v5171_v35  ;;  %v5173_v40 = vadd.f32 %v5172_v36, %v5132_v34 }
 0xe3e   :  { %v5174_v41 = vpop.f32.mrf.mxu1 }
 0xe3f   :  { %v5215_v43 = vpop.f32.mrf.mxu0  ;;  %v5220_v44 = vmax.f32 %v12747_v39, 0.0  ;;  %v5214_v45 = vadd.f32 %v5213_v38, %v5173_v40 }
 0xe40   :  { %v5175_v46 = vpop.f32.mrf.mxu1 }
 0xe41   :  { %v5216_v47 = vpop.f32.mrf.mxu0  ;;  %v5221_v49 = vmax.f32 %v5214_v45, 0.0 }
 0xe42   :  { %12268 = dma.done.wait [#allocation7 + $0x1], 65536 }
 0xe43   :  { %12269 = vsyncadd [#allocation7 + $0x1], 4294901760  ;;  %v12750_v50 = vpack.c.bf16 %v5219_v0, %v5219_v0  ;;  %v12752_v37 = vpack.c.bf16 %v5221_v49, %v5221_v49  ;;  %v5342_v51 = vld [vmem:[#allocation3 + $0x380] sm:$0xff]  ;;  %v5319_v1 = vld [vmem:[#allocation3 + $0x2c8] sm:$0xff] }
 0xe44   :  { %v5350_v52 = vld [vmem:[#allocation3 + $0x3c0] sm:$0xff] }
 0xe45   :  { %8418 = vmatprep.mubr.bf16.mxu1 %v12750_v50  ;;  %8459 = vmatprep.mubr.bf16.mxu0 %v12752_v37  ;;  %v5598_v42 = vld [vmem:[#allocation3 + $0xb80] sm:$0xff]  ;;  %v10328_v53 = vcombine.high %v5342_v51, %v5350_v52  ;;  %v10327_v3 = vcombine.low %v5342_v51, %v5350_v52 }
 0xe46   :  { %v5606_v54 = vld [vmem:[#allocation3 + $0xbc0] sm:$0xff] }
 0xe47   :  { %v5326_v27 = vld [vmem:[#allocation3 + $0x300] sm:$0xff]  ;;  %v10584_v4 = vcombine.high %v5598_v42, %v5606_v54  ;;  %v10583_v55 = vcombine.low %v5598_v42, %v5606_v54  ;;  %8386 = vmatprep.subr.bf16.mxu1 %v10328_v53 }
 0xe48   :  { %v5334_v62 = vld [vmem:[#allocation3 + $0x340] sm:$0xff]  ;;  %8387 = vmatpush1.bf16.msra.mxu1 %v10327_v3 }
 0xe49   :  { %v10312_v56 = vcombine.high %v5326_v27, %v5334_v62  ;;  %v5582_v57 = vld [vmem:[#allocation3 + $0xb00] sm:$0xff]  ;;  %8427 = vmatprep.subr.bf16.mxu0 %v10584_v4  ;;  %v10311_v61 = vcombine.low %v5326_v27, %v5334_v62 }
 0xe4a   :  { %v5590_v48 = vld [vmem:[#allocation3 + $0xb40] sm:$0xff]  ;;  %8428 = vmatpush1.bf16.msra.mxu0 %v10583_v55 }
 0xe4b   :  { %v5310_v6 = vld [vmem:[#allocation3 + $0x280] sm:$0xff]  ;;  %v10568_v8 = vcombine.high %v5582_v57, %v5590_v48  ;;  %8388 = vmatprep.subr.bf16.mxu1 %v10312_v56  ;;  %v10567_v63 = vcombine.low %v5582_v57, %v5590_v48 }
 0xe4c   :  { %v5318_v58 = vld [vmem:[#allocation3 + $0x2c0] sm:$0xff]  ;;  %8389 = vmatpush1.bf16.msra.mxu1 %v10311_v61 }
 0xe4d   :  { %v5566_v59 = vld [vmem:[#allocation3 + $0xa80] sm:$0xff]  ;;  %v10296_v24 = vcombine.high %v5310_v6, %v5318_v58  ;;  %8429 = vmatprep.subr.bf16.mxu0 %v10568_v8  ;;  %v10295_v0 = vcombine.low %v5310_v6, %v5318_v58 }
 0xe4e   :  { %v5574_v60 = vld [vmem:[#allocation3 + $0xac0] sm:$0xff]  ;;  %8430 = vmatpush1.bf16.msra.mxu0 %v10567_v63 }
 0xe4f   :  { %v10552_v2 = vcombine.high %v5566_v59, %v5574_v60  ;;  %v5294_v7 = vld [vmem:[#allocation3 + $0x200] sm:$0xff]  ;;  %8390 = vmatprep.subr.bf16.mxu1 %v10296_v24  ;;  %v10551_v15 = vcombine.low %v5566_v59, %v5574_v60 }
 0xe50   :  { %v5302_v10 = vld [vmem:[#allocation3 + $0x240] sm:$0xff]  ;;  %8391 = vmatpush1.bf16.msra.mxu1 %v10295_v0 }
 0xe51   :  { %v5550_v12 = vld [vmem:[#allocation3 + $0xa00] sm:$0xff]  ;;  %v10280_v16 = vcombine.high %v5294_v7, %v5302_v10  ;;  %8431 = vmatprep.subr.bf16.mxu0 %v10552_v2  ;;  %v10279_v22 = vcombine.low %v5294_v7, %v5302_v10 }
 0xe52   :  { %v5558_v13 = vld [vmem:[#allocation3 + $0xa40] sm:$0xff]  ;;  %8432 = vmatpush1.bf16.msra.mxu0 %v10551_v15 }
 0xe53   :  { %v10536_v17 = vcombine.high %v5550_v12, %v5558_v13  ;;  %v5278_v18 = vld [vmem:[#allocation3 + $0x180] sm:$0xff]  ;;  %8392 = vmatprep.subr.bf16.mxu1 %v10280_v16  ;;  %v10535_v26 = vcombine.low %v5550_v12, %v5558_v13 }
 0xe54   :  { %v5286_v19 = vld [vmem:[#allocation3 + $0x1c0] sm:$0xff]  ;;  %8393 = vmatpush1.bf16.msra.mxu1 %v10279_v22 }
 0xe55   :  { %v5534_v20 = vld [vmem:[#allocation3 + $0x980] sm:$0xff]  ;;  %v10264_v28 = vcombine.high %v5278_v18, %v5286_v19  ;;  %8433 = vmatprep.subr.bf16.mxu0 %v10536_v17  ;;  %v10263_v34 = vcombine.low %v5278_v18, %v5286_v19 }
 0xe56   :  { %v5542_v21 = vld [vmem:[#allocation3 + $0x9c0] sm:$0xff]  ;;  %8434 = vmatpush1.bf16.msra.mxu0 %v10535_v26 }
 0xe57   :  { %v10520_v29 = vcombine.high %v5534_v20, %v5542_v21  ;;  %v5262_v30 = vld [vmem:[#allocation3 + $0x100] sm:$0xff]  ;;  %8394 = vmatprep.subr.bf16.mxu1 %v10264_v28  ;;  %v10519_v35 = vcombine.low %v5534_v20, %v5542_v21 }
 0xe58   :  { %v5270_v31 = vld [vmem:[#allocation3 + $0x140] sm:$0xff]  ;;  %8395 = vmatpush1.bf16.msra.mxu1 %v10263_v34 }
 0xe59   :  { %v5518_v32 = vld [vmem:[#allocation3 + $0x900] sm:$0xff]  ;;  %v10248_v36 = vcombine.high %v5262_v30, %v5270_v31  ;;  %8435 = vmatprep.subr.bf16.mxu0 %v10520_v29  ;;  %v10247_v46 = vcombine.low %v5262_v30, %v5270_v31 }
 0xe5a   :  { %v5526_v33 = vld [vmem:[#allocation3 + $0x940] sm:$0xff]  ;;  %8436 = vmatpush1.bf16.msra.mxu0 %v10519_v35 }
 0xe5b   :  { %v10504_v38 = vcombine.high %v5518_v32, %v5526_v33  ;;  %v5246_v40 = vld [vmem:[#allocation3 + $0x80] sm:$0xff]  ;;  %8396 = vmatprep.subr.bf16.mxu1 %v10248_v36  ;;  %v10503_v47 = vcombine.low %v5518_v32, %v5526_v33 }
 0xe5c   :  { %v5254_v41 = vld [vmem:[#allocation3 + $0xc0] sm:$0xff]  ;;  %8397 = vmatpush1.bf16.msra.mxu1 %v10247_v46 }
 0xe5d   :  { %v5502_v43 = vld [vmem:[#allocation3 + $0x880] sm:$0xff]  ;;  %v10232_v49 = vcombine.high %v5246_v40, %v5254_v41  ;;  %8437 = vmatprep.subr.bf16.mxu0 %v10504_v38  ;;  %v10231_v3 = vcombine.low %v5246_v40, %v5254_v41 }
 0xe5e   :  { %v5510_v45 = vld [vmem:[#allocation3 + $0x8c0] sm:$0xff]  ;;  %8438 = vmatpush1.bf16.msra.mxu0 %v10503_v47 }
 0xe5f   :  { %v10488_v51 = vcombine.high %v5502_v43, %v5510_v45  ;;  %v5230_v52 = vld [vmem:[#allocation3] sm:$0xff]  ;;  %8398 = vmatprep.subr.bf16.mxu1 %v10232_v49  ;;  %v10487_v27 = vcombine.low %v5502_v43, %v5510_v45 }
 0xe60   :  { %v5238_v42 = vld [vmem:[#allocation3 + $0x40] sm:$0xff]  ;;  %8399 = vmatpush1.bf16.msra.mxu1 %v10231_v3 }
 0xe61   :  { %v5486_v53 = vld [vmem:[#allocation3 + $0x800] sm:$0xff]  ;;  %v10216_v62 = vcombine.high %v5230_v52, %v5238_v42  ;;  %8439 = vmatprep.subr.bf16.mxu0 %v10488_v51  ;;  %v10215_v6 = vcombine.low %v5230_v52, %v5238_v42 }
 0xe62   :  { %v5494_v54 = vld [vmem:[#allocation3 + $0x840] sm:$0xff]  ;;  %8440 = vmatpush1.bf16.msra.mxu0 %v10487_v27 }
 0xe63   :  { %v10472_v4 = vcombine.high %v5486_v53, %v5494_v54  ;;  %v5470_v55 = vld [vmem:[#allocation3 + $0x780] sm:$0xff]  ;;  %8400 = vmatprep.subr.bf16.mxu1 %v10216_v62  ;;  %v10471_v8 = vcombine.low %v5486_v53, %v5494_v54 }
 0xe64   :  { %v5478_v56 = vld [vmem:[#allocation3 + $0x7c0] sm:$0xff]  ;;  %8401 = vmatpush1.bf16.msra.mxu1 %v10215_v6 }
 0xe65   :  { %v5726_v57 = vld [vmem:[#allocation3 + $0xf80] sm:$0xff]  ;;  %v10456_v58 = vcombine.high %v5470_v55, %v5478_v56  ;;  %8441 = vmatprep.subr.bf16.mxu0 %v10472_v4  ;;  %v10455_v2 = vcombine.low %v5470_v55, %v5478_v56 }
 0xe66   :  { %v5734_v48 = vld [vmem:[#allocation3 + $0xfc0] sm:$0xff]  ;;  %8442 = vmatpush1.bf16.msra.mxu0 %v10471_v8 }
 0xe67   :  { %v10712_v59 = vcombine.high %v5726_v57, %v5734_v48  ;;  %v5454_v60 = vld [vmem:[#allocation3 + $0x700] sm:$0xff]  ;;  %8402 = vmatprep.subr.bf16.mxu1 %v10456_v58  ;;  %v10711_v7 = vcombine.low %v5726_v57, %v5734_v48 }
 0xe68   :  { %v5462_v61 = vld [vmem:[#allocation3 + $0x740] sm:$0xff]  ;;  %8403 = vmatpush2.bf16.msra.mxu1 %v10455_v2  ;;  %v5351_v2 = vld [vmem:[#allocation3 + $0x3c8] sm:$0xff] }
 0xe69   :  { %v5710_v63 = vld [vmem:[#allocation3 + $0xf00] sm:$0xff]  ;;  %v10440_v10 = vcombine.high %v5454_v60, %v5462_v61  ;;  %8443 = vmatprep.subr.bf16.mxu0 %v10712_v59  ;;  %v10439_v17 = vcombine.low %v5454_v60, %v5462_v61 }
 0xe6a   :  { %v5718_v24 = vld [vmem:[#allocation3 + $0xf40] sm:$0xff]  ;;  %8444 = vmatpush2.bf16.msra.mxu0 %v10711_v7  ;;  %v5599_v7 = vld [vmem:[#allocation3 + $0xb88] sm:$0xff] }
 0xe6b   :  { %v10696_v12 = vcombine.high %v5710_v63, %v5718_v24  ;;  %v5438_v13 = vld [vmem:[#allocation3 + $0x680] sm:$0xff]  ;;  %8404 = vmatprep.subr.bf16.mxu1 %v10440_v10  ;;  %v10695_v18 = vcombine.low %v5710_v63, %v5718_v24  ;;  %v5343_v24 = vld [vmem:[#allocation3 + $0x388] sm:$0xff] }
 0xe6c   :  { %v5446_v0 = vld [vmem:[#allocation3 + $0x6c0] sm:$0xff]  ;;  %8405 = vmatpush2.bf16.msra.mxu1 %v10439_v17  ;;  %v5607_v10 = vld [vmem:[#allocation3 + $0xbc8] sm:$0xff] }
 0xe6d   :  { %v5694_v15 = vld [vmem:[#allocation3 + $0xe80] sm:$0xff]  ;;  %v10424_v19 = vcombine.high %v5438_v13, %v5446_v0  ;;  %8445 = vmatprep.subr.bf16.mxu0 %v10696_v12  ;;  %v10423_v29 = vcombine.low %v5438_v13, %v5446_v0  ;;  %v10330_v0 = vcombine.high %v5343_v24, %v5351_v2  ;;  %v5335_v17 = vld [vmem:[#allocation3 + $0x348] sm:$0xff] }
 0xe6e   :  { %v5702_v16 = vld [vmem:[#allocation3 + $0xec0] sm:$0xff]  ;;  %8446 = vmatpush2.bf16.msra.mxu0 %v10695_v18  ;;  %v12759_v18 = vpack.c.bf16 %v5218_v5, %v5218_v5  ;;  %v5567_v5 = vld [vmem:[#allocation3 + $0xa88] sm:$0xff] }
 0xe6f   :  { %v10680_v20 = vcombine.high %v5694_v15, %v5702_v16  ;;  %v5422_v21 = vld [vmem:[#allocation3 + $0x600] sm:$0xff]  ;;  %8406 = vmatprep.subr.bf16.mxu1 %v10424_v19  ;;  %v10679_v30 = vcombine.low %v5694_v15, %v5702_v16  ;;  %v10586_v15 = vcombine.high %v5599_v7, %v5607_v10  ;;  %v5327_v16 = vld [vmem:[#allocation3 + $0x308] sm:$0xff] }
 0xe70   :  { %v5430_v22 = vld [vmem:[#allocation3 + $0x640] sm:$0xff]  ;;  %8407 = vmatpush2.bf16.msra.mxu1 %v10423_v29  ;;  %v5583_v19 = vld [vmem:[#allocation3 + $0xb08] sm:$0xff]  ;;  %v10313_v39 = vcombine.low %v5327_v16, %v5335_v17 }
 0xe71   :  { %v5678_v26 = vld [vmem:[#allocation3 + $0xe00] sm:$0xff]  ;;  %v10408_v31 = vcombine.high %v5422_v21, %v5430_v22  ;;  %8447 = vmatprep.subr.bf16.mxu0 %v10680_v20  ;;  %v10407_v38 = vcombine.low %v5422_v21, %v5430_v22  ;;  %v5591_v20 = vld [vmem:[#allocation3 + $0xb48] sm:$0xff]  ;;  %v12764_v21 = vpack.c.bf16 %v5220_v44, %v5220_v44  ;;  %v10329_v22 = vcombine.low %v5343_v24, %v5351_v2 }
 0xe72   :  { %v5686_v28 = vld [vmem:[#allocation3 + $0xe40] sm:$0xff]  ;;  %8448 = vmatpush2.bf16.msra.mxu0 %v10679_v30  ;;  %v10570_v29 = vcombine.high %v5583_v19, %v5591_v20  ;;  %v5311_v30 = vld [vmem:[#allocation3 + $0x288] sm:$0xff]  ;;  %v10569_v44 = vcombine.low %v5583_v19, %v5591_v20 }
 0xe73   :  { %v10664_v32 = vcombine.high %v5678_v26, %v5686_v28  ;;  %v5406_v33 = vld [vmem:[#allocation3 + $0x580] sm:$0xff]  ;;  %8408 = vmatprep.subr.bf16.mxu1 %v10408_v31  ;;  %v10663_v40 = vcombine.low %v5678_v26, %v5686_v28  ;;  %v10585_v26 = vcombine.low %v5599_v7, %v5607_v10  ;;  %v10314_v28 = vcombine.high %v5327_v16, %v5335_v17  ;;  %v5575_v31 = vld [vmem:[#allocation3 + $0xac8] sm:$0xff] }
 0xe74   :  { %v5414_v34 = vld [vmem:[#allocation3 + $0x5c0] sm:$0xff]  ;;  %8409 = vmatpush2.bf16.msra.mxu1 %v10407_v38  ;;  %v5559_v38 = vld [vmem:[#allocation3 + $0xa48] sm:$0xff] }
 0xe75   :  { %v5662_v35 = vld [vmem:[#allocation3 + $0xd80] sm:$0xff]  ;;  %v10392_v41 = vcombine.high %v5406_v33, %v5414_v34  ;;  %8449 = vmatprep.subr.bf16.mxu0 %v10664_v32  ;;  %v10391_v51 = vcombine.low %v5406_v33, %v5414_v34  ;;  %v10298_v32 = vcombine.high %v5311_v30, %v5319_v1  ;;  %v10554_v33 = vcombine.high %v5567_v5, %v5575_v31  ;;  %v5295_v34 = vld [vmem:[#allocation3 + $0x208] sm:$0xff] }
 0xe76   :  { %v5670_v36 = vld [vmem:[#allocation3 + $0xdc0] sm:$0xff]  ;;  %8450 = vmatpush2.bf16.msra.mxu0 %v10663_v40  ;;  %v10297_v40 = vcombine.low %v5311_v30, %v5319_v1  ;;  %v5231_v2 = vld [vmem:[#allocation3 + $0x8] sm:$0xff] }
 0xe77   :  { %v10648_v43 = vcombine.high %v5662_v35, %v5670_v36  ;;  %v5390_v45 = vld [vmem:[#allocation3 + $0x500] sm:$0xff]  ;;  %8410 = vmatprep.subr.bf16.mxu1 %v10392_v41  ;;  %v10647_v52 = vcombine.low %v5662_v35, %v5670_v36  ;;  %v5303_v35 = vld [vmem:[#allocation3 + $0x248] sm:$0xff]  ;;  %v10553_v41 = vcombine.low %v5567_v5, %v5575_v31 }
 0xe78   :  { %v5398_v46 = vld [vmem:[#allocation3 + $0x540] sm:$0xff]  ;;  %8411 = vmatpush2.bf16.msra.mxu1 %v10391_v51  ;;  %v5551_v36 = vld [vmem:[#allocation3 + $0xa08] sm:$0xff] }
 0xe79   :  { %v5646_v47 = vld [vmem:[#allocation3 + $0xd00] sm:$0xff]  ;;  %v10376_v42 = vcombine.high %v5390_v45, %v5398_v46  ;;  %8451 = vmatprep.subr.bf16.mxu0 %v10648_v43  ;;  %v10375_v4 = vcombine.low %v5390_v45, %v5398_v46  ;;  %v10282_v43 = vcombine.high %v5295_v34, %v5303_v35  ;;  %v10538_v45 = vcombine.high %v5551_v36, %v5559_v38  ;;  %v5279_v46 = vld [vmem:[#allocation3 + $0x188] sm:$0xff] }
 0xe7a   :  { %v5654_v49 = vld [vmem:[#allocation3 + $0xd40] sm:$0xff]  ;;  %8452 = vmatpush2.bf16.msra.mxu0 %v10647_v52  ;;  %v5543_v51 = vld [vmem:[#allocation3 + $0x9c8] sm:$0xff]  ;;  %v10281_v52 = vcombine.low %v5295_v34, %v5303_v35 }
 0xe7b   :  { %v10632_v53 = vcombine.high %v5646_v47, %v5654_v49  ;;  %v5374_v54 = vld [vmem:[#allocation3 + $0x480] sm:$0xff]  ;;  %8412 = vmatprep.subr.bf16.mxu1 %v10376_v42  ;;  %v10631_v55 = vcombine.low %v5646_v47, %v5654_v49  ;;  %v5287_v47 = vld [vmem:[#allocation3 + $0x1c8] sm:$0xff]  ;;  %v10537_v42 = vcombine.low %v5551_v36, %v5559_v38 }
 0xe7c   :  { %v5382_v3 = vld [vmem:[#allocation3 + $0x4c0] sm:$0xff]  ;;  %8413 = vmatpush2.bf16.msra.mxu1 %v10375_v4  ;;  %v5535_v49 = vld [vmem:[#allocation3 + $0x988] sm:$0xff] }
 0xe7d   :  { %v5630_v27 = vld [vmem:[#allocation3 + $0xc80] sm:$0xff]  ;;  %v10360_v56 = vcombine.high %v5374_v54, %v5382_v3  ;;  %8453 = vmatprep.subr.bf16.mxu0 %v10632_v53  ;;  %v10359_v59 = vcombine.low %v5374_v54, %v5382_v3  ;;  %v10266_v53 = vcombine.high %v5279_v46, %v5287_v47  ;;  %v10522_v54 = vcombine.high %v5535_v49, %v5543_v51  ;;  %v5263_v3 = vld [vmem:[#allocation3 + $0x108] sm:$0xff] }
 0xe7e   :  { %v5638_v62 = vld [vmem:[#allocation3 + $0xcc0] sm:$0xff]  ;;  %8454 = vmatpush2.bf16.msra.mxu0 %v10631_v55  ;;  %v5527_v4 = vld [vmem:[#allocation3 + $0x948] sm:$0xff]  ;;  %v10265_v55 = vcombine.low %v5279_v46, %v5287_v47 }
 0xe7f   :  { %v10616_v57 = vcombine.high %v5630_v27, %v5638_v62  ;;  %v5358_v48 = vld [vmem:[#allocation3 + $0x400] sm:$0xff]  ;;  %8414 = vmatprep.subr.bf16.mxu1 %v10360_v56  ;;  %v10615_v60 = vcombine.low %v5630_v27, %v5638_v62  ;;  %v5271_v27 = vld [vmem:[#allocation3 + $0x148] sm:$0xff]  ;;  %v10521_v56 = vcombine.low %v5535_v49, %v5543_v51 }
 0xe80   :  { %v5366_v6 = vld [vmem:[#allocation3 + $0x440] sm:$0xff]  ;;  %8415 = vmatpush2.bf16.msra.mxu1 %v10359_v59  ;;  %v5519_v62 = vld [vmem:[#allocation3 + $0x908] sm:$0xff] }
 0xe81   :  { %v5614_v8 = vld [vmem:[#allocation3 + $0xc00] sm:$0xff]  ;;  %v10344_v61 = vcombine.high %v5358_v48, %v5366_v6  ;;  %8455 = vmatprep.subr.bf16.mxu0 %v10616_v57  ;;  %v10343_v12 = vcombine.low %v5358_v48, %v5366_v6  ;;  %v10250_v57 = vcombine.high %v5263_v3, %v5271_v27  ;;  %v10506_v48 = vcombine.high %v5519_v62, %v5527_v4  ;;  %v5247_v6 = vld [vmem:[#allocation3 + $0x88] sm:$0xff] }
 0xe82   :  { %v5622_v58 = vld [vmem:[#allocation3 + $0xc40] sm:$0xff]  ;;  %8456 = vmatpush2.bf16.msra.mxu0 %v10615_v60  ;;  %v5511_v59 = vld [vmem:[#allocation3 + $0x8c8] sm:$0xff]  ;;  %v10249_v60 = vcombine.low %v5263_v3, %v5271_v27 }
 0xe83   :  { %v10600_v63 = vcombine.high %v5614_v8, %v5622_v58  ;;  %8416 = vmatprep.subr.bf16.mxu1 %v10344_v61  ;;  %v10599_v13 = vcombine.low %v5614_v8, %v5622_v58  ;;  %v5255_v8 = vld [vmem:[#allocation3 + $0xc8] sm:$0xff]  ;;  %v10505_v61 = vcombine.low %v5519_v62, %v5527_v4 }
 0xe84   :  { %8417 = vmatpush2.bf16.msra.mxu1 %v10343_v12  ;;  %v5503_v58 = vld [vmem:[#allocation3 + $0x888] sm:$0xff] }
 0xe85   :  { %8457 = vmatprep.subr.bf16.mxu0 %v10600_v63  ;;  %8468 = vmatprep.subr.bf16.mxu1 %v10330_v0  ;;  %v10234_v63 = vcombine.high %v5247_v6, %v5255_v8  ;;  %v10490_v24 = vcombine.high %v5503_v58, %v5511_v59  ;;  %v5239_v7 = vld [vmem:[#allocation3 + $0x48] sm:$0xff]  ;;  %v10489_v0 = vcombine.low %v5503_v58, %v5511_v59 }
 0xe86   :  { %8458 = vmatpush2.bf16.msra.mxu0 %v10599_v13  ;;  %v5487_v10 = vld [vmem:[#allocation3 + $0x808] sm:$0xff]  ;;  %v10233_v13 = vcombine.low %v5247_v6, %v5255_v8 }
 0xe87   :  { %8509 = vmatprep.subr.bf16.mxu0 %v10586_v15  ;;  %8419 = vmatmul.mubr.bf16.vlgmr.msra.gmra.mxu1 %v12759_v18  ;;  %v5495_v12 = vld [vmem:[#allocation3 + $0x848] sm:$0xff]  ;;  %v10218_v15 = vcombine.high %v5231_v2, %v5239_v7 }
 0xe88   :  { %8469 = vmatpush1.bf16.msra.mxu1 %v10329_v22  ;;  %8500 = vmatprep.mubr.bf16.mxu1 %v12750_v50  ;;  %v10474_v16 = vcombine.high %v5487_v10, %v5495_v12  ;;  %v5471_v17 = vld [vmem:[#allocation3 + $0x788] sm:$0xff] }
 0xe89   :  { %8460 = vmatmul.mubr.bf16.vlgmr.msra.gmra.mxu0 %v12764_v21  ;;  %8470 = vmatprep.subr.bf16.mxu1 %v10314_v28  ;;  %v5479_v19 = vld [vmem:[#allocation3 + $0x7c8] sm:$0xff]  ;;  %v10473_v28 = vcombine.low %v5487_v10, %v5495_v12 }
 0xe8a   :  { %8510 = vmatpush1.bf16.msra.mxu0 %v10585_v26  ;;  %8541 = vmatprep.mubr.bf16.mxu0 %v12752_v37  ;;  %v5727_v20 = vld [vmem:[#allocation3 + $0xf88] sm:$0xff]  ;;  %v10217_v26 = vcombine.low %v5231_v2, %v5239_v7 }
 0xe8b   :  { %8511 = vmatprep.subr.bf16.mxu0 %v10570_v29  ;;  %v5735_v22 = vld [vmem:[#allocation3 + $0xfc8] sm:$0xff]  ;;  %v10458_v29 = vcombine.high %v5471_v17, %v5479_v19 }
 0xe8c   :  { %8471 = vmatpush1.bf16.msra.mxu1 %v10313_v39  ;;  %v10714_v30 = vcombine.high %v5727_v20, %v5735_v22  ;;  %v5455_v1 = vld [vmem:[#allocation3 + $0x708] sm:$0xff] }
 0xe8d   :  { %8472 = vmatprep.subr.bf16.mxu1 %v10298_v32  ;;  %v5463_v5 = vld [vmem:[#allocation3 + $0x748] sm:$0xff]  ;;  %v10713_v32 = vcombine.low %v5727_v20, %v5735_v22 }
 0xe8e   :  { %8512 = vmatpush1.bf16.msra.mxu0 %v10569_v44  ;;  %v5711_v31 = vld [vmem:[#allocation3 + $0xf08] sm:$0xff]  ;;  %v10457_v44 = vcombine.low %v5471_v17, %v5479_v19 }
 0xe8f   :  { %8513 = vmatprep.subr.bf16.mxu0 %v10554_v33  ;;  %v5719_v39 = vld [vmem:[#allocation3 + $0xf48] sm:$0xff]  ;;  %v10442_v33 = vcombine.high %v5455_v1, %v5463_v5 }
 0xe90   :  { %8473 = vmatpush1.bf16.msra.mxu1 %v10297_v40  ;;  %v10698_v34 = vcombine.high %v5711_v31, %v5719_v39  ;;  %v5439_v35 = vld [vmem:[#allocation3 + $0x688] sm:$0xff] }
 0xe91   :  { %8474 = vmatprep.subr.bf16.mxu1 %v10282_v43  ;;  %v5447_v36 = vld [vmem:[#allocation3 + $0x6c8] sm:$0xff]  ;;  %v10697_v43 = vcombine.low %v5711_v31, %v5719_v39  ;;  %v5352_v31 = vld [vmem:[#allocation3 + $0x3d0] sm:$0xff] }
 0xe92   :  { %8514 = vmatpush1.bf16.msra.mxu0 %v10553_v41  ;;  %v5695_v38 = vld [vmem:[#allocation3 + $0xe88] sm:$0xff]  ;;  %v10441_v41 = vcombine.low %v5455_v1, %v5463_v5  ;;  %v5344_v5 = vld [vmem:[#allocation3 + $0x390] sm:$0xff] }
 0xe93   :  { %8515 = vmatprep.subr.bf16.mxu0 %v10538_v45  ;;  %v5703_v40 = vld [vmem:[#allocation3 + $0xec8] sm:$0xff]  ;;  %v10426_v45 = vcombine.high %v5439_v35, %v5447_v36  ;;  %v5600_v39 = vld [vmem:[#allocation3 + $0xb90] sm:$0xff] }
 0xe94   :  { %8475 = vmatpush1.bf16.msra.mxu1 %v10281_v52  ;;  %v10682_v46 = vcombine.high %v5695_v38, %v5703_v40  ;;  %v5423_v47 = vld [vmem:[#allocation3 + $0x608] sm:$0xff] }
 0xe95   :  { %8476 = vmatprep.subr.bf16.mxu1 %v10266_v53  ;;  %v5431_v49 = vld [vmem:[#allocation3 + $0x648] sm:$0xff]  ;;  %v10681_v53 = vcombine.low %v5695_v38, %v5703_v40  ;;  %v5336_v38 = vld [vmem:[#allocation3 + $0x350] sm:$0xff] }
 0xe96   :  { %8516 = vmatpush1.bf16.msra.mxu0 %v10537_v42  ;;  %v5679_v51 = vld [vmem:[#allocation3 + $0xe08] sm:$0xff]  ;;  %v10425_v42 = vcombine.low %v5439_v35, %v5447_v36  ;;  %v5328_v36 = vld [vmem:[#allocation3 + $0x310] sm:$0xff] }
 0xe97   :  { %8517 = vmatprep.subr.bf16.mxu0 %v10522_v54  ;;  %v5687_v52 = vld [vmem:[#allocation3 + $0xe48] sm:$0xff]  ;;  %v10410_v54 = vcombine.high %v5423_v47, %v5431_v49  ;;  %v5584_v40 = vld [vmem:[#allocation3 + $0xb10] sm:$0xff] }
 0xe98   :  { %8477 = vmatpush1.bf16.msra.mxu1 %v10265_v55  ;;  %v10666_v3 = vcombine.high %v5679_v51, %v5687_v52  ;;  %v5407_v27 = vld [vmem:[#allocation3 + $0x588] sm:$0xff] }
 0xe99   :  { %8478 = vmatprep.subr.bf16.mxu1 %v10250_v57  ;;  %v5415_v62 = vld [vmem:[#allocation3 + $0x5c8] sm:$0xff]  ;;  %v10665_v57 = vcombine.low %v5679_v51, %v5687_v52  ;;  %v5320_v51 = vld [vmem:[#allocation3 + $0x2d0] sm:$0xff] }
 0xe9a   :  { %8518 = vmatpush1.bf16.msra.mxu0 %v10521_v56  ;;  %v5663_v4 = vld [vmem:[#allocation3 + $0xd88] sm:$0xff]  ;;  %v10409_v56 = vcombine.low %v5423_v47, %v5431_v49  ;;  %v5312_v49 = vld [vmem:[#allocation3 + $0x290] sm:$0xff] }
 0xe9b   :  { %8519 = vmatprep.subr.bf16.mxu0 %v10506_v48  ;;  %v5671_v55 = vld [vmem:[#allocation3 + $0xdc8] sm:$0xff]  ;;  %v10394_v48 = vcombine.high %v5407_v27, %v5415_v62  ;;  %v5568_v52 = vld [vmem:[#allocation3 + $0xa90] sm:$0xff] }
 0xe9c   :  { %8479 = vmatpush1.bf16.msra.mxu1 %v10249_v60  ;;  %v10650_v6 = vcombine.high %v5663_v4, %v5671_v55  ;;  %v5391_v8 = vld [vmem:[#allocation3 + $0x508] sm:$0xff] }
 0xe9d   :  { %8480 = vmatprep.subr.bf16.mxu1 %v10234_v63  ;;  %v5399_v58 = vld [vmem:[#allocation3 + $0x548] sm:$0xff]  ;;  %v10649_v63 = vcombine.low %v5663_v4, %v5671_v55  ;;  %v5304_v4 = vld [vmem:[#allocation3 + $0x250] sm:$0xff] }
 0xe9e   :  { %8520 = vmatpush1.bf16.msra.mxu0 %v10505_v61  ;;  %v5647_v59 = vld [vmem:[#allocation3 + $0xd08] sm:$0xff]  ;;  %v10393_v61 = vcombine.low %v5407_v27, %v5415_v62  ;;  %v5296_v62 = vld [vmem:[#allocation3 + $0x210] sm:$0xff] }
 0xe9f   :  { %8521 = vmatprep.subr.bf16.mxu0 %v10490_v24  ;;  %v5655_v60 = vld [vmem:[#allocation3 + $0xd48] sm:$0xff]  ;;  %v10378_v24 = vcombine.high %v5391_v8, %v5399_v58  ;;  %v5552_v55 = vld [vmem:[#allocation3 + $0xa10] sm:$0xff] }
 0xea0   :  { %8481 = vmatpush1.bf16.msra.mxu1 %v10233_v13  ;;  %v10634_v2 = vcombine.high %v5647_v59, %v5655_v60  ;;  %v5375_v7 = vld [vmem:[#allocation3 + $0x488] sm:$0xff] }
 0xea1   :  { %8482 = vmatprep.subr.bf16.mxu1 %v10218_v15  ;;  %v5383_v10 = vld [vmem:[#allocation3 + $0x4c8] sm:$0xff]  ;;  %v10633_v15 = vcombine.low %v5647_v59, %v5655_v60  ;;  %v5288_v59 = vld [vmem:[#allocation3 + $0x1d0] sm:$0xff] }
 0xea2   :  { %8522 = vmatpush1.bf16.msra.mxu0 %v10489_v0  ;;  %v5631_v12 = vld [vmem:[#allocation3 + $0xc88] sm:$0xff]  ;;  %v10377_v0 = vcombine.low %v5391_v8, %v5399_v58  ;;  %v5280_v58 = vld [vmem:[#allocation3 + $0x190] sm:$0xff] }
 0xea3   :  { %8523 = vmatprep.subr.bf16.mxu0 %v10474_v16  ;;  %v5639_v13 = vld [vmem:[#allocation3 + $0xcc8] sm:$0xff]  ;;  %v10362_v16 = vcombine.high %v5375_v7, %v5383_v10  ;;  %v5536_v60 = vld [vmem:[#allocation3 + $0x990] sm:$0xff] }
 0xea4   :  { %8483 = vmatpush1.bf16.msra.mxu1 %v10217_v26  ;;  %v10618_v17 = vcombine.high %v5631_v12, %v5639_v13  ;;  %v5359_v19 = vld [vmem:[#allocation3 + $0x408] sm:$0xff] }
 0xea5   :  { %8484 = vmatprep.subr.bf16.mxu1 %v10458_v29  ;;  %v5367_v20 = vld [vmem:[#allocation3 + $0x448] sm:$0xff]  ;;  %v10617_v29 = vcombine.low %v5631_v12, %v5639_v13  ;;  %v5272_v12 = vld [vmem:[#allocation3 + $0x150] sm:$0xff] }
 0xea6   :  { %8524 = vmatpush1.bf16.msra.mxu0 %v10473_v28  ;;  %v5615_v22 = vld [vmem:[#allocation3 + $0xc08] sm:$0xff]  ;;  %v10361_v28 = vcombine.low %v5375_v7, %v5383_v10  ;;  %v5264_v10 = vld [vmem:[#allocation3 + $0x110] sm:$0xff] }
 0xea7   :  { %8525 = vmatprep.subr.bf16.mxu0 %v10714_v30  ;;  %v5623_v26 = vld [vmem:[#allocation3 + $0xc48] sm:$0xff]  ;;  %v10346_v30 = vcombine.high %v5359_v19, %v5367_v20  ;;  %v5520_v13 = vld [vmem:[#allocation3 + $0x910] sm:$0xff] }
 0xea8   :  { %8485 = vmatpush2.bf16.msra.mxu1 %v10457_v44  ;;  %v10602_v1 = vcombine.high %v5615_v22, %v5623_v26  ;;  %v5608_v44 = vld [vmem:[#allocation3 + $0xbd0] sm:$0xff] }
 0xea9   :  { %8486 = vmatprep.subr.bf16.mxu1 %v10442_v33  ;;  %v10601_v33 = vcombine.low %v5615_v22, %v5623_v26  ;;  %v10588_v35 = vcombine.high %v5600_v39, %v5608_v44  ;;  %v5256_v22 = vld [vmem:[#allocation3 + $0xd0] sm:$0xff] }
 0xeaa   :  { %8526 = vmatpush2.bf16.msra.mxu0 %v10713_v32  ;;  %v10345_v32 = vcombine.low %v5359_v19, %v5367_v20  ;;  %v5248_v20 = vld [vmem:[#allocation3 + $0x90] sm:$0xff] }
 0xeab   :  { %8527 = vmatprep.subr.bf16.mxu0 %v10698_v34  ;;  %v10332_v34 = vcombine.high %v5344_v5, %v5352_v31  ;;  %v5504_v26 = vld [vmem:[#allocation3 + $0x890] sm:$0xff] }
 0xeac   :  { %8487 = vmatpush2.bf16.msra.mxu1 %v10441_v41  ;;  %v5592_v41 = vld [vmem:[#allocation3 + $0xb50] sm:$0xff] }
 0xead   :  { %8488 = vmatprep.subr.bf16.mxu1 %v10426_v45  ;;  %v10587_v45 = vcombine.low %v5600_v39, %v5608_v44  ;;  %v10572_v47 = vcombine.high %v5584_v40, %v5592_v41  ;;  %v5240_v39 = vld [vmem:[#allocation3 + $0x50] sm:$0xff] }
 0xeae   :  { %8528 = vmatpush2.bf16.msra.mxu0 %v10697_v43  ;;  %v10331_v43 = vcombine.low %v5344_v5, %v5352_v31  ;;  %v5232_v31 = vld [vmem:[#allocation3 + $0x10] sm:$0xff] }
 0xeaf   :  { %8529 = vmatprep.subr.bf16.mxu0 %v10682_v46  ;;  %v10316_v46 = vcombine.high %v5328_v36, %v5336_v38  ;;  %v5488_v44 = vld [vmem:[#allocation3 + $0x810] sm:$0xff] }
 0xeb0   :  { %8489 = vmatpush2.bf16.msra.mxu1 %v10425_v42  ;;  %v5576_v42 = vld [vmem:[#allocation3 + $0xad0] sm:$0xff] }
 0xeb1   :  { %8490 = vmatprep.subr.bf16.mxu1 %v10410_v54  ;;  %v10571_v54 = vcombine.low %v5584_v40, %v5592_v41  ;;  %v10556_v27 = vcombine.high %v5568_v52, %v5576_v42  ;;  %v5480_v40 = vld [vmem:[#allocation3 + $0x7d0] sm:$0xff] }
 0xeb2   :  { %8530 = vmatpush2.bf16.msra.mxu0 %v10681_v53  ;;  %v10315_v53 = vcombine.low %v5328_v36, %v5336_v38  ;;  %v5472_v38 = vld [vmem:[#allocation3 + $0x790] sm:$0xff] }
 0xeb3   :  { %8531 = vmatprep.subr.bf16.mxu0 %v10666_v3  ;;  %v10300_v3 = vcombine.high %v5312_v49, %v5320_v51  ;;  %v5728_v41 = vld [vmem:[#allocation3 + $0xf90] sm:$0xff] }
 0xeb4   :  { %8491 = vmatpush2.bf16.msra.mxu1 %v10409_v56  ;;  %v5560_v56 = vld [vmem:[#allocation3 + $0xa50] sm:$0xff] }
 0xeb5   :  { %8492 = vmatprep.subr.bf16.mxu1 %v10394_v48  ;;  %v10555_v48 = vcombine.low %v5568_v52, %v5576_v42  ;;  %v10540_v8 = vcombine.high %v5552_v55, %v5560_v56  ;;  %v5464_v52 = vld [vmem:[#allocation3 + $0x750] sm:$0xff] }
 0xeb6   :  { %8532 = vmatpush2.bf16.msra.mxu0 %v10665_v57  ;;  %v10299_v57 = vcombine.low %v5312_v49, %v5320_v51  ;;  %v5456_v51 = vld [vmem:[#allocation3 + $0x710] sm:$0xff] }
 0xeb7   :  { %8533 = vmatprep.subr.bf16.mxu0 %v10650_v6  ;;  %v10284_v6 = vcombine.high %v5296_v62, %v5304_v4  ;;  %v5712_v42 = vld [vmem:[#allocation3 + $0xf10] sm:$0xff] }
 0xeb8   :  { %8493 = vmatpush2.bf16.msra.mxu1 %v10393_v61  ;;  %v5544_v61 = vld [vmem:[#allocation3 + $0x9d0] sm:$0xff] }
 0xeb9   :  { %8494 = vmatprep.subr.bf16.mxu1 %v10378_v24  ;;  %v10539_v24 = vcombine.low %v5552_v55, %v5560_v56  ;;  %v10524_v7 = vcombine.high %v5536_v60, %v5544_v61  ;;  %v5448_v55 = vld [vmem:[#allocation3 + $0x6d0] sm:$0xff] }
 0xeba   :  { %8534 = vmatpush2.bf16.msra.mxu0 %v10649_v63  ;;  %v10283_v63 = vcombine.low %v5296_v62, %v5304_v4  ;;  %v5440_v4 = vld [vmem:[#allocation3 + $0x690] sm:$0xff] }
 0xebb   :  { %8535 = vmatprep.subr.bf16.mxu0 %v10634_v2  ;;  %v10268_v2 = vcombine.high %v5280_v58, %v5288_v59  ;;  %v5696_v56 = vld [vmem:[#allocation3 + $0xe90] sm:$0xff] }
 0xebc   :  { %8495 = vmatpush2.bf16.msra.mxu1 %v10377_v0  ;;  %v5528_v0 = vld [vmem:[#allocation3 + $0x950] sm:$0xff] }
 0xebd   :  { %8496 = vmatprep.subr.bf16.mxu1 %v10362_v16  ;;  %v10523_v16 = vcombine.low %v5536_v60, %v5544_v61  ;;  %v10508_v19 = vcombine.high %v5520_v13, %v5528_v0  ;;  %v5432_v60 = vld [vmem:[#allocation3 + $0x650] sm:$0xff] }
 0xebe   :  { %8536 = vmatpush2.bf16.msra.mxu0 %v10633_v15  ;;  %v10267_v15 = vcombine.low %v5280_v58, %v5288_v59  ;;  %v5424_v59 = vld [vmem:[#allocation3 + $0x610] sm:$0xff] }
 0xebf   :  { %8537 = vmatprep.subr.bf16.mxu0 %v10618_v17  ;;  %v10252_v17 = vcombine.high %v5264_v10, %v5272_v12  ;;  %v5680_v61 = vld [vmem:[#allocation3 + $0xe10] sm:$0xff] }
 0xec0   :  { %8497 = vmatpush2.bf16.msra.mxu1 %v10361_v28  ;;  %v5512_v28 = vld [vmem:[#allocation3 + $0x8d0] sm:$0xff] }
 0xec1   :  { %8498 = vmatprep.subr.bf16.mxu1 %v10346_v30  ;;  %v10507_v30 = vcombine.low %v5520_v13, %v5528_v0  ;;  %v10492_v5 = vcombine.high %v5504_v26, %v5512_v28  ;;  %v5416_v13 = vld [vmem:[#allocation3 + $0x5d0] sm:$0xff] }
 0xec2   :  { %8538 = vmatpush2.bf16.msra.mxu0 %v10617_v29  ;;  %v10251_v29 = vcombine.low %v5264_v10, %v5272_v12  ;;  %v5408_v12 = vld [vmem:[#allocation3 + $0x590] sm:$0xff] }
 0xec3   :  { %8539 = vmatprep.subr.bf16.mxu0 %v10602_v1  ;;  %v10236_v1 = vcombine.high %v5248_v20, %v5256_v22  ;;  %v5664_v0 = vld [vmem:[#allocation3 + $0xd90] sm:$0xff] }
 0xec4   :  { %8499 = vmatpush2.bf16.msra.mxu1 %v10345_v32  ;;  %v5496_v32 = vld [vmem:[#allocation3 + $0x850] sm:$0xff] }
 0xec5   :  { %8550 = vmatprep.subr.bf16.mxu1 %v10332_v34  ;;  %v10491_v34 = vcombine.low %v5504_v26, %v5512_v28  ;;  %v10476_v36 = vcombine.high %v5488_v44, %v5496_v32  ;;  %v5400_v26 = vld [vmem:[#allocation3 + $0x550] sm:$0xff] }
 0xec6   :  { %8540 = vmatpush2.bf16.msra.mxu0 %v10601_v33  ;;  %v10235_v33 = vcombine.low %v5248_v20, %v5256_v22  ;;  %v5392_v22 = vld [vmem:[#allocation3 + $0x510] sm:$0xff] }
 0xec7   :  { %8591 = vmatprep.subr.bf16.mxu0 %v10588_v35  ;;  %8501 = vmatmul.mubr.bf16.vlgmr.msra.gmra.mxu1 %v12759_v18  ;;  %v10220_v35 = vcombine.high %v5232_v31, %v5240_v39  ;;  %v5648_v28 = vld [vmem:[#allocation3 + $0xd10] sm:$0xff] }
 0xec8   :  { %8551 = vmatpush1.bf16.msra.mxu1 %v10331_v43  ;;  %8582 = vmatprep.mubr.bf16.mxu1 %v12750_v50  ;;  %v5736_v43 = vld [vmem:[#allocation3 + $0xfd0] sm:$0xff] }
 0xec9   :  { %8542 = vmatmul.mubr.bf16.vlgmr.msra.gmra.mxu0 %v12764_v21  ;;  %8552 = vmatprep.subr.bf16.mxu1 %v10316_v46  ;;  %v10475_v46 = vcombine.low %v5488_v44, %v5496_v32  ;;  %v10716_v49 = vcombine.high %v5728_v41, %v5736_v43  ;;  %v5384_v44 = vld [vmem:[#allocation3 + $0x4d0] sm:$0xff] }
 0xeca   :  { %8592 = vmatpush1.bf16.msra.mxu0 %v10587_v45  ;;  %8623 = vmatprep.mubr.bf16.mxu0 %v12752_v37  ;;  %v10219_v45 = vcombine.low %v5232_v31, %v5240_v39  ;;  %v5376_v39 = vld [vmem:[#allocation3 + $0x490] sm:$0xff] }
 0xecb   :  { %8593 = vmatprep.subr.bf16.mxu0 %v10572_v47  ;;  %v10460_v47 = vcombine.high %v5472_v38, %v5480_v40  ;;  %v5632_v32 = vld [vmem:[#allocation3 + $0xc90] sm:$0xff] }
 0xecc   :  { %8553 = vmatpush1.bf16.msra.mxu1 %v10315_v53  ;;  %v5720_v53 = vld [vmem:[#allocation3 + $0xf50] sm:$0xff] }
 0xecd   :  { %8554 = vmatprep.subr.bf16.mxu1 %v10300_v3  ;;  %v10715_v3 = vcombine.low %v5728_v41, %v5736_v43  ;;  %v10700_v62 = vcombine.high %v5712_v42, %v5720_v53  ;;  %v5368_v41 = vld [vmem:[#allocation3 + $0x450] sm:$0xff] }
 0xece   :  { %8594 = vmatpush1.bf16.msra.mxu0 %v10571_v54  ;;  %v10459_v54 = vcombine.low %v5472_v38, %v5480_v40  ;;  %v5360_v40 = vld [vmem:[#allocation3 + $0x410] sm:$0xff] }
 0xecf   :  { %8595 = vmatprep.subr.bf16.mxu0 %v10556_v27  ;;  %v10444_v27 = vcombine.high %v5456_v51, %v5464_v52  ;;  %v5616_v43 = vld [vmem:[#allocation3 + $0xc10] sm:$0xff] }
 0xed0   :  { %8555 = vmatpush1.bf16.msra.mxu1 %v10299_v57  ;;  %v5704_v57 = vld [vmem:[#allocation3 + $0xed0] sm:$0xff] }
 0xed1   :  { %8556 = vmatprep.subr.bf16.mxu1 %v10284_v6  ;;  %v10699_v6 = vcombine.low %v5712_v42, %v5720_v53  ;;  %v10684_v58 = vcombine.high %v5696_v56, %v5704_v57  ;;  %v5353_v42 = vld [vmem:[#allocation3 + $0x3d8] sm:$0xff] }
 0xed2   :  { %8596 = vmatpush1.bf16.msra.mxu0 %v10555_v48  ;;  %v10443_v48 = vcombine.low %v5456_v51, %v5464_v52  ;;  %v5345_v52 = vld [vmem:[#allocation3 + $0x398] sm:$0xff] }
 0xed3   :  { %8597 = vmatprep.subr.bf16.mxu0 %v10540_v8  ;;  %v10428_v8 = vcombine.high %v5440_v4, %v5448_v55  ;;  %v5601_v53 = vld [vmem:[#allocation3 + $0xb98] sm:$0xff] }
 0xed4   :  { %8557 = vmatpush1.bf16.msra.mxu1 %v10283_v63  ;;  %v5688_v63 = vld [vmem:[#allocation3 + $0xe50] sm:$0xff] }
 0xed5   :  { %8558 = vmatprep.subr.bf16.mxu1 %v10268_v2  ;;  %v10683_v2 = vcombine.low %v5696_v56, %v5704_v57  ;;  %v10668_v10 = vcombine.high %v5680_v61, %v5688_v63  ;;  %v5337_v56 = vld [vmem:[#allocation3 + $0x358] sm:$0xff] }
 0xed6   :  { %8598 = vmatpush1.bf16.msra.mxu0 %v10539_v24  ;;  %v10427_v24 = vcombine.low %v5440_v4, %v5448_v55  ;;  %v5329_v55 = vld [vmem:[#allocation3 + $0x318] sm:$0xff] }
 0xed7   :  { %8599 = vmatprep.subr.bf16.mxu0 %v10524_v7  ;;  %v10412_v7 = vcombine.high %v5424_v59, %v5432_v60  ;;  %v5585_v57 = vld [vmem:[#allocation3 + $0xb18] sm:$0xff] }
 0xed8   :  { %8559 = vmatpush1.bf16.msra.mxu1 %v10267_v15  ;;  %v5672_v15 = vld [vmem:[#allocation3 + $0xdd0] sm:$0xff] }
 0xed9   :  { %8560 = vmatprep.subr.bf16.mxu1 %v10252_v17  ;;  %v10667_v17 = vcombine.low %v5680_v61, %v5688_v63  ;;  %v10652_v20 = vcombine.high %v5664_v0, %v5672_v15  ;;  %v5321_v61 = vld [vmem:[#allocation3 + $0x2d8] sm:$0xff] }
 0xeda   :  { %8600 = vmatpush1.bf16.msra.mxu0 %v10523_v16  ;;  %v10411_v16 = vcombine.low %v5424_v59, %v5432_v60  ;;  %v5313_v60 = vld [vmem:[#allocation3 + $0x298] sm:$0xff] }
 0xedb   :  { %8601 = vmatprep.subr.bf16.mxu0 %v10508_v19  ;;  %v10396_v19 = vcombine.high %v5408_v12, %v5416_v13  ;;  %v5569_v63 = vld [vmem:[#allocation3 + $0xa98] sm:$0xff] }
 0xedc   :  { %8561 = vmatpush1.bf16.msra.mxu1 %v10251_v29  ;;  %v5656_v29 = vld [vmem:[#allocation3 + $0xd50] sm:$0xff] }
 0xedd   :  { %8562 = vmatprep.subr.bf16.mxu1 %v10236_v1  ;;  %v10651_v1 = vcombine.low %v5664_v0, %v5672_v15  ;;  %v10636_v31 = vcombine.high %v5648_v28, %v5656_v29  ;;  %v5305_v0 = vld [vmem:[#allocation3 + $0x258] sm:$0xff] }
 0xede   :  { %8602 = vmatpush1.bf16.msra.mxu0 %v10507_v30  ;;  %v10395_v30 = vcombine.low %v5408_v12, %v5416_v13  ;;  %v5297_v13 = vld [vmem:[#allocation3 + $0x218] sm:$0xff] }
 0xedf   :  { %8603 = vmatprep.subr.bf16.mxu0 %v10492_v5  ;;  %v10380_v5 = vcombine.high %v5392_v22, %v5400_v26  ;;  %v5553_v15 = vld [vmem:[#allocation3 + $0xa18] sm:$0xff] }
 0xee0   :  { %8563 = vmatpush1.bf16.msra.mxu1 %v10235_v33  ;;  %v5640_v33 = vld [vmem:[#allocation3 + $0xcd0] sm:$0xff] }
 0xee1   :  { %8564 = vmatprep.subr.bf16.mxu1 %v10220_v35  ;;  %v10635_v35 = vcombine.low %v5648_v28, %v5656_v29  ;;  %v10620_v38 = vcombine.high %v5632_v32, %v5640_v33  ;;  %v5289_v28 = vld [vmem:[#allocation3 + $0x1d8] sm:$0xff] }
 0xee2   :  { %8604 = vmatpush1.bf16.msra.mxu0 %v10491_v34  ;;  %v10379_v34 = vcombine.low %v5392_v22, %v5400_v26  ;;  %v5281_v26 = vld [vmem:[#allocation3 + $0x198] sm:$0xff] }
 0xee3   :  { %8605 = vmatprep.subr.bf16.mxu0 %v10476_v36  ;;  %v10364_v36 = vcombine.high %v5376_v39, %v5384_v44  ;;  %v5537_v29 = vld [vmem:[#allocation3 + $0x998] sm:$0xff] }
 0xee4   :  { %8565 = vmatpush1.bf16.msra.mxu1 %v10219_v45  ;;  %v5624_v45 = vld [vmem:[#allocation3 + $0xc50] sm:$0xff] }
 0xee5   :  { %8566 = vmatprep.subr.bf16.mxu1 %v10460_v47  ;;  %v10619_v47 = vcombine.low %v5632_v32, %v5640_v33  ;;  %v10604_v51 = vcombine.high %v5616_v43, %v5624_v45  ;;  %v5273_v32 = vld [vmem:[#allocation3 + $0x158] sm:$0xff] }
 0xee6   :  { %8606 = vmatpush1.bf16.msra.mxu0 %v10475_v46  ;;  %v10363_v46 = vcombine.low %v5376_v39, %v5384_v44  ;;  %v5265_v44 = vld [vmem:[#allocation3 + $0x118] sm:$0xff] }
 0xee7   :  { %8607 = vmatprep.subr.bf16.mxu0 %v10716_v49  ;;  %v10348_v49 = vcombine.high %v5360_v40, %v5368_v41  ;;  %v5521_v33 = vld [vmem:[#allocation3 + $0x918] sm:$0xff] }
 0xee8   :  { %8567 = vmatpush2.bf16.msra.mxu1 %v10459_v54  ;;  %v5609_v54 = vld [vmem:[#allocation3 + $0xbd8] sm:$0xff] }
 0xee9   :  { %8568 = vmatprep.subr.bf16.mxu1 %v10444_v27  ;;  %v10603_v27 = vcombine.low %v5616_v43, %v5624_v45  ;;  %v10590_v4 = vcombine.high %v5601_v53, %v5609_v54  ;;  %v5257_v43 = vld [vmem:[#allocation3 + $0xd8] sm:$0xff] }
 0xeea   :  { %8608 = vmatpush2.bf16.msra.mxu0 %v10715_v3  ;;  %v10347_v3 = vcombine.low %v5360_v40, %v5368_v41  ;;  %v5249_v41 = vld [vmem:[#allocation3 + $0x98] sm:$0xff] }
 0xeeb   :  { %8609 = vmatprep.subr.bf16.mxu0 %v10700_v62  ;;  %v10334_v62 = vcombine.high %v5345_v52, %v5353_v42  ;;  %v5505_v45 = vld [vmem:[#allocation3 + $0x898] sm:$0xff] }
 0xeec   :  { %8569 = vmatpush2.bf16.msra.mxu1 %v10443_v48  ;;  %v5593_v48 = vld [vmem:[#allocation3 + $0xb58] sm:$0xff] }
 0xeed   :  { %8570 = vmatprep.subr.bf16.mxu1 %v10428_v8  ;;  %v10589_v8 = vcombine.low %v5601_v53, %v5609_v54  ;;  %v10574_v59 = vcombine.high %v5585_v57, %v5593_v48  ;;  %v5241_v53 = vld [vmem:[#allocation3 + $0x58] sm:$0xff] }
 0xeee   :  { %8610 = vmatpush2.bf16.msra.mxu0 %v10699_v6  ;;  %v10333_v6 = vcombine.low %v5345_v52, %v5353_v42  ;;  %v5233_v42 = vld [vmem:[#allocation3 + $0x18] sm:$0xff] }
 0xeef   :  { %8611 = vmatprep.subr.bf16.mxu0 %v10684_v58  ;;  %v10318_v58 = vcombine.high %v5329_v55, %v5337_v56  ;;  %v5489_v54 = vld [vmem:[#allocation3 + $0x818] sm:$0xff] }
 0xef0   :  { %8571 = vmatpush2.bf16.msra.mxu1 %v10427_v24  ;;  %v5577_v24 = vld [vmem:[#allocation3 + $0xad8] sm:$0xff] }
 0xef1   :  { %8572 = vmatprep.subr.bf16.mxu1 %v10412_v7  ;;  %v10573_v7 = vcombine.low %v5585_v57, %v5593_v48  ;;  %v10558_v12 = vcombine.high %v5569_v63, %v5577_v24  ;;  %v5481_v57 = vld [vmem:[#allocation3 + $0x7d8] sm:$0xff] }
 0xef2   :  { %8612 = vmatpush2.bf16.msra.mxu0 %v10683_v2  ;;  %v10317_v2 = vcombine.low %v5329_v55, %v5337_v56  ;;  %v5473_v56 = vld [vmem:[#allocation3 + $0x798] sm:$0xff] }
 0xef3   :  { %8613 = vmatprep.subr.bf16.mxu0 %v10668_v10  ;;  %v10302_v10 = vcombine.high %v5313_v60, %v5321_v61  ;;  %v5729_v48 = vld [vmem:[#allocation3 + $0xf98] sm:$0xff] }
 0xef4   :  { %8573 = vmatpush2.bf16.msra.mxu1 %v10411_v16  ;;  %v5561_v16 = vld [vmem:[#allocation3 + $0xa58] sm:$0xff] }
 0xef5   :  { %8574 = vmatprep.subr.bf16.mxu1 %v10396_v19  ;;  %v10557_v19 = vcombine.low %v5569_v63, %v5577_v24  ;;  %v10542_v22 = vcombine.high %v5553_v15, %v5561_v16  ;;  %v5465_v63 = vld [vmem:[#allocation3 + $0x758] sm:$0xff] }
 0xef6   :  { %8614 = vmatpush2.bf16.msra.mxu0 %v10667_v17  ;;  %v10301_v17 = vcombine.low %v5313_v60, %v5321_v61  ;;  %v5457_v61 = vld [vmem:[#allocation3 + $0x718] sm:$0xff] }
 0xef7   :  { %8615 = vmatprep.subr.bf16.mxu0 %v10652_v20  ;;  %v10286_v20 = vcombine.high %v5297_v13, %v5305_v0  ;;  %v5713_v24 = vld [vmem:[#allocation3 + $0xf18] sm:$0xff] }
 0xef8   :  { %8575 = vmatpush2.bf16.msra.mxu1 %v10395_v30  ;;  %v5545_v30 = vld [vmem:[#allocation3 + $0x9d8] sm:$0xff] }
 0xef9   :  { %8576 = vmatprep.subr.bf16.mxu1 %v10380_v5  ;;  %v10541_v5 = vcombine.low %v5553_v15, %v5561_v16  ;;  %v10526_v39 = vcombine.high %v5537_v29, %v5545_v30  ;;  %v5449_v15 = vld [vmem:[#allocation3 + $0x6d8] sm:$0xff] }
 0xefa   :  { %8616 = vmatpush2.bf16.msra.mxu0 %v10651_v1  ;;  %v10285_v1 = vcombine.low %v5297_v13, %v5305_v0  ;;  %v5441_v0 = vld [vmem:[#allocation3 + $0x698] sm:$0xff] }
 0xefb   :  { %8617 = vmatprep.subr.bf16.mxu0 %v10636_v31  ;;  %v10270_v31 = vcombine.high %v5281_v26, %v5289_v28  ;;  %v5697_v16 = vld [vmem:[#allocation3 + $0xe98] sm:$0xff] }
 0xefc   :  { %8577 = vmatpush2.bf16.msra.mxu1 %v10379_v34  ;;  %v5529_v34 = vld [vmem:[#allocation3 + $0x958] sm:$0xff] }
 0xefd   :  { %8578 = vmatprep.subr.bf16.mxu1 %v10364_v36  ;;  %v10525_v36 = vcombine.low %v5537_v29, %v5545_v30  ;;  %v10510_v40 = vcombine.high %v5521_v33, %v5529_v34  ;;  %v5433_v29 = vld [vmem:[#allocation3 + $0x658] sm:$0xff] }
 0xefe   :  { %8618 = vmatpush2.bf16.msra.mxu0 %v10635_v35  ;;  %v10269_v35 = vcombine.low %v5281_v26, %v5289_v28  ;;  %v5425_v28 = vld [vmem:[#allocation3 + $0x618] sm:$0xff] }
 0xeff   :  { %8619 = vmatprep.subr.bf16.mxu0 %v10620_v38  ;;  %v10254_v38 = vcombine.high %v5265_v44, %v5273_v32  ;;  %v5681_v30 = vld [vmem:[#allocation3 + $0xe18] sm:$0xff] }
 0xf00   :  { %8579 = vmatpush2.bf16.msra.mxu1 %v10363_v46  ;;  %v5513_v46 = vld [vmem:[#allocation3 + $0x8d8] sm:$0xff] }
 0xf01   :  { %8580 = vmatprep.subr.bf16.mxu1 %v10348_v49  ;;  %v10509_v49 = vcombine.low %v5521_v33, %v5529_v34  ;;  %v10494_v52 = vcombine.high %v5505_v45, %v5513_v46  ;;  %v5417_v33 = vld [vmem:[#allocation3 + $0x5d8] sm:$0xff] }
 0xf02   :  { %8620 = vmatpush2.bf16.msra.mxu0 %v10619_v47  ;;  %v10253_v47 = vcombine.low %v5265_v44, %v5273_v32  ;;  %v5409_v32 = vld [vmem:[#allocation3 + $0x598] sm:$0xff] }
 0xf03   :  { %8621 = vmatprep.subr.bf16.mxu0 %v10604_v51  ;;  %v10238_v51 = vcombine.high %v5249_v41, %v5257_v43  ;;  %v5665_v34 = vld [vmem:[#allocation3 + $0xd98] sm:$0xff] }
 0xf04   :  { %8581 = vmatpush2.bf16.msra.mxu1 %v10347_v3  ;;  %v5497_v3 = vld [vmem:[#allocation3 + $0x858] sm:$0xff] }
 0xf05   :  { %8632 = vmatprep.subr.bf16.mxu1 %v10334_v62  ;;  %v10493_v62 = vcombine.low %v5505_v45, %v5513_v46  ;;  %v10478_v55 = vcombine.high %v5489_v54, %v5497_v3  ;;  %v5401_v45 = vld [vmem:[#allocation3 + $0x558] sm:$0xff] }
 0xf06   :  { %8622 = vmatpush2.bf16.msra.mxu0 %v10603_v27  ;;  %v10237_v27 = vcombine.low %v5249_v41, %v5257_v43  ;;  %v5393_v43 = vld [vmem:[#allocation3 + $0x518] sm:$0xff] }
 0xf07   :  { %8673 = vmatprep.subr.bf16.mxu0 %v10590_v4  ;;  %8583 = vmatmul.mubr.bf16.vlgmr.msra.gmra.mxu1 %v12759_v18  ;;  %v10222_v4 = vcombine.high %v5233_v42, %v5241_v53  ;;  %v5649_v46 = vld [vmem:[#allocation3 + $0xd18] sm:$0xff] }
 0xf08   :  { %8633 = vmatpush1.bf16.msra.mxu1 %v10333_v6  ;;  %8664 = vmatprep.mubr.bf16.mxu1 %v12750_v50  ;;  %v5737_v6 = vld [vmem:[#allocation3 + $0xfd8] sm:$0xff] }
 0xf09   :  { %8624 = vmatmul.mubr.bf16.vlgmr.msra.gmra.mxu0 %v12764_v21  ;;  %8634 = vmatprep.subr.bf16.mxu1 %v10318_v58  ;;  %v10477_v58 = vcombine.low %v5489_v54, %v5497_v3  ;;  %v10718_v60 = vcombine.high %v5729_v48, %v5737_v6  ;;  %v5385_v54 = vld [vmem:[#allocation3 + $0x4d8] sm:$0xff] }
 0xf0a   :  { %8674 = vmatpush1.bf16.msra.mxu0 %v10589_v8  ;;  %8705 = vmatprep.mubr.bf16.mxu0 %v12752_v37  ;;  %v10221_v8 = vcombine.low %v5233_v42, %v5241_v53  ;;  %v5377_v53 = vld [vmem:[#allocation3 + $0x498] sm:$0xff] }
 0xf0b   :  { %8675 = vmatprep.subr.bf16.mxu0 %v10574_v59  ;;  %v10462_v59 = vcombine.high %v5473_v56, %v5481_v57  ;;  %v5633_v3 = vld [vmem:[#allocation3 + $0xc98] sm:$0xff] }
 0xf0c   :  { %8635 = vmatpush1.bf16.msra.mxu1 %v10317_v2  ;;  %v5721_v2 = vld [vmem:[#allocation3 + $0xf58] sm:$0xff] }
 0xf0d   :  { %8636 = vmatprep.subr.bf16.mxu1 %v10302_v10  ;;  %v10717_v10 = vcombine.low %v5729_v48, %v5737_v6  ;;  %v10702_v13 = vcombine.high %v5713_v24, %v5721_v2  ;;  %v5369_v48 = vld [vmem:[#allocation3 + $0x458] sm:$0xff] }
 0xf0e   :  { %8676 = vmatpush1.bf16.msra.mxu0 %v10573_v7  ;;  %v10461_v7 = vcombine.low %v5473_v56, %v5481_v57  ;;  %v5361_v57 = vld [vmem:[#allocation3 + $0x418] sm:$0xff] }
 0xf0f   :  { %8677 = vmatprep.subr.bf16.mxu0 %v10558_v12  ;;  %v10446_v12 = vcombine.high %v5457_v61, %v5465_v63  ;;  %v5617_v6 = vld [vmem:[#allocation3 + $0xc18] sm:$0xff] }
 0xf10   :  { %8637 = vmatpush1.bf16.msra.mxu1 %v10301_v17  ;;  %v5705_v17 = vld [vmem:[#allocation3 + $0xed8] sm:$0xff] }
 0xf11   :  { %8638 = vmatprep.subr.bf16.mxu1 %v10286_v20  ;;  %v10701_v20 = vcombine.low %v5713_v24, %v5721_v2  ;;  %v10686_v26 = vcombine.high %v5697_v16, %v5705_v17  ;;  %v5354_v24 = vld [vmem:[#allocation3 + $0x3e0] sm:$0xff] }
 0xf12   :  { %8678 = vmatpush1.bf16.msra.mxu0 %v10557_v19  ;;  %v10445_v19 = vcombine.low %v5457_v61, %v5465_v63  ;;  %v5346_v63 = vld [vmem:[#allocation3 + $0x3a0] sm:$0xff] }
 0xf13   :  { %8679 = vmatprep.subr.bf16.mxu0 %v10542_v22  ;;  %v10430_v22 = vcombine.high %v5441_v0, %v5449_v15  ;;  %v5602_v2 = vld [vmem:[#allocation3 + $0xba0] sm:$0xff] }
 0xf14   :  { %8639 = vmatpush1.bf16.msra.mxu1 %v10285_v1  ;;  %v5689_v1 = vld [vmem:[#allocation3 + $0xe58] sm:$0xff] }
 0xf15   :  { %8640 = vmatprep.subr.bf16.mxu1 %v10270_v31  ;;  %v10685_v31 = vcombine.low %v5697_v16, %v5705_v17  ;;  %v10670_v44 = vcombine.high %v5681_v30, %v5689_v1  ;;  %v5330_v16 = vld [vmem:[#allocation3 + $0x320] sm:$0xff] }
 0xf16   :  { %8680 = vmatpush1.bf16.msra.mxu0 %v10541_v5  ;;  %v10429_v5 = vcombine.low %v5441_v0, %v5449_v15  ;;  %v10336_v0 = vcombine.high %v5346_v63, %v5354_v24  ;;  %v5338_v17 = vld [vmem:[#allocation3 + $0x360] sm:$0xff] }
 0xf17   :  { %8681 = vmatprep.subr.bf16.mxu0 %v10526_v39  ;;  %v10414_v39 = vcombine.high %v5425_v28, %v5433_v29 }
 0xf18   :  { %8641 = vmatpush1.bf16.msra.mxu1 %v10269_v35  ;;  %v5673_v35 = vld [vmem:[#allocation3 + $0xdd8] sm:$0xff] }
 0xf19   :  { %8642 = vmatprep.subr.bf16.mxu1 %v10254_v38  ;;  %v10669_v38 = vcombine.low %v5681_v30, %v5689_v1  ;;  %v10654_v41 = vcombine.high %v5665_v34, %v5673_v35 }
 0xf1a   :  { %8682 = vmatpush1.bf16.msra.mxu0 %v10525_v36  ;;  %v10413_v36 = vcombine.low %v5425_v28, %v5433_v29  ;;  %v10320_v29 = vcombine.high %v5330_v16, %v5338_v17 }
 0xf1b   :  { %8683 = vmatprep.subr.bf16.mxu0 %v10510_v40  ;;  %v10398_v40 = vcombine.high %v5409_v32, %v5417_v33 }
 0xf1c   :  { %8643 = vmatpush1.bf16.msra.mxu1 %v10253_v47  ;;  %v5657_v47 = vld [vmem:[#allocation3 + $0xd58] sm:$0xff] }
 0xf1d   :  { %8644 = vmatprep.subr.bf16.mxu1 %v10238_v51  ;;  %v10653_v51 = vcombine.low %v5665_v34, %v5673_v35  ;;  %v10638_v42 = vcombine.high %v5649_v46, %v5657_v47  ;;  %v10319_v35 = vcombine.low %v5330_v16, %v5338_v17 }
 0xf1e   :  { %8684 = vmatpush1.bf16.msra.mxu0 %v10509_v49  ;;  %v10397_v49 = vcombine.low %v5409_v32, %v5417_v33  ;;  %v5578_v32 = vld [vmem:[#allocation3 + $0xae0] sm:$0xff] }
 0xf1f   :  { %8685 = vmatprep.subr.bf16.mxu0 %v10494_v52  ;;  %v10382_v52 = vcombine.high %v5393_v43, %v5401_v45 }
 0xf20   :  { %8645 = vmatpush1.bf16.msra.mxu1 %v10237_v27  ;;  %v5641_v27 = vld [vmem:[#allocation3 + $0xcd8] sm:$0xff] }
 0xf21   :  { %8646 = vmatprep.subr.bf16.mxu1 %v10222_v4  ;;  %v10637_v4 = vcombine.low %v5649_v46, %v5657_v47  ;;  %v10622_v56 = vcombine.high %v5633_v3, %v5641_v27  ;;  %v5298_v47 = vld [vmem:[#allocation3 + $0x220] sm:$0xff] }
 0xf22   :  { %8686 = vmatpush1.bf16.msra.mxu0 %v10493_v62  ;;  %v10381_v62 = vcombine.low %v5393_v43, %v5401_v45 }
 0xf23   :  { %8687 = vmatprep.subr.bf16.mxu0 %v10478_v55  ;;  %v10366_v55 = vcombine.high %v5377_v53, %v5385_v54 }
 0xf24   :  { %8647 = vmatpush1.bf16.msra.mxu1 %v10221_v8  ;;  %v5625_v8 = vld [vmem:[#allocation3 + $0xc58] sm:$0xff] }
 0xf25   :  { %8648 = vmatprep.subr.bf16.mxu1 %v10462_v59  ;;  %v10621_v59 = vcombine.low %v5633_v3, %v5641_v27  ;;  %v10606_v61 = vcombine.high %v5617_v6, %v5625_v8 }
 0xf26   :  { %8688 = vmatpush1.bf16.msra.mxu0 %v10477_v58  ;;  %v10365_v58 = vcombine.low %v5377_v53, %v5385_v54 }
 0xf27   :  { %8689 = vmatprep.subr.bf16.mxu0 %v10718_v60  ;;  %v10350_v60 = vcombine.high %v5361_v57, %v5369_v48 }
 0xf28   :  { %8649 = vmatpush2.bf16.msra.mxu1 %v10461_v7  ;;  %v5610_v7 = vld [vmem:[#allocation3 + $0xbe0] sm:$0xff] }
 0xf29   :  { %8650 = vmatprep.subr.bf16.mxu1 %v10446_v12  ;;  %v10605_v12 = vcombine.low %v5617_v6, %v5625_v8  ;;  %v10592_v15 = vcombine.high %v5602_v2, %v5610_v7  ;;  %v10591_v28 = vcombine.low %v5602_v2, %v5610_v7  ;;  %v5282_v6 = vld [vmem:[#allocation3 + $0x1a0] sm:$0xff] }
 0xf2a   :  { %8690 = vmatpush2.bf16.msra.mxu0 %v10717_v10  ;;  %v10349_v10 = vcombine.low %v5361_v57, %v5369_v48  ;;  %v5290_v8 = vld [vmem:[#allocation3 + $0x1e0] sm:$0xff] }
 0xf2b   :  { %8691 = vmatprep.subr.bf16.mxu0 %v10702_v13  ;;  %v12778_v13 = vld [vmem:[#allocation29] sm:$0xff] }
 0xf2c   :  { %8651 = vmatpush2.bf16.msra.mxu1 %v10445_v19  ;;  %v5586_v19 = vld [vmem:[#allocation3 + $0xb20] sm:$0xff]  ;;  %v5753_v30 = vrot.slane %v12778_v13, %v12519_v14 }
 0xf2d   :  { %8652 = vmatprep.subr.bf16.mxu1 %v10430_v22  ;;  %v5749_v22 = vrot.slane %v12778_v13, %v12516_v11  ;;  %v5266_v2 = vld [vmem:[#allocation3 + $0x120] sm:$0xff] }
 0xf2e   :  { %8692 = vmatpush2.bf16.msra.mxu0 %v10701_v20  ;;  %v5594_v20 = vld [vmem:[#allocation3 + $0xb60] sm:$0xff] }
 0xf2f   :  { %8693 = vmatprep.subr.bf16.mxu0 %v10686_v26  ;;  %v10335_v26 = vcombine.low %v5346_v63, %v5354_v24  ;;  %v10576_v1 = vcombine.high %v5586_v19, %v5594_v20  ;;  %v10272_v63 = vcombine.high %v5282_v6, %v5290_v8  ;;  %v5274_v7 = vld [vmem:[#allocation3 + $0x160] sm:$0xff] }
 0xf30   :  { %8653 = vmatpush2.bf16.msra.mxu1 %v10429_v5  ;;  %v5314_v5 = vld [vmem:[#allocation3 + $0x2a0] sm:$0xff]  ;;  %v10256_v16 = vcombine.high %v5266_v2, %v5274_v7 }
 0xf31   :  { %8654 = vmatprep.subr.bf16.mxu1 %v10414_v39 }
 0xf32   :  { %8694 = vmatpush2.bf16.msra.mxu0 %v10685_v31  ;;  %v5322_v31 = vld [vmem:[#allocation3 + $0x2e0] sm:$0xff] }
 0xf33   :  { %8695 = vmatprep.subr.bf16.mxu0 %v10670_v44  ;;  %v5570_v44 = vld [vmem:[#allocation3 + $0xaa0] sm:$0xff]  ;;  %v10303_v27 = vcombine.low %v5314_v5, %v5322_v31 }
 0xf34   :  { %8655 = vmatpush2.bf16.msra.mxu1 %v10413_v36  ;;  %v10560_v46 = vcombine.high %v5570_v44, %v5578_v32 }
 0xf35   :  { %8656 = vmatprep.subr.bf16.mxu1 %v10398_v40  ;;  %v10304_v40 = vcombine.high %v5314_v5, %v5322_v31  ;;  %v5234_v5 = vld [vmem:[#allocation3 + $0x20] sm:$0xff] }
 0xf36   :  { %8696 = vmatpush2.bf16.msra.mxu0 %v10669_v38  ;;  %v10575_v38 = vcombine.low %v5586_v19, %v5594_v20  ;;  %v5250_v19 = vld [vmem:[#allocation3 + $0xa0] sm:$0xff] }
 0xf37   :  { %8697 = vmatprep.subr.bf16.mxu0 %v10654_v41  ;;  %v5258_v20 = vld [vmem:[#allocation3 + $0xe0] sm:$0xff] }
 0xf38   :  { %8657 = vmatpush2.bf16.msra.mxu1 %v10397_v49  ;;  %v5306_v49 = vld [vmem:[#allocation3 + $0x260] sm:$0xff] }
 0xf39   :  { %8658 = vmatprep.subr.bf16.mxu1 %v10382_v52  ;;  %v5554_v52 = vld [vmem:[#allocation3 + $0xa20] sm:$0xff] }
 0xf3a   :  { %8698 = vmatpush2.bf16.msra.mxu0 %v10653_v51  ;;  %v5242_v31 = vld [vmem:[#allocation3 + $0x60] sm:$0xff] }
 0xf3b   :  { %8699 = vmatprep.subr.bf16.mxu0 %v10638_v42  ;;  %v5562_v42 = vld [vmem:[#allocation3 + $0xa60] sm:$0xff] }
 0xf3c   :  { %8659 = vmatpush2.bf16.msra.mxu1 %v10381_v62  ;;  %v10544_v48 = vcombine.high %v5554_v52, %v5562_v42 }
 0xf3d   :  { %8660 = vmatprep.subr.bf16.mxu1 %v10366_v55  ;;  %v10288_v55 = vcombine.high %v5298_v47, %v5306_v49 }
 0xf3e   :  { %8700 = vmatpush2.bf16.msra.mxu0 %v10637_v4  ;;  %v10559_v4 = vcombine.low %v5570_v44, %v5578_v32  ;;  %v5498_v44 = vld [vmem:[#allocation3 + $0x860] sm:$0xff]  ;;  %v10239_v32 = vcombine.low %v5250_v19, %v5258_v20 }
 0xf3f   :  { %8701 = vmatprep.subr.bf16.mxu0 %v10622_v56 }
 0xf40   :  { %8661 = vmatpush2.bf16.msra.mxu1 %v10365_v58  ;;  %v5538_v58 = vld [vmem:[#allocation3 + $0x9a0] sm:$0xff] }
 0xf41   :  { %8662 = vmatprep.subr.bf16.mxu1 %v10350_v60  ;;  %v10287_v60 = vcombine.low %v5298_v47, %v5306_v49 }
 0xf42   :  { %8702 = vmatpush2.bf16.msra.mxu0 %v10621_v59  ;;  %v5546_v59 = vld [vmem:[#allocation3 + $0x9e0] sm:$0xff] }
 0xf43   :  { %8703 = vmatprep.subr.bf16.mxu0 %v10606_v61  ;;  %v10543_v61 = vcombine.low %v5554_v52, %v5562_v42  ;;  %v10528_v24 = vcombine.high %v5538_v58, %v5546_v59  ;;  %v5466_v52 = vld [vmem:[#allocation3 + $0x760] sm:$0xff] }
 0xf44   :  { %8663 = vmatpush2.bf16.msra.mxu1 %v10349_v10  ;;  %v5522_v10 = vld [vmem:[#allocation3 + $0x920] sm:$0xff] }
 0xf45   :  { %8714 = vmatprep.subr.bf16.mxu1 %v10336_v0  ;;  %v10271_v0 = vcombine.low %v5282_v6, %v5290_v8  ;;  %v5714_v42 = vld [vmem:[#allocation3 + $0xf20] sm:$0xff] }
 0xf46   :  { %8704 = vmatpush2.bf16.msra.mxu0 %v10605_v12  ;;  %v5530_v12 = vld [vmem:[#allocation3 + $0x960] sm:$0xff] }
 0xf47   :  { %8755 = vmatprep.subr.bf16.mxu0 %v10592_v15  ;;  %v8420_v39 = vpop.f32.mrf.mxu1  ;;  %8665 = vmatmul.mubr.bf16.vlgmr.msra.gmra.mxu1 %v12759_v18  ;;  %v10527_v15 = vcombine.low %v5538_v58, %v5546_v59  ;;  %v10512_v17 = vcombine.high %v5522_v10, %v5530_v12  ;;  %v5698_v6 = vld [vmem:[#allocation3 + $0xea0] sm:$0xff] }
 0xf48   :  { %v8421_v33 = vadd.f32 %v8420_v39, %v5749_v22  ;;  %8715 = vmatpush1.bf16.msra.mxu1 %v10335_v26  ;;  %8746 = vmatprep.mubr.bf16.mxu1 %v12750_v50  ;;  %v5506_v22 = vld [vmem:[#allocation3 + $0x8a0] sm:$0xff] }
 0xf49   :  { %v8461_v34 = vpop.f32.mrf.mxu0  ;;  %8706 = vmatmul.mubr.bf16.vlgmr.msra.gmra.mxu0 %v12764_v21  ;;  %v8422_v36 = vpop.f32.mrf.mxu1  ;;  %8716 = vmatprep.subr.bf16.mxu1 %v10320_v29  ;;  %v5514_v26 = vld [vmem:[#allocation3 + $0x8e0] sm:$0xff]  ;;  %v10511_v29 = vcombine.low %v5522_v10, %v5530_v12 }
 0xf4a   :  { %8756 = vmatpush1.bf16.msra.mxu0 %v10591_v28  ;;  %v12786_v41 = vadd.f32 %v8461_v34, %v8421_v33  ;;  %v8423_v43 = vadd.f32 %v8422_v36, %v5753_v30  ;;  %8787 = vmatprep.mubr.bf16.mxu0 %v12752_v37  ;;  %v10255_v28 = vcombine.low %v5266_v2, %v5274_v7  ;;  %v5490_v39 = vld [vmem:[#allocation3 + $0x820] sm:$0xff] }
 0xf4b   :  { %v8463_v45 = vpop.f32.mrf.mxu0  ;;  %8757 = vmatprep.subr.bf16.mxu0 %v10576_v1  ;;  %v8424_v51 = vpop.f32.mrf.mxu1  ;;  %v10240_v30 = vcombine.high %v5250_v19, %v5258_v20  ;;  %v10496_v1 = vcombine.high %v5506_v22, %v5514_v26  ;;  %v10495_v33 = vcombine.low %v5506_v22, %v5514_v26  ;;  %v10224_v34 = vcombine.high %v5234_v5, %v5242_v31  ;;  %v5474_v36 = vld [vmem:[#allocation3 + $0x7a0] sm:$0xff] }
 0xf4c   :  { %v9042_v53 = vmax.f32 %v12786_v41, 0.0  ;;  %v12791_v54 = vadd.f32 %v8463_v45, %v8423_v43  ;;  %8717 = vmatpush1.bf16.msra.mxu1 %v10319_v35  ;;  %v10480_v35 = vcombine.high %v5490_v39, %v5498_v44  ;;  %v5738_v43 = vld [vmem:[#allocation3 + $0xfe0] sm:$0xff]  ;;  %v10223_v45 = vcombine.low %v5234_v5, %v5242_v31 }
 0xf4d   :  { %v8465_v3 = vpop.f32.mrf.mxu0  ;;  %v8425_v62 = vpop.f32.mrf.mxu1  ;;  %8718 = vmatprep.subr.bf16.mxu1 %v10304_v40  ;;  %v5730_v40 = vld [vmem:[#allocation3 + $0xfa0] sm:$0xff] }
 0xf4e   :  { %8758 = vmatpush1.bf16.msra.mxu0 %v10575_v38  ;;  %v9043_v56 = vmax.f32 %v12791_v54, 0.0  ;;  %v5482_v38 = vld [vmem:[#allocation3 + $0x7e0] sm:$0xff]  ;;  %v10720_v49 = vcombine.high %v5730_v40, %v5738_v43  ;;  %v10719_v62 = vcombine.low %v5730_v40, %v5738_v43 }
 0xf4f   :  { %v8466_v57 = vpop.f32.mrf.mxu0  ;;  %8759 = vmatprep.subr.bf16.mxu0 %v10560_v46  ;;  %v10479_v46 = vcombine.low %v5490_v39, %v5498_v44  ;;  %v10464_v47 = vcombine.high %v5474_v36, %v5482_v38  ;;  %v5458_v51 = vld [vmem:[#allocation3 + $0x720] sm:$0xff] }
 0xf50   :  { %8719 = vmatpush1.bf16.msra.mxu1 %v10303_v27  ;;  %v5722_v3 = vld [vmem:[#allocation3 + $0xf60] sm:$0xff]  ;;  %v10463_v27 = vcombine.low %v5474_v36, %v5482_v38  ;;  %v10447_v58 = vcombine.low %v5458_v51, %v5466_v52 }
 0xf51   :  { %8720 = vmatprep.subr.bf16.mxu1 %v10288_v55  ;;  %v10704_v55 = vcombine.high %v5714_v42, %v5722_v3  ;;  %v5442_v57 = vld [vmem:[#allocation3 + $0x6a0] sm:$0xff]  ;;  %v10703_v59 = vcombine.low %v5714_v42, %v5722_v3 }
 0xf52   :  { %8760 = vmatpush1.bf16.msra.mxu0 %v10559_v4  ;;  %v10448_v4 = vcombine.high %v5458_v51, %v5466_v52  ;;  %v5706_v8 = vld [vmem:[#allocation3 + $0xee0] sm:$0xff] }
 0xf53   :  { %8761 = vmatprep.subr.bf16.mxu0 %v10544_v48  ;;  %v5450_v48 = vld [vmem:[#allocation3 + $0x6e0] sm:$0xff]  ;;  %v10687_v12 = vcombine.low %v5698_v6, %v5706_v8 }
 0xf54   :  { %8721 = vmatpush1.bf16.msra.mxu1 %v10287_v60  ;;  %v10432_v60 = vcombine.high %v5442_v57, %v5450_v48  ;;  %v5682_v2 = vld [vmem:[#allocation3 + $0xe20] sm:$0xff]  ;;  %v10431_v10 = vcombine.low %v5442_v57, %v5450_v48  ;;  %v5603_v57 = vld [vmem:[#allocation3 + $0xba8] sm:$0xff] }
 0xf55   :  { %8722 = vmatprep.subr.bf16.mxu1 %v10272_v63  ;;  %v5426_v63 = vld [vmem:[#allocation3 + $0x620] sm:$0xff]  ;;  %v5611_v48 = vld [vmem:[#allocation3 + $0xbe8] sm:$0xff] }
 0xf56   :  { %8762 = vmatpush1.bf16.msra.mxu0 %v10543_v61  ;;  %v10688_v61 = vcombine.high %v5698_v6, %v5706_v8  ;;  %v5690_v7 = vld [vmem:[#allocation3 + $0xe60] sm:$0xff] }
 0xf57   :  { %8763 = vmatprep.subr.bf16.mxu0 %v10528_v24  ;;  %v5434_v24 = vld [vmem:[#allocation3 + $0x660] sm:$0xff]  ;;  %v10671_v26 = vcombine.low %v5682_v2, %v5690_v7 }
 0xf58   :  { %8723 = vmatpush1.bf16.msra.mxu1 %v10271_v0  ;;  %v10416_v0 = vcombine.high %v5426_v63, %v5434_v24  ;;  %v5666_v19 = vld [vmem:[#allocation3 + $0xda0] sm:$0xff]  ;;  %v10415_v22 = vcombine.low %v5426_v63, %v5434_v24  ;;  %v5587_v63 = vld [vmem:[#allocation3 + $0xb28] sm:$0xff] }
 0xf59   :  { %8724 = vmatprep.subr.bf16.mxu1 %v10256_v16  ;;  %v5410_v16 = vld [vmem:[#allocation3 + $0x5a0] sm:$0xff]  ;;  %v5595_v24 = vld [vmem:[#allocation3 + $0xb68] sm:$0xff] }
 0xf5a   :  { %8764 = vmatpush1.bf16.msra.mxu0 %v10527_v15  ;;  %v10672_v15 = vcombine.high %v5682_v2, %v5690_v7  ;;  %v5674_v20 = vld [vmem:[#allocation3 + $0xde0] sm:$0xff]  ;;  %v5757_v2 = vrot.slane %v12778_v13, %v12740_v23 }
 0xf5b   :  { %8765 = vmatprep.subr.bf16.mxu0 %v10512_v17  ;;  %v5418_v17 = vld [vmem:[#allocation3 + $0x5e0] sm:$0xff]  ;;  %v10655_v44 = vcombine.low %v5666_v19, %v5674_v20 }
 0xf5c   :  { %8725 = vmatpush1.bf16.msra.mxu1 %v10255_v28  ;;  %v10400_v28 = vcombine.high %v5410_v16, %v5418_v17  ;;  %v5650_v5 = vld [vmem:[#allocation3 + $0xd20] sm:$0xff]  ;;  %v10399_v39 = vcombine.low %v5410_v16, %v5418_v17  ;;  %v5315_v16 = vld [vmem:[#allocation3 + $0x2a8] sm:$0xff] }
 0xf5d   :  { %8726 = vmatprep.subr.bf16.mxu1 %v10240_v30  ;;  %v5394_v30 = vld [vmem:[#allocation3 + $0x520] sm:$0xff]  ;;  %v5323_v17 = vld [vmem:[#allocation3 + $0x2e8] sm:$0xff] }
 0xf5e   :  { %8766 = vmatpush1.bf16.msra.mxu0 %v10511_v29  ;;  %v10656_v29 = vcombine.high %v5666_v19, %v5674_v20  ;;  %v5658_v31 = vld [vmem:[#allocation3 + $0xd60] sm:$0xff]  ;;  %v5571_v20 = vld [vmem:[#allocation3 + $0xaa8] sm:$0xff] }
 0xf5f   :  { %8767 = vmatprep.subr.bf16.mxu0 %v10496_v1  ;;  %v5402_v1 = vld [vmem:[#allocation3 + $0x560] sm:$0xff]  ;;  %v10639_v43 = vcombine.low %v5650_v5, %v5658_v31 }
 0xf60   :  { %8727 = vmatpush1.bf16.msra.mxu1 %v10239_v32  ;;  %v10384_v32 = vcombine.high %v5394_v30, %v5402_v1  ;;  %v5634_v36 = vld [vmem:[#allocation3 + $0xca0] sm:$0xff]  ;;  %v10383_v40 = vcombine.low %v5394_v30, %v5402_v1  ;;  %v10577_v1 = vcombine.low %v5587_v63, %v5595_v24 }
 0xf61   :  { %8728 = vmatprep.subr.bf16.mxu1 %v10224_v34  ;;  %v5378_v34 = vld [vmem:[#allocation3 + $0x4a0] sm:$0xff] }
 0xf62   :  { %8768 = vmatpush1.bf16.msra.mxu0 %v10495_v33  ;;  %v10640_v33 = vcombine.high %v5650_v5, %v5658_v31  ;;  %v5642_v38 = vld [vmem:[#allocation3 + $0xce0] sm:$0xff]  ;;  %v10306_v5 = vcombine.high %v5315_v16, %v5323_v17 }
 0xf63   :  { %8769 = vmatprep.subr.bf16.mxu0 %v10480_v35  ;;  %v5386_v35 = vld [vmem:[#allocation3 + $0x4e0] sm:$0xff]  ;;  %v10623_v3 = vcombine.low %v5634_v36, %v5642_v38 }
 0xf64   :  { %8729 = vmatpush1.bf16.msra.mxu1 %v10223_v45  ;;  %v10368_v45 = vcombine.high %v5378_v34, %v5386_v35  ;;  %v5618_v51 = vld [vmem:[#allocation3 + $0xc20] sm:$0xff]  ;;  %v10367_v42 = vcombine.low %v5378_v34, %v5386_v35  ;;  %v5307_v34 = vld [vmem:[#allocation3 + $0x268] sm:$0xff] }
 0xf65   :  { %8730 = vmatprep.subr.bf16.mxu1 %v10464_v47  ;;  %v5362_v47 = vld [vmem:[#allocation3 + $0x420] sm:$0xff] }
 0xf66   :  { %8770 = vmatpush1.bf16.msra.mxu0 %v10479_v46  ;;  %v10624_v46 = vcombine.high %v5634_v36, %v5642_v38  ;;  %v5626_v52 = vld [vmem:[#allocation3 + $0xc60] sm:$0xff]  ;;  %v5555_v36 = vld [vmem:[#allocation3 + $0xa28] sm:$0xff] }
 0xf67   :  { %8771 = vmatprep.subr.bf16.mxu0 %v10720_v49  ;;  %v5370_v49 = vld [vmem:[#allocation3 + $0x460] sm:$0xff]  ;;  %v10607_v8 = vcombine.low %v5618_v51, %v5626_v52  ;;  %v5563_v38 = vld [vmem:[#allocation3 + $0xa68] sm:$0xff] }
 0xf68   :  { %8731 = vmatpush2.bf16.msra.mxu1 %v10463_v27  ;;  %v10352_v27 = vcombine.high %v5362_v47, %v5370_v49  ;;  %v10351_v6 = vcombine.low %v5362_v47, %v5370_v49 }
 0xf69   :  { %8732 = vmatprep.subr.bf16.mxu1 %v10448_v4  ;;  %v5347_v4 = vld [vmem:[#allocation3 + $0x3a8] sm:$0xff] }
 0xf6a   :  { %8772 = vmatpush2.bf16.msra.mxu0 %v10719_v62  ;;  %v10608_v62 = vcombine.high %v5618_v51, %v5626_v52 }
 0xf6b   :  { %8773 = vmatprep.subr.bf16.mxu0 %v10704_v55  ;;  %v5355_v55 = vld [vmem:[#allocation3 + $0x3e8] sm:$0xff] }
 0xf6c   :  { %8733 = vmatpush2.bf16.msra.mxu1 %v10447_v58  ;;  %v10338_v58 = vcombine.high %v5347_v4, %v5355_v55  ;;  %v10337_v7 = vcombine.low %v5347_v4, %v5355_v55  ;;  %v5539_v4 = vld [vmem:[#allocation3 + $0x9a8] sm:$0xff] }
 0xf6d   :  { %8734 = vmatprep.subr.bf16.mxu1 %v10432_v60  ;;  %v5331_v60 = vld [vmem:[#allocation3 + $0x328] sm:$0xff] }
 0xf6e   :  { %8774 = vmatpush2.bf16.msra.mxu0 %v10703_v59  ;;  %v10594_v59 = vcombine.high %v5603_v57, %v5611_v48  ;;  %v5547_v55 = vld [vmem:[#allocation3 + $0x9e8] sm:$0xff] }
 0xf6f   :  { %8775 = vmatprep.subr.bf16.mxu0 %v10688_v61  ;;  %v5339_v61 = vld [vmem:[#allocation3 + $0x368] sm:$0xff] }
 0xf70   :  { %8735 = vmatpush2.bf16.msra.mxu1 %v10431_v10  ;;  %v10593_v10 = vcombine.low %v5603_v57, %v5611_v48  ;;  %v10545_v48 = vcombine.low %v5555_v36, %v5563_v38 }
 0xf71   :  { %8736 = vmatprep.subr.bf16.mxu1 %v10416_v0  ;;  %v5761_v0 = vrot.slane %v12778_v13, %v12743_v25 }
 0xf72   :  { %8776 = vmatpush2.bf16.msra.mxu0 %v10687_v12  ;;  %v10322_v12 = vcombine.high %v5331_v60, %v5339_v61 }
 0xf73   :  { %8777 = vmatprep.subr.bf16.mxu0 %v10672_v15  ;;  %v10578_v15 = vcombine.high %v5587_v63, %v5595_v24  ;;  %v10529_v24 = vcombine.low %v5539_v4, %v5547_v55 }
 0xf74   :  { %8737 = vmatpush2.bf16.msra.mxu1 %v10415_v22  ;;  %v5579_v22 = vld [vmem:[#allocation3 + $0xae8] sm:$0xff] }
 0xf75   :  { %8738 = vmatprep.subr.bf16.mxu1 %v10400_v28  ;;  %v10561_v49 = vcombine.low %v5571_v20, %v5579_v22 }
 0xf76   :  { %8778 = vmatpush2.bf16.msra.mxu0 %v10671_v26 }
 0xf77   :  { %8779 = vmatprep.subr.bf16.mxu0 %v10656_v29  ;;  %v10321_v29 = vcombine.low %v5331_v60, %v5339_v61  ;;  %v5523_v60 = vld [vmem:[#allocation3 + $0x928] sm:$0xff] }
 0xf78   :  { %8739 = vmatpush2.bf16.msra.mxu1 %v10399_v39  ;;  %v5531_v61 = vld [vmem:[#allocation3 + $0x968] sm:$0xff] }
 0xf79   :  { %8740 = vmatprep.subr.bf16.mxu1 %v10384_v32  ;;  %v10562_v32 = vcombine.high %v5571_v20, %v5579_v22  ;;  %v5235_v22 = vld [vmem:[#allocation3 + $0x28] sm:$0xff] }
 0xf7a   :  { %8780 = vmatpush2.bf16.msra.mxu0 %v10655_v44 }
 0xf7b   :  { %8781 = vmatprep.subr.bf16.mxu0 %v10640_v33  ;;  %v5299_v33 = vld [vmem:[#allocation3 + $0x228] sm:$0xff] }
 0xf7c   :  { %8741 = vmatpush2.bf16.msra.mxu1 %v10383_v40  ;;  %v10290_v51 = vcombine.high %v5299_v33, %v5307_v34  ;;  %v10289_v57 = vcombine.low %v5299_v33, %v5307_v34  ;;  %v5731_v33 = vld [vmem:[#allocation3 + $0xfa8] sm:$0xff] }
 0xf7d   :  { %8742 = vmatprep.subr.bf16.mxu1 %v10368_v45  ;;  %v5739_v34 = vld [vmem:[#allocation3 + $0xfe8] sm:$0xff] }
 0xf7e   :  { %8782 = vmatpush2.bf16.msra.mxu0 %v10639_v43 }
 0xf7f   :  { %8783 = vmatprep.subr.bf16.mxu0 %v10624_v46  ;;  %v10305_v46 = vcombine.low %v5315_v16, %v5323_v17  ;;  %v10513_v17 = vcombine.low %v5523_v60, %v5531_v61 }
 0xf80   :  { %8743 = vmatpush2.bf16.msra.mxu1 %v10367_v42 }
 0xf81   :  { %8744 = vmatprep.subr.bf16.mxu1 %v10352_v27  ;;  %v5283_v27 = vld [vmem:[#allocation3 + $0x1a8] sm:$0xff] }
 0xf82   :  { %8784 = vmatpush2.bf16.msra.mxu0 %v10623_v3  ;;  %v10546_v3 = vcombine.high %v5555_v36, %v5563_v38 }
 0xf83   :  { %8785 = vmatprep.subr.bf16.mxu0 %v10608_v62  ;;  %v5291_v62 = vld [vmem:[#allocation3 + $0x1e8] sm:$0xff] }
 0xf84   :  { %8745 = vmatpush2.bf16.msra.mxu1 %v10351_v6  ;;  %v10274_v6 = vcombine.high %v5283_v27, %v5291_v62  ;;  %v10273_v63 = vcombine.low %v5283_v27, %v5291_v62 }
 0xf85   :  { %8796 = vmatprep.subr.bf16.mxu1 %v10338_v58  ;;  %v5267_v58 = vld [vmem:[#allocation3 + $0x128] sm:$0xff] }
 0xf86   :  { %8786 = vmatpush2.bf16.msra.mxu0 %v10607_v8  ;;  %v10530_v8 = vcombine.high %v5539_v4, %v5547_v55  ;;  %v5443_v4 = vld [vmem:[#allocation3 + $0x6a8] sm:$0xff] }
 0xf87   :  { %8837 = vmatprep.subr.bf16.mxu0 %v10594_v59  ;;  %v8502_v19 = vpop.f32.mrf.mxu1  ;;  %8747 = vmatmul.mubr.bf16.vlgmr.msra.gmra.mxu1 %v12759_v18  ;;  %v5275_v59 = vld [vmem:[#allocation3 + $0x168] sm:$0xff] }
 0xf88   :  { %v8503_v26 = vadd.f32 %v8502_v19, %v5757_v2  ;;  %8797 = vmatpush1.bf16.msra.mxu1 %v10337_v7  ;;  %8828 = vmatprep.mubr.bf16.mxu1 %v12750_v50  ;;  %v10258_v2 = vcombine.high %v5267_v58, %v5275_v59  ;;  %v10514_v7 = vcombine.high %v5523_v60, %v5531_v61  ;;  %v5451_v55 = vld [vmem:[#allocation3 + $0x6e8] sm:$0xff] }
 0xf89   :  { %v8543_v28 = vpop.f32.mrf.mxu0  ;;  %8788 = vmatmul.mubr.bf16.vlgmr.msra.gmra.mxu0 %v12764_v21  ;;  %v8504_v30 = vpop.f32.mrf.mxu1  ;;  %8798 = vmatprep.subr.bf16.mxu1 %v10322_v12  ;;  %v5259_v12 = vld [vmem:[#allocation3 + $0xe8] sm:$0xff]  ;;  %v10257_v16 = vcombine.low %v5267_v58, %v5275_v59  ;;  %v10434_v58 = vcombine.high %v5443_v4, %v5451_v55 }
 0xf8a   :  { %8838 = vmatpush1.bf16.msra.mxu0 %v10593_v10  ;;  %v12800_v31 = vadd.f32 %v8543_v28, %v8503_v26  ;;  %v8505_v39 = vadd.f32 %v8504_v30, %v5761_v0  ;;  %8869 = vmatprep.mubr.bf16.mxu0 %v12752_v37  ;;  %v5251_v10 = vld [vmem:[#allocation3 + $0xa8] sm:$0xff] }
 0xf8b   :  { %v8545_v44 = vpop.f32.mrf.mxu0  ;;  %8839 = vmatprep.subr.bf16.mxu0 %v10578_v15  ;;  %v8506_v35 = vpop.f32.mrf.mxu1  ;;  %v5507_v0 = vld [vmem:[#allocation3 + $0x8a8] sm:$0xff]  ;;  %v10242_v19 = vcombine.high %v5251_v10, %v5259_v12  ;;  %v10241_v30 = vcombine.low %v5251_v10, %v5259_v12 }
 0xf8c   :  { %v9044_v40 = vmax.f32 %v12800_v31, 0.0  ;;  %v12805_v43 = vadd.f32 %v8545_v44, %v8505_v39  ;;  %8799 = vmatpush1.bf16.msra.mxu1 %v10321_v29  ;;  %v5515_v15 = vld [vmem:[#allocation3 + $0x8e8] sm:$0xff] }
 0xf8d   :  { %v8547_v45 = vpop.f32.mrf.mxu0  ;;  %v8507_v47 = vpop.f32.mrf.mxu1  ;;  %8800 = vmatprep.subr.bf16.mxu1 %v10306_v5  ;;  %v10498_v20 = vcombine.high %v5507_v0, %v5515_v15  ;;  %v5243_v26 = vld [vmem:[#allocation3 + $0x68] sm:$0xff] }
 0xf8e   :  { %8840 = vmatpush1.bf16.msra.mxu0 %v10577_v1  ;;  %v9045_v52 = vmax.f32 %v12805_v43, 0.0  ;;  %v5491_v28 = vld [vmem:[#allocation3 + $0x828] sm:$0xff]  ;;  %v10497_v1 = vcombine.low %v5507_v0, %v5515_v15  ;;  %v10226_v5 = vcombine.high %v5235_v22, %v5243_v26  ;;  %v10225_v35 = vcombine.low %v5235_v22, %v5243_v26 }
 0xf8f   :  { %v8548_v42 = vpop.f32.mrf.mxu0  ;;  %8841 = vmatprep.subr.bf16.mxu0 %v10562_v32  ;;  %v5499_v29 = vld [vmem:[#allocation3 + $0x868] sm:$0xff]  ;;  %v10722_v45 = vcombine.high %v5731_v33, %v5739_v34 }
 0xf90   :  { %8801 = vmatpush1.bf16.msra.mxu1 %v10305_v46  ;;  %v10482_v39 = vcombine.high %v5491_v28, %v5499_v29  ;;  %v5475_v44 = vld [vmem:[#allocation3 + $0x7a8] sm:$0xff]  ;;  %v10481_v36 = vcombine.low %v5491_v28, %v5499_v29 }
 0xf91   :  { %8802 = vmatprep.subr.bf16.mxu1 %v10290_v51  ;;  %v5483_v32 = vld [vmem:[#allocation3 + $0x7e8] sm:$0xff] }
 0xf92   :  { %8842 = vmatpush1.bf16.msra.mxu0 %v10561_v49  ;;  %v10466_v38 = vcombine.high %v5475_v44, %v5483_v32  ;;  %v5459_v46 = vld [vmem:[#allocation3 + $0x728] sm:$0xff]  ;;  %v10465_v42 = vcombine.low %v5475_v44, %v5483_v32 }
 0xf93   :  { %8843 = vmatprep.subr.bf16.mxu0 %v10546_v3  ;;  %v5467_v47 = vld [vmem:[#allocation3 + $0x768] sm:$0xff]  ;;  %v10721_v3 = vcombine.low %v5731_v33, %v5739_v34 }
 0xf94   :  { %8803 = vmatpush1.bf16.msra.mxu1 %v10289_v57  ;;  %v5715_v49 = vld [vmem:[#allocation3 + $0xf28] sm:$0xff]  ;;  %v10450_v27 = vcombine.high %v5459_v46, %v5467_v47 }
 0xf95   :  { %8804 = vmatprep.subr.bf16.mxu1 %v10274_v6  ;;  %v5723_v51 = vld [vmem:[#allocation3 + $0xf68] sm:$0xff]  ;;  %v10449_v6 = vcombine.low %v5459_v46, %v5467_v47 }
 0xf96   :  { %8844 = vmatpush1.bf16.msra.mxu0 %v10545_v48  ;;  %v10706_v62 = vcombine.high %v5715_v49, %v5723_v51  ;;  %v5699_v57 = vld [vmem:[#allocation3 + $0xea8] sm:$0xff] }
 0xf97   :  { %8845 = vmatprep.subr.bf16.mxu0 %v10530_v8  ;;  %v5707_v48 = vld [vmem:[#allocation3 + $0xee8] sm:$0xff]  ;;  %v10705_v8 = vcombine.low %v5715_v49, %v5723_v51 }
 0xf98   :  { %8805 = vmatpush1.bf16.msra.mxu1 %v10273_v63  ;;  %v10690_v59 = vcombine.high %v5699_v57, %v5707_v48  ;;  %v5427_v60 = vld [vmem:[#allocation3 + $0x628] sm:$0xff] }
 0xf99   :  { %8806 = vmatprep.subr.bf16.mxu1 %v10258_v2  ;;  %v5435_v61 = vld [vmem:[#allocation3 + $0x668] sm:$0xff]  ;;  %v10433_v2 = vcombine.low %v5443_v4, %v5451_v55 }
 0xf9a   :  { %8846 = vmatpush1.bf16.msra.mxu0 %v10529_v24  ;;  %v5683_v63 = vld [vmem:[#allocation3 + $0xe28] sm:$0xff]  ;;  %v10418_v10 = vcombine.high %v5427_v60, %v5435_v61 }
 0xf9b   :  { %8847 = vmatprep.subr.bf16.mxu0 %v10514_v7  ;;  %v5691_v24 = vld [vmem:[#allocation3 + $0xe68] sm:$0xff]  ;;  %v10689_v7 = vcombine.low %v5699_v57, %v5707_v48  ;;  %v5348_v57 = vld [vmem:[#allocation3 + $0x3b0] sm:$0xff] }
 0xf9c   :  { %8807 = vmatpush1.bf16.msra.mxu1 %v10257_v16  ;;  %v10674_v12 = vcombine.high %v5683_v63, %v5691_v24  ;;  %v5411_v0 = vld [vmem:[#allocation3 + $0x5a8] sm:$0xff]  ;;  %v5356_v48 = vld [vmem:[#allocation3 + $0x3f0] sm:$0xff] }
 0xf9d   :  { %8808 = vmatprep.subr.bf16.mxu1 %v10242_v19  ;;  %v5419_v15 = vld [vmem:[#allocation3 + $0x5e8] sm:$0xff]  ;;  %v10417_v19 = vcombine.low %v5427_v60, %v5435_v61  ;;  %v10340_v61 = vcombine.high %v5348_v57, %v5356_v48 }
 0xf9e   :  { %8848 = vmatpush1.bf16.msra.mxu0 %v10513_v17  ;;  %v5667_v16 = vld [vmem:[#allocation3 + $0xda8] sm:$0xff]  ;;  %v10402_v22 = vcombine.high %v5411_v0, %v5419_v15 }
 0xf9f   :  { %8849 = vmatprep.subr.bf16.mxu0 %v10498_v20  ;;  %v5675_v17 = vld [vmem:[#allocation3 + $0xde8] sm:$0xff]  ;;  %v10673_v20 = vcombine.low %v5683_v63, %v5691_v24  ;;  %v5768_v24 = vsub.s32 5, %v12513_v9 }
 0xfa0   :  { %8809 = vmatpush1.bf16.msra.mxu1 %v10241_v30  ;;  %v10658_v26 = vcombine.high %v5667_v16, %v5675_v17  ;;  %v5395_v28 = vld [vmem:[#allocation3 + $0x528] sm:$0xff] }
 0xfa1   :  { %8810 = vmatprep.subr.bf16.mxu1 %v10226_v5  ;;  %v5403_v29 = vld [vmem:[#allocation3 + $0x568] sm:$0xff]  ;;  %v10401_v5 = vcombine.low %v5411_v0, %v5419_v15  ;;  %v10339_v15 = vcombine.low %v5348_v57, %v5356_v48 }
 0xfa2   :  { %8850 = vmatpush1.bf16.msra.mxu0 %v10497_v1  ;;  %v5651_v30 = vld [vmem:[#allocation3 + $0xd28] sm:$0xff]  ;;  %v10386_v44 = vcombine.high %v5395_v28, %v5403_v29 }
 0xfa3   :  { %8851 = vmatprep.subr.bf16.mxu0 %v10482_v39  ;;  %v5659_v1 = vld [vmem:[#allocation3 + $0xd68] sm:$0xff]  ;;  %v10657_v39 = vcombine.low %v5667_v16, %v5675_v17 }
 0xfa4   :  { %8811 = vmatpush1.bf16.msra.mxu1 %v10225_v35  ;;  %v10642_v32 = vcombine.high %v5651_v30, %v5659_v1  ;;  %v5379_v33 = vld [vmem:[#allocation3 + $0x4a8] sm:$0xff] }
 0xfa5   :  { %8812 = vmatprep.subr.bf16.mxu1 %v10466_v38  ;;  %v5387_v34 = vld [vmem:[#allocation3 + $0x4e8] sm:$0xff]  ;;  %v10385_v38 = vcombine.low %v5395_v28, %v5403_v29  ;;  %v5572_v29 = vld [vmem:[#allocation3 + $0xab0] sm:$0xff] }
 0xfa6   :  { %8852 = vmatpush1.bf16.msra.mxu0 %v10481_v36  ;;  %v5635_v35 = vld [vmem:[#allocation3 + $0xca8] sm:$0xff]  ;;  %v10370_v46 = vcombine.high %v5379_v33, %v5387_v34 }
 0xfa7   :  { %8853 = vmatprep.subr.bf16.mxu0 %v10722_v45  ;;  %v5643_v36 = vld [vmem:[#allocation3 + $0xce8] sm:$0xff]  ;;  %v10641_v45 = vcombine.low %v5651_v30, %v5659_v1  ;;  %v5580_v30 = vld [vmem:[#allocation3 + $0xaf0] sm:$0xff] }
 0xfa8   :  { %8813 = vmatpush2.bf16.msra.mxu1 %v10465_v42  ;;  %v10626_v47 = vcombine.high %v5635_v35, %v5643_v36  ;;  %v5363_v49 = vld [vmem:[#allocation3 + $0x428] sm:$0xff] }
 0xfa9   :  { %8814 = vmatprep.subr.bf16.mxu1 %v10450_v27  ;;  %v5371_v51 = vld [vmem:[#allocation3 + $0x468] sm:$0xff]  ;;  %v10369_v27 = vcombine.low %v5379_v33, %v5387_v34 }
 0xfaa   :  { %8854 = vmatpush2.bf16.msra.mxu0 %v10721_v3  ;;  %v5619_v42 = vld [vmem:[#allocation3 + $0xc28] sm:$0xff]  ;;  %v10354_v4 = vcombine.high %v5363_v49, %v5371_v51 }
 0xfab   :  { %8855 = vmatprep.subr.bf16.mxu0 %v10706_v62  ;;  %v5627_v3 = vld [vmem:[#allocation3 + $0xc68] sm:$0xff]  ;;  %v10625_v62 = vcombine.low %v5635_v35, %v5643_v36  ;;  %v10564_v36 = vcombine.high %v5572_v29, %v5580_v30 }
 0xfac   :  { %8815 = vmatpush2.bf16.msra.mxu1 %v10449_v6  ;;  %v10610_v55 = vcombine.high %v5619_v42, %v5627_v3  ;;  %v5604_v6 = vld [vmem:[#allocation3 + $0xbb0] sm:$0xff]  ;;  %v10609_v60 = vcombine.low %v5619_v42, %v5627_v3 }
 0xfad   :  { %8816 = vmatprep.subr.bf16.mxu1 %v10434_v58  ;;  %v10353_v58 = vcombine.low %v5363_v49, %v5371_v51  ;;  %v5564_v49 = vld [vmem:[#allocation3 + $0xa70] sm:$0xff] }
 0xfae   :  { %8856 = vmatpush2.bf16.msra.mxu0 %v10705_v8  ;;  %v5612_v8 = vld [vmem:[#allocation3 + $0xbf0] sm:$0xff] }
 0xfaf   :  { %8857 = vmatprep.subr.bf16.mxu0 %v10690_v59  ;;  %v5764_v59 = vsub.s32 4, %v12513_v9  ;;  %v10596_v63 = vcombine.high %v5604_v6, %v5612_v8  ;;  %v10595_v16 = vcombine.low %v5604_v6, %v5612_v8  ;;  %v5284_v8 = vld [vmem:[#allocation3 + $0x1b0] sm:$0xff] }
 0xfb0   :  { %8817 = vmatpush2.bf16.msra.mxu1 %v10433_v2  ;;  %v5332_v2 = vld [vmem:[#allocation3 + $0x330] sm:$0xff] }
 0xfb1   :  { %8818 = vmatprep.subr.bf16.mxu1 %v10418_v10  ;;  %v5588_v10 = vld [vmem:[#allocation3 + $0xb30] sm:$0xff]  ;;  %v5765_v0 = vrot.slane %v12778_v13, %v5764_v59 }
 0xfb2   :  { %8858 = vmatpush2.bf16.msra.mxu0 %v10689_v7  ;;  %v5340_v7 = vld [vmem:[#allocation3 + $0x370] sm:$0xff] }
 0xfb3   :  { %8859 = vmatprep.subr.bf16.mxu0 %v10674_v12  ;;  %v5596_v12 = vld [vmem:[#allocation3 + $0xb70] sm:$0xff]  ;;  %v10324_v17 = vcombine.high %v5332_v2, %v5340_v7 }
 0xfb4   :  { %8819 = vmatpush2.bf16.msra.mxu1 %v10417_v19  ;;  %v5769_v19 = vrot.slane %v12778_v13, %v5768_v24 }
 0xfb5   :  { %8820 = vmatprep.subr.bf16.mxu1 %v10402_v22  ;;  %v5316_v22 = vld [vmem:[#allocation3 + $0x2b0] sm:$0xff] }
 0xfb6   :  { %8860 = vmatpush2.bf16.msra.mxu0 %v10673_v20  ;;  %v10580_v20 = vcombine.high %v5588_v10, %v5596_v12 }
 0xfb7   :  { %8861 = vmatprep.subr.bf16.mxu0 %v10658_v26  ;;  %v5324_v26 = vld [vmem:[#allocation3 + $0x2f0] sm:$0xff] }
 0xfb8   :  { %8821 = vmatpush2.bf16.msra.mxu1 %v10401_v5  ;;  %v10308_v33 = vcombine.high %v5316_v22, %v5324_v26 }
 0xfb9   :  { %8822 = vmatprep.subr.bf16.mxu1 %v10386_v44 }
 0xfba   :  { %8862 = vmatpush2.bf16.msra.mxu0 %v10657_v39  ;;  %v10323_v39 = vcombine.low %v5332_v2, %v5340_v7 }
 0xfbb   :  { %8863 = vmatprep.subr.bf16.mxu0 %v10642_v32  ;;  %v10579_v32 = vcombine.low %v5588_v10, %v5596_v12  ;;  %v5268_v12 = vld [vmem:[#allocation3 + $0x130] sm:$0xff] }
 0xfbc   :  { %8823 = vmatpush2.bf16.msra.mxu1 %v10385_v38  ;;  %v5300_v38 = vld [vmem:[#allocation3 + $0x230] sm:$0xff] }
 0xfbd   :  { %8824 = vmatprep.subr.bf16.mxu1 %v10370_v46 }
 0xfbe   :  { %8864 = vmatpush2.bf16.msra.mxu0 %v10641_v45  ;;  %v5308_v45 = vld [vmem:[#allocation3 + $0x270] sm:$0xff] }
 0xfbf   :  { %8865 = vmatprep.subr.bf16.mxu0 %v10626_v47  ;;  %v5556_v47 = vld [vmem:[#allocation3 + $0xa30] sm:$0xff] }
 0xfc0   :  { %8825 = vmatpush2.bf16.msra.mxu1 %v10369_v27  ;;  %v10307_v27 = vcombine.low %v5316_v22, %v5324_v26  ;;  %v10548_v6 = vcombine.high %v5556_v47, %v5564_v49  ;;  %v10547_v2 = vcombine.low %v5556_v47, %v5564_v49  ;;  %v5252_v26 = vld [vmem:[#allocation3 + $0xb0] sm:$0xff] }
 0xfc1   :  { %8826 = vmatprep.subr.bf16.mxu1 %v10354_v4  ;;  %v10563_v4 = vcombine.low %v5572_v29, %v5580_v30  ;;  %v5508_v29 = vld [vmem:[#allocation3 + $0x8b0] sm:$0xff] }
 0xfc2   :  { %8866 = vmatpush2.bf16.msra.mxu0 %v10625_v62  ;;  %v5516_v30 = vld [vmem:[#allocation3 + $0x8f0] sm:$0xff] }
 0xfc3   :  { %8867 = vmatprep.subr.bf16.mxu0 %v10610_v55  ;;  %v10292_v55 = vcombine.high %v5300_v38, %v5308_v45  ;;  %v5476_v47 = vld [vmem:[#allocation3 + $0x7b0] sm:$0xff] }
 0xfc4   :  { %8827 = vmatpush2.bf16.msra.mxu1 %v10353_v58  ;;  %v5292_v58 = vld [vmem:[#allocation3 + $0x1f0] sm:$0xff] }
 0xfc5   :  { %8878 = vmatprep.subr.bf16.mxu1 %v10340_v61  ;;  %v5548_v61 = vld [vmem:[#allocation3 + $0x9f0] sm:$0xff]  ;;  %v10276_v7 = vcombine.high %v5284_v8, %v5292_v58 }
 0xfc6   :  { %8868 = vmatpush2.bf16.msra.mxu0 %v10609_v60  ;;  %v5540_v60 = vld [vmem:[#allocation3 + $0x9b0] sm:$0xff] }
 0xfc7   :  { %8919 = vmatprep.subr.bf16.mxu0 %v10596_v63  ;;  %v8584_v28 = vpop.f32.mrf.mxu1  ;;  %8829 = vmatmul.mubr.bf16.vlgmr.msra.gmra.mxu1 %v12759_v18  ;;  %v10291_v63 = vcombine.low %v5300_v38, %v5308_v45  ;;  %v10532_v10 = vcombine.high %v5540_v60, %v5548_v61  ;;  %v10499_v38 = vcombine.low %v5508_v29, %v5516_v30  ;;  %v5484_v49 = vld [vmem:[#allocation3 + $0x7f0] sm:$0xff] }
 0xfc8   :  { %v8585_v1 = vadd.f32 %v8584_v28, %v5765_v0  ;;  %8879 = vmatpush1.bf16.msra.mxu1 %v10339_v15  ;;  %8910 = vmatprep.mubr.bf16.mxu1 %v12750_v50  ;;  %v5276_v0 = vld [vmem:[#allocation3 + $0x170] sm:$0xff] }
 0xfc9   :  { %v8625_v5 = vpop.f32.mrf.mxu0  ;;  %8870 = vmatmul.mubr.bf16.vlgmr.msra.gmra.mxu0 %v12764_v21  ;;  %v8586_v44 = vpop.f32.mrf.mxu1  ;;  %8880 = vmatprep.subr.bf16.mxu1 %v10324_v17  ;;  %v5524_v15 = vld [vmem:[#allocation3 + $0x930] sm:$0xff]  ;;  %v10275_v17 = vcombine.low %v5284_v8, %v5292_v58 }
 0xfca   :  { %8920 = vmatpush1.bf16.msra.mxu0 %v10595_v16  ;;  %v12818_v13 = vadd.f32 %v8625_v5, %v8585_v1  ;;  %v8587_v34 = vadd.f32 %v8586_v44, %v5769_v19  ;;  %8951 = vmatprep.mubr.bf16.mxu0 %v12752_v37  ;;  %v5532_v16 = vld [vmem:[#allocation3 + $0x970] sm:$0xff]  ;;  %v10531_v19 = vcombine.low %v5540_v60, %v5548_v61 }
 0xfcb   :  { %v8627_v35 = vpop.f32.mrf.mxu0  ;;  %8921 = vmatprep.subr.bf16.mxu0 %v10580_v20  ;;  %v8588_v46 = vpop.f32.mrf.mxu1  ;;  %v10260_v20 = vcombine.high %v5268_v12, %v5276_v0  ;;  %v10516_v22 = vcombine.high %v5524_v15, %v5532_v16  ;;  %v5260_v28 = vld [vmem:[#allocation3 + $0xf0] sm:$0xff]  ;;  %v10259_v1 = vcombine.low %v5268_v12, %v5276_v0  ;;  %v10515_v5 = vcombine.low %v5524_v15, %v5532_v16 }
 0xfcc   :  { %v9046_v51 = vmax.f32 %v12818_v13, 0.0  ;;  %v12823_v42 = vadd.f32 %v8627_v35, %v8587_v34  ;;  %8881 = vmatpush1.bf16.msra.mxu1 %v10323_v39  ;;  %v10244_v39 = vcombine.high %v5252_v26, %v5260_v28  ;;  %v10500_v44 = vcombine.high %v5508_v29, %v5516_v30  ;;  %v5492_v34 = vld [vmem:[#allocation3 + $0x830] sm:$0xff] }
 0xfcd   :  { %v8629_v3 = vpop.f32.mrf.mxu0  ;;  %v8589_v62 = vpop.f32.mrf.mxu1  ;;  %8882 = vmatprep.subr.bf16.mxu1 %v10308_v33  ;;  %v5244_v33 = vld [vmem:[#allocation3 + $0x70] sm:$0xff]  ;;  %v10467_v61 = vcombine.low %v5476_v47, %v5484_v49 }
 0xfce   :  { %8922 = vmatpush1.bf16.msra.mxu0 %v10579_v32  ;;  %v9047_v57 = vmax.f32 %v12823_v42, 0.0  ;;  %v5236_v32 = vld [vmem:[#allocation3 + $0x30] sm:$0xff] }
 0xfcf   :  { %v8630_v48 = vpop.f32.mrf.mxu0  ;;  %8923 = vmatprep.subr.bf16.mxu0 %v10564_v36  ;;  %v5500_v35 = vld [vmem:[#allocation3 + $0x870] sm:$0xff]  ;;  %v10243_v36 = vcombine.low %v5252_v26, %v5260_v28  ;;  %v10228_v45 = vcombine.high %v5236_v32, %v5244_v33  ;;  %v10227_v62 = vcombine.low %v5236_v32, %v5244_v33 }
 0xfd0   :  { %8883 = vmatpush1.bf16.msra.mxu1 %v10307_v27  ;;  %v10484_v46 = vcombine.high %v5492_v34, %v5500_v35  ;;  %v5732_v3 = vld [vmem:[#allocation3 + $0xfb0] sm:$0xff] }
 0xfd1   :  { %8884 = vmatprep.subr.bf16.mxu1 %v10292_v55  ;;  %v5740_v27 = vld [vmem:[#allocation3 + $0xff0] sm:$0xff]  ;;  %v10468_v55 = vcombine.high %v5476_v47, %v5484_v49 }
 0xfd2   :  { %8924 = vmatpush1.bf16.msra.mxu0 %v10563_v4  ;;  %v10483_v4 = vcombine.low %v5492_v34, %v5500_v35  ;;  %v10724_v48 = vcombine.high %v5732_v3, %v5740_v27  ;;  %v5468_v8 = vld [vmem:[#allocation3 + $0x770] sm:$0xff] }
 0xfd3   :  { %8925 = vmatprep.subr.bf16.mxu0 %v10548_v6  ;;  %v5460_v6 = vld [vmem:[#allocation3 + $0x730] sm:$0xff] }
 0xfd4   :  { %8885 = vmatpush1.bf16.msra.mxu1 %v10291_v63  ;;  %v5716_v58 = vld [vmem:[#allocation3 + $0xf30] sm:$0xff]  ;;  %v10723_v63 = vcombine.low %v5732_v3, %v5740_v27  ;;  %v10451_v16 = vcombine.low %v5460_v6, %v5468_v8 }
 0xfd5   :  { %8886 = vmatprep.subr.bf16.mxu1 %v10276_v7  ;;  %v5724_v60 = vld [vmem:[#allocation3 + $0xf70] sm:$0xff] }
 0xfd6   :  { %8926 = vmatpush1.bf16.msra.mxu0 %v10547_v2  ;;  %v10452_v2 = vcombine.high %v5460_v6, %v5468_v8  ;;  %v10708_v7 = vcombine.high %v5716_v58, %v5724_v60  ;;  %v5452_v12 = vld [vmem:[#allocation3 + $0x6f0] sm:$0xff] }
 0xfd7   :  { %8927 = vmatprep.subr.bf16.mxu0 %v10532_v10  ;;  %v5444_v10 = vld [vmem:[#allocation3 + $0x6b0] sm:$0xff] }
 0xfd8   :  { %8887 = vmatpush1.bf16.msra.mxu1 %v10275_v17  ;;  %v5700_v0 = vld [vmem:[#allocation3 + $0xeb0] sm:$0xff]  ;;  %v10707_v17 = vcombine.low %v5716_v58, %v5724_v60  ;;  %v10435_v30 = vcombine.low %v5444_v10, %v5452_v12 }
 0xfd9   :  { %8888 = vmatprep.subr.bf16.mxu1 %v10260_v20  ;;  %v5708_v15 = vld [vmem:[#allocation3 + $0xef0] sm:$0xff] }
 0xfda   :  { %8928 = vmatpush1.bf16.msra.mxu0 %v10531_v19  ;;  %v10436_v19 = vcombine.high %v5444_v10, %v5452_v12  ;;  %v10692_v20 = vcombine.high %v5700_v0, %v5708_v15  ;;  %v5436_v26 = vld [vmem:[#allocation3 + $0x670] sm:$0xff] }
 0xfdb   :  { %8929 = vmatprep.subr.bf16.mxu0 %v10516_v22  ;;  %v5428_v22 = vld [vmem:[#allocation3 + $0x630] sm:$0xff] }
 0xfdc   :  { %8889 = vmatpush1.bf16.msra.mxu1 %v10259_v1  ;;  %v5684_v28 = vld [vmem:[#allocation3 + $0xe30] sm:$0xff]  ;;  %v10691_v1 = vcombine.low %v5700_v0, %v5708_v15  ;;  %v10419_v35 = vcombine.low %v5428_v22, %v5436_v26 }
 0xfdd   :  { %8890 = vmatprep.subr.bf16.mxu1 %v10244_v39  ;;  %v5692_v29 = vld [vmem:[#allocation3 + $0xe70] sm:$0xff] }
 0xfde   :  { %8930 = vmatpush1.bf16.msra.mxu0 %v10515_v5  ;;  %v10420_v5 = vcombine.high %v5428_v22, %v5436_v26  ;;  %v10676_v39 = vcombine.high %v5684_v28, %v5692_v29  ;;  %v5420_v32 = vld [vmem:[#allocation3 + $0x5f0] sm:$0xff]  ;;  %v5357_v22 = vld [vmem:[#allocation3 + $0x3f8] sm:$0xff] }
 0xfdf   :  { %8931 = vmatprep.subr.bf16.mxu0 %v10500_v44  ;;  %v5412_v44 = vld [vmem:[#allocation3 + $0x5b0] sm:$0xff]  ;;  %v5605_v26 = vld [vmem:[#allocation3 + $0xbb8] sm:$0xff] }
 0xfe0   :  { %8891 = vmatpush1.bf16.msra.mxu1 %v10243_v36  ;;  %v5668_v33 = vld [vmem:[#allocation3 + $0xdb0] sm:$0xff]  ;;  %v10675_v36 = vcombine.low %v5684_v28, %v5692_v29  ;;  %v10403_v27 = vcombine.low %v5412_v44, %v5420_v32  ;;  %v5613_v28 = vld [vmem:[#allocation3 + $0xbf8] sm:$0xff] }
 0xfe1   :  { %8892 = vmatprep.subr.bf16.mxu1 %v10228_v45  ;;  %v5676_v34 = vld [vmem:[#allocation3 + $0xdf0] sm:$0xff] }
 0xfe2   :  { %8932 = vmatpush1.bf16.msra.mxu0 %v10499_v38  ;;  %v10404_v38 = vcombine.high %v5412_v44, %v5420_v32  ;;  %v10660_v45 = vcombine.high %v5668_v33, %v5676_v34  ;;  %v5404_v47 = vld [vmem:[#allocation3 + $0x570] sm:$0xff]  ;;  %v5776_v44 = vsub.s32 7, %v12513_v9  ;;  %v5333_v32 = vld [vmem:[#allocation3 + $0x338] sm:$0xff] }
 0xfe3   :  { %8933 = vmatprep.subr.bf16.mxu0 %v10484_v46  ;;  %v5396_v46 = vld [vmem:[#allocation3 + $0x530] sm:$0xff] }
 0xfe4   :  { %8893 = vmatpush1.bf16.msra.mxu1 %v10227_v62  ;;  %v5652_v49 = vld [vmem:[#allocation3 + $0xd30] sm:$0xff]  ;;  %v10659_v62 = vcombine.low %v5668_v33, %v5676_v34  ;;  %v10387_v60 = vcombine.low %v5396_v46, %v5404_v47  ;;  %v5341_v33 = vld [vmem:[#allocation3 + $0x378] sm:$0xff] }
 0xfe5   :  { %8894 = vmatprep.subr.bf16.mxu1 %v10468_v55  ;;  %v5660_v3 = vld [vmem:[#allocation3 + $0xd70] sm:$0xff]  ;;  %v5589_v34 = vld [vmem:[#allocation3 + $0xb38] sm:$0xff] }
 0xfe6   :  { %8934 = vmatpush1.bf16.msra.mxu0 %v10483_v4  ;;  %v10388_v4 = vcombine.high %v5396_v46, %v5404_v47  ;;  %v10644_v55 = vcombine.high %v5652_v49, %v5660_v3  ;;  %v5388_v6 = vld [vmem:[#allocation3 + $0x4f0] sm:$0xff]  ;;  %v10597_v46 = vcombine.low %v5605_v26, %v5613_v28  ;;  %v10326_v47 = vcombine.high %v5333_v32, %v5341_v33 }
 0xfe7   :  { %8935 = vmatprep.subr.bf16.mxu0 %v10724_v48  ;;  %v5380_v48 = vld [vmem:[#allocation3 + $0x4b0] sm:$0xff] }
 0xfe8   :  { %8895 = vmatpush2.bf16.msra.mxu1 %v10467_v61  ;;  %v5636_v8 = vld [vmem:[#allocation3 + $0xcb0] sm:$0xff]  ;;  %v10643_v61 = vcombine.low %v5652_v49, %v5660_v3  ;;  %v10371_v15 = vcombine.low %v5380_v48, %v5388_v6 }
 0xfe9   :  { %8896 = vmatprep.subr.bf16.mxu1 %v10452_v2  ;;  %v5644_v58 = vld [vmem:[#allocation3 + $0xcf0] sm:$0xff] }
 0xfea   :  { %8936 = vmatpush2.bf16.msra.mxu0 %v10723_v63  ;;  %v10372_v63 = vcombine.high %v5380_v48, %v5388_v6  ;;  %v10628_v2 = vcombine.high %v5636_v8, %v5644_v58  ;;  %v5372_v10 = vld [vmem:[#allocation3 + $0x470] sm:$0xff]  ;;  %v5581_v48 = vld [vmem:[#allocation3 + $0xaf8] sm:$0xff] }
 0xfeb   :  { %8937 = vmatprep.subr.bf16.mxu0 %v10708_v7  ;;  %v5364_v7 = vld [vmem:[#allocation3 + $0x430] sm:$0xff] }
 0xfec   :  { %8897 = vmatpush2.bf16.msra.mxu1 %v10451_v16  ;;  %v5620_v12 = vld [vmem:[#allocation3 + $0xc30] sm:$0xff]  ;;  %v10627_v16 = vcombine.low %v5636_v8, %v5644_v58  ;;  %v10355_v29 = vcombine.low %v5364_v7, %v5372_v10  ;;  %v10325_v58 = vcombine.low %v5333_v32, %v5341_v33  ;;  %v5285_v33 = vld [vmem:[#allocation3 + $0x1b8] sm:$0xff] }
 0xfed   :  { %8898 = vmatprep.subr.bf16.mxu1 %v10436_v19  ;;  %v5628_v0 = vld [vmem:[#allocation3 + $0xc70] sm:$0xff] }
 0xfee   :  { %8938 = vmatpush2.bf16.msra.mxu0 %v10707_v17  ;;  %v10356_v17 = vcombine.high %v5364_v7, %v5372_v10  ;;  %v10612_v19 = vcombine.high %v5620_v12, %v5628_v0 }
 0xfef   :  { %8939 = vmatprep.subr.bf16.mxu0 %v10692_v20  ;;  %v5349_v20 = vld [vmem:[#allocation3 + $0x3b8] sm:$0xff] }
 0xff0   :  { %8899 = vmatpush2.bf16.msra.mxu1 %v10435_v30  ;;  %v5772_v30 = vsub.s32 6, %v12513_v9 }
 0xff1   :  { %8900 = vmatprep.subr.bf16.mxu1 %v10420_v5  ;;  %v10342_v5 = vcombine.high %v5349_v20, %v5357_v22 }
 0xff2   :  { %8940 = vmatpush2.bf16.msra.mxu0 %v10691_v1  ;;  %v10611_v1 = vcombine.low %v5620_v12, %v5628_v0  ;;  %v5301_v0 = vld [vmem:[#allocation3 + $0x238] sm:$0xff] }
 0xff3   :  { %8941 = vmatprep.subr.bf16.mxu0 %v10676_v39  ;;  %v10598_v39 = vcombine.high %v5605_v26, %v5613_v28 }
 0xff4   :  { %8901 = vmatpush2.bf16.msra.mxu1 %v10419_v35  ;;  %v5597_v35 = vld [vmem:[#allocation3 + $0xb78] sm:$0xff] }
 0xff5   :  { %8902 = vmatprep.subr.bf16.mxu1 %v10404_v38  ;;  %v10582_v3 = vcombine.high %v5589_v34, %v5597_v35 }
 0xff6   :  { %8942 = vmatpush2.bf16.msra.mxu0 %v10675_v36  ;;  %v11865_v36 = vld [vmem:[#allocation29] sm:$0xff] }
 0xff7   :  { %8943 = vmatprep.subr.bf16.mxu0 %v10660_v45  ;;  %v5773_v38 = vrot.slane %v11865_v36, %v5772_v30  ;;  %v10341_v45 = vcombine.low %v5349_v20, %v5357_v22  ;;  %v5777_v49 = vrot.slane %v11865_v36, %v5776_v44 }
 0xff8   :  { %8903 = vmatpush2.bf16.msra.mxu1 %v10403_v27  ;;  %v5317_v27 = vld [vmem:[#allocation3 + $0x2b8] sm:$0xff] }
 0xff9   :  { %8904 = vmatprep.subr.bf16.mxu1 %v10388_v4 }
 0xffa   :  { %8944 = vmatpush2.bf16.msra.mxu0 %v10659_v62  ;;  %v5325_v62 = vld [vmem:[#allocation3 + $0x2f8] sm:$0xff] }
 0xffb   :  { %8945 = vmatprep.subr.bf16.mxu0 %v10644_v55  ;;  %v5573_v55 = vld [vmem:[#allocation3 + $0xab8] sm:$0xff]  ;;  %v10309_v28 = vcombine.low %v5317_v27, %v5325_v62 }
 0xffc   :  { %8905 = vmatpush2.bf16.msra.mxu1 %v10387_v60  ;;  %v10566_v12 = vcombine.high %v5573_v55, %v5581_v48 }
 0xffd   :  { %8906 = vmatprep.subr.bf16.mxu1 %v10372_v63  ;;  %v10310_v63 = vcombine.high %v5317_v27, %v5325_v62  ;;  %v5533_v27 = vld [vmem:[#allocation3 + $0x978] sm:$0xff] }
 0xffe   :  { %8946 = vmatpush2.bf16.msra.mxu0 %v10643_v61  ;;  %v10581_v61 = vcombine.low %v5589_v34, %v5597_v35  ;;  %v5293_v34 = vld [vmem:[#allocation3 + $0x1f8] sm:$0xff] }
 0xfff   :  { %8947 = vmatprep.subr.bf16.mxu0 %v10628_v2  ;;  %v5549_v35 = vld [vmem:[#allocation3 + $0x9f8] sm:$0xff]  ;;  %v10277_v62 = vcombine.low %v5285_v33, %v5293_v34 }
0x1000   :  { %8907 = vmatpush2.bf16.msra.mxu1 %v10371_v15  ;;  %v5309_v15 = vld [vmem:[#allocation3 + $0x278] sm:$0xff] }
0x1001   :  { %8908 = vmatprep.subr.bf16.mxu1 %v10356_v17  ;;  %v5557_v17 = vld [vmem:[#allocation3 + $0xa38] sm:$0xff]  ;;  %v10293_v36 = vcombine.low %v5301_v0, %v5309_v15 }
0x1002   :  { %8948 = vmatpush2.bf16.msra.mxu0 %v10627_v16 }
0x1003   :  { %8949 = vmatprep.subr.bf16.mxu0 %v10612_v19  ;;  %v5565_v19 = vld [vmem:[#allocation3 + $0xa78] sm:$0xff] }
0x1004   :  { %8909 = vmatpush2.bf16.msra.mxu1 %v10355_v29  ;;  %v10550_v32 = vcombine.high %v5557_v17, %v5565_v19 }
0x1005   :  { %8960 = vmatprep.subr.bf16.mxu1 %v10342_v5  ;;  %v10294_v5 = vcombine.high %v5301_v0, %v5309_v15  ;;  %v5245_v0 = vld [vmem:[#allocation3 + $0x78] sm:$0xff] }
0x1006   :  { %8950 = vmatpush2.bf16.msra.mxu0 %v10611_v1  ;;  %v10565_v1 = vcombine.low %v5573_v55, %v5581_v48  ;;  %v5493_v15 = vld [vmem:[#allocation3 + $0x838] sm:$0xff] }
0x1007   :  { %9001 = vmatprep.subr.bf16.mxu0 %v10598_v39  ;;  %v8666_v4 = vpop.f32.mrf.mxu1  ;;  %8911 = vmatmul.mubr.bf16.vlgmr.msra.gmra.mxu1 %v12759_v18 }
0x1008   :  { %v8667_v6 = vadd.f32 %v8666_v4, %v5773_v38  ;;  %8961 = vmatpush1.bf16.msra.mxu1 %v10341_v45  ;;  %8992 = vmatprep.mubr.bf16.mxu1 %v12750_v50  ;;  %v10549_v38 = vcombine.low %v5557_v17, %v5565_v19  ;;  %v10278_v45 = vcombine.high %v5285_v33, %v5293_v34 }
0x1009   :  { %v8707_v8 = vpop.f32.mrf.mxu0  ;;  %8952 = vmatmul.mubr.bf16.vlgmr.msra.gmra.mxu0 %v12764_v21  ;;  %v8668_v60 = vpop.f32.mrf.mxu1  ;;  %8962 = vmatprep.subr.bf16.mxu1 %v10326_v47  ;;  %v5269_v47 = vld [vmem:[#allocation3 + $0x138] sm:$0xff] }
0x100a   :  { %9002 = vmatpush1.bf16.msra.mxu0 %v10597_v46  ;;  %v12834_v2 = vadd.f32 %v8707_v8, %v8667_v6  ;;  %v8669_v7 = vadd.f32 %v8668_v60, %v5777_v49  ;;  %9033 = vmatprep.mubr.bf16.mxu0 %v12752_v37  ;;  %v5541_v37 = vld [vmem:[#allocation3 + $0x9b8] sm:$0xff] }
0x100b   :  { %v8709_v10 = vpop.f32.mrf.mxu0  ;;  %9003 = vmatprep.subr.bf16.mxu0 %v10582_v3  ;;  %v8670_v16 = vpop.f32.mrf.mxu1  ;;  %v10534_v46 = vcombine.high %v5541_v37, %v5549_v35  ;;  %v5277_v49 = vld [vmem:[#allocation3 + $0x178] sm:$0xff]  ;;  %v10533_v4 = vcombine.low %v5541_v37, %v5549_v35 }
0x100c   :  { %v9048_v20 = vmax.f32 %v12834_v2, 0.0  ;;  %v12839_v22 = vadd.f32 %v8709_v10, %v8669_v7  ;;  %8963 = vmatpush1.bf16.msra.mxu1 %v10325_v58  ;;  %v5525_v3 = vld [vmem:[#allocation3 + $0x938] sm:$0xff]  ;;  %v10262_v55 = vcombine.high %v5269_v47, %v5277_v49 }
0x100d   :  { %v8711_v26 = vpop.f32.mrf.mxu0  ;;  %v8671_v29 = vpop.f32.mrf.mxu1  ;;  %8964 = vmatprep.subr.bf16.mxu1 %v10310_v63  ;;  %v10518_v48 = vcombine.high %v5525_v3, %v5533_v27  ;;  %v5253_v6 = vld [vmem:[#allocation3 + $0xb8] sm:$0xff]  ;;  %v10517_v63 = vcombine.low %v5525_v3, %v5533_v27 }
0x100e   :  { %9004 = vmatpush1.bf16.msra.mxu0 %v10581_v61  ;;  %v9049_v39 = vmax.f32 %v12839_v22, 0.0  ;;  %v5261_v8 = vld [vmem:[#allocation3 + $0xf8] sm:$0xff]  ;;  %v10261_v61 = vcombine.low %v5269_v47, %v5277_v49 }
0x100f   :  { %v8712_v50 = vpop.f32.mrf.mxu0  ;;  %9005 = vmatprep.subr.bf16.mxu0 %v10566_v12  ;;  %v5509_v58 = vld [vmem:[#allocation3 + $0x8b8] sm:$0xff]  ;;  %v10246_v7 = vcombine.high %v5253_v6, %v5261_v8  ;;  %v10245_v17 = vcombine.low %v5253_v6, %v5261_v8 }
0x1010   :  { %8965 = vmatpush1.bf16.msra.mxu1 %v10309_v28  ;;  %v5517_v60 = vld [vmem:[#allocation3 + $0x8f8] sm:$0xff] }
0x1011   :  { %8966 = vmatprep.subr.bf16.mxu1 %v10294_v5  ;;  %v10502_v10 = vcombine.high %v5509_v58, %v5517_v60  ;;  %v5237_v12 = vld [vmem:[#allocation3 + $0x38] sm:$0xff]  ;;  %v10501_v19 = vcombine.low %v5509_v58, %v5517_v60 }
0x1012   :  { %9006 = vmatpush1.bf16.msra.mxu0 %v10565_v1  ;;  %v5501_v16 = vld [vmem:[#allocation3 + $0x878] sm:$0xff]  ;;  %v10230_v26 = vcombine.high %v5237_v12, %v5245_v0 }
0x1013   :  { %9007 = vmatprep.subr.bf16.mxu0 %v10550_v32  ;;  %v10486_v28 = vcombine.high %v5493_v15, %v5501_v16  ;;  %v5477_v29 = vld [vmem:[#allocation3 + $0x7b8] sm:$0xff]  ;;  %v10229_v32 = vcombine.low %v5237_v12, %v5245_v0  ;;  %v10485_v33 = vcombine.low %v5493_v15, %v5501_v16 }
0x1014   :  { %8967 = vmatpush1.bf16.msra.mxu1 %v10293_v36  ;;  %v5485_v1 = vld [vmem:[#allocation3 + $0x7f8] sm:$0xff] }
0x1015   :  { %8968 = vmatprep.subr.bf16.mxu1 %v10278_v45  ;;  %v5733_v5 = vld [vmem:[#allocation3 + $0xfb8] sm:$0xff]  ;;  %v10470_v34 = vcombine.high %v5477_v29, %v5485_v1 }
0x1016   :  { %9008 = vmatpush1.bf16.msra.mxu0 %v10549_v38  ;;  %v5741_v50 = vld [vmem:[#allocation3 + $0xff8] sm:$0xff] }
0x1017   :  { %9009 = vmatprep.subr.bf16.mxu0 %v10534_v46  ;;  %v10726_v37 = vcombine.high %v5733_v5, %v5741_v50  ;;  %v5461_v35 = vld [vmem:[#allocation3 + $0x738] sm:$0xff]  ;;  %v10469_v46 = vcombine.low %v5477_v29, %v5485_v1  ;;  %v10725_v47 = vcombine.low %v5733_v5, %v5741_v50 }
0x1018   :  { %8969 = vmatpush1.bf16.msra.mxu1 %v10277_v62  ;;  %v5469_v36 = vld [vmem:[#allocation3 + $0x778] sm:$0xff] }
0x1019   :  { %8970 = vmatprep.subr.bf16.mxu1 %v10262_v55  ;;  %v5717_v38 = vld [vmem:[#allocation3 + $0xf38] sm:$0xff]  ;;  %v10454_v49 = vcombine.high %v5461_v35, %v5469_v36 }
0x101a   :  { %9010 = vmatpush1.bf16.msra.mxu0 %v10533_v4  ;;  %v5725_v45 = vld [vmem:[#allocation3 + $0xf78] sm:$0xff] }
0x101b   :  { %9011 = vmatprep.subr.bf16.mxu0 %v10518_v48  ;;  %v10710_v3 = vcombine.high %v5717_v38, %v5725_v45  ;;  %v5445_v27 = vld [vmem:[#allocation3 + $0x6b8] sm:$0xff]  ;;  %v10453_v48 = vcombine.low %v5461_v35, %v5469_v36  ;;  %v10709_v6 = vcombine.low %v5717_v38, %v5725_v45 }
0x101c   :  { %8971 = vmatpush1.bf16.msra.mxu1 %v10261_v61  ;;  %v5453_v62 = vld [vmem:[#allocation3 + $0x6f8] sm:$0xff] }
0x101d   :  { %8972 = vmatprep.subr.bf16.mxu1 %v10246_v7  ;;  %v5701_v4 = vld [vmem:[#allocation3 + $0xeb8] sm:$0xff]  ;;  %v10438_v8 = vcombine.high %v5445_v27, %v5453_v62 }
0x101e   :  { %9012 = vmatpush1.bf16.msra.mxu0 %v10517_v63  ;;  %v5709_v55 = vld [vmem:[#allocation3 + $0xef8] sm:$0xff] }
0x101f   :  { %9013 = vmatprep.subr.bf16.mxu0 %v10502_v10  ;;  %v10694_v58 = vcombine.high %v5701_v4, %v5709_v55  ;;  %v5429_v60 = vld [vmem:[#allocation3 + $0x638] sm:$0xff]  ;;  %v10437_v10 = vcombine.low %v5445_v27, %v5453_v62  ;;  %v10693_v12 = vcombine.low %v5701_v4, %v5709_v55 }
0x1020   :  { %8973 = vmatpush1.bf16.msra.mxu1 %v10245_v17  ;;  %v5437_v61 = vld [vmem:[#allocation3 + $0x678] sm:$0xff] }
0x1021   :  { %8974 = vmatprep.subr.bf16.mxu1 %v10230_v26  ;;  %v5685_v63 = vld [vmem:[#allocation3 + $0xe38] sm:$0xff]  ;;  %v10422_v0 = vcombine.high %v5429_v60, %v5437_v61 }
0x1022   :  { %9014 = vmatpush1.bf16.msra.mxu0 %v10501_v19  ;;  %v5693_v7 = vld [vmem:[#allocation3 + $0xe78] sm:$0xff] }
0x1023   :  { %9015 = vmatprep.subr.bf16.mxu0 %v10486_v28  ;;  %v10678_v15 = vcombine.high %v5685_v63, %v5693_v7  ;;  %v5413_v16 = vld [vmem:[#allocation3 + $0x5b8] sm:$0xff]  ;;  %v10421_v28 = vcombine.low %v5429_v60, %v5437_v61  ;;  %v10677_v29 = vcombine.low %v5685_v63, %v5693_v7 }
0x1024   :  { %8975 = vmatpush1.bf16.msra.mxu1 %v10229_v32  ;;  %v5421_v17 = vld [vmem:[#allocation3 + $0x5f8] sm:$0xff] }
0x1025   :  { %8976 = vmatprep.subr.bf16.mxu1 %v10470_v34  ;;  %v5669_v19 = vld [vmem:[#allocation3 + $0xdb8] sm:$0xff]  ;;  %v10406_v1 = vcombine.high %v5413_v16, %v5421_v17 }
0x1026   :  { %9016 = vmatpush1.bf16.msra.mxu0 %v10485_v33  ;;  %v5677_v26 = vld [vmem:[#allocation3 + $0xdf8] sm:$0xff] }
0x1027   :  { %9017 = vmatprep.subr.bf16.mxu0 %v10726_v37  ;;  %v10662_v5 = vcombine.high %v5669_v19, %v5677_v26  ;;  %v5397_v50 = vld [vmem:[#allocation3 + $0x538] sm:$0xff]  ;;  %v10405_v37 = vcombine.low %v5413_v16, %v5421_v17  ;;  %v10661_v35 = vcombine.low %v5669_v19, %v5677_v26 }
0x1028   :  { %8977 = vmatpush2.bf16.msra.mxu1 %v10469_v46  ;;  %v5405_v32 = vld [vmem:[#allocation3 + $0x578] sm:$0xff] }
0x1029   :  { %8978 = vmatprep.subr.bf16.mxu1 %v10454_v49  ;;  %v5653_v33 = vld [vmem:[#allocation3 + $0xd38] sm:$0xff]  ;;  %v10390_v36 = vcombine.high %v5397_v50, %v5405_v32 }
0x102a   :  { %9018 = vmatpush2.bf16.msra.mxu0 %v10725_v47  ;;  %v5661_v34 = vld [vmem:[#allocation3 + $0xd78] sm:$0xff] }
0x102b   :  { %9019 = vmatprep.subr.bf16.mxu0 %v10710_v3  ;;  %v10646_v38 = vcombine.high %v5653_v33, %v5661_v34  ;;  %v5381_v45 = vld [vmem:[#allocation3 + $0x4b8] sm:$0xff]  ;;  %v10389_v3 = vcombine.low %v5397_v50, %v5405_v32  ;;  %v10645_v27 = vcombine.low %v5653_v33, %v5661_v34 }
0x102c   :  { %8979 = vmatpush2.bf16.msra.mxu1 %v10453_v48  ;;  %v5389_v46 = vld [vmem:[#allocation3 + $0x4f8] sm:$0xff] }
0x102d   :  { %8980 = vmatprep.subr.bf16.mxu1 %v10438_v8  ;;  %v5637_v47 = vld [vmem:[#allocation3 + $0xcb8] sm:$0xff]  ;;  %v10374_v62 = vcombine.high %v5381_v45, %v5389_v46 }
0x102e   :  { %9020 = vmatpush2.bf16.msra.mxu0 %v10709_v6  ;;  %v5645_v49 = vld [vmem:[#allocation3 + $0xcf8] sm:$0xff] }
0x102f   :  { %9021 = vmatprep.subr.bf16.mxu0 %v10694_v58  ;;  %v10630_v4 = vcombine.high %v5637_v47, %v5645_v49  ;;  %v5365_v55 = vld [vmem:[#allocation3 + $0x438] sm:$0xff]  ;;  %v10373_v58 = vcombine.low %v5381_v45, %v5389_v46  ;;  %v10629_v60 = vcombine.low %v5637_v47, %v5645_v49 }
0x1030   :  { %8981 = vmatpush2.bf16.msra.mxu1 %v10437_v10  ;;  %v5373_v48 = vld [vmem:[#allocation3 + $0x478] sm:$0xff] }
0x1031   :  { %8982 = vmatprep.subr.bf16.mxu1 %v10422_v0  ;;  %v5621_v6 = vld [vmem:[#allocation3 + $0xc38] sm:$0xff]  ;;  %v10358_v61 = vcombine.high %v5365_v55, %v5373_v48  ;;  %v10357_v7 = vcombine.low %v5365_v55, %v5373_v48 }
0x1032   :  { %9022 = vmatpush2.bf16.msra.mxu0 %v10693_v12  ;;  %v5629_v8 = vld [vmem:[#allocation3 + $0xc78] sm:$0xff]  ;;  %v5743_v12 = vld [vmem:[#allocation29 + $0x8] sm:$0xff] }
0x1033   :  { %9023 = vmatprep.subr.bf16.mxu0 %v10678_v15  ;;  %v10614_v63 = vcombine.high %v5621_v6, %v5629_v8  ;;  %v10613_v10 = vcombine.low %v5621_v6, %v5629_v8  ;;  %v5781_v0 = vrot.slane %v5743_v12, %v12516_v11  ;;  %v5785_v15 = vrot.slane %v5743_v12, %v12519_v14 }
0x1034   :  { %8983 = vmatpush2.bf16.msra.mxu1 %v10421_v28  ;;  %v5801_v48 = vrot.slane %v5743_v12, %v5768_v24  ;;  %v5805_v24 = vrot.slane %v5743_v12, %v5772_v30 }
0x1035   :  { %8984 = vmatprep.subr.bf16.mxu1 %v10406_v1 }
0x1036   :  { %9024 = vmatpush2.bf16.msra.mxu0 %v10677_v29 }
0x1037   :  { %9025 = vmatprep.subr.bf16.mxu0 %v10662_v5 }
0x1038   :  { %8985 = vmatpush2.bf16.msra.mxu1 %v10405_v37  ;;  %v5793_v37 = vrot.slane %v5743_v12, %v12743_v25  ;;  %v5797_v25 = vrot.slane %v5743_v12, %v5764_v59 }
0x1039   :  { %8986 = vmatprep.subr.bf16.mxu1 %v10390_v36 }
0x103a   :  { %9026 = vmatpush2.bf16.msra.mxu0 %v10661_v35 }
0x103b   :  { %9027 = vmatprep.subr.bf16.mxu0 %v10646_v38 }
0x103c   :  { %8987 = vmatpush2.bf16.msra.mxu1 %v10389_v3 }
0x103d   :  { %8988 = vmatprep.subr.bf16.mxu1 %v10374_v62 }
0x103e   :  { %9028 = vmatpush2.bf16.msra.mxu0 %v10645_v27 }
0x103f   :  { %9029 = vmatprep.subr.bf16.mxu0 %v10630_v4 }
0x1040   :  { %8989 = vmatpush2.bf16.msra.mxu1 %v10373_v58 }
0x1041   :  { %8990 = vmatprep.subr.bf16.mxu1 %v10358_v61 }
0x1042   :  { %9030 = vmatpush2.bf16.msra.mxu0 %v10629_v60 }
0x1043   :  { %9031 = vmatprep.subr.bf16.mxu0 %v10614_v63 }
0x1044   :  { %8991 = vmatpush2.bf16.msra.mxu1 %v10357_v7 }
0x1046   :  { %9032 = vmatpush2.bf16.msra.mxu0 %v10613_v10 }
0x1047   :  { %v8748_v16 = vpop.f32.mrf.mxu1  ;;  %8993 = vmatmul.mubr.bf16.vlgmr.msra.gmra.mxu1 %v12759_v18  ;;  %v5789_v18 = vrot.slane %v5743_v12, %v12740_v23 }
0x1048   :  { %v8749_v17 = vadd.f32 %v8748_v16, %v5781_v0 }
0x1049   :  { %v8789_v19 = vpop.f32.mrf.mxu0  ;;  %9034 = vmatmul.mubr.bf16.vlgmr.msra.gmra.mxu0 %v12764_v21  ;;  %v8750_v26 = vpop.f32.mrf.mxu1 }
0x104a   :  { %v12846_v28 = vadd.f32 %v8789_v19, %v8749_v17  ;;  %v8751_v29 = vadd.f32 %v8750_v26, %v5785_v15  ;;  %v5809_v26 = vrot.slane %v5743_v12, %v5776_v44 }
0x104b   :  { %v8791_v1 = vpop.f32.mrf.mxu0  ;;  %v8752_v5 = vpop.f32.mrf.mxu1 }
0x104c   :  { %v9050_v50 = vmax.f32 %v12846_v28, 0.0  ;;  %v12849_v32 = vadd.f32 %v8791_v1, %v8751_v29 }
0x104d   :  { %v8793_v11 = vpop.f32.mrf.mxu0  ;;  %v8753_v33 = vpop.f32.mrf.mxu1 }
0x104e   :  { %v9051_v14 = vmax.f32 %v12849_v32, 0.0 }
0x104f   :  { %v8794_v34 = vpop.f32.mrf.mxu0 }
0x1087   :  { %v8830_v21 = vpop.f32.mrf.mxu1 }
0x1088   :  { %v8831_v35 = vadd.f32 %v8830_v21, %v5789_v18 }
0x1089   :  { %v8871_v36 = vpop.f32.mrf.mxu0  ;;  %v8832_v38 = vpop.f32.mrf.mxu1 }
0x108a   :  { %v12854_v45 = vadd.f32 %v8871_v36, %v8831_v35  ;;  %v8833_v46 = vadd.f32 %v8832_v38, %v5793_v37 }
0x108b   :  { %v8873_v47 = vpop.f32.mrf.mxu0  ;;  %v8834_v49 = vpop.f32.mrf.mxu1 }
0x108c   :  { %v9052_v3 = vmax.f32 %v12854_v45, 0.0  ;;  %v12857_v27 = vadd.f32 %v8873_v47, %v8833_v46 }
0x108d   :  { %v8875_v62 = vpop.f32.mrf.mxu0  ;;  %v8835_v4 = vpop.f32.mrf.mxu1 }
0x108e   :  { %v9053_v55 = vmax.f32 %v12857_v27, 0.0 }
0x108f   :  { %v8876_v23 = vpop.f32.mrf.mxu0 }
0x10c7   :  { %v8912_v6 = vpop.f32.mrf.mxu1 }
0x10c8   :  { %v8913_v8 = vadd.f32 %v8912_v6, %v5797_v25 }
0x10c9   :  { %v8953_v58 = vpop.f32.mrf.mxu0  ;;  %v8914_v60 = vpop.f32.mrf.mxu1 }
0x10ca   :  { %v12864_v61 = vadd.f32 %v8953_v58, %v8913_v8  ;;  %v8915_v63 = vadd.f32 %v8914_v60, %v5801_v48 }
0x10cb   :  { %v8955_v7 = vpop.f32.mrf.mxu0  ;;  %v8916_v10 = vpop.f32.mrf.mxu1 }
0x10cc   :  { %v9054_v0 = vmax.f32 %v12864_v61, 0.0  ;;  %v12867_v15 = vadd.f32 %v8955_v7, %v8915_v63 }
0x10cd   :  { %v8957_v16 = vpop.f32.mrf.mxu0  ;;  %v8917_v17 = vpop.f32.mrf.mxu1 }
0x10ce   :  { %v9055_v59 = vmax.f32 %v12867_v15, 0.0 }
0x10cf   :  { %v8958_v19 = vpop.f32.mrf.mxu0 }
0x1107   :  { %v8994_v29 = vpop.f32.mrf.mxu1 }
0x1108   :  { %v8995_v1 = vadd.f32 %v8994_v29, %v5805_v24 }
0x1109   :  { %v9035_v5 = vpop.f32.mrf.mxu0  ;;  %v8996_v11 = vpop.f32.mrf.mxu1 }
0x110a   :  { %v12874_v33 = vadd.f32 %v9035_v5, %v8995_v1  ;;  %v8997_v34 = vadd.f32 %v8996_v11, %v5809_v26 }
0x110b   :  { %v9037_v18 = vpop.f32.mrf.mxu0  ;;  %v8998_v37 = vpop.f32.mrf.mxu1 }
0x110c   :  { %v9056_v21 = vmax.f32 %v12874_v33, 0.0  ;;  %v12877_v35 = vadd.f32 %v9037_v18, %v8997_v34 }
0x110d   :  { %v9039_v36 = vpop.f32.mrf.mxu0  ;;  %v8999_v38 = vpop.f32.mrf.mxu1 }
0x110e   :  { %v9057_v30 = vmax.f32 %v12877_v35, 0.0 }
0x110f   :  { %v9040_v46 = vpop.f32.mrf.mxu0 }
0x1110   :  { %12270 = dma.done.wait [#allocation7 + $0x2], 32768 }
0x1111   :  { %12271 = vsyncadd [#allocation7 + $0x2], 4294934528  ;;  %9388 = vmatprep.mubr.f32.mxu1 %v9043_v56  ;;  %9458 = vmatprep.mubr.f32.mxu0 %v9045_v52  ;;  %v9092_v9 = vld [vmem:[#allocation4 + $0xf8] sm:$0xff]  ;;  %v9091_v49 = vld [vmem:[#allocation4 + $0xf0] sm:$0xff]  ;;  %vm9884_vm4 = vcmask 1041408   ;;  %s12301_s17 = smov [#allocation32]  }
0x1112   :  { %v9124_v44 = vld [vmem:[#allocation4 + $0x1f8] sm:$0xff]  ;;  %10843 = vmatprep.subr.mxu1 %v9092_v9  ;;  %v9123_v62 = vld [vmem:[#allocation4 + $0x1f0] sm:$0xff]  ;;  %v9090_v25 = vld [vmem:[#allocation4 + $0xe8] sm:$0xff]  ;;  %s9904_s18 = sshll.u32 %s12301_s17, 4  ;;  %s9905_s18 = int_to_ptr.vmem [resolvable:$true] %s9904_s18 }
0x1113   :  { %v9076_v12 = vld [vmem:[#allocation4 + $0x78] sm:$0xff]  ;;  %10878 = vmatprep.subr.mxu0 %v9124_v44  ;;  %v9075_v4 = vld [vmem:[#allocation4 + $0x70] sm:$0xff]  ;;  %v9122_v54 = vld [vmem:[#allocation4 + $0x1e8] sm:$0xff]  ;;  %s12230_s0 = scalar_lea.vmem %s9905_s18, 32  ;;  %p12235_p7 = scmp.lt.s32.totalorder %s9905_s18, %s9905_s18 }
0x1114   :  { %v9108_v47 = vld [vmem:[#allocation4 + $0x178] sm:$0xff]  ;;  %10844 = vmatpush3.msra.mxu1 %v9076_v12  ;;  %v9107_v23 = vld [vmem:[#allocation4 + $0x170] sm:$0xff]  ;;  %v9074_v56 = vld [vmem:[#allocation4 + $0x68] sm:$0xff]  ;;  %p12231_p6 = scmp.ne.s32.totalorder %s9905_s18, %s12230_s0  ;;  %p12236_p8 = scmp.lt.s32.totalorder %s12230_s0, %s12230_s0 }
0x1115   :  { %10879 = vmatpush3.msra.mxu0 %v9108_v47  ;;  %10845 = vmatprep.subr.mxu1 %v9091_v49  ;;  %v9106_v48 = vld [vmem:[#allocation4 + $0x168] sm:$0xff]  ;;  %v9089_v43 = vld [vmem:[#allocation4 + $0xe0] sm:$0xff]  ;;  %v9088_v58 = vld [vmem:[#allocation4 + $0xd8] sm:$0xff] }
0x1116   :  { %10880 = vmatprep.subr.mxu0 %v9123_v62  ;;  %10846 = vmatpush3.msra.mxu1 %v9075_v4  ;;  %v9121_v52 = vld [vmem:[#allocation4 + $0x1e0] sm:$0xff]  ;;  %v9120_v60 = vld [vmem:[#allocation4 + $0x1d8] sm:$0xff]  ;;  %v9087_v10 = vld [vmem:[#allocation4 + $0xd0] sm:$0xff]  ;;  %p12237_p9 = por %p12236_p8, %p12235_p7 }
0x1117   :  { %10881 = vmatpush3.msra.mxu0 %v9107_v23  ;;  %10847 = vmatprep.subr.mxu1 %v9090_v25  ;;  %v9073_v6 = vld [vmem:[#allocation4 + $0x60] sm:$0xff]  ;;  %v9072_v63 = vld [vmem:[#allocation4 + $0x58] sm:$0xff]  ;;  %v9119_v16 = vld [vmem:[#allocation4 + $0x1d0] sm:$0xff] }
0x1118   :  { %10882 = vmatprep.subr.mxu0 %v9122_v54  ;;  %v9105_v8 = vld [vmem:[#allocation4 + $0x160] sm:$0xff]  ;;  %10848 = vmatpush3.msra.mxu1 %v9074_v56  ;;  %v9104_v7 = vld [vmem:[#allocation4 + $0x158] sm:$0xff]  ;;  %v9071_v17 = vld [vmem:[#allocation4 + $0x50] sm:$0xff]  ;;  %p12238_p10 = pnand %p12237_p9, %p12231_p6 }
0x1119   :  { %10883 = vmatpush3.msra.mxu0 %v9106_v48  ;;  %10849 = vmatprep.subr.mxu1 %v9089_v43  ;;  %v9103_v19 = vld [vmem:[#allocation4 + $0x150] sm:$0xff]  ;;  %v9086_v24 = vld [vmem:[#allocation4 + $0xc8] sm:$0xff]  ;;  %v9085_v5 = vld [vmem:[#allocation4 + $0xc0] sm:$0xff] }
0x111a   :  { %10884 = vmatprep.subr.mxu0 %v9121_v52  ;;  %10850 = vmatpush3.msra.mxu1 %v9073_v6  ;;  %v9118_v26 = vld [vmem:[#allocation4 + $0x1c8] sm:$0xff]  ;;  %v9117_v11 = vld [vmem:[#allocation4 + $0x1c0] sm:$0xff]  ;;  %v9084_v37 = vld [vmem:[#allocation4 + $0xb8] sm:$0xff] }
0x111b   :  { %10885 = vmatpush3.msra.mxu0 %v9105_v8  ;;  %10851 = vmatprep.subr.mxu1 %v9088_v58  ;;  %v9070_v29 = vld [vmem:[#allocation4 + $0x48] sm:$0xff]  ;;  %v9069_v34 = vld [vmem:[#allocation4 + $0x40] sm:$0xff]  ;;  %v9116_v36 = vld [vmem:[#allocation4 + $0x1b8] sm:$0xff] }
0x111c   :  { %10886 = vmatprep.subr.mxu0 %v9120_v60  ;;  %10852 = vmatpush3.msra.mxu1 %v9072_v63  ;;  %v9102_v1 = vld [vmem:[#allocation4 + $0x148] sm:$0xff]  ;;  %v9101_v18 = vld [vmem:[#allocation4 + $0x140] sm:$0xff]  ;;  %v9068_v38 = vld [vmem:[#allocation4 + $0x38] sm:$0xff] }
0x111d   :  { %10887 = vmatpush3.msra.mxu0 %v9104_v7  ;;  %10853 = vmatprep.subr.mxu1 %v9087_v10  ;;  %v9100_v46 = vld [vmem:[#allocation4 + $0x138] sm:$0xff]  ;;  %v9083_v9 = vld [vmem:[#allocation4 + $0xb0] sm:$0xff]  ;;  %v9082_v49 = vld [vmem:[#allocation4 + $0xa8] sm:$0xff] }
0x111e   :  { %10888 = vmatprep.subr.mxu0 %v9119_v16  ;;  %10854 = vmatpush3.msra.mxu1 %v9071_v17  ;;  %v9115_v44 = vld [vmem:[#allocation4 + $0x1b0] sm:$0xff]  ;;  %v9114_v62 = vld [vmem:[#allocation4 + $0x1a8] sm:$0xff]  ;;  %v9081_v25 = vld [vmem:[#allocation4 + $0xa0] sm:$0xff] }
0x111f   :  { %10889 = vmatpush3.msra.mxu0 %v9103_v19  ;;  %10855 = vmatprep.subr.mxu1 %v9086_v24  ;;  %v9067_v12 = vld [vmem:[#allocation4 + $0x30] sm:$0xff]  ;;  %v9066_v4 = vld [vmem:[#allocation4 + $0x28] sm:$0xff]  ;;  %v9113_v54 = vld [vmem:[#allocation4 + $0x1a0] sm:$0xff] }
0x1120   :  { %10890 = vmatprep.subr.mxu0 %v9118_v26  ;;  %10856 = vmatpush3.msra.mxu1 %v9070_v29  ;;  %v9099_v47 = vld [vmem:[#allocation4 + $0x130] sm:$0xff]  ;;  %v9098_v23 = vld [vmem:[#allocation4 + $0x128] sm:$0xff]  ;;  %v9065_v56 = vld [vmem:[#allocation4 + $0x20] sm:$0xff] }
0x1121   :  { %10891 = vmatpush3.msra.mxu0 %v9102_v1  ;;  %10857 = vmatprep.subr.mxu1 %v9085_v5  ;;  %v9097_v48 = vld [vmem:[#allocation4 + $0x120] sm:$0xff]  ;;  %v9080_v43 = vld [vmem:[#allocation4 + $0x98] sm:$0xff]  ;;  %v9079_v58 = vld [vmem:[#allocation4 + $0x90] sm:$0xff] }
0x1122   :  { %10892 = vmatprep.subr.mxu0 %v9117_v11  ;;  %10858 = vmatpush3.msra.mxu1 %v9069_v34  ;;  %v9112_v52 = vld [vmem:[#allocation4 + $0x198] sm:$0xff]  ;;  %v9111_v60 = vld [vmem:[#allocation4 + $0x190] sm:$0xff]  ;;  %v9078_v10 = vld [vmem:[#allocation4 + $0x88] sm:$0xff] }
0x1123   :  { %10893 = vmatpush3.msra.mxu0 %v9101_v18  ;;  %10859 = vmatprep.subr.mxu1 %v9084_v37  ;;  %v9064_v6 = vld [vmem:[#allocation4 + $0x18] sm:$0xff]  ;;  %v9063_v63 = vld [vmem:[#allocation4 + $0x10] sm:$0xff]  ;;  %v9110_v16 = vld [vmem:[#allocation4 + $0x188] sm:$0xff] }
0x1124   :  { %10894 = vmatprep.subr.mxu0 %v9116_v36  ;;  %10860 = vmatpush3.msra.mxu1 %v9068_v38  ;;  %v9096_v8 = vld [vmem:[#allocation4 + $0x118] sm:$0xff]  ;;  %v9095_v7 = vld [vmem:[#allocation4 + $0x110] sm:$0xff]  ;;  %v9062_v17 = vld [vmem:[#allocation4 + $0x8] sm:$0xff] }
0x1125   :  { %10895 = vmatpush3.msra.mxu0 %v9100_v46  ;;  %10861 = vmatprep.subr.mxu1 %v9083_v9  ;;  %v9094_v19 = vld [vmem:[#allocation4 + $0x108] sm:$0xff]  ;;  %v9077_v24 = vld [vmem:[#allocation4 + $0x80] sm:$0xff]  ;;  %v9156_v5 = vld [vmem:[#allocation4 + $0x2f8] sm:$0xff] }
0x1126   :  { %10896 = vmatprep.subr.mxu0 %v9115_v44  ;;  %10862 = vmatpush3.msra.mxu1 %v9067_v12  ;;  %v9109_v26 = vld [vmem:[#allocation4 + $0x180] sm:$0xff]  ;;  %v9188_v11 = vld [vmem:[#allocation4 + $0x3f8] sm:$0xff]  ;;  %v9155_v37 = vld [vmem:[#allocation4 + $0x2f0] sm:$0xff] }
0x1127   :  { %10897 = vmatpush3.msra.mxu0 %v9099_v47  ;;  %10863 = vmatprep.subr.mxu1 %v9082_v49  ;;  %v9061_v29 = vld [vmem:[#allocation4] sm:$0xff]  ;;  %v9140_v34 = vld [vmem:[#allocation4 + $0x278] sm:$0xff]  ;;  %v9187_v36 = vld [vmem:[#allocation4 + $0x3f0] sm:$0xff] }
0x1128   :  { %10898 = vmatprep.subr.mxu0 %v9114_v62  ;;  %10864 = vmatpush3.msra.mxu1 %v9066_v4  ;;  %v9093_v1 = vld [vmem:[#allocation4 + $0x100] sm:$0xff]  ;;  %v9172_v18 = vld [vmem:[#allocation4 + $0x378] sm:$0xff]  ;;  %v9139_v38 = vld [vmem:[#allocation4 + $0x270] sm:$0xff] }
0x1129   :  { %10899 = vmatpush3.msra.mxu0 %v9098_v23  ;;  %10865 = vmatprep.subr.mxu1 %v9081_v25  ;;  %v9171_v46 = vld [vmem:[#allocation4 + $0x370] sm:$0xff]  ;;  %v9154_v9 = vld [vmem:[#allocation4 + $0x2e8] sm:$0xff]  ;;  %v9153_v41 = vld [vmem:[#allocation4 + $0x2e0] sm:$0xff] }
0x112a   :  { %10900 = vmatprep.subr.mxu0 %v9113_v54  ;;  %10866 = vmatpush3.msra.mxu1 %v9065_v56  ;;  %v9186_v44 = vld [vmem:[#allocation4 + $0x3e8] sm:$0xff]  ;;  %v9137_v49 = vld [vmem:[#allocation4 + $0x260] sm:$0xff]  ;;  %v9152_v31 = vld [vmem:[#allocation4 + $0x2d8] sm:$0xff] }
0x112b   :  { %10901 = vmatpush3.msra.mxu0 %v9097_v48  ;;  %10867 = vmatprep.subr.mxu1 %v9080_v43  ;;  %v9138_v12 = vld [vmem:[#allocation4 + $0x268] sm:$0xff]  ;;  %v9169_v62 = vld [vmem:[#allocation4 + $0x360] sm:$0xff]  ;;  %v9136_v4 = vld [vmem:[#allocation4 + $0x258] sm:$0xff] }
0x112c   :  { %10902 = vmatprep.subr.mxu0 %v9112_v52  ;;  %10868 = vmatpush3.msra.mxu1 %v9064_v6  ;;  %v9170_v47 = vld [vmem:[#allocation4 + $0x368] sm:$0xff]  ;;  %v9168_v23 = vld [vmem:[#allocation4 + $0x358] sm:$0xff]  ;;  %v9151_v25 = vld [vmem:[#allocation4 + $0x2d0] sm:$0xff] }
0x112d   :  { %10903 = vmatpush3.msra.mxu0 %v9096_v8  ;;  %10869 = vmatprep.subr.mxu1 %v9079_v58  ;;  %v9183_v54 = vld [vmem:[#allocation4 + $0x3d0] sm:$0xff]  ;;  %v9150_v43 = vld [vmem:[#allocation4 + $0x2c8] sm:$0xff]  ;;  %v9149_v58 = vld [vmem:[#allocation4 + $0x2c0] sm:$0xff] }
0x112e   :  { %10904 = vmatprep.subr.mxu0 %v9111_v60  ;;  %10870 = vmatpush3.msra.mxu1 %v9063_v63  ;;  %v9135_v56 = vld [vmem:[#allocation4 + $0x250] sm:$0xff]  ;;  %v9182_v52 = vld [vmem:[#allocation4 + $0x3c8] sm:$0xff]  ;;  %v9181_v60 = vld [vmem:[#allocation4 + $0x3c0] sm:$0xff] }
0x112f   :  { %10905 = vmatpush3.msra.mxu0 %v9095_v7  ;;  %10871 = vmatprep.subr.mxu1 %v9078_v10  ;;  %v9167_v48 = vld [vmem:[#allocation4 + $0x350] sm:$0xff]  ;;  %v9134_v6 = vld [vmem:[#allocation4 + $0x248] sm:$0xff]  ;;  %v9133_v63 = vld [vmem:[#allocation4 + $0x240] sm:$0xff] }
0x1130   :  { %10906 = vmatprep.subr.mxu0 %v9110_v16  ;;  %10872 = vmatpush3.msra.mxu1 %v9062_v17  ;;  %v9166_v8 = vld [vmem:[#allocation4 + $0x348] sm:$0xff]  ;;  %v9165_v7 = vld [vmem:[#allocation4 + $0x340] sm:$0xff]  ;;  %v9148_v10 = vld [vmem:[#allocation4 + $0x2b8] sm:$0xff] }
0x1131   :  { %10907 = vmatpush3.msra.mxu0 %v9094_v19  ;;  %10873 = vmatprep.subr.mxu1 %v9077_v24  ;;  %v9180_v16 = vld [vmem:[#allocation4 + $0x3b8] sm:$0xff]  ;;  %v9147_v24 = vld [vmem:[#allocation4 + $0x2b0] sm:$0xff]  ;;  %v9202_v13 = vld [vmem:[#allocation4 + $0x468] sm:$0xff] }
0x1132   :  { %10908 = vmatprep.subr.mxu0 %v9109_v26  ;;  %10874 = vmatpush3.msra.mxu1 %v9061_v29  ;;  %v9132_v17 = vld [vmem:[#allocation4 + $0x238] sm:$0xff]  ;;  %v9179_v26 = vld [vmem:[#allocation4 + $0x3b0] sm:$0xff]  ;;  %v9217_v22 = vld [vmem:[#allocation4 + $0x4e0] sm:$0xff] }
0x1133   :  { %10909 = vmatpush3.msra.mxu0 %v9093_v1  ;;  %9389 = vmatmul.mubr.f32.vlgmr.msra.gmra.mxu1 %v9042_v53  ;;  %v9185_v53 = vld [vmem:[#allocation4 + $0x3e0] sm:$0xff]  ;;  %v9164_v19 = vld [vmem:[#allocation4 + $0x338] sm:$0xff]  ;;  %v9131_v29 = vld [vmem:[#allocation4 + $0x230] sm:$0xff] }
0x1134   :  { %10913 = vmatprep.subr.mxu1 %v9156_v5  ;;  %10948 = vmatprep.subr.mxu0 %v9188_v11  ;;  %v9163_v1 = vld [vmem:[#allocation4 + $0x330] sm:$0xff]  ;;  %v9146_v5 = vld [vmem:[#allocation4 + $0x2a8] sm:$0xff]  ;;  %v9216_v2 = vld [vmem:[#allocation4 + $0x4d8] sm:$0xff] }
0x1135   :  { %9459 = vmatmul.mubr.f32.vlgmr.msra.gmra.mxu0 %v9044_v40  ;;  %10914 = vmatpush3.msra.mxu1 %v9140_v34  ;;  %v9184_v40 = vld [vmem:[#allocation4 + $0x3d8] sm:$0xff]  ;;  %v9178_v11 = vld [vmem:[#allocation4 + $0x3a8] sm:$0xff]  ;;  %v9235_v42 = vld [vmem:[#allocation4 + $0x570] sm:$0xff] }
0x1136   :  { %10949 = vmatpush3.msra.mxu0 %v9172_v18  ;;  %10915 = vmatprep.subr.mxu1 %v9155_v37  ;;  %v9130_v34 = vld [vmem:[#allocation4 + $0x228] sm:$0xff]  ;;  %v9145_v37 = vld [vmem:[#allocation4 + $0x2a0] sm:$0xff]  ;;  %v9299_v32 = vld [vmem:[#allocation4 + $0x770] sm:$0xff] }
0x1137   :  { %10950 = vmatprep.subr.mxu0 %v9187_v36  ;;  %10916 = vmatpush3.msra.mxu1 %v9139_v38  ;;  %v9162_v18 = vld [vmem:[#allocation4 + $0x328] sm:$0xff]  ;;  %v9177_v36 = vld [vmem:[#allocation4 + $0x3a0] sm:$0xff]  ;;  %v9280_v45 = vld [vmem:[#allocation4 + $0x6d8] sm:$0xff] }
0x1138   :  { %10951 = vmatpush3.msra.mxu0 %v9171_v46  ;;  %10917 = vmatprep.subr.mxu1 %v9154_v9  ;;  %v9129_v38 = vld [vmem:[#allocation4 + $0x220] sm:$0xff]  ;;  %v9144_v9 = vld [vmem:[#allocation4 + $0x298] sm:$0xff]  ;;  %v9266_v28 = vld [vmem:[#allocation4 + $0x668] sm:$0xff] }
0x1139   :  { %10952 = vmatprep.subr.mxu0 %v9186_v44  ;;  %10918 = vmatpush3.msra.mxu1 %v9138_v12  ;;  %v9161_v46 = vld [vmem:[#allocation4 + $0x320] sm:$0xff]  ;;  %v9176_v44 = vld [vmem:[#allocation4 + $0x398] sm:$0xff] }
0x113a   :  { %10953 = vmatpush3.msra.mxu0 %v9170_v47  ;;  %10919 = vmatprep.subr.mxu1 %v9153_v41  ;;  %v9128_v12 = vld [vmem:[#allocation4 + $0x218] sm:$0xff]  ;;  %v9143_v41 = vld [vmem:[#allocation4 + $0x290] sm:$0xff]  ;;  %v9281_v27 = vld [vmem:[#allocation4 + $0x6e0] sm:$0xff] }
0x113b   :  { %10954 = vmatprep.subr.mxu0 %v9185_v53  ;;  %10920 = vmatpush3.msra.mxu1 %v9137_v49  ;;  %v9160_v47 = vld [vmem:[#allocation4 + $0x318] sm:$0xff]  ;;  %v9175_v53 = vld [vmem:[#allocation4 + $0x390] sm:$0xff] }
0x113c   :  { %10955 = vmatpush3.msra.mxu0 %v9169_v62  ;;  %10921 = vmatprep.subr.mxu1 %v9152_v31  ;;  %v9127_v49 = vld [vmem:[#allocation4 + $0x210] sm:$0xff]  ;;  %v9142_v31 = vld [vmem:[#allocation4 + $0x288] sm:$0xff] }
0x113d   :  { %10956 = vmatprep.subr.mxu0 %v9184_v40  ;;  %10922 = vmatpush3.msra.mxu1 %v9136_v4  ;;  %v9159_v62 = vld [vmem:[#allocation4 + $0x310] sm:$0xff]  ;;  %v9174_v40 = vld [vmem:[#allocation4 + $0x388] sm:$0xff] }
0x113e   :  { %10957 = vmatpush3.msra.mxu0 %v9168_v23  ;;  %10923 = vmatprep.subr.mxu1 %v9151_v25  ;;  %v9126_v4 = vld [vmem:[#allocation4 + $0x208] sm:$0xff]  ;;  %v9141_v25 = vld [vmem:[#allocation4 + $0x280] sm:$0xff] }
0x113f   :  { %10958 = vmatprep.subr.mxu0 %v9183_v54  ;;  %10924 = vmatpush3.msra.mxu1 %v9135_v56  ;;  %v9158_v23 = vld [vmem:[#allocation4 + $0x308] sm:$0xff]  ;;  %v9173_v54 = vld [vmem:[#allocation4 + $0x380] sm:$0xff] }
0x1140   :  { %10959 = vmatpush3.msra.mxu0 %v9167_v48  ;;  %10925 = vmatprep.subr.mxu1 %v9150_v43  ;;  %v9125_v56 = vld [vmem:[#allocation4 + $0x200] sm:$0xff]  ;;  %v9220_v43 = vld [vmem:[#allocation4 + $0x4f8] sm:$0xff] }
0x1141   :  { %10960 = vmatprep.subr.mxu0 %v9182_v52  ;;  %10926 = vmatpush3.msra.mxu1 %v9134_v6  ;;  %v9157_v48 = vld [vmem:[#allocation4 + $0x300] sm:$0xff]  ;;  %v9252_v52 = vld [vmem:[#allocation4 + $0x5f8] sm:$0xff] }
0x1142   :  { %10961 = vmatpush3.msra.mxu0 %v9166_v8  ;;  %10927 = vmatprep.subr.mxu1 %v9149_v58  ;;  %v9204_v6 = vld [vmem:[#allocation4 + $0x478] sm:$0xff]  ;;  %v9219_v58 = vld [vmem:[#allocation4 + $0x4f0] sm:$0xff] }
0x1143   :  { %10962 = vmatprep.subr.mxu0 %v9181_v60  ;;  %10928 = vmatpush3.msra.mxu1 %v9133_v63  ;;  %v9236_v8 = vld [vmem:[#allocation4 + $0x578] sm:$0xff]  ;;  %v9251_v60 = vld [vmem:[#allocation4 + $0x5f0] sm:$0xff] }
0x1144   :  { %10963 = vmatpush3.msra.mxu0 %v9165_v7  ;;  %10929 = vmatprep.subr.mxu1 %v9148_v10  ;;  %v9203_v63 = vld [vmem:[#allocation4 + $0x470] sm:$0xff]  ;;  %v9250_v7 = vld [vmem:[#allocation4 + $0x5e8] sm:$0xff]  ;;  %v9201_v10 = vld [vmem:[#allocation4 + $0x460] sm:$0xff] }
0x1145   :  { %10964 = vmatprep.subr.mxu0 %v9180_v16  ;;  %10930 = vmatpush3.msra.mxu1 %v9132_v17  ;;  %v9233_v16 = vld [vmem:[#allocation4 + $0x560] sm:$0xff]  ;;  %v9200_v17 = vld [vmem:[#allocation4 + $0x458] sm:$0xff] }
0x1146   :  { %10965 = vmatpush3.msra.mxu0 %v9164_v19  ;;  %10931 = vmatprep.subr.mxu1 %v9147_v24  ;;  %v9232_v19 = vld [vmem:[#allocation4 + $0x558] sm:$0xff]  ;;  %v9215_v24 = vld [vmem:[#allocation4 + $0x4d0] sm:$0xff] }
0x1147   :  { %10966 = vmatprep.subr.mxu0 %v9179_v26  ;;  %10932 = vmatpush3.msra.mxu1 %v9131_v29  ;;  %v9247_v26 = vld [vmem:[#allocation4 + $0x5d0] sm:$0xff] }
0x1148   :  { %10967 = vmatpush3.msra.mxu0 %v9163_v1  ;;  %10933 = vmatprep.subr.mxu1 %v9146_v5  ;;  %v9199_v29 = vld [vmem:[#allocation4 + $0x450] sm:$0xff]  ;;  %v9214_v5 = vld [vmem:[#allocation4 + $0x4c8] sm:$0xff] }
0x1149   :  { %10968 = vmatprep.subr.mxu0 %v9178_v11  ;;  %10934 = vmatpush3.msra.mxu1 %v9130_v34  ;;  %v9231_v1 = vld [vmem:[#allocation4 + $0x550] sm:$0xff]  ;;  %v9246_v11 = vld [vmem:[#allocation4 + $0x5c8] sm:$0xff] }
0x114a   :  { %10969 = vmatpush3.msra.mxu0 %v9162_v18  ;;  %10935 = vmatprep.subr.mxu1 %v9145_v37  ;;  %v9198_v34 = vld [vmem:[#allocation4 + $0x448] sm:$0xff]  ;;  %v9213_v37 = vld [vmem:[#allocation4 + $0x4c0] sm:$0xff] }
0x114b   :  { %10970 = vmatprep.subr.mxu0 %v9177_v36  ;;  %10936 = vmatpush3.msra.mxu1 %v9129_v38  ;;  %v9230_v18 = vld [vmem:[#allocation4 + $0x548] sm:$0xff]  ;;  %v9245_v36 = vld [vmem:[#allocation4 + $0x5c0] sm:$0xff] }
0x114c   :  { %10971 = vmatpush3.msra.mxu0 %v9161_v46  ;;  %10937 = vmatprep.subr.mxu1 %v9144_v9  ;;  %v9197_v38 = vld [vmem:[#allocation4 + $0x440] sm:$0xff]  ;;  %v9212_v9 = vld [vmem:[#allocation4 + $0x4b8] sm:$0xff] }
0x114d   :  { %10972 = vmatprep.subr.mxu0 %v9176_v44  ;;  %10938 = vmatpush3.msra.mxu1 %v9128_v12  ;;  %v9229_v46 = vld [vmem:[#allocation4 + $0x540] sm:$0xff]  ;;  %v9244_v44 = vld [vmem:[#allocation4 + $0x5b8] sm:$0xff] }
0x114e   :  { %10973 = vmatpush3.msra.mxu0 %v9160_v47  ;;  %10939 = vmatprep.subr.mxu1 %v9143_v41  ;;  %v9196_v12 = vld [vmem:[#allocation4 + $0x438] sm:$0xff]  ;;  %v9211_v41 = vld [vmem:[#allocation4 + $0x4b0] sm:$0xff] }
0x114f   :  { %10974 = vmatprep.subr.mxu0 %v9175_v53  ;;  %10940 = vmatpush3.msra.mxu1 %v9127_v49  ;;  %v9228_v47 = vld [vmem:[#allocation4 + $0x538] sm:$0xff]  ;;  %v9243_v53 = vld [vmem:[#allocation4 + $0x5b0] sm:$0xff] }
0x1150   :  { %10975 = vmatpush3.msra.mxu0 %v9159_v62  ;;  %10941 = vmatprep.subr.mxu1 %v9142_v31  ;;  %v9195_v49 = vld [vmem:[#allocation4 + $0x430] sm:$0xff]  ;;  %v9210_v31 = vld [vmem:[#allocation4 + $0x4a8] sm:$0xff] }
0x1151   :  { %10976 = vmatprep.subr.mxu0 %v9174_v40  ;;  %10942 = vmatpush3.msra.mxu1 %v9126_v4  ;;  %v9227_v62 = vld [vmem:[#allocation4 + $0x530] sm:$0xff]  ;;  %v9242_v40 = vld [vmem:[#allocation4 + $0x5a8] sm:$0xff] }
0x1152   :  { %10977 = vmatpush3.msra.mxu0 %v9158_v23  ;;  %10943 = vmatprep.subr.mxu1 %v9141_v25  ;;  %v9194_v4 = vld [vmem:[#allocation4 + $0x428] sm:$0xff]  ;;  %v9209_v25 = vld [vmem:[#allocation4 + $0x4a0] sm:$0xff] }
0x1153   :  { %10978 = vmatprep.subr.mxu0 %v9173_v54  ;;  %10944 = vmatpush3.msra.mxu1 %v9125_v56  ;;  %v9226_v23 = vld [vmem:[#allocation4 + $0x528] sm:$0xff]  ;;  %v9241_v54 = vld [vmem:[#allocation4 + $0x5a0] sm:$0xff] }
0x1154   :  { %9528 = vmatprep.mubr.f32.mxu1 %v9047_v57  ;;  %10979 = vmatpush3.msra.mxu0 %v9157_v48  ;;  %v9218_v57 = vld [vmem:[#allocation4 + $0x4e8] sm:$0xff]  ;;  %v9193_v56 = vld [vmem:[#allocation4 + $0x420] sm:$0xff] }
0x1155   :  { %9529 = vmatmul.mubr.f32.vlgmr.msra.gmra.mxu1 %v9046_v51  ;;  %9598 = vmatprep.mubr.f32.mxu0 %v9049_v39  ;;  %v9234_v51 = vld [vmem:[#allocation4 + $0x568] sm:$0xff]  ;;  %v9249_v39 = vld [vmem:[#allocation4 + $0x5e0] sm:$0xff] }
0x1156   :  { %10983 = vmatprep.subr.mxu1 %v9220_v43  ;;  %11018 = vmatprep.subr.mxu0 %v9252_v52  ;;  %v9225_v48 = vld [vmem:[#allocation4 + $0x520] sm:$0xff]  ;;  %v9208_v43 = vld [vmem:[#allocation4 + $0x498] sm:$0xff] }
0x1157   :  { %9599 = vmatmul.mubr.f32.vlgmr.msra.gmra.mxu0 %v9048_v20  ;;  %10984 = vmatpush3.msra.mxu1 %v9204_v6  ;;  %v9248_v20 = vld [vmem:[#allocation4 + $0x5d8] sm:$0xff] }
0x1158   :  { %11019 = vmatpush3.msra.mxu0 %v9236_v8  ;;  %10985 = vmatprep.subr.mxu1 %v9219_v58  ;;  %v9240_v52 = vld [vmem:[#allocation4 + $0x598] sm:$0xff]  ;;  %v9207_v58 = vld [vmem:[#allocation4 + $0x490] sm:$0xff] }
0x1159   :  { %11020 = vmatprep.subr.mxu0 %v9251_v60  ;;  %10986 = vmatpush3.msra.mxu1 %v9203_v63  ;;  %v9192_v6 = vld [vmem:[#allocation4 + $0x418] sm:$0xff]  ;;  %v9239_v60 = vld [vmem:[#allocation4 + $0x590] sm:$0xff] }
0x115a   :  { %11021 = vmatpush3.msra.mxu0 %v9235_v42  ;;  %10987 = vmatprep.subr.mxu1 %v9218_v57  ;;  %v9224_v8 = vld [vmem:[#allocation4 + $0x518] sm:$0xff]  ;;  %v9191_v63 = vld [vmem:[#allocation4 + $0x410] sm:$0xff]  ;;  %v9206_v57 = vld [vmem:[#allocation4 + $0x488] sm:$0xff] }
0x115b   :  { %11022 = vmatprep.subr.mxu0 %v9250_v7  ;;  %10988 = vmatpush3.msra.mxu1 %v9202_v13  ;;  %v9223_v42 = vld [vmem:[#allocation4 + $0x510] sm:$0xff]  ;;  %v9238_v7 = vld [vmem:[#allocation4 + $0x588] sm:$0xff] }
0x115c   :  { %11023 = vmatpush3.msra.mxu0 %v9234_v51  ;;  %10989 = vmatprep.subr.mxu1 %v9217_v22  ;;  %v9190_v13 = vld [vmem:[#allocation4 + $0x408] sm:$0xff]  ;;  %v9205_v22 = vld [vmem:[#allocation4 + $0x480] sm:$0xff] }
0x115d   :  { %11024 = vmatprep.subr.mxu0 %v9249_v39  ;;  %10990 = vmatpush3.msra.mxu1 %v9201_v10  ;;  %v9222_v51 = vld [vmem:[#allocation4 + $0x508] sm:$0xff]  ;;  %v9237_v39 = vld [vmem:[#allocation4 + $0x580] sm:$0xff] }
0x115e   :  { %11025 = vmatpush3.msra.mxu0 %v9233_v16  ;;  %10991 = vmatprep.subr.mxu1 %v9216_v2  ;;  %v9189_v10 = vld [vmem:[#allocation4 + $0x400] sm:$0xff]  ;;  %v9284_v2 = vld [vmem:[#allocation4 + $0x6f8] sm:$0xff] }
0x115f   :  { %11026 = vmatprep.subr.mxu0 %v9248_v20  ;;  %10992 = vmatpush3.msra.mxu1 %v9200_v17  ;;  %v9221_v16 = vld [vmem:[#allocation4 + $0x500] sm:$0xff]  ;;  %v9316_v20 = vld [vmem:[#allocation4 + $0x7f8] sm:$0xff] }
0x1160   :  { %11027 = vmatpush3.msra.mxu0 %v9232_v19  ;;  %10993 = vmatprep.subr.mxu1 %v9215_v24  ;;  %v9268_v17 = vld [vmem:[#allocation4 + $0x678] sm:$0xff]  ;;  %v9283_v24 = vld [vmem:[#allocation4 + $0x6f0] sm:$0xff] }
0x1161   :  { %11028 = vmatprep.subr.mxu0 %v9247_v26  ;;  %10994 = vmatpush3.msra.mxu1 %v9199_v29  ;;  %v9300_v19 = vld [vmem:[#allocation4 + $0x778] sm:$0xff]  ;;  %v9315_v26 = vld [vmem:[#allocation4 + $0x7f0] sm:$0xff] }
0x1162   :  { %11029 = vmatpush3.msra.mxu0 %v9231_v1  ;;  %10995 = vmatprep.subr.mxu1 %v9214_v5  ;;  %v9267_v29 = vld [vmem:[#allocation4 + $0x670] sm:$0xff]  ;;  %v9314_v1 = vld [vmem:[#allocation4 + $0x7e8] sm:$0xff]  ;;  %v9265_v5 = vld [vmem:[#allocation4 + $0x660] sm:$0xff] }
0x1163   :  { %11030 = vmatprep.subr.mxu0 %v9246_v11  ;;  %10996 = vmatpush3.msra.mxu1 %v9198_v34  ;;  %v9297_v11 = vld [vmem:[#allocation4 + $0x760] sm:$0xff]  ;;  %v9264_v34 = vld [vmem:[#allocation4 + $0x658] sm:$0xff] }
0x1164   :  { %11031 = vmatpush3.msra.mxu0 %v9230_v18  ;;  %10997 = vmatprep.subr.mxu1 %v9213_v37  ;;  %v9296_v18 = vld [vmem:[#allocation4 + $0x758] sm:$0xff]  ;;  %v9279_v37 = vld [vmem:[#allocation4 + $0x6d0] sm:$0xff] }
0x1165   :  { %11032 = vmatprep.subr.mxu0 %v9245_v36  ;;  %10998 = vmatpush3.msra.mxu1 %v9197_v38  ;;  %v9311_v36 = vld [vmem:[#allocation4 + $0x7d0] sm:$0xff] }
0x1166   :  { %11033 = vmatpush3.msra.mxu0 %v9229_v46  ;;  %10999 = vmatprep.subr.mxu1 %v9212_v9  ;;  %v9263_v38 = vld [vmem:[#allocation4 + $0x650] sm:$0xff]  ;;  %v9278_v9 = vld [vmem:[#allocation4 + $0x6c8] sm:$0xff] }
0x1167   :  { %11034 = vmatprep.subr.mxu0 %v9244_v44  ;;  %11000 = vmatpush3.msra.mxu1 %v9196_v12  ;;  %v9295_v46 = vld [vmem:[#allocation4 + $0x750] sm:$0xff]  ;;  %v9310_v44 = vld [vmem:[#allocation4 + $0x7c8] sm:$0xff] }
0x1168   :  { %11035 = vmatpush3.msra.mxu0 %v9228_v47  ;;  %11001 = vmatprep.subr.mxu1 %v9211_v41  ;;  %v9262_v12 = vld [vmem:[#allocation4 + $0x648] sm:$0xff]  ;;  %v9277_v41 = vld [vmem:[#allocation4 + $0x6c0] sm:$0xff] }
0x1169   :  { %11036 = vmatprep.subr.mxu0 %v9243_v53  ;;  %11002 = vmatpush3.msra.mxu1 %v9195_v49  ;;  %v9294_v47 = vld [vmem:[#allocation4 + $0x748] sm:$0xff]  ;;  %v9309_v53 = vld [vmem:[#allocation4 + $0x7c0] sm:$0xff] }
0x116a   :  { %11037 = vmatpush3.msra.mxu0 %v9227_v62  ;;  %11003 = vmatprep.subr.mxu1 %v9210_v31  ;;  %v9261_v49 = vld [vmem:[#allocation4 + $0x640] sm:$0xff]  ;;  %v9276_v31 = vld [vmem:[#allocation4 + $0x6b8] sm:$0xff] }
0x116b   :  { %11038 = vmatprep.subr.mxu0 %v9242_v40  ;;  %11004 = vmatpush3.msra.mxu1 %v9194_v4  ;;  %v9293_v62 = vld [vmem:[#allocation4 + $0x740] sm:$0xff]  ;;  %v9308_v40 = vld [vmem:[#allocation4 + $0x7b8] sm:$0xff] }
0x116c   :  { %11039 = vmatpush3.msra.mxu0 %v9226_v23  ;;  %11005 = vmatprep.subr.mxu1 %v9209_v25  ;;  %v9260_v4 = vld [vmem:[#allocation4 + $0x638] sm:$0xff]  ;;  %v9275_v25 = vld [vmem:[#allocation4 + $0x6b0] sm:$0xff] }
0x116d   :  { %11040 = vmatprep.subr.mxu0 %v9241_v54  ;;  %11006 = vmatpush3.msra.mxu1 %v9193_v56  ;;  %v9292_v23 = vld [vmem:[#allocation4 + $0x738] sm:$0xff]  ;;  %v9307_v54 = vld [vmem:[#allocation4 + $0x7b0] sm:$0xff] }
0x116e   :  { %11041 = vmatpush3.msra.mxu0 %v9225_v48  ;;  %11007 = vmatprep.subr.mxu1 %v9208_v43  ;;  %v9259_v56 = vld [vmem:[#allocation4 + $0x630] sm:$0xff]  ;;  %v9274_v43 = vld [vmem:[#allocation4 + $0x6a8] sm:$0xff] }
0x116f   :  { %11042 = vmatprep.subr.mxu0 %v9240_v52  ;;  %11008 = vmatpush3.msra.mxu1 %v9192_v6  ;;  %v9291_v48 = vld [vmem:[#allocation4 + $0x730] sm:$0xff]  ;;  %v9306_v52 = vld [vmem:[#allocation4 + $0x7a8] sm:$0xff] }
0x1170   :  { %11043 = vmatpush3.msra.mxu0 %v9224_v8  ;;  %11009 = vmatprep.subr.mxu1 %v9207_v58  ;;  %v9258_v6 = vld [vmem:[#allocation4 + $0x628] sm:$0xff]  ;;  %v9273_v58 = vld [vmem:[#allocation4 + $0x6a0] sm:$0xff] }
0x1171   :  { %11044 = vmatprep.subr.mxu0 %v9239_v60  ;;  %11010 = vmatpush3.msra.mxu1 %v9191_v63  ;;  %v9290_v8 = vld [vmem:[#allocation4 + $0x728] sm:$0xff]  ;;  %v9305_v60 = vld [vmem:[#allocation4 + $0x7a0] sm:$0xff] }
0x1172   :  { %11045 = vmatpush3.msra.mxu0 %v9223_v42  ;;  %11011 = vmatprep.subr.mxu1 %v9206_v57  ;;  %v9257_v63 = vld [vmem:[#allocation4 + $0x620] sm:$0xff]  ;;  %v9272_v57 = vld [vmem:[#allocation4 + $0x698] sm:$0xff] }
0x1173   :  { %11046 = vmatprep.subr.mxu0 %v9238_v7  ;;  %11012 = vmatpush3.msra.mxu1 %v9190_v13  ;;  %v9289_v42 = vld [vmem:[#allocation4 + $0x720] sm:$0xff]  ;;  %v9304_v7 = vld [vmem:[#allocation4 + $0x798] sm:$0xff] }
0x1174   :  { %11047 = vmatpush3.msra.mxu0 %v9222_v51  ;;  %11013 = vmatprep.subr.mxu1 %v9205_v22  ;;  %v9256_v13 = vld [vmem:[#allocation4 + $0x618] sm:$0xff]  ;;  %v9271_v22 = vld [vmem:[#allocation4 + $0x690] sm:$0xff] }
0x1175   :  { %11048 = vmatprep.subr.mxu0 %v9237_v39  ;;  %11014 = vmatpush3.msra.mxu1 %v9189_v10  ;;  %v9288_v51 = vld [vmem:[#allocation4 + $0x718] sm:$0xff]  ;;  %v9303_v39 = vld [vmem:[#allocation4 + $0x790] sm:$0xff] }
0x1176   :  { %9668 = vmatprep.mubr.f32.mxu1 %v9051_v14  ;;  %11049 = vmatpush3.msra.mxu0 %v9221_v16  ;;  %v9282_v14 = vld [vmem:[#allocation4 + $0x6e8] sm:$0xff]  ;;  %v9255_v10 = vld [vmem:[#allocation4 + $0x610] sm:$0xff] }
0x1177   :  { %9669 = vmatmul.mubr.f32.vlgmr.msra.gmra.mxu1 %v9050_v50  ;;  %9738 = vmatprep.mubr.f32.mxu0 %v9053_v55  ;;  %v9298_v50 = vld [vmem:[#allocation4 + $0x768] sm:$0xff]  ;;  %v9313_v55 = vld [vmem:[#allocation4 + $0x7e0] sm:$0xff]  ;;  %v9287_v16 = vld [vmem:[#allocation4 + $0x710] sm:$0xff] }
0x1178   :  { %11053 = vmatprep.subr.mxu1 %v9284_v2  ;;  %11088 = vmatprep.subr.mxu0 %v9316_v20  ;;  %v9270_v2 = vld [vmem:[#allocation4 + $0x688] sm:$0xff] }
0x1179   :  { %9739 = vmatmul.mubr.f32.vlgmr.msra.gmra.mxu0 %v9052_v3  ;;  %11054 = vmatpush3.msra.mxu1 %v9268_v17  ;;  %v9312_v3 = vld [vmem:[#allocation4 + $0x7d8] sm:$0xff]  ;;  %v9302_v20 = vld [vmem:[#allocation4 + $0x788] sm:$0xff] }
0x117a   :  { %11089 = vmatpush3.msra.mxu0 %v9300_v19  ;;  %11055 = vmatprep.subr.mxu1 %v9283_v24  ;;  %v9254_v17 = vld [vmem:[#allocation4 + $0x608] sm:$0xff]  ;;  %v9269_v24 = vld [vmem:[#allocation4 + $0x680] sm:$0xff] }
0x117b   :  { %11090 = vmatprep.subr.mxu0 %v9315_v26  ;;  %11056 = vmatpush3.msra.mxu1 %v9267_v29  ;;  %v9286_v19 = vld [vmem:[#allocation4 + $0x708] sm:$0xff]  ;;  %v9301_v26 = vld [vmem:[#allocation4 + $0x780] sm:$0xff] }
0x117c   :  { %11091 = vmatpush3.msra.mxu0 %v9299_v32  ;;  %11057 = vmatprep.subr.mxu1 %v9282_v14  ;;  %v9253_v29 = vld [vmem:[#allocation4 + $0x600] sm:$0xff] }
0x117d   :  { %11092 = vmatprep.subr.mxu0 %v9314_v1  ;;  %11058 = vmatpush3.msra.mxu1 %v9266_v28  ;;  %v9285_v32 = vld [vmem:[#allocation4 + $0x700] sm:$0xff] }
0x117e   :  { %11093 = vmatpush3.msra.mxu0 %v9298_v50  ;;  %11059 = vmatprep.subr.mxu1 %v9281_v27 }
0x117f   :  { %11094 = vmatprep.subr.mxu0 %v9313_v55  ;;  %11060 = vmatpush3.msra.mxu1 %v9265_v5  ;;  %v10727_v55 = vld [vmem:[#allocation31] ss:$0 sm:$0xff] }
0x1180   :  { %11095 = vmatpush3.msra.mxu0 %v9297_v11  ;;  %11061 = vmatprep.subr.mxu1 %v9280_v45 }
0x1181   :  { %11096 = vmatprep.subr.mxu0 %v9312_v3  ;;  %11062 = vmatpush3.msra.mxu1 %v9264_v34 }
0x1182   :  { %11097 = vmatpush3.msra.mxu0 %v9296_v18  ;;  %11063 = vmatprep.subr.mxu1 %v9279_v37 }
0x1183   :  { %11098 = vmatprep.subr.mxu0 %v9311_v36  ;;  %11064 = vmatpush3.msra.mxu1 %v9263_v38 }
0x1184   :  { %11099 = vmatpush3.msra.mxu0 %v9295_v46  ;;  %11065 = vmatprep.subr.mxu1 %v9278_v9 }
0x1185   :  { %11100 = vmatprep.subr.mxu0 %v9310_v44  ;;  %11066 = vmatpush3.msra.mxu1 %v9262_v12 }
0x1186   :  { %11101 = vmatpush3.msra.mxu0 %v9294_v47  ;;  %11067 = vmatprep.subr.mxu1 %v9277_v41 }
0x1187   :  { %11102 = vmatprep.subr.mxu0 %v9309_v53  ;;  %11068 = vmatpush3.msra.mxu1 %v9261_v49 }
0x1188   :  { %11103 = vmatpush3.msra.mxu0 %v9293_v62  ;;  %11069 = vmatprep.subr.mxu1 %v9276_v31 }
0x1189   :  { %11104 = vmatprep.subr.mxu0 %v9308_v40  ;;  %11070 = vmatpush3.msra.mxu1 %v9260_v4 }
0x118a   :  { %11105 = vmatpush3.msra.mxu0 %v9292_v23  ;;  %11071 = vmatprep.subr.mxu1 %v9275_v25 }
0x118b   :  { %11106 = vmatprep.subr.mxu0 %v9307_v54  ;;  %11072 = vmatpush3.msra.mxu1 %v9259_v56 }
0x118c   :  { %11107 = vmatpush3.msra.mxu0 %v9291_v48  ;;  %11073 = vmatprep.subr.mxu1 %v9274_v43 }
0x118d   :  { %11108 = vmatprep.subr.mxu0 %v9306_v52  ;;  %11074 = vmatpush3.msra.mxu1 %v9258_v6 }
0x118e   :  { %11109 = vmatpush3.msra.mxu0 %v9290_v8  ;;  %11075 = vmatprep.subr.mxu1 %v9273_v58 }
0x118f   :  { %11110 = vmatprep.subr.mxu0 %v9305_v60  ;;  %11076 = vmatpush3.msra.mxu1 %v9257_v63 }
0x1190   :  { %11111 = vmatpush3.msra.mxu0 %v9289_v42  ;;  %11077 = vmatprep.subr.mxu1 %v9272_v57 }
0x1191   :  { %11112 = vmatprep.subr.mxu0 %v9304_v7  ;;  %11078 = vmatpush3.msra.mxu1 %v9256_v13 }
0x1192   :  { %11113 = vmatpush3.msra.mxu0 %v9288_v51  ;;  %11079 = vmatprep.subr.mxu1 %v9271_v22 }
0x1193   :  { %11114 = vmatprep.subr.mxu0 %v9303_v39  ;;  %11080 = vmatpush3.msra.mxu1 %v9255_v10 }
0x1194   :  { %11115 = vmatpush3.msra.mxu0 %v9287_v16  ;;  %11081 = vmatprep.subr.mxu1 %v9270_v2 }
0x1195   :  { %11116 = vmatprep.subr.mxu0 %v9302_v20  ;;  %11082 = vmatpush3.msra.mxu1 %v9254_v17 }
0x1196   :  { %11117 = vmatpush3.msra.mxu0 %v9286_v19  ;;  %11083 = vmatprep.subr.mxu1 %v9269_v24 }
0x1197   :  { %11118 = vmatprep.subr.mxu0 %v9301_v26  ;;  %11084 = vmatpush3.msra.mxu1 %v9253_v29 }
0x1198   :  { %9808 = vmatprep.mubr.f32.mxu1 %v9055_v59  ;;  %11119 = vmatpush3.msra.mxu0 %v9285_v32 }
0x1199   :  { %9878 = vmatprep.mubr.f32.mxu0 %v9057_v30  ;;  %9809 = vmatmul.mubr.f32.vlgmr.msra.gmra.mxu1 %v9054_v0 }
0x119a   :  { %9879 = vmatmul.mubr.f32.vlgmr.msra.gmra.mxu0 %v9056_v21 }
0x11f3   :  { %v10875_v14 = vpop.f32.mrf.mxu1 }
0x11f5   :  { %v10910_v1 = vpop.f32.mrf.mxu0  ;;  %v10876_v28 = vpop.f32.mrf.mxu1 }
0x11f6   :  { %v10877_v27 = vadd.f32 %v10876_v28, %v10875_v14 }
0x11f7   :  { %v10911_v5 = vpop.f32.mrf.mxu0 }
0x11f8   :  { %v9391_v59 = vadd.f32 %v10877_v27, %v10727_v55  ;;  %v10912_v45 = vadd.f32 %v10911_v5, %v10910_v1 }
0x11fa   :  { %v9461_v34 = vadd.f32 %v10912_v45, %v9391_v59 }
0x1215   :  { %v10945_v50 = vpop.f32.mrf.mxu1 }
0x1217   :  { %v10980_v11 = vpop.f32.mrf.mxu0  ;;  %v10946_v15 = vpop.f32.mrf.mxu1 }
0x1218   :  { %v10947_v35 = vadd.f32 %v10946_v15, %v10945_v50 }
0x1219   :  { %v10981_v30 = vpop.f32.mrf.mxu0 }
0x121a   :  { %v9531_v18 = vadd.f32 %v10947_v35, %v9461_v34  ;;  %v10982_v33 = vadd.f32 %v10981_v30, %v10980_v11 }
0x121c   :  { %v9601_v36 = vadd.f32 %v10982_v33, %v9531_v18 }
0x1237   :  { %v11015_v3 = vpop.f32.mrf.mxu1 }
0x1239   :  { %v11050_v61 = vpop.f32.mrf.mxu0  ;;  %v11016_v0 = vpop.f32.mrf.mxu1 }
0x123a   :  { %v11017_v21 = vadd.f32 %v11016_v0, %v11015_v3 }
0x123b   :  { %v11051_v37 = vpop.f32.mrf.mxu0 }
0x123c   :  { %v9671_v38 = vadd.f32 %v11017_v21, %v9601_v36  ;;  %v11052_v46 = vadd.f32 %v11051_v37, %v11050_v61 }
0x123e   :  { %v9741_v41 = vadd.f32 %v11052_v46, %v9671_v38 }
0x1259   :  { %v11085_v9 = vpop.f32.mrf.mxu1 }
0x125a   :  { %v11120_v44 = vpop.f32.mrf.mxu0 }
0x125b   :  { %v11086_v12 = vpop.f32.mrf.mxu1 }
0x125c   :  { %v11121_v47 = vpop.f32.mrf.mxu0  ;;  %v11087_v53 = vadd.f32 %v11086_v12, %v11085_v9 }
0x125d   :  { %v11122_v62 = vadd.f32 %v11121_v47, %v11120_v44 }
0x125e   :  { %v9811_v49 = vadd.f32 %v11087_v53, %v9741_v41 }
0x1260   :  { %v9881_v31 = vadd.f32 %v11122_v62, %v9811_v49 }
0x1262   :  { %v9885_v40 = vsel %vm9884_vm4, %v9881_v31, -inf }
0x1263   :  { %9886 = vmax.xlane.f32.xlu0 %v9885_v40 }
0x12ec   :  { %v9887_v4 = vpop.xlane.xlu0 %9886 }
0x12ed   :  { %v9888_v23 = vsub.f32 %v9881_v31, %v9887_v4 }
0x12ef   :  { %v9889_v25 = vmul.f32 1.442695, %v9888_v23 }
0x12f1   :  { %11866 = vpow2.f32 %v9889_v25 }
0x12fe   :  { %v11867_v54 = vpop.eup %11866 }
0x12ff   :  { %v9891_v56 = vsel %vm9884_vm4, %v11867_v54, 0.0 }
0x1300   :  { %9892 = vadd.xlane.f32.xlu0 %v9891_v56 }
0x1389   :  { %v9893_v48 = vpop.xlane.xlu0 %9892 }
0x138a   :  { %11868 = vlog2.f32 %v9893_v48 }
0x1397   :  { %v11869_v43 = vpop.eup %11868 }
0x1398   :  { %v9895_v52 = vmul.f32 0.6931472, %v11869_v43 }
0x139a   :  { %v9896_v6 = vsub.f32 %v9888_v23, %v9895_v52 }
0x139c   :  { %9897 = vst [vmem:[#allocation32] sm:$0x3] %v9896_v6 }
0x139d   :  { %12241 = shalt.err (!%p12238_p10)
}
0x139e   :  { %9907 = dma.vmem_to_hbm [thread:$0]  %s9905_s18, 32, %s12934_s19, [#allocation10]  }
0x139f   :  { %12272 = dma.done.wait [#allocation10], 32  }
0x13a0   :  { %12273 = vsyncadd [#allocation10], 4294967264 }
0x13a1   :  { %9911 = vsyncpa [#allocation9], 1 }
0x13a2   :  { %9912 = vsyncpa [#allocation12], 1 }
0x13a3   :  { %9913 = vsyncpa [#allocation15], 1 }
0x13a4   :  { %9914 = vsyncpa [#allocation18], 1 }
0x13a5   :  { %9915 = vsyncpa [#allocation21], 1 }
0x13a6   :  { %9916 = vsyncpa [#allocation24], 1 }
0x13a7   :  { %9917 = vsyncpa [#allocation27], 1 }
0x13a8   :  { %9918 = vsyncpa [#allocation30], 1 }
0x13a9   :  { %9919 = vsyncpa [#allocation10], 1 }
0x13aa   :  { %9920 = vsyncmov [#allocation7] }
0x13ad   :  { %s9921_s2 = vpop.sfrf %9920 }
0x13ae   :  { %p10728_p11 = scmp.ne.s32.totalorder %s9921_s2, 0 }
0x13b0   :  { %9925 = shalt.err (%p10728_p11)  }
0x13b1   :  { %9927 = vsyncmov [#allocation7 + $0x1] }
0x13b4   :  { %s9928_s13 = vpop.sfrf %9927 }
0x13b5   :  { %p10729_p12 = scmp.ne.s32.totalorder %s9928_s13, 0 }
0x13b7   :  { %9932 = shalt.err (%p10729_p12)  }
0x13b8   :  { %9934 = vsyncmov [#allocation7 + $0x2] }
0x13bb   :  { %s9935_s19 = vpop.sfrf %9934 }
0x13bc   :  { %p10730_p13 = scmp.ne.s32.totalorder %s9935_s19, 0 }
0x13be   :  { %9939 = shalt.err (%p10730_p13)  }

</bundles_post_ra>
